<compile_context>
chip_gen: v5e
topology: v5e:2x2
jax: 0.10.0
libtpu: 0.0.40
codegen_flags: <defaults>
</compile_context>

<pallas_src>
import jax
import jax.numpy as jnp
from jax import lax
from jax.experimental import pallas as pl
from jax.experimental.pallas import tpu as pltpu


def _round_up(x, m):
    return (x + m - 1) // m * m


def _pick_t_chunk(t_total, batch, max_rows=512):
    """Largest divisor of t_total whose chunk (t_chunk * batch rows) stays small."""
    best = 1
    for d in range(1, t_total + 1):
        if t_total % d == 0 and d * batch <= max_rows:
            best = d
    return best


# -----------------------------------------------------------------------------
# Pallas kernel.
# Refs (all f32, lane-padded):
#   src    (rows, Dp)        rows = t_chunk * B, row = t * B + b
#   mask   (rows, 1)
#   w_ih0  (Dp, 4Hp)  w_hh0 (Hp, 4Hp)  b0 (1, 4Hp)
#   w_cat1 (2Hp, 4Hp) b1 (1, 4Hp)                 (rows 0:Hp -> h0, Hp:2Hp -> h1)
#   fc1_w  (Hp, Hp)   fc1_b (1, Hp)   fc2_w (Hp, Op)  fc2_b (1, Op)
#   out    (rows, Op)        Op = output_dim padded to 128 lanes
# Scratch: h0, c0, h1, c1 (B, Hp)  xproj (rows, 4Hp)  hs (rows, Hp)
# -----------------------------------------------------------------------------
def _lstm_fc_kernel(src_ref, mask_ref,
                    w_ih0_ref, w_hh0_ref, b0_ref,
                    w_cat1_ref, b1_ref,
                    fc1_w_ref, fc1_b_ref, fc2_w_ref, fc2_b_ref,
                    out_ref,
                    h0_ref, c0_ref, h1_ref, c1_ref, xproj_ref, hs_ref):
    batch = h0_ref.shape[0]
    hp = h0_ref.shape[1]
    t_chunk = hs_ref.shape[0] // batch

    @pl.when(pl.program_id(0) == 0)
    def _():
        h0_ref[...] = jnp.zeros_like(h0_ref)
        c0_ref[...] = jnp.zeros_like(c0_ref)
        h1_ref[...] = jnp.zeros_like(h1_ref)
        c1_ref[...] = jnp.zeros_like(c1_ref)

    # Hoisted layer-0 input projection for the whole chunk (one big matmul),
    # combined bias (b_ih + b_hh) folded in.
    xproj_ref[...] = (
        jnp.dot(src_ref[...], w_ih0_ref[...], preferred_element_type=jnp.float32)
        + b0_ref[...])

    def gates_to_hc(g, c_prev):
        # gate slices are exact 128-lane multiples (Hp is a multiple of 128)
        i = jax.nn.sigmoid(g[:, 0 * hp:1 * hp])
        f = jax.nn.sigmoid(g[:, 1 * hp:2 * hp])
        gg = jnp.tanh(g[:, 2 * hp:3 * hp])
        o = jax.nn.sigmoid(g[:, 3 * hp:4 * hp])
        c_new = f * c_prev + i * gg
        h_new = o * jnp.tanh(c_new)
        return h_new, c_new

    def step(t, carry):
        h0, c0, h1, c1 = carry
        row = pl.multiple_of(t * batch, batch)
        # layer 0: only the recurrent matmul sits on the serial path
        g0 = xproj_ref[pl.ds(row, batch), :] + jnp.dot(
            h0, w_hh0_ref[...], preferred_element_type=jnp.float32)
        h0, c0 = gates_to_hc(g0, c0)
        # layer 1: single fused MXU push over concat([x=h0, h=h1])
        xh = jnp.concatenate([h0, h1], axis=-1)                   # (B, 2Hp)
        g1 = (jnp.dot(xh, w_cat1_ref[...], preferred_element_type=jnp.float32)
              + b1_ref[...])
        h1, c1 = gates_to_hc(g1, c1)
        hs_ref[pl.ds(row, batch), :] = h1
        return (h0, c0, h1, c1)

    carry0 = (h0_ref[...], c0_ref[...], h1_ref[...], c1_ref[...])
    h0, c0, h1, c1 = lax.fori_loop(0, t_chunk, step, carry0, unroll=True)
    # state carried across chunks via scratch refs (written once per chunk)
    h0_ref[...] = h0
    c0_ref[...] = c0
    h1_ref[...] = h1
    c1_ref[...] = c1

    # Hoisted fc_out over the stacked chunk (packed-seq mask applied first).
    hm = hs_ref[...] * mask_ref[...]                              # (rows, Hp)
    z = jnp.maximum(
        jnp.dot(hm, fc1_w_ref[...], preferred_element_type=jnp.float32)
        + fc1_b_ref[...], 0.0)
    y = (jnp.dot(z, fc2_w_ref[...], preferred_element_type=jnp.float32)
         + fc2_b_ref[...])
    out_ref[...] = y.astype(out_ref.dtype)


def lstm_fc_pallas(src_2d, mask_2d, kp, *, t_total, batch, t_chunk,
                   hid_pad, out_pad):
    """src_2d: (T*B, Dp) f32, mask_2d: (T*B, 1) f32 -> (T*B, out_pad) f32."""
    rows = t_chunk * batch
    n_chunks = t_total // t_chunk
    d_pad = src_2d.shape[-1]

    def full_spec(arr):
        nd = arr.ndim
        return pl.BlockSpec(arr.shape, lambda c, _n=nd: (0,) * _n)

    in_specs = [
        pl.BlockSpec((rows, d_pad), lambda c: (c, 0)),   # src chunk
        pl.BlockSpec((rows, 1), lambda c: (c, 0)),       # mask chunk
        full_spec(kp["w_ih0"]), full_spec(kp["w_hh0"]), full_spec(kp["b0"]),
        full_spec(kp["w_cat1"]), full_spec(kp["b1"]),
        full_spec(kp["fc1_w"]), full_spec(kp["fc1_b"]),
        full_spec(kp["fc2_w"]), full_spec(kp["fc2_b"]),
    ]
    out_spec = pl.BlockSpec((rows, out_pad), lambda c: (c, 0))

    return pl.pallas_call(
        _lstm_fc_kernel,
        out_shape=jax.ShapeDtypeStruct((t_total * batch, out_pad), jnp.float32),
        grid_spec=pltpu.PrefetchScalarGridSpec(
            num_scalar_prefetch=0,
            grid=(n_chunks,),
            in_specs=in_specs,
            out_specs=out_spec,
            scratch_shapes=[
                pltpu.VMEM((batch, hid_pad), jnp.float32),       # h0
                pltpu.VMEM((batch, hid_pad), jnp.float32),       # c0
                pltpu.VMEM((batch, hid_pad), jnp.float32),       # h1
                pltpu.VMEM((batch, hid_pad), jnp.float32),       # c1
                pltpu.VMEM((rows, 4 * hid_pad), jnp.float32),    # xproj
                pltpu.VMEM((rows, hid_pad), jnp.float32),        # hs
            ]),
        compiler_params=pltpu.CompilerParams(
            dimension_semantics=("arbitrary",)),                 # recurrent axis
    )(src_2d, mask_2d,
      kp["w_ih0"], kp["w_hh0"], kp["b0"],
      kp["w_cat1"], kp["b1"],
      kp["fc1_w"], kp["fc1_b"], kp["fc2_w"], kp["fc2_b"])


# -----------------------------------------------------------------------------
# Module wrapper (glue in plain JAX, hot path in the Pallas kernel).
# -----------------------------------------------------------------------------
class LSTMPallas:
    def __init__(self, gnn_embed_dim, hid_dim, n_layers, dropout,
                 pack_mode=True, compression_rate=10, max_story=8, key=None):
        assert compression_rate % 10 == 0 and compression_rate >= 10
        assert n_layers == 2, "this synthetic kernel hardcodes n_layers=2"
        self.gnn_embed_dim = gnn_embed_dim
        self.hid_dim = hid_dim
        self.n_layers = n_layers
        self.dropout = dropout
        self.pack_mode = pack_mode
        self.compression_rate = compression_rate
        self.output_compression_rate = compression_rate // 10
        self.max_story = max_story
        self.output_dim = max_story * self.output_compression_rate
        self.input_size = gnn_embed_dim + compression_rate
        # lane-aligned padded sizes used by the kernel
        self.hid_pad = _round_up(hid_dim, 128)
        self.input_pad = _round_up(self.input_size, 128)
        self.out_pad = _round_up(self.output_dim, 128)
        key = key if key is not None else jax.random.PRNGKey(0)
        self.params = self._init_params(key)           # unpadded (reference layout)
        self.kparams = self._pad_params(self.params)   # padded kernel layout

    def _init_params(self, key):
        H, D_in, out_dim = self.hid_dim, self.input_size, self.output_dim
        k = 1.0 / jnp.sqrt(H)
        keys = jax.random.split(key, 12)
        u = lambda kk, shape: jax.random.uniform(kk, shape, jnp.float32, -k, k)
        # LSTM layer 0 (input D_in) and layer 1 (input H); weights stored
        # pre-transposed so kernel does x @ W, gate order (i, f, g, o).
        w_ih0 = u(keys[0], (D_in, 4 * H))
        w_hh0 = u(keys[1], (H, 4 * H))
        b0 = u(keys[2], (1, 4 * H)) + u(keys[3], (1, 4 * H))   # b_ih + b_hh
        w_ih1 = u(keys[4], (H, 4 * H))
        w_hh1 = u(keys[5], (H, 4 * H))
        b1 = u(keys[6], (1, 4 * H)) + u(keys[7], (1, 4 * H))
        fc1_w = u(keys[8], (H, H))
        fc1_b = u(keys[9], (1, H))
        fc2_w = u(keys[10], (H, out_dim))
        fc2_b = u(keys[11], (1, out_dim))
        return dict(w_ih0=w_ih0, w_hh0=w_hh0, b0=b0,
                    w_ih1=w_ih1, w_hh1=w_hh1, b1=b1,
                    fc1_w=fc1_w, fc1_b=fc1_b, fc2_w=fc2_w, fc2_b=fc2_b)

    def _pad_params(self, p):
        """Zero-pad each gate block / hidden width to Hp (mult. of 128 lanes),
        the input-feature axis to Dp and the fc2 output axis to Op.  Padded
        columns of h/c stay exactly 0 (zero weights+bias -> i*g = 0, f*c = 0),
        so results are unchanged."""
        H, Hp, Dp, Op = self.hid_dim, self.hid_pad, self.input_pad, self.out_pad
        dH = Hp - H

        def pad_gate_cols(w):
            kdim = w.shape[0]
            return jnp.pad(w.reshape(kdim, 4, H),
                           ((0, 0), (0, 0), (0, dH))).reshape(kdim, 4 * Hp)

        w_ih0 = pad_gate_cols(
            jnp.pad(p["w_ih0"], ((0, Dp - self.input_size), (0, 0))))   # (Dp, 4Hp)
        w_hh0 = pad_gate_cols(jnp.pad(p["w_hh0"], ((0, dH), (0, 0))))   # (Hp, 4Hp)
        b0 = pad_gate_cols(p["b0"])                                     # (1, 4Hp)
        w_ih1 = pad_gate_cols(jnp.pad(p["w_ih1"], ((0, dH), (0, 0))))
        w_hh1 = pad_gate_cols(jnp.pad(p["w_hh1"], ((0, dH), (0, 0))))
        w_cat1 = jnp.concatenate([w_ih1, w_hh1], axis=0)                # (2Hp, 4Hp)
        b1 = pad_gate_cols(p["b1"])
        fc1_w = jnp.pad(p["fc1_w"], ((0, dH), (0, dH)))                 # (Hp, Hp)
        fc1_b = jnp.pad(p["fc1_b"], ((0, 0), (0, dH)))                  # (1, Hp)
        fc2_w = jnp.pad(p["fc2_w"], ((0, dH), (0, Op - self.output_dim)))  # (Hp, Op)
        fc2_b = jnp.pad(p["fc2_b"], ((0, 0), (0, Op - self.output_dim)))   # (1, Op)
        return dict(w_ih0=w_ih0, w_hh0=w_hh0, b0=b0, w_cat1=w_cat1, b1=b1,
                    fc1_w=fc1_w, fc1_b=fc1_b, fc2_w=fc2_w, fc2_b=fc2_b)

    def __call__(self, ground_motion, gnn_embedding, seq_length_list=None):
        B = ground_motion.shape[0]
        original_src_seq_len = ground_motion.shape[-1]
        original_trg_seq_len = original_src_seq_len // 10
        assert original_src_seq_len % self.compression_rate == 0
        T = original_src_seq_len // self.compression_rate

        gm = ground_motion.reshape(B, T, self.compression_rate)
        gnn = jnp.repeat(gnn_embedding[:, None, :], T, axis=1)
        src = jnp.concatenate([gm, gnn], axis=-1).astype(jnp.float32)   # (B,T,D)

        if self.pack_mode:
            comp_len = (seq_length_list // self.compression_rate).astype(jnp.int32)
            mask = (jnp.arange(T)[None, :] < comp_len[:, None]).astype(jnp.float32)
        else:
            mask = jnp.ones((B, T), jnp.float32)

        # pad batch to the f32 sublane count (8) and features to 128 lanes
        B_pad = _round_up(max(B, 8), 8)
        src = jnp.pad(src, ((0, B_pad - B), (0, 0),
                            (0, self.input_pad - self.input_size)))
        mask = jnp.pad(mask, ((0, B_pad - B), (0, 0)))

        # time-major, flattened to lane-friendly 2-D slabs (row = t*B_pad + b)
        src_2d = jnp.transpose(src, (1, 0, 2)).reshape(T * B_pad, self.input_pad)
        mask_2d = jnp.transpose(mask, (1, 0)).reshape(T * B_pad, 1)

        t_chunk = _pick_t_chunk(T, B_pad)
        out_2d = lstm_fc_pallas(src_2d, mask_2d, self.kparams,
                                t_total=T, batch=B_pad, t_chunk=t_chunk,
                                hid_pad=self.hid_pad,
                                out_pad=self.out_pad)                   # (T*Bp, Op)
        out = out_2d.reshape(T, B_pad, self.out_pad)
        out = jnp.transpose(out, (1, 0, 2))[:B, :, :self.output_dim]    # (B, T, O)
        return out.reshape(B, original_trg_seq_len, self.max_story)


# -----------------------------------------------------------------------------
# Pure-JAX reference (unpadded params) for a correctness check of the kernel.
# -----------------------------------------------------------------------------
def reference_forward(model, ground_motion, gnn_embedding, seq_length_list):
    p = model.params
    B = ground_motion.shape[0]
    L = ground_motion.shape[-1]
    T = L // model.compression_rate
    H = model.hid_dim
    gm = ground_motion.reshape(B, T, model.compression_rate)
    gnn = jnp.repeat(gnn_embedding[:, None, :], T, axis=1)
    src = jnp.concatenate([gm, gnn], axis=-1).astype(jnp.float32)

    def cell(x, h, c, w_ih, w_hh, b):
        g = x @ w_ih + h @ w_hh + b
        i = jax.nn.sigmoid(g[:, :H]); f = jax.nn.sigmoid(g[:, H:2 * H])
        gg = jnp.tanh(g[:, 2 * H:3 * H]); o = jax.nn.sigmoid(g[:, 3 * H:])
        c = f * c + i * gg
        return o * jnp.tanh(c), c

    def step(carry, x):
        h0, c0, h1, c1 = carry
        h0, c0 = cell(x, h0, c0, p["w_ih0"], p["w_hh0"], p["b0"])
        h1, c1 = cell(h0, h1, c1, p["w_ih1"], p["w_hh1"], p["b1"])
        return (h0, c0, h1, c1), h1

    z = jnp.zeros((B, H), jnp.float32)
    _, hs = lax.scan(step, (z, z, z, z), jnp.transpose(src, (1, 0, 2)))
    hs = jnp.transpose(hs, (1, 0, 2))                            # (B, T, H)
    comp_len = (seq_length_list // model.compression_rate).astype(jnp.int32)
    mask = (jnp.arange(T)[None, :] < comp_len[:, None]).astype(jnp.float32)
    hs = hs * mask[:, :, None]
    y = jnp.maximum(hs @ p["fc1_w"] + p["fc1_b"], 0.0) @ p["fc2_w"] + p["fc2_b"]
    return y.reshape(B, L // 10, model.max_story)


if __name__ == "__main__":
    key = jax.random.PRNGKey(0)
    k_gm, k_gnn, k_param = jax.random.split(key, 3)

    # Small config consistent with the module.
    B = 2
    gnn_embed_dim = 32
    hid_dim = 32
    n_layers = 2
    compression_rate = 10
    max_story = 8
    original_src_seq_len = 80           # -> compressed_seq_len = 8, trg_len = 8

    ground_motion = jax.random.normal(k_gm, (B, original_src_seq_len), jnp.float32)
    gnn_embedding = jax.random.normal(k_gnn, (B, gnn_embed_dim), jnp.float32)
    seq_length_list = jnp.array([80, 50], jnp.int32)   # variable lengths (packed)

    model = LSTMPallas(gnn_embed_dim, hid_dim, n_layers, dropout=0.0,
                       pack_mode=True, compression_rate=compression_rate,
                       max_story=max_story, key=k_param)

    out = model(ground_motion, gnn_embedding, seq_length_list)
    out = jax.block_until_ready(out)

    with jax.default_matmul_precision("highest"):
        ref = reference_forward(model, ground_motion, gnn_embedding,
                                seq_length_list)
        ref = jax.block_until_ready(ref)

    assert out.shape == (B, original_src_seq_len // 10, max_story), out.shape
    # tolerance accommodates MXU multi-pass f32 rounding vs the XLA reference
    assert jnp.allclose(out, ref, atol=5e-3, rtol=5e-3), \
        float(jnp.max(jnp.abs(out - ref)))

    print("KERNEL_OK")
</pallas_src>

<mosaic_0001>
module attributes {stable_mosaic.version = 11 : i64} {
  func.func @_lstm_fc_kernel(%arg0: i32, %arg1: memref<64x128xf32, #tpu.memory_space<vmem>>, %arg2: memref<64x1xf32, #tpu.memory_space<vmem>>, %arg3: memref<128x512xf32, #tpu.memory_space<vmem>>, %arg4: memref<128x512xf32, #tpu.memory_space<vmem>>, %arg5: memref<1x512xf32, #tpu.memory_space<vmem>>, %arg6: memref<256x512xf32, #tpu.memory_space<vmem>>, %arg7: memref<1x512xf32, #tpu.memory_space<vmem>>, %arg8: memref<128x128xf32, #tpu.memory_space<vmem>>, %arg9: memref<1x128xf32, #tpu.memory_space<vmem>>, %arg10: memref<128x128xf32, #tpu.memory_space<vmem>>, %arg11: memref<1x128xf32, #tpu.memory_space<vmem>>, %arg12: memref<64x128xf32, #tpu.memory_space<vmem>>, %arg13: memref<8x128xf32, #tpu.memory_space<vmem>>, %arg14: memref<8x128xf32, #tpu.memory_space<vmem>>, %arg15: memref<8x128xf32, #tpu.memory_space<vmem>>, %arg16: memref<8x128xf32, #tpu.memory_space<vmem>>, %arg17: memref<64x512xf32, #tpu.memory_space<vmem>>, %arg18: memref<64x128xf32, #tpu.memory_space<vmem>>) attributes {dimension_semantics = [#tpu.dimension_semantics<arbitrary>], iteration_bounds = array<i64: 1>, scalar_prefetch = 0 : i64, scratch_operands = 6 : i64, tpu.core_type = #tpu.core_type<tc>, window_params = [{transform_indices = @transform_0, window_bounds = array<i64: 64, 128>}, {transform_indices = @transform_1, window_bounds = array<i64: 64, 1>}, {pipeline_mode = #tpu.pipeline_mode<synchronous>, transform_indices = @transform_2, window_bounds = array<i64: 128, 512>}, {pipeline_mode = #tpu.pipeline_mode<synchronous>, transform_indices = @transform_3, window_bounds = array<i64: 128, 512>}, {pipeline_mode = #tpu.pipeline_mode<synchronous>, transform_indices = @transform_4, window_bounds = array<i64: 1, 512>}, {pipeline_mode = #tpu.pipeline_mode<synchronous>, transform_indices = @transform_5, window_bounds = array<i64: 256, 512>}, {pipeline_mode = #tpu.pipeline_mode<synchronous>, transform_indices = @transform_6, window_bounds = array<i64: 1, 512>}, {pipeline_mode = #tpu.pipeline_mode<synchronous>, transform_indices = @transform_7, window_bounds = array<i64: 128, 128>}, {pipeline_mode = #tpu.pipeline_mode<synchronous>, transform_indices = @transform_8, window_bounds = array<i64: 1, 128>}, {pipeline_mode = #tpu.pipeline_mode<synchronous>, transform_indices = @transform_9, window_bounds = array<i64: 128, 128>}, {pipeline_mode = #tpu.pipeline_mode<synchronous>, transform_indices = @transform_10, window_bounds = array<i64: 1, 128>}, {transform_indices = @transform_11, window_bounds = array<i64: 64, 128>}]} {
    %c0_i32 = arith.constant 0 : i32
    %0 = arith.cmpi eq, %arg0, %c0_i32 : i32
    %1 = arith.extui %0 : i1 to i32
    %c0_i32_0 = arith.constant 0 : i32
    %2 = arith.cmpi ne, %1, %c0_i32_0 : i32
    scf.if %2 {
      %cst_178 = arith.constant 0.000000e+00 : f32
      %555 = vector.broadcast %cst_178 : f32 to vector<8x128xf32>
      %c0_179 = arith.constant 0 : index
      %c0_180 = arith.constant 0 : index
      %556 = vector.load %arg13[%c0_179, %c0_180] : memref<8x128xf32, #tpu.memory_space<vmem>>, vector<8x128xf32>
      tpu.vector_store %arg13[%c0_179, %c0_180], %555 {strides = array<i32>} : memref<8x128xf32, #tpu.memory_space<vmem>>, vector<8x128xf32>,
      %cst_181 = arith.constant 0.000000e+00 : f32
      %557 = vector.broadcast %cst_181 : f32 to vector<8x128xf32>
      %c0_182 = arith.constant 0 : index
      %c0_183 = arith.constant 0 : index
      %558 = vector.load %arg14[%c0_182, %c0_183] : memref<8x128xf32, #tpu.memory_space<vmem>>, vector<8x128xf32>
      tpu.vector_store %arg14[%c0_182, %c0_183], %557 {strides = array<i32>} : memref<8x128xf32, #tpu.memory_space<vmem>>, vector<8x128xf32>,
      %cst_184 = arith.constant 0.000000e+00 : f32
      %559 = vector.broadcast %cst_184 : f32 to vector<8x128xf32>
      %c0_185 = arith.constant 0 : index
      %c0_186 = arith.constant 0 : index
      %560 = vector.load %arg15[%c0_185, %c0_186] : memref<8x128xf32, #tpu.memory_space<vmem>>, vector<8x128xf32>
      tpu.vector_store %arg15[%c0_185, %c0_186], %559 {strides = array<i32>} : memref<8x128xf32, #tpu.memory_space<vmem>>, vector<8x128xf32>,
      %cst_187 = arith.constant 0.000000e+00 : f32
      %561 = vector.broadcast %cst_187 : f32 to vector<8x128xf32>
      %c0_188 = arith.constant 0 : index
      %c0_189 = arith.constant 0 : index
      %562 = vector.load %arg16[%c0_188, %c0_189] : memref<8x128xf32, #tpu.memory_space<vmem>>, vector<8x128xf32>
      tpu.vector_store %arg16[%c0_188, %c0_189], %561 {strides = array<i32>} : memref<8x128xf32, #tpu.memory_space<vmem>>, vector<8x128xf32>,
    } else {
    }
    %c0 = arith.constant 0 : index
    %c0_1 = arith.constant 0 : index
    %3 = vector.load %arg1[%c0, %c0_1] : memref<64x128xf32, #tpu.memory_space<vmem>>, vector<64x128xf32>
    %c0_2 = arith.constant 0 : index
    %c0_3 = arith.constant 0 : index
    %4 = vector.load %arg3[%c0_2, %c0_3] : memref<128x512xf32, #tpu.memory_space<vmem>>, vector<128x512xf32>
    %cst = arith.constant dense<0.000000e+00> : vector<64x512xf32>
    %5 = tpu.matmul %3, %4, %cst {dimension_numbers = #tpu.dot_dimension_numbers<[1], [0], [0], [1], [0, 0, 1, 1], [], []>} : vector<64x128xf32>, vector<128x512xf32>, vector<64x512xf32> -> vector<64x512xf32>
    %c0_4 = arith.constant 0 : index
    %c0_5 = arith.constant 0 : index
    %6 = vector.load %arg5[%c0_4, %c0_5] : memref<1x512xf32, #tpu.memory_space<vmem>>, vector<1x512xf32>
    %7 = vector.broadcast %6 : vector<1x512xf32> to vector<64x512xf32>
    %8 = arith.addf %5, %7 : vector<64x512xf32>
    %c0_6 = arith.constant 0 : index
    %c0_7 = arith.constant 0 : index
    %9 = vector.load %arg17[%c0_6, %c0_7] : memref<64x512xf32, #tpu.memory_space<vmem>>, vector<64x512xf32>
    tpu.vector_store %arg17[%c0_6, %c0_7], %8 {strides = array<i32>} : memref<64x512xf32, #tpu.memory_space<vmem>>, vector<64x512xf32>,
    %c0_8 = arith.constant 0 : index
    %c0_9 = arith.constant 0 : index
    %10 = vector.load %arg13[%c0_8, %c0_9] : memref<8x128xf32, #tpu.memory_space<vmem>>, vector<8x128xf32>
    %c0_10 = arith.constant 0 : index
    %c0_11 = arith.constant 0 : index
    %11 = vector.load %arg14[%c0_10, %c0_11] : memref<8x128xf32, #tpu.memory_space<vmem>>, vector<8x128xf32>
    %c0_12 = arith.constant 0 : index
    %c0_13 = arith.constant 0 : index
    %12 = vector.load %arg15[%c0_12, %c0_13] : memref<8x128xf32, #tpu.memory_space<vmem>>, vector<8x128xf32>
    %c0_14 = arith.constant 0 : index
    %c0_15 = arith.constant 0 : index
    %13 = vector.load %arg16[%c0_14, %c0_15] : memref<8x128xf32, #tpu.memory_space<vmem>>, vector<8x128xf32>
    %c0_i32_16 = arith.constant 0 : i32
    %c8_i32 = arith.constant 8 : i32
    %14 = arith.muli %c0_i32_16, %c8_i32 : i32
    %15 = tpu.assume_multiple %14, 8 : i32
    %16 = arith.index_cast %15 : i32 to index
    %c0_17 = arith.constant 0 : index
    %17 = vector.load %arg17[%16, %c0_17] : memref<64x512xf32, #tpu.memory_space<vmem>>, vector<8x512xf32>
    %c0_18 = arith.constant 0 : index
    %c0_19 = arith.constant 0 : index
    %18 = vector.load %arg4[%c0_18, %c0_19] : memref<128x512xf32, #tpu.memory_space<vmem>>, vector<128x512xf32>
    %cst_20 = arith.constant dense<0.000000e+00> : vector<8x512xf32>
    %19 = tpu.matmul %10, %18, %cst_20 {dimension_numbers = #tpu.dot_dimension_numbers<[1], [0], [0], [1], [0, 0, 1, 1], [], []>} : vector<8x128xf32>, vector<128x512xf32>, vector<8x512xf32> -> vector<8x512xf32>
    %20 = arith.addf %17, %19 : vector<8x512xf32>
    %21 = vector.extract_strided_slice %20 {offsets = [0, 0], sizes = [8, 128], strides = [1, 1]} : vector<8x512xf32> to vector<8x128xf32>
    %22 = arith.negf %21 : vector<8x128xf32>
    %23 = math.exp %22 : vector<8x128xf32>
    %cst_21 = arith.constant 1.000000e+00 : f32
    %24 = vector.broadcast %cst_21 : f32 to vector<8x128xf32>
    %25 = arith.addf %24, %23 : vector<8x128xf32>
    %26 = arith.divf %24, %25 : vector<8x128xf32>
    %27 = vector.extract_strided_slice %20 {offsets = [0, 128], sizes = [8, 128], strides = [1, 1]} : vector<8x512xf32> to vector<8x128xf32>
    %28 = arith.negf %27 : vector<8x128xf32>
    %29 = math.exp %28 : vector<8x128xf32>
    %cst_22 = arith.constant 1.000000e+00 : f32
    %30 = vector.broadcast %cst_22 : f32 to vector<8x128xf32>
    %31 = arith.addf %30, %29 : vector<8x128xf32>
    %32 = arith.divf %30, %31 : vector<8x128xf32>
    %33 = vector.extract_strided_slice %20 {offsets = [0, 256], sizes = [8, 128], strides = [1, 1]} : vector<8x512xf32> to vector<8x128xf32>
    %34 = math.tanh %33 : vector<8x128xf32>
    %35 = vector.extract_strided_slice %20 {offsets = [0, 384], sizes = [8, 128], strides = [1, 1]} : vector<8x512xf32> to vector<8x128xf32>
    %36 = arith.negf %35 : vector<8x128xf32>
    %37 = math.exp %36 : vector<8x128xf32>
    %cst_23 = arith.constant 1.000000e+00 : f32
    %38 = vector.broadcast %cst_23 : f32 to vector<8x128xf32>
    %39 = arith.addf %38, %37 : vector<8x128xf32>
    %40 = arith.divf %38, %39 : vector<8x128xf32>
    %41 = arith.mulf %32, %11 : vector<8x128xf32>
    %42 = arith.mulf %26, %34 : vector<8x128xf32>
    %43 = arith.addf %41, %42 : vector<8x128xf32>
    %44 = math.tanh %43 : vector<8x128xf32>
    %45 = arith.mulf %40, %44 : vector<8x128xf32>
    %46 = tpu.concatenate %45, %12 in 1 : vector<8x128xf32>, vector<8x128xf32> -> vector<8x256xf32>
    %c0_24 = arith.constant 0 : index
    %c0_25 = arith.constant 0 : index
    %47 = vector.load %arg6[%c0_24, %c0_25] : memref<256x512xf32, #tpu.memory_space<vmem>>, vector<256x512xf32>
    %cst_26 = arith.constant dense<0.000000e+00> : vector<8x512xf32>
    %48 = tpu.matmul %46, %47, %cst_26 {dimension_numbers = #tpu.dot_dimension_numbers<[1], [0], [0], [1], [0, 0, 1, 1], [], []>} : vector<8x256xf32>, vector<256x512xf32>, vector<8x512xf32> -> vector<8x512xf32>
    %c0_27 = arith.constant 0 : index
    %c0_28 = arith.constant 0 : index
    %49 = vector.load %arg7[%c0_27, %c0_28] : memref<1x512xf32, #tpu.memory_space<vmem>>, vector<1x512xf32>
    %50 = vector.broadcast %49 : vector<1x512xf32> to vector<8x512xf32>
    %51 = arith.addf %48, %50 : vector<8x512xf32>
    %52 = vector.extract_strided_slice %51 {offsets = [0, 0], sizes = [8, 128], strides = [1, 1]} : vector<8x512xf32> to vector<8x128xf32>
    %53 = arith.negf %52 : vector<8x128xf32>
    %54 = math.exp %53 : vector<8x128xf32>
    %cst_29 = arith.constant 1.000000e+00 : f32
    %55 = vector.broadcast %cst_29 : f32 to vector<8x128xf32>
    %56 = arith.addf %55, %54 : vector<8x128xf32>
    %57 = arith.divf %55, %56 : vector<8x128xf32>
    %58 = vector.extract_strided_slice %51 {offsets = [0, 128], sizes = [8, 128], strides = [1, 1]} : vector<8x512xf32> to vector<8x128xf32>
    %59 = arith.negf %58 : vector<8x128xf32>
    %60 = math.exp %59 : vector<8x128xf32>
    %cst_30 = arith.constant 1.000000e+00 : f32
    %61 = vector.broadcast %cst_30 : f32 to vector<8x128xf32>
    %62 = arith.addf %61, %60 : vector<8x128xf32>
    %63 = arith.divf %61, %62 : vector<8x128xf32>
    %64 = vector.extract_strided_slice %51 {offsets = [0, 256], sizes = [8, 128], strides = [1, 1]} : vector<8x512xf32> to vector<8x128xf32>
    %65 = math.tanh %64 : vector<8x128xf32>
    %66 = vector.extract_strided_slice %51 {offsets = [0, 384], sizes = [8, 128], strides = [1, 1]} : vector<8x512xf32> to vector<8x128xf32>
    %67 = arith.negf %66 : vector<8x128xf32>
    %68 = math.exp %67 : vector<8x128xf32>
    %cst_31 = arith.constant 1.000000e+00 : f32
    %69 = vector.broadcast %cst_31 : f32 to vector<8x128xf32>
    %70 = arith.addf %69, %68 : vector<8x128xf32>
    %71 = arith.divf %69, %70 : vector<8x128xf32>
    %72 = arith.mulf %63, %13 : vector<8x128xf32>
    %73 = arith.mulf %57, %65 : vector<8x128xf32>
    %74 = arith.addf %72, %73 : vector<8x128xf32>
    %75 = math.tanh %74 : vector<8x128xf32>
    %76 = arith.mulf %71, %75 : vector<8x128xf32>
    %77 = arith.index_cast %15 : i32 to index
    %c0_32 = arith.constant 0 : index
    %78 = vector.load %arg18[%77, %c0_32] : memref<64x128xf32, #tpu.memory_space<vmem>>, vector<8x128xf32>
    tpu.vector_store %arg18[%77, %c0_32], %76 {strides = array<i32>} : memref<64x128xf32, #tpu.memory_space<vmem>>, vector<8x128xf32>,
    %c1_i32 = arith.constant 1 : i32
    %c8_i32_33 = arith.constant 8 : i32
    %79 = arith.muli %c1_i32, %c8_i32_33 : i32
    %80 = tpu.assume_multiple %79, 8 : i32
    %81 = arith.index_cast %80 : i32 to index
    %c0_34 = arith.constant 0 : index
    %82 = vector.load %arg17[%81, %c0_34] : memref<64x512xf32, #tpu.memory_space<vmem>>, vector<8x512xf32>
    %c0_35 = arith.constant 0 : index
    %c0_36 = arith.constant 0 : index
    %83 = vector.load %arg4[%c0_35, %c0_36] : memref<128x512xf32, #tpu.memory_space<vmem>>, vector<128x512xf32>
    %cst_37 = arith.constant dense<0.000000e+00> : vector<8x512xf32>
    %84 = tpu.matmul %45, %83, %cst_37 {dimension_numbers = #tpu.dot_dimension_numbers<[1], [0], [0], [1], [0, 0, 1, 1], [], []>} : vector<8x128xf32>, vector<128x512xf32>, vector<8x512xf32> -> vector<8x512xf32>
    %85 = arith.addf %82, %84 : vector<8x512xf32>
    %86 = vector.extract_strided_slice %85 {offsets = [0, 0], sizes = [8, 128], strides = [1, 1]} : vector<8x512xf32> to vector<8x128xf32>
    %87 = arith.negf %86 : vector<8x128xf32>
    %88 = math.exp %87 : vector<8x128xf32>
    %cst_38 = arith.constant 1.000000e+00 : f32
    %89 = vector.broadcast %cst_38 : f32 to vector<8x128xf32>
    %90 = arith.addf %89, %88 : vector<8x128xf32>
    %91 = arith.divf %89, %90 : vector<8x128xf32>
    %92 = vector.extract_strided_slice %85 {offsets = [0, 128], sizes = [8, 128], strides = [1, 1]} : vector<8x512xf32> to vector<8x128xf32>
    %93 = arith.negf %92 : vector<8x128xf32>
    %94 = math.exp %93 : vector<8x128xf32>
    %cst_39 = arith.constant 1.000000e+00 : f32
    %95 = vector.broadcast %cst_39 : f32 to vector<8x128xf32>
    %96 = arith.addf %95, %94 : vector<8x128xf32>
    %97 = arith.divf %95, %96 : vector<8x128xf32>
    %98 = vector.extract_strided_slice %85 {offsets = [0, 256], sizes = [8, 128], strides = [1, 1]} : vector<8x512xf32> to vector<8x128xf32>
    %99 = math.tanh %98 : vector<8x128xf32>
    %100 = vector.extract_strided_slice %85 {offsets = [0, 384], sizes = [8, 128], strides = [1, 1]} : vector<8x512xf32> to vector<8x128xf32>
    %101 = arith.negf %100 : vector<8x128xf32>
    %102 = math.exp %101 : vector<8x128xf32>
    %cst_40 = arith.constant 1.000000e+00 : f32
    %103 = vector.broadcast %cst_40 : f32 to vector<8x128xf32>
    %104 = arith.addf %103, %102 : vector<8x128xf32>
    %105 = arith.divf %103, %104 : vector<8x128xf32>
    %106 = arith.mulf %97, %43 : vector<8x128xf32>
    %107 = arith.mulf %91, %99 : vector<8x128xf32>
    %108 = arith.addf %106, %107 : vector<8x128xf32>
    %109 = math.tanh %108 : vector<8x128xf32>
    %110 = arith.mulf %105, %109 : vector<8x128xf32>
    %111 = tpu.concatenate %110, %76 in 1 : vector<8x128xf32>, vector<8x128xf32> -> vector<8x256xf32>
    %c0_41 = arith.constant 0 : index
    %c0_42 = arith.constant 0 : index
    %112 = vector.load %arg6[%c0_41, %c0_42] : memref<256x512xf32, #tpu.memory_space<vmem>>, vector<256x512xf32>
    %cst_43 = arith.constant dense<0.000000e+00> : vector<8x512xf32>
    %113 = tpu.matmul %111, %112, %cst_43 {dimension_numbers = #tpu.dot_dimension_numbers<[1], [0], [0], [1], [0, 0, 1, 1], [], []>} : vector<8x256xf32>, vector<256x512xf32>, vector<8x512xf32> -> vector<8x512xf32>
    %c0_44 = arith.constant 0 : index
    %c0_45 = arith.constant 0 : index
    %114 = vector.load %arg7[%c0_44, %c0_45] : memref<1x512xf32, #tpu.memory_space<vmem>>, vector<1x512xf32>
    %115 = vector.broadcast %114 : vector<1x512xf32> to vector<8x512xf32>
    %116 = arith.addf %113, %115 : vector<8x512xf32>
    %117 = vector.extract_strided_slice %116 {offsets = [0, 0], sizes = [8, 128], strides = [1, 1]} : vector<8x512xf32> to vector<8x128xf32>
    %118 = arith.negf %117 : vector<8x128xf32>
    %119 = math.exp %118 : vector<8x128xf32>
    %cst_46 = arith.constant 1.000000e+00 : f32
    %120 = vector.broadcast %cst_46 : f32 to vector<8x128xf32>
    %121 = arith.addf %120, %119 : vector<8x128xf32>
    %122 = arith.divf %120, %121 : vector<8x128xf32>
    %123 = vector.extract_strided_slice %116 {offsets = [0, 128], sizes = [8, 128], strides = [1, 1]} : vector<8x512xf32> to vector<8x128xf32>
    %124 = arith.negf %123 : vector<8x128xf32>
    %125 = math.exp %124 : vector<8x128xf32>
    %cst_47 = arith.constant 1.000000e+00 : f32
    %126 = vector.broadcast %cst_47 : f32 to vector<8x128xf32>
    %127 = arith.addf %126, %125 : vector<8x128xf32>
    %128 = arith.divf %126, %127 : vector<8x128xf32>
    %129 = vector.extract_strided_slice %116 {offsets = [0, 256], sizes = [8, 128], strides = [1, 1]} : vector<8x512xf32> to vector<8x128xf32>
    %130 = math.tanh %129 : vector<8x128xf32>
    %131 = vector.extract_strided_slice %116 {offsets = [0, 384], sizes = [8, 128], strides = [1, 1]} : vector<8x512xf32> to vector<8x128xf32>
    %132 = arith.negf %131 : vector<8x128xf32>
    %133 = math.exp %132 : vector<8x128xf32>
    %cst_48 = arith.constant 1.000000e+00 : f32
    %134 = vector.broadcast %cst_48 : f32 to vector<8x128xf32>
    %135 = arith.addf %134, %133 : vector<8x128xf32>
    %136 = arith.divf %134, %135 : vector<8x128xf32>
    %137 = arith.mulf %128, %74 : vector<8x128xf32>
    %138 = arith.mulf %122, %130 : vector<8x128xf32>
    %139 = arith.addf %137, %138 : vector<8x128xf32>
    %140 = math.tanh %139 : vector<8x128xf32>
    %141 = arith.mulf %136, %140 : vector<8x128xf32>
    %142 = arith.index_cast %80 : i32 to index
    %c0_49 = arith.constant 0 : index
    %143 = vector.load %arg18[%142, %c0_49] : memref<64x128xf32, #tpu.memory_space<vmem>>, vector<8x128xf32>
    tpu.vector_store %arg18[%142, %c0_49], %141 {strides = array<i32>} : memref<64x128xf32, #tpu.memory_space<vmem>>, vector<8x128xf32>,
    %c2_i32 = arith.constant 2 : i32
    %c8_i32_50 = arith.constant 8 : i32
    %144 = arith.muli %c2_i32, %c8_i32_50 : i32
    %145 = tpu.assume_multiple %144, 8 : i32
    %146 = arith.index_cast %145 : i32 to index
    %c0_51 = arith.constant 0 : index
    %147 = vector.load %arg17[%146, %c0_51] : memref<64x512xf32, #tpu.memory_space<vmem>>, vector<8x512xf32>
    %c0_52 = arith.constant 0 : index
    %c0_53 = arith.constant 0 : index
    %148 = vector.load %arg4[%c0_52, %c0_53] : memref<128x512xf32, #tpu.memory_space<vmem>>, vector<128x512xf32>
    %cst_54 = arith.constant dense<0.000000e+00> : vector<8x512xf32>
    %149 = tpu.matmul %110, %148, %cst_54 {dimension_numbers = #tpu.dot_dimension_numbers<[1], [0], [0], [1], [0, 0, 1, 1], [], []>} : vector<8x128xf32>, vector<128x512xf32>, vector<8x512xf32> -> vector<8x512xf32>
    %150 = arith.addf %147, %149 : vector<8x512xf32>
    %151 = vector.extract_strided_slice %150 {offsets = [0, 0], sizes = [8, 128], strides = [1, 1]} : vector<8x512xf32> to vector<8x128xf32>
    %152 = arith.negf %151 : vector<8x128xf32>
    %153 = math.exp %152 : vector<8x128xf32>
    %cst_55 = arith.constant 1.000000e+00 : f32
    %154 = vector.broadcast %cst_55 : f32 to vector<8x128xf32>
    %155 = arith.addf %154, %153 : vector<8x128xf32>
    %156 = arith.divf %154, %155 : vector<8x128xf32>
    %157 = vector.extract_strided_slice %150 {offsets = [0, 128], sizes = [8, 128], strides = [1, 1]} : vector<8x512xf32> to vector<8x128xf32>
    %158 = arith.negf %157 : vector<8x128xf32>
    %159 = math.exp %158 : vector<8x128xf32>
    %cst_56 = arith.constant 1.000000e+00 : f32
    %160 = vector.broadcast %cst_56 : f32 to vector<8x128xf32>
    %161 = arith.addf %160, %159 : vector<8x128xf32>
    %162 = arith.divf %160, %161 : vector<8x128xf32>
    %163 = vector.extract_strided_slice %150 {offsets = [0, 256], sizes = [8, 128], strides = [1, 1]} : vector<8x512xf32> to vector<8x128xf32>
    %164 = math.tanh %163 : vector<8x128xf32>
    %165 = vector.extract_strided_slice %150 {offsets = [0, 384], sizes = [8, 128], strides = [1, 1]} : vector<8x512xf32> to vector<8x128xf32>
    %166 = arith.negf %165 : vector<8x128xf32>
    %167 = math.exp %166 : vector<8x128xf32>
    %cst_57 = arith.constant 1.000000e+00 : f32
    %168 = vector.broadcast %cst_57 : f32 to vector<8x128xf32>
    %169 = arith.addf %168, %167 : vector<8x128xf32>
    %170 = arith.divf %168, %169 : vector<8x128xf32>
    %171 = arith.mulf %162, %108 : vector<8x128xf32>
    %172 = arith.mulf %156, %164 : vector<8x128xf32>
    %173 = arith.addf %171, %172 : vector<8x128xf32>
    %174 = math.tanh %173 : vector<8x128xf32>
    %175 = arith.mulf %170, %174 : vector<8x128xf32>
    %176 = tpu.concatenate %175, %141 in 1 : vector<8x128xf32>, vector<8x128xf32> -> vector<8x256xf32>
    %c0_58 = arith.constant 0 : index
    %c0_59 = arith.constant 0 : index
    %177 = vector.load %arg6[%c0_58, %c0_59] : memref<256x512xf32, #tpu.memory_space<vmem>>, vector<256x512xf32>
    %cst_60 = arith.constant dense<0.000000e+00> : vector<8x512xf32>
    %178 = tpu.matmul %176, %177, %cst_60 {dimension_numbers = #tpu.dot_dimension_numbers<[1], [0], [0], [1], [0, 0, 1, 1], [], []>} : vector<8x256xf32>, vector<256x512xf32>, vector<8x512xf32> -> vector<8x512xf32>
    %c0_61 = arith.constant 0 : index
    %c0_62 = arith.constant 0 : index
    %179 = vector.load %arg7[%c0_61, %c0_62] : memref<1x512xf32, #tpu.memory_space<vmem>>, vector<1x512xf32>
    %180 = vector.broadcast %179 : vector<1x512xf32> to vector<8x512xf32>
    %181 = arith.addf %178, %180 : vector<8x512xf32>
    %182 = vector.extract_strided_slice %181 {offsets = [0, 0], sizes = [8, 128], strides = [1, 1]} : vector<8x512xf32> to vector<8x128xf32>
    %183 = arith.negf %182 : vector<8x128xf32>
    %184 = math.exp %183 : vector<8x128xf32>
    %cst_63 = arith.constant 1.000000e+00 : f32
    %185 = vector.broadcast %cst_63 : f32 to vector<8x128xf32>
    %186 = arith.addf %185, %184 : vector<8x128xf32>
    %187 = arith.divf %185, %186 : vector<8x128xf32>
    %188 = vector.extract_strided_slice %181 {offsets = [0, 128], sizes = [8, 128], strides = [1, 1]} : vector<8x512xf32> to vector<8x128xf32>
    %189 = arith.negf %188 : vector<8x128xf32>
    %190 = math.exp %189 : vector<8x128xf32>
    %cst_64 = arith.constant 1.000000e+00 : f32
    %191 = vector.broadcast %cst_64 : f32 to vector<8x128xf32>
    %192 = arith.addf %191, %190 : vector<8x128xf32>
    %193 = arith.divf %191, %192 : vector<8x128xf32>
    %194 = vector.extract_strided_slice %181 {offsets = [0, 256], sizes = [8, 128], strides = [1, 1]} : vector<8x512xf32> to vector<8x128xf32>
    %195 = math.tanh %194 : vector<8x128xf32>
    %196 = vector.extract_strided_slice %181 {offsets = [0, 384], sizes = [8, 128], strides = [1, 1]} : vector<8x512xf32> to vector<8x128xf32>
    %197 = arith.negf %196 : vector<8x128xf32>
    %198 = math.exp %197 : vector<8x128xf32>
    %cst_65 = arith.constant 1.000000e+00 : f32
    %199 = vector.broadcast %cst_65 : f32 to vector<8x128xf32>
    %200 = arith.addf %199, %198 : vector<8x128xf32>
    %201 = arith.divf %199, %200 : vector<8x128xf32>
    %202 = arith.mulf %193, %139 : vector<8x128xf32>
    %203 = arith.mulf %187, %195 : vector<8x128xf32>
    %204 = arith.addf %202, %203 : vector<8x128xf32>
    %205 = math.tanh %204 : vector<8x128xf32>
    %206 = arith.mulf %201, %205 : vector<8x128xf32>
    %207 = arith.index_cast %145 : i32 to index
    %c0_66 = arith.constant 0 : index
    %208 = vector.load %arg18[%207, %c0_66] : memref<64x128xf32, #tpu.memory_space<vmem>>, vector<8x128xf32>
    tpu.vector_store %arg18[%207, %c0_66], %206 {strides = array<i32>} : memref<64x128xf32, #tpu.memory_space<vmem>>, vector<8x128xf32>,
    %c3_i32 = arith.constant 3 : i32
    %c8_i32_67 = arith.constant 8 : i32
    %209 = arith.muli %c3_i32, %c8_i32_67 : i32
    %210 = tpu.assume_multiple %209, 8 : i32
    %211 = arith.index_cast %210 : i32 to index
    %c0_68 = arith.constant 0 : index
    %212 = vector.load %arg17[%211, %c0_68] : memref<64x512xf32, #tpu.memory_space<vmem>>, vector<8x512xf32>
    %c0_69 = arith.constant 0 : index
    %c0_70 = arith.constant 0 : index
    %213 = vector.load %arg4[%c0_69, %c0_70] : memref<128x512xf32, #tpu.memory_space<vmem>>, vector<128x512xf32>
    %cst_71 = arith.constant dense<0.000000e+00> : vector<8x512xf32>
    %214 = tpu.matmul %175, %213, %cst_71 {dimension_numbers = #tpu.dot_dimension_numbers<[1], [0], [0], [1], [0, 0, 1, 1], [], []>} : vector<8x128xf32>, vector<128x512xf32>, vector<8x512xf32> -> vector<8x512xf32>
    %215 = arith.addf %212, %214 : vector<8x512xf32>
    %216 = vector.extract_strided_slice %215 {offsets = [0, 0], sizes = [8, 128], strides = [1, 1]} : vector<8x512xf32> to vector<8x128xf32>
    %217 = arith.negf %216 : vector<8x128xf32>
    %218 = math.exp %217 : vector<8x128xf32>
    %cst_72 = arith.constant 1.000000e+00 : f32
    %219 = vector.broadcast %cst_72 : f32 to vector<8x128xf32>
    %220 = arith.addf %219, %218 : vector<8x128xf32>
    %221 = arith.divf %219, %220 : vector<8x128xf32>
    %222 = vector.extract_strided_slice %215 {offsets = [0, 128], sizes = [8, 128], strides = [1, 1]} : vector<8x512xf32> to vector<8x128xf32>
    %223 = arith.negf %222 : vector<8x128xf32>
    %224 = math.exp %223 : vector<8x128xf32>
    %cst_73 = arith.constant 1.000000e+00 : f32
    %225 = vector.broadcast %cst_73 : f32 to vector<8x128xf32>
    %226 = arith.addf %225, %224 : vector<8x128xf32>
    %227 = arith.divf %225, %226 : vector<8x128xf32>
    %228 = vector.extract_strided_slice %215 {offsets = [0, 256], sizes = [8, 128], strides = [1, 1]} : vector<8x512xf32> to vector<8x128xf32>
    %229 = math.tanh %228 : vector<8x128xf32>
    %230 = vector.extract_strided_slice %215 {offsets = [0, 384], sizes = [8, 128], strides = [1, 1]} : vector<8x512xf32> to vector<8x128xf32>
    %231 = arith.negf %230 : vector<8x128xf32>
    %232 = math.exp %231 : vector<8x128xf32>
    %cst_74 = arith.constant 1.000000e+00 : f32
    %233 = vector.broadcast %cst_74 : f32 to vector<8x128xf32>
    %234 = arith.addf %233, %232 : vector<8x128xf32>
    %235 = arith.divf %233, %234 : vector<8x128xf32>
    %236 = arith.mulf %227, %173 : vector<8x128xf32>
    %237 = arith.mulf %221, %229 : vector<8x128xf32>
    %238 = arith.addf %236, %237 : vector<8x128xf32>
    %239 = math.tanh %238 : vector<8x128xf32>
    %240 = arith.mulf %235, %239 : vector<8x128xf32>
    %241 = tpu.concatenate %240, %206 in 1 : vector<8x128xf32>, vector<8x128xf32> -> vector<8x256xf32>
    %c0_75 = arith.constant 0 : index
    %c0_76 = arith.constant 0 : index
    %242 = vector.load %arg6[%c0_75, %c0_76] : memref<256x512xf32, #tpu.memory_space<vmem>>, vector<256x512xf32>
    %cst_77 = arith.constant dense<0.000000e+00> : vector<8x512xf32>
    %243 = tpu.matmul %241, %242, %cst_77 {dimension_numbers = #tpu.dot_dimension_numbers<[1], [0], [0], [1], [0, 0, 1, 1], [], []>} : vector<8x256xf32>, vector<256x512xf32>, vector<8x512xf32> -> vector<8x512xf32>
    %c0_78 = arith.constant 0 : index
    %c0_79 = arith.constant 0 : index
    %244 = vector.load %arg7[%c0_78, %c0_79] : memref<1x512xf32, #tpu.memory_space<vmem>>, vector<1x512xf32>
    %245 = vector.broadcast %244 : vector<1x512xf32> to vector<8x512xf32>
    %246 = arith.addf %243, %245 : vector<8x512xf32>
    %247 = vector.extract_strided_slice %246 {offsets = [0, 0], sizes = [8, 128], strides = [1, 1]} : vector<8x512xf32> to vector<8x128xf32>
    %248 = arith.negf %247 : vector<8x128xf32>
    %249 = math.exp %248 : vector<8x128xf32>
    %cst_80 = arith.constant 1.000000e+00 : f32
    %250 = vector.broadcast %cst_80 : f32 to vector<8x128xf32>
    %251 = arith.addf %250, %249 : vector<8x128xf32>
    %252 = arith.divf %250, %251 : vector<8x128xf32>
    %253 = vector.extract_strided_slice %246 {offsets = [0, 128], sizes = [8, 128], strides = [1, 1]} : vector<8x512xf32> to vector<8x128xf32>
    %254 = arith.negf %253 : vector<8x128xf32>
    %255 = math.exp %254 : vector<8x128xf32>
    %cst_81 = arith.constant 1.000000e+00 : f32
    %256 = vector.broadcast %cst_81 : f32 to vector<8x128xf32>
    %257 = arith.addf %256, %255 : vector<8x128xf32>
    %258 = arith.divf %256, %257 : vector<8x128xf32>
    %259 = vector.extract_strided_slice %246 {offsets = [0, 256], sizes = [8, 128], strides = [1, 1]} : vector<8x512xf32> to vector<8x128xf32>
    %260 = math.tanh %259 : vector<8x128xf32>
    %261 = vector.extract_strided_slice %246 {offsets = [0, 384], sizes = [8, 128], strides = [1, 1]} : vector<8x512xf32> to vector<8x128xf32>
    %262 = arith.negf %261 : vector<8x128xf32>
    %263 = math.exp %262 : vector<8x128xf32>
    %cst_82 = arith.constant 1.000000e+00 : f32
    %264 = vector.broadcast %cst_82 : f32 to vector<8x128xf32>
    %265 = arith.addf %264, %263 : vector<8x128xf32>
    %266 = arith.divf %264, %265 : vector<8x128xf32>
    %267 = arith.mulf %258, %204 : vector<8x128xf32>
    %268 = arith.mulf %252, %260 : vector<8x128xf32>
    %269 = arith.addf %267, %268 : vector<8x128xf32>
    %270 = math.tanh %269 : vector<8x128xf32>
    %271 = arith.mulf %266, %270 : vector<8x128xf32>
    %272 = arith.index_cast %210 : i32 to index
    %c0_83 = arith.constant 0 : index
    %273 = vector.load %arg18[%272, %c0_83] : memref<64x128xf32, #tpu.memory_space<vmem>>, vector<8x128xf32>
    tpu.vector_store %arg18[%272, %c0_83], %271 {strides = array<i32>} : memref<64x128xf32, #tpu.memory_space<vmem>>, vector<8x128xf32>,
    %c4_i32 = arith.constant 4 : i32
    %c8_i32_84 = arith.constant 8 : i32
    %274 = arith.muli %c4_i32, %c8_i32_84 : i32
    %275 = tpu.assume_multiple %274, 8 : i32
    %276 = arith.index_cast %275 : i32 to index
    %c0_85 = arith.constant 0 : index
    %277 = vector.load %arg17[%276, %c0_85] : memref<64x512xf32, #tpu.memory_space<vmem>>, vector<8x512xf32>
    %c0_86 = arith.constant 0 : index
    %c0_87 = arith.constant 0 : index
    %278 = vector.load %arg4[%c0_86, %c0_87] : memref<128x512xf32, #tpu.memory_space<vmem>>, vector<128x512xf32>
    %cst_88 = arith.constant dense<0.000000e+00> : vector<8x512xf32>
    %279 = tpu.matmul %240, %278, %cst_88 {dimension_numbers = #tpu.dot_dimension_numbers<[1], [0], [0], [1], [0, 0, 1, 1], [], []>} : vector<8x128xf32>, vector<128x512xf32>, vector<8x512xf32> -> vector<8x512xf32>
    %280 = arith.addf %277, %279 : vector<8x512xf32>
    %281 = vector.extract_strided_slice %280 {offsets = [0, 0], sizes = [8, 128], strides = [1, 1]} : vector<8x512xf32> to vector<8x128xf32>
    %282 = arith.negf %281 : vector<8x128xf32>
    %283 = math.exp %282 : vector<8x128xf32>
    %cst_89 = arith.constant 1.000000e+00 : f32
    %284 = vector.broadcast %cst_89 : f32 to vector<8x128xf32>
    %285 = arith.addf %284, %283 : vector<8x128xf32>
    %286 = arith.divf %284, %285 : vector<8x128xf32>
    %287 = vector.extract_strided_slice %280 {offsets = [0, 128], sizes = [8, 128], strides = [1, 1]} : vector<8x512xf32> to vector<8x128xf32>
    %288 = arith.negf %287 : vector<8x128xf32>
    %289 = math.exp %288 : vector<8x128xf32>
    %cst_90 = arith.constant 1.000000e+00 : f32
    %290 = vector.broadcast %cst_90 : f32 to vector<8x128xf32>
    %291 = arith.addf %290, %289 : vector<8x128xf32>
    %292 = arith.divf %290, %291 : vector<8x128xf32>
    %293 = vector.extract_strided_slice %280 {offsets = [0, 256], sizes = [8, 128], strides = [1, 1]} : vector<8x512xf32> to vector<8x128xf32>
    %294 = math.tanh %293 : vector<8x128xf32>
    %295 = vector.extract_strided_slice %280 {offsets = [0, 384], sizes = [8, 128], strides = [1, 1]} : vector<8x512xf32> to vector<8x128xf32>
    %296 = arith.negf %295 : vector<8x128xf32>
    %297 = math.exp %296 : vector<8x128xf32>
    %cst_91 = arith.constant 1.000000e+00 : f32
    %298 = vector.broadcast %cst_91 : f32 to vector<8x128xf32>
    %299 = arith.addf %298, %297 : vector<8x128xf32>
    %300 = arith.divf %298, %299 : vector<8x128xf32>
    %301 = arith.mulf %292, %238 : vector<8x128xf32>
    %302 = arith.mulf %286, %294 : vector<8x128xf32>
    %303 = arith.addf %301, %302 : vector<8x128xf32>
    %304 = math.tanh %303 : vector<8x128xf32>
    %305 = arith.mulf %300, %304 : vector<8x128xf32>
    %306 = tpu.concatenate %305, %271 in 1 : vector<8x128xf32>, vector<8x128xf32> -> vector<8x256xf32>
    %c0_92 = arith.constant 0 : index
    %c0_93 = arith.constant 0 : index
    %307 = vector.load %arg6[%c0_92, %c0_93] : memref<256x512xf32, #tpu.memory_space<vmem>>, vector<256x512xf32>
    %cst_94 = arith.constant dense<0.000000e+00> : vector<8x512xf32>
    %308 = tpu.matmul %306, %307, %cst_94 {dimension_numbers = #tpu.dot_dimension_numbers<[1], [0], [0], [1], [0, 0, 1, 1], [], []>} : vector<8x256xf32>, vector<256x512xf32>, vector<8x512xf32> -> vector<8x512xf32>
    %c0_95 = arith.constant 0 : index
    %c0_96 = arith.constant 0 : index
    %309 = vector.load %arg7[%c0_95, %c0_96] : memref<1x512xf32, #tpu.memory_space<vmem>>, vector<1x512xf32>
    %310 = vector.broadcast %309 : vector<1x512xf32> to vector<8x512xf32>
    %311 = arith.addf %308, %310 : vector<8x512xf32>
    %312 = vector.extract_strided_slice %311 {offsets = [0, 0], sizes = [8, 128], strides = [1, 1]} : vector<8x512xf32> to vector<8x128xf32>
    %313 = arith.negf %312 : vector<8x128xf32>
    %314 = math.exp %313 : vector<8x128xf32>
    %cst_97 = arith.constant 1.000000e+00 : f32
    %315 = vector.broadcast %cst_97 : f32 to vector<8x128xf32>
    %316 = arith.addf %315, %314 : vector<8x128xf32>
    %317 = arith.divf %315, %316 : vector<8x128xf32>
    %318 = vector.extract_strided_slice %311 {offsets = [0, 128], sizes = [8, 128], strides = [1, 1]} : vector<8x512xf32> to vector<8x128xf32>
    %319 = arith.negf %318 : vector<8x128xf32>
    %320 = math.exp %319 : vector<8x128xf32>
    %cst_98 = arith.constant 1.000000e+00 : f32
    %321 = vector.broadcast %cst_98 : f32 to vector<8x128xf32>
    %322 = arith.addf %321, %320 : vector<8x128xf32>
    %323 = arith.divf %321, %322 : vector<8x128xf32>
    %324 = vector.extract_strided_slice %311 {offsets = [0, 256], sizes = [8, 128], strides = [1, 1]} : vector<8x512xf32> to vector<8x128xf32>
    %325 = math.tanh %324 : vector<8x128xf32>
    %326 = vector.extract_strided_slice %311 {offsets = [0, 384], sizes = [8, 128], strides = [1, 1]} : vector<8x512xf32> to vector<8x128xf32>
    %327 = arith.negf %326 : vector<8x128xf32>
    %328 = math.exp %327 : vector<8x128xf32>
    %cst_99 = arith.constant 1.000000e+00 : f32
    %329 = vector.broadcast %cst_99 : f32 to vector<8x128xf32>
    %330 = arith.addf %329, %328 : vector<8x128xf32>
    %331 = arith.divf %329, %330 : vector<8x128xf32>
    %332 = arith.mulf %323, %269 : vector<8x128xf32>
    %333 = arith.mulf %317, %325 : vector<8x128xf32>
    %334 = arith.addf %332, %333 : vector<8x128xf32>
    %335 = math.tanh %334 : vector<8x128xf32>
    %336 = arith.mulf %331, %335 : vector<8x128xf32>
    %337 = arith.index_cast %275 : i32 to index
    %c0_100 = arith.constant 0 : index
    %338 = vector.load %arg18[%337, %c0_100] : memref<64x128xf32, #tpu.memory_space<vmem>>, vector<8x128xf32>
    tpu.vector_store %arg18[%337, %c0_100], %336 {strides = array<i32>} : memref<64x128xf32, #tpu.memory_space<vmem>>, vector<8x128xf32>,
    %c5_i32 = arith.constant 5 : i32
    %c8_i32_101 = arith.constant 8 : i32
    %339 = arith.muli %c5_i32, %c8_i32_101 : i32
    %340 = tpu.assume_multiple %339, 8 : i32
    %341 = arith.index_cast %340 : i32 to index
    %c0_102 = arith.constant 0 : index
    %342 = vector.load %arg17[%341, %c0_102] : memref<64x512xf32, #tpu.memory_space<vmem>>, vector<8x512xf32>
    %c0_103 = arith.constant 0 : index
    %c0_104 = arith.constant 0 : index
    %343 = vector.load %arg4[%c0_103, %c0_104] : memref<128x512xf32, #tpu.memory_space<vmem>>, vector<128x512xf32>
    %cst_105 = arith.constant dense<0.000000e+00> : vector<8x512xf32>
    %344 = tpu.matmul %305, %343, %cst_105 {dimension_numbers = #tpu.dot_dimension_numbers<[1], [0], [0], [1], [0, 0, 1, 1], [], []>} : vector<8x128xf32>, vector<128x512xf32>, vector<8x512xf32> -> vector<8x512xf32>
    %345 = arith.addf %342, %344 : vector<8x512xf32>
    %346 = vector.extract_strided_slice %345 {offsets = [0, 0], sizes = [8, 128], strides = [1, 1]} : vector<8x512xf32> to vector<8x128xf32>
    %347 = arith.negf %346 : vector<8x128xf32>
    %348 = math.exp %347 : vector<8x128xf32>
    %cst_106 = arith.constant 1.000000e+00 : f32
    %349 = vector.broadcast %cst_106 : f32 to vector<8x128xf32>
    %350 = arith.addf %349, %348 : vector<8x128xf32>
    %351 = arith.divf %349, %350 : vector<8x128xf32>
    %352 = vector.extract_strided_slice %345 {offsets = [0, 128], sizes = [8, 128], strides = [1, 1]} : vector<8x512xf32> to vector<8x128xf32>
    %353 = arith.negf %352 : vector<8x128xf32>
    %354 = math.exp %353 : vector<8x128xf32>
    %cst_107 = arith.constant 1.000000e+00 : f32
    %355 = vector.broadcast %cst_107 : f32 to vector<8x128xf32>
    %356 = arith.addf %355, %354 : vector<8x128xf32>
    %357 = arith.divf %355, %356 : vector<8x128xf32>
    %358 = vector.extract_strided_slice %345 {offsets = [0, 256], sizes = [8, 128], strides = [1, 1]} : vector<8x512xf32> to vector<8x128xf32>
    %359 = math.tanh %358 : vector<8x128xf32>
    %360 = vector.extract_strided_slice %345 {offsets = [0, 384], sizes = [8, 128], strides = [1, 1]} : vector<8x512xf32> to vector<8x128xf32>
    %361 = arith.negf %360 : vector<8x128xf32>
    %362 = math.exp %361 : vector<8x128xf32>
    %cst_108 = arith.constant 1.000000e+00 : f32
    %363 = vector.broadcast %cst_108 : f32 to vector<8x128xf32>
    %364 = arith.addf %363, %362 : vector<8x128xf32>
    %365 = arith.divf %363, %364 : vector<8x128xf32>
    %366 = arith.mulf %357, %303 : vector<8x128xf32>
    %367 = arith.mulf %351, %359 : vector<8x128xf32>
    %368 = arith.addf %366, %367 : vector<8x128xf32>
    %369 = math.tanh %368 : vector<8x128xf32>
    %370 = arith.mulf %365, %369 : vector<8x128xf32>
    %371 = tpu.concatenate %370, %336 in 1 : vector<8x128xf32>, vector<8x128xf32> -> vector<8x256xf32>
    %c0_109 = arith.constant 0 : index
    %c0_110 = arith.constant 0 : index
    %372 = vector.load %arg6[%c0_109, %c0_110] : memref<256x512xf32, #tpu.memory_space<vmem>>, vector<256x512xf32>
    %cst_111 = arith.constant dense<0.000000e+00> : vector<8x512xf32>
    %373 = tpu.matmul %371, %372, %cst_111 {dimension_numbers = #tpu.dot_dimension_numbers<[1], [0], [0], [1], [0, 0, 1, 1], [], []>} : vector<8x256xf32>, vector<256x512xf32>, vector<8x512xf32> -> vector<8x512xf32>
    %c0_112 = arith.constant 0 : index
    %c0_113 = arith.constant 0 : index
    %374 = vector.load %arg7[%c0_112, %c0_113] : memref<1x512xf32, #tpu.memory_space<vmem>>, vector<1x512xf32>
    %375 = vector.broadcast %374 : vector<1x512xf32> to vector<8x512xf32>
    %376 = arith.addf %373, %375 : vector<8x512xf32>
    %377 = vector.extract_strided_slice %376 {offsets = [0, 0], sizes = [8, 128], strides = [1, 1]} : vector<8x512xf32> to vector<8x128xf32>
    %378 = arith.negf %377 : vector<8x128xf32>
    %379 = math.exp %378 : vector<8x128xf32>
    %cst_114 = arith.constant 1.000000e+00 : f32
    %380 = vector.broadcast %cst_114 : f32 to vector<8x128xf32>
    %381 = arith.addf %380, %379 : vector<8x128xf32>
    %382 = arith.divf %380, %381 : vector<8x128xf32>
    %383 = vector.extract_strided_slice %376 {offsets = [0, 128], sizes = [8, 128], strides = [1, 1]} : vector<8x512xf32> to vector<8x128xf32>
    %384 = arith.negf %383 : vector<8x128xf32>
    %385 = math.exp %384 : vector<8x128xf32>
    %cst_115 = arith.constant 1.000000e+00 : f32
    %386 = vector.broadcast %cst_115 : f32 to vector<8x128xf32>
    %387 = arith.addf %386, %385 : vector<8x128xf32>
    %388 = arith.divf %386, %387 : vector<8x128xf32>
    %389 = vector.extract_strided_slice %376 {offsets = [0, 256], sizes = [8, 128], strides = [1, 1]} : vector<8x512xf32> to vector<8x128xf32>
    %390 = math.tanh %389 : vector<8x128xf32>
    %391 = vector.extract_strided_slice %376 {offsets = [0, 384], sizes = [8, 128], strides = [1, 1]} : vector<8x512xf32> to vector<8x128xf32>
    %392 = arith.negf %391 : vector<8x128xf32>
    %393 = math.exp %392 : vector<8x128xf32>
    %cst_116 = arith.constant 1.000000e+00 : f32
    %394 = vector.broadcast %cst_116 : f32 to vector<8x128xf32>
    %395 = arith.addf %394, %393 : vector<8x128xf32>
    %396 = arith.divf %394, %395 : vector<8x128xf32>
    %397 = arith.mulf %388, %334 : vector<8x128xf32>
    %398 = arith.mulf %382, %390 : vector<8x128xf32>
    %399 = arith.addf %397, %398 : vector<8x128xf32>
    %400 = math.tanh %399 : vector<8x128xf32>
    %401 = arith.mulf %396, %400 : vector<8x128xf32>
    %402 = arith.index_cast %340 : i32 to index
    %c0_117 = arith.constant 0 : index
    %403 = vector.load %arg18[%402, %c0_117] : memref<64x128xf32, #tpu.memory_space<vmem>>, vector<8x128xf32>
    tpu.vector_store %arg18[%402, %c0_117], %401 {strides = array<i32>} : memref<64x128xf32, #tpu.memory_space<vmem>>, vector<8x128xf32>,
    %c6_i32 = arith.constant 6 : i32
    %c8_i32_118 = arith.constant 8 : i32
    %404 = arith.muli %c6_i32, %c8_i32_118 : i32
    %405 = tpu.assume_multiple %404, 8 : i32
    %406 = arith.index_cast %405 : i32 to index
    %c0_119 = arith.constant 0 : index
    %407 = vector.load %arg17[%406, %c0_119] : memref<64x512xf32, #tpu.memory_space<vmem>>, vector<8x512xf32>
    %c0_120 = arith.constant 0 : index
    %c0_121 = arith.constant 0 : index
    %408 = vector.load %arg4[%c0_120, %c0_121] : memref<128x512xf32, #tpu.memory_space<vmem>>, vector<128x512xf32>
    %cst_122 = arith.constant dense<0.000000e+00> : vector<8x512xf32>
    %409 = tpu.matmul %370, %408, %cst_122 {dimension_numbers = #tpu.dot_dimension_numbers<[1], [0], [0], [1], [0, 0, 1, 1], [], []>} : vector<8x128xf32>, vector<128x512xf32>, vector<8x512xf32> -> vector<8x512xf32>
    %410 = arith.addf %407, %409 : vector<8x512xf32>
    %411 = vector.extract_strided_slice %410 {offsets = [0, 0], sizes = [8, 128], strides = [1, 1]} : vector<8x512xf32> to vector<8x128xf32>
    %412 = arith.negf %411 : vector<8x128xf32>
    %413 = math.exp %412 : vector<8x128xf32>
    %cst_123 = arith.constant 1.000000e+00 : f32
    %414 = vector.broadcast %cst_123 : f32 to vector<8x128xf32>
    %415 = arith.addf %414, %413 : vector<8x128xf32>
    %416 = arith.divf %414, %415 : vector<8x128xf32>
    %417 = vector.extract_strided_slice %410 {offsets = [0, 128], sizes = [8, 128], strides = [1, 1]} : vector<8x512xf32> to vector<8x128xf32>
    %418 = arith.negf %417 : vector<8x128xf32>
    %419 = math.exp %418 : vector<8x128xf32>
    %cst_124 = arith.constant 1.000000e+00 : f32
    %420 = vector.broadcast %cst_124 : f32 to vector<8x128xf32>
    %421 = arith.addf %420, %419 : vector<8x128xf32>
    %422 = arith.divf %420, %421 : vector<8x128xf32>
    %423 = vector.extract_strided_slice %410 {offsets = [0, 256], sizes = [8, 128], strides = [1, 1]} : vector<8x512xf32> to vector<8x128xf32>
    %424 = math.tanh %423 : vector<8x128xf32>
    %425 = vector.extract_strided_slice %410 {offsets = [0, 384], sizes = [8, 128], strides = [1, 1]} : vector<8x512xf32> to vector<8x128xf32>
    %426 = arith.negf %425 : vector<8x128xf32>
    %427 = math.exp %426 : vector<8x128xf32>
    %cst_125 = arith.constant 1.000000e+00 : f32
    %428 = vector.broadcast %cst_125 : f32 to vector<8x128xf32>
    %429 = arith.addf %428, %427 : vector<8x128xf32>
    %430 = arith.divf %428, %429 : vector<8x128xf32>
    %431 = arith.mulf %422, %368 : vector<8x128xf32>
    %432 = arith.mulf %416, %424 : vector<8x128xf32>
    %433 = arith.addf %431, %432 : vector<8x128xf32>
    %434 = math.tanh %433 : vector<8x128xf32>
    %435 = arith.mulf %430, %434 : vector<8x128xf32>
    %436 = tpu.concatenate %435, %401 in 1 : vector<8x128xf32>, vector<8x128xf32> -> vector<8x256xf32>
    %c0_126 = arith.constant 0 : index
    %c0_127 = arith.constant 0 : index
    %437 = vector.load %arg6[%c0_126, %c0_127] : memref<256x512xf32, #tpu.memory_space<vmem>>, vector<256x512xf32>
    %cst_128 = arith.constant dense<0.000000e+00> : vector<8x512xf32>
    %438 = tpu.matmul %436, %437, %cst_128 {dimension_numbers = #tpu.dot_dimension_numbers<[1], [0], [0], [1], [0, 0, 1, 1], [], []>} : vector<8x256xf32>, vector<256x512xf32>, vector<8x512xf32> -> vector<8x512xf32>
    %c0_129 = arith.constant 0 : index
    %c0_130 = arith.constant 0 : index
    %439 = vector.load %arg7[%c0_129, %c0_130] : memref<1x512xf32, #tpu.memory_space<vmem>>, vector<1x512xf32>
    %440 = vector.broadcast %439 : vector<1x512xf32> to vector<8x512xf32>
    %441 = arith.addf %438, %440 : vector<8x512xf32>
    %442 = vector.extract_strided_slice %441 {offsets = [0, 0], sizes = [8, 128], strides = [1, 1]} : vector<8x512xf32> to vector<8x128xf32>
    %443 = arith.negf %442 : vector<8x128xf32>
    %444 = math.exp %443 : vector<8x128xf32>
    %cst_131 = arith.constant 1.000000e+00 : f32
    %445 = vector.broadcast %cst_131 : f32 to vector<8x128xf32>
    %446 = arith.addf %445, %444 : vector<8x128xf32>
    %447 = arith.divf %445, %446 : vector<8x128xf32>
    %448 = vector.extract_strided_slice %441 {offsets = [0, 128], sizes = [8, 128], strides = [1, 1]} : vector<8x512xf32> to vector<8x128xf32>
    %449 = arith.negf %448 : vector<8x128xf32>
    %450 = math.exp %449 : vector<8x128xf32>
    %cst_132 = arith.constant 1.000000e+00 : f32
    %451 = vector.broadcast %cst_132 : f32 to vector<8x128xf32>
    %452 = arith.addf %451, %450 : vector<8x128xf32>
    %453 = arith.divf %451, %452 : vector<8x128xf32>
    %454 = vector.extract_strided_slice %441 {offsets = [0, 256], sizes = [8, 128], strides = [1, 1]} : vector<8x512xf32> to vector<8x128xf32>
    %455 = math.tanh %454 : vector<8x128xf32>
    %456 = vector.extract_strided_slice %441 {offsets = [0, 384], sizes = [8, 128], strides = [1, 1]} : vector<8x512xf32> to vector<8x128xf32>
    %457 = arith.negf %456 : vector<8x128xf32>
    %458 = math.exp %457 : vector<8x128xf32>
    %cst_133 = arith.constant 1.000000e+00 : f32
    %459 = vector.broadcast %cst_133 : f32 to vector<8x128xf32>
    %460 = arith.addf %459, %458 : vector<8x128xf32>
    %461 = arith.divf %459, %460 : vector<8x128xf32>
    %462 = arith.mulf %453, %399 : vector<8x128xf32>
    %463 = arith.mulf %447, %455 : vector<8x128xf32>
    %464 = arith.addf %462, %463 : vector<8x128xf32>
    %465 = math.tanh %464 : vector<8x128xf32>
    %466 = arith.mulf %461, %465 : vector<8x128xf32>
    %467 = arith.index_cast %405 : i32 to index
    %c0_134 = arith.constant 0 : index
    %468 = vector.load %arg18[%467, %c0_134] : memref<64x128xf32, #tpu.memory_space<vmem>>, vector<8x128xf32>
    tpu.vector_store %arg18[%467, %c0_134], %466 {strides = array<i32>} : memref<64x128xf32, #tpu.memory_space<vmem>>, vector<8x128xf32>,
    %c7_i32 = arith.constant 7 : i32
    %c8_i32_135 = arith.constant 8 : i32
    %469 = arith.muli %c7_i32, %c8_i32_135 : i32
    %470 = tpu.assume_multiple %469, 8 : i32
    %471 = arith.index_cast %470 : i32 to index
    %c0_136 = arith.constant 0 : index
    %472 = vector.load %arg17[%471, %c0_136] : memref<64x512xf32, #tpu.memory_space<vmem>>, vector<8x512xf32>
    %c0_137 = arith.constant 0 : index
    %c0_138 = arith.constant 0 : index
    %473 = vector.load %arg4[%c0_137, %c0_138] : memref<128x512xf32, #tpu.memory_space<vmem>>, vector<128x512xf32>
    %cst_139 = arith.constant dense<0.000000e+00> : vector<8x512xf32>
    %474 = tpu.matmul %435, %473, %cst_139 {dimension_numbers = #tpu.dot_dimension_numbers<[1], [0], [0], [1], [0, 0, 1, 1], [], []>} : vector<8x128xf32>, vector<128x512xf32>, vector<8x512xf32> -> vector<8x512xf32>
    %475 = arith.addf %472, %474 : vector<8x512xf32>
    %476 = vector.extract_strided_slice %475 {offsets = [0, 0], sizes = [8, 128], strides = [1, 1]} : vector<8x512xf32> to vector<8x128xf32>
    %477 = arith.negf %476 : vector<8x128xf32>
    %478 = math.exp %477 : vector<8x128xf32>
    %cst_140 = arith.constant 1.000000e+00 : f32
    %479 = vector.broadcast %cst_140 : f32 to vector<8x128xf32>
    %480 = arith.addf %479, %478 : vector<8x128xf32>
    %481 = arith.divf %479, %480 : vector<8x128xf32>
    %482 = vector.extract_strided_slice %475 {offsets = [0, 128], sizes = [8, 128], strides = [1, 1]} : vector<8x512xf32> to vector<8x128xf32>
    %483 = arith.negf %482 : vector<8x128xf32>
    %484 = math.exp %483 : vector<8x128xf32>
    %cst_141 = arith.constant 1.000000e+00 : f32
    %485 = vector.broadcast %cst_141 : f32 to vector<8x128xf32>
    %486 = arith.addf %485, %484 : vector<8x128xf32>
    %487 = arith.divf %485, %486 : vector<8x128xf32>
    %488 = vector.extract_strided_slice %475 {offsets = [0, 256], sizes = [8, 128], strides = [1, 1]} : vector<8x512xf32> to vector<8x128xf32>
    %489 = math.tanh %488 : vector<8x128xf32>
    %490 = vector.extract_strided_slice %475 {offsets = [0, 384], sizes = [8, 128], strides = [1, 1]} : vector<8x512xf32> to vector<8x128xf32>
    %491 = arith.negf %490 : vector<8x128xf32>
    %492 = math.exp %491 : vector<8x128xf32>
    %cst_142 = arith.constant 1.000000e+00 : f32
    %493 = vector.broadcast %cst_142 : f32 to vector<8x128xf32>
    %494 = arith.addf %493, %492 : vector<8x128xf32>
    %495 = arith.divf %493, %494 : vector<8x128xf32>
    %496 = arith.mulf %487, %433 : vector<8x128xf32>
    %497 = arith.mulf %481, %489 : vector<8x128xf32>
    %498 = arith.addf %496, %497 : vector<8x128xf32>
    %499 = math.tanh %498 : vector<8x128xf32>
    %500 = arith.mulf %495, %499 : vector<8x128xf32>
    %501 = tpu.concatenate %500, %466 in 1 : vector<8x128xf32>, vector<8x128xf32> -> vector<8x256xf32>
    %c0_143 = arith.constant 0 : index
    %c0_144 = arith.constant 0 : index
    %502 = vector.load %arg6[%c0_143, %c0_144] : memref<256x512xf32, #tpu.memory_space<vmem>>, vector<256x512xf32>
    %cst_145 = arith.constant dense<0.000000e+00> : vector<8x512xf32>
    %503 = tpu.matmul %501, %502, %cst_145 {dimension_numbers = #tpu.dot_dimension_numbers<[1], [0], [0], [1], [0, 0, 1, 1], [], []>} : vector<8x256xf32>, vector<256x512xf32>, vector<8x512xf32> -> vector<8x512xf32>
    %c0_146 = arith.constant 0 : index
    %c0_147 = arith.constant 0 : index
    %504 = vector.load %arg7[%c0_146, %c0_147] : memref<1x512xf32, #tpu.memory_space<vmem>>, vector<1x512xf32>
    %505 = vector.broadcast %504 : vector<1x512xf32> to vector<8x512xf32>
    %506 = arith.addf %503, %505 : vector<8x512xf32>
    %507 = vector.extract_strided_slice %506 {offsets = [0, 0], sizes = [8, 128], strides = [1, 1]} : vector<8x512xf32> to vector<8x128xf32>
    %508 = arith.negf %507 : vector<8x128xf32>
    %509 = math.exp %508 : vector<8x128xf32>
    %cst_148 = arith.constant 1.000000e+00 : f32
    %510 = vector.broadcast %cst_148 : f32 to vector<8x128xf32>
    %511 = arith.addf %510, %509 : vector<8x128xf32>
    %512 = arith.divf %510, %511 : vector<8x128xf32>
    %513 = vector.extract_strided_slice %506 {offsets = [0, 128], sizes = [8, 128], strides = [1, 1]} : vector<8x512xf32> to vector<8x128xf32>
    %514 = arith.negf %513 : vector<8x128xf32>
    %515 = math.exp %514 : vector<8x128xf32>
    %cst_149 = arith.constant 1.000000e+00 : f32
    %516 = vector.broadcast %cst_149 : f32 to vector<8x128xf32>
    %517 = arith.addf %516, %515 : vector<8x128xf32>
    %518 = arith.divf %516, %517 : vector<8x128xf32>
    %519 = vector.extract_strided_slice %506 {offsets = [0, 256], sizes = [8, 128], strides = [1, 1]} : vector<8x512xf32> to vector<8x128xf32>
    %520 = math.tanh %519 : vector<8x128xf32>
    %521 = vector.extract_strided_slice %506 {offsets = [0, 384], sizes = [8, 128], strides = [1, 1]} : vector<8x512xf32> to vector<8x128xf32>
    %522 = arith.negf %521 : vector<8x128xf32>
    %523 = math.exp %522 : vector<8x128xf32>
    %cst_150 = arith.constant 1.000000e+00 : f32
    %524 = vector.broadcast %cst_150 : f32 to vector<8x128xf32>
    %525 = arith.addf %524, %523 : vector<8x128xf32>
    %526 = arith.divf %524, %525 : vector<8x128xf32>
    %527 = arith.mulf %518, %464 : vector<8x128xf32>
    %528 = arith.mulf %512, %520 : vector<8x128xf32>
    %529 = arith.addf %527, %528 : vector<8x128xf32>
    %530 = math.tanh %529 : vector<8x128xf32>
    %531 = arith.mulf %526, %530 : vector<8x128xf32>
    %532 = arith.index_cast %470 : i32 to index
    %c0_151 = arith.constant 0 : index
    %533 = vector.load %arg18[%532, %c0_151] : memref<64x128xf32, #tpu.memory_space<vmem>>, vector<8x128xf32>
    tpu.vector_store %arg18[%532, %c0_151], %531 {strides = array<i32>} : memref<64x128xf32, #tpu.memory_space<vmem>>, vector<8x128xf32>,
    %c8_i32_152 = arith.constant 8 : i32
    %c0_153 = arith.constant 0 : index
    %c0_154 = arith.constant 0 : index
    %534 = vector.load %arg13[%c0_153, %c0_154] : memref<8x128xf32, #tpu.memory_space<vmem>>, vector<8x128xf32>
    tpu.vector_store %arg13[%c0_153, %c0_154], %500 {strides = array<i32>} : memref<8x128xf32, #tpu.memory_space<vmem>>, vector<8x128xf32>,
    %c0_155 = arith.constant 0 : index
    %c0_156 = arith.constant 0 : index
    %535 = vector.load %arg14[%c0_155, %c0_156] : memref<8x128xf32, #tpu.memory_space<vmem>>, vector<8x128xf32>
    tpu.vector_store %arg14[%c0_155, %c0_156], %498 {strides = array<i32>} : memref<8x128xf32, #tpu.memory_space<vmem>>, vector<8x128xf32>,
    %c0_157 = arith.constant 0 : index
    %c0_158 = arith.constant 0 : index
    %536 = vector.load %arg15[%c0_157, %c0_158] : memref<8x128xf32, #tpu.memory_space<vmem>>, vector<8x128xf32>
    tpu.vector_store %arg15[%c0_157, %c0_158], %531 {strides = array<i32>} : memref<8x128xf32, #tpu.memory_space<vmem>>, vector<8x128xf32>,
    %c0_159 = arith.constant 0 : index
    %c0_160 = arith.constant 0 : index
    %537 = vector.load %arg16[%c0_159, %c0_160] : memref<8x128xf32, #tpu.memory_space<vmem>>, vector<8x128xf32>
    tpu.vector_store %arg16[%c0_159, %c0_160], %529 {strides = array<i32>} : memref<8x128xf32, #tpu.memory_space<vmem>>, vector<8x128xf32>,
    %c0_161 = arith.constant 0 : index
    %c0_162 = arith.constant 0 : index
    %538 = vector.load %arg18[%c0_161, %c0_162] : memref<64x128xf32, #tpu.memory_space<vmem>>, vector<64x128xf32>
    %c0_163 = arith.constant 0 : index
    %c0_164 = arith.constant 0 : index
    %539 = vector.load %arg2[%c0_163, %c0_164] : memref<64x1xf32, #tpu.memory_space<vmem>>, vector<64x1xf32>
    %540 = vector.broadcast %539 : vector<64x1xf32> to vector<64x128xf32>
    %541 = arith.mulf %538, %540 : vector<64x128xf32>
    %c0_165 = arith.constant 0 : index
    %c0_166 = arith.constant 0 : index
    %542 = vector.load %arg8[%c0_165, %c0_166] : memref<128x128xf32, #tpu.memory_space<vmem>>, vector<128x128xf32>
    %cst_167 = arith.constant dense<0.000000e+00> : vector<64x128xf32>
    %543 = tpu.matmul %541, %542, %cst_167 {dimension_numbers = #tpu.dot_dimension_numbers<[1], [0], [0], [1], [0, 0, 1, 1], [], []>} : vector<64x128xf32>, vector<128x128xf32>, vector<64x128xf32> -> vector<64x128xf32>
    %c0_168 = arith.constant 0 : index
    %c0_169 = arith.constant 0 : index
    %544 = vector.load %arg9[%c0_168, %c0_169] : memref<1x128xf32, #tpu.memory_space<vmem>>, vector<1x128xf32>
    %545 = vector.broadcast %544 : vector<1x128xf32> to vector<64x128xf32>
    %546 = arith.addf %543, %545 : vector<64x128xf32>
    %cst_170 = arith.constant 0.000000e+00 : f32
    %547 = vector.broadcast %cst_170 : f32 to vector<64x128xf32>
    %548 = arith.maximumf %546, %547 : vector<64x128xf32>
    %c0_171 = arith.constant 0 : index
    %c0_172 = arith.constant 0 : index
    %549 = vector.load %arg10[%c0_171, %c0_172] : memref<128x128xf32, #tpu.memory_space<vmem>>, vector<128x128xf32>
    %cst_173 = arith.constant dense<0.000000e+00> : vector<64x128xf32>
    %550 = tpu.matmul %548, %549, %cst_173 {dimension_numbers = #tpu.dot_dimension_numbers<[1], [0], [0], [1], [0, 0, 1, 1], [], []>} : vector<64x128xf32>, vector<128x128xf32>, vector<64x128xf32> -> vector<64x128xf32>
    %c0_174 = arith.constant 0 : index
    %c0_175 = arith.constant 0 : index
    %551 = vector.load %arg11[%c0_174, %c0_175] : memref<1x128xf32, #tpu.memory_space<vmem>>, vector<1x128xf32>
    %552 = vector.broadcast %551 : vector<1x128xf32> to vector<64x128xf32>
    %553 = arith.addf %550, %552 : vector<64x128xf32>
    %c0_176 = arith.constant 0 : index
    %c0_177 = arith.constant 0 : index
    %554 = vector.load %arg12[%c0_176, %c0_177] : memref<64x128xf32, #tpu.memory_space<vmem>>, vector<64x128xf32>
    tpu.vector_store %arg12[%c0_176, %c0_177], %553 {strides = array<i32>} : memref<64x128xf32, #tpu.memory_space<vmem>>, vector<64x128xf32>,
    return
  }
  func.func @transform_0(%arg0: i32) -> (i32, i32) {
    %c0_i32 = arith.constant 0 : i32
    %c0_i32_0 = arith.constant 0 : i32
    return %arg0, %c0_i32 : i32, i32
  }
  func.func @transform_1(%arg0: i32) -> (i32, i32) {
    %c0_i32 = arith.constant 0 : i32
    %c0_i32_0 = arith.constant 0 : i32
    return %arg0, %c0_i32 : i32, i32
  }
  func.func @transform_2(%arg0: i32) -> (i32, i32) {
    %c0_i32 = arith.constant 0 : i32
    %c0_i32_0 = arith.constant 0 : i32
    %c0_i32_1 = arith.constant 0 : i32
    return %c0_i32, %c0_i32_0 : i32, i32
  }
  func.func @transform_3(%arg0: i32) -> (i32, i32) {
    %c0_i32 = arith.constant 0 : i32
    %c0_i32_0 = arith.constant 0 : i32
    %c0_i32_1 = arith.constant 0 : i32
    return %c0_i32, %c0_i32_0 : i32, i32
  }
  func.func @transform_4(%arg0: i32) -> (i32, i32) {
    %c0_i32 = arith.constant 0 : i32
    %c0_i32_0 = arith.constant 0 : i32
    %c0_i32_1 = arith.constant 0 : i32
    return %c0_i32, %c0_i32_0 : i32, i32
  }
  func.func @transform_5(%arg0: i32) -> (i32, i32) {
    %c0_i32 = arith.constant 0 : i32
    %c0_i32_0 = arith.constant 0 : i32
    %c0_i32_1 = arith.constant 0 : i32
    return %c0_i32, %c0_i32_0 : i32, i32
  }
  func.func @transform_6(%arg0: i32) -> (i32, i32) {
    %c0_i32 = arith.constant 0 : i32
    %c0_i32_0 = arith.constant 0 : i32
    %c0_i32_1 = arith.constant 0 : i32
    return %c0_i32, %c0_i32_0 : i32, i32
  }
  func.func @transform_7(%arg0: i32) -> (i32, i32) {
    %c0_i32 = arith.constant 0 : i32
    %c0_i32_0 = arith.constant 0 : i32
    %c0_i32_1 = arith.constant 0 : i32
    return %c0_i32, %c0_i32_0 : i32, i32
  }
  func.func @transform_8(%arg0: i32) -> (i32, i32) {
    %c0_i32 = arith.constant 0 : i32
    %c0_i32_0 = arith.constant 0 : i32
    %c0_i32_1 = arith.constant 0 : i32
    return %c0_i32, %c0_i32_0 : i32, i32
  }
  func.func @transform_9(%arg0: i32) -> (i32, i32) {
    %c0_i32 = arith.constant 0 : i32
    %c0_i32_0 = arith.constant 0 : i32
    %c0_i32_1 = arith.constant 0 : i32
    return %c0_i32, %c0_i32_0 : i32, i32
  }
  func.func @transform_10(%arg0: i32) -> (i32, i32) {
    %c0_i32 = arith.constant 0 : i32
    %c0_i32_0 = arith.constant 0 : i32
    %c0_i32_1 = arith.constant 0 : i32
    return %c0_i32, %c0_i32_0 : i32, i32
  }
  func.func @transform_11(%arg0: i32) -> (i32, i32) {
    %c0_i32 = arith.constant 0 : i32
    %c0_i32_0 = arith.constant 0 : i32
    return %arg0, %c0_i32 : i32, i32
  }
}

</mosaic_0001>

<bundles_post_ra>
// kernel: tpu_custom_call.1
= control target key start
LH: loop header
LB: loop body
LE: loop exit
PB: predicated region body
PF: predicated region fallthrough
CT: control target
= control target key end

     0   :  { %16 = vsyncpa [#allocation9], 0  ;;  %s7194_s0 = inlined_call_operand.vmem [shape: f32[64,128], index: 0, kind: input, shape index: {}]   ;;  %s7195_s1 = inlined_call_operand.vmem [shape: f32[64,1], index: 1, kind: input, shape index: {}]   ;;  %s7196_s2 = inlined_call_operand.hbm [shape: f32[128,512], index: 2, kind: input, shape index: {}]   ;;  %s7197_s3 = inlined_call_operand.hbm [shape: f32[128,512], index: 3, kind: input, shape index: {}]   ;;  %s7198_s4 = inlined_call_operand.vmem [shape: f32[1,512], index: 4, kind: input, shape index: {}]   ;;  %s7199_s5 = inlined_call_operand.hbm [shape: f32[256,512], index: 5, kind: input, shape index: {}]   ;;  %s7200_s6 = inlined_call_operand.hbm [shape: f32[1,512], index: 6, kind: input, shape index: {}]   ;;  %s7201_s7 = inlined_call_operand.hbm [shape: f32[128,128], index: 7, kind: input, shape index: {}]   ;;  %s7202_s8 = inlined_call_operand.vmem [shape: f32[1,128], index: 8, kind: input, shape index: {}]   ;;  %s7203_s9 = inlined_call_operand.hbm [shape: f32[128,128], index: 9, kind: input, shape index: {}]   ;;  %s7204_s10 = inlined_call_operand.vmem [shape: f32[1,128], index: 10, kind: input, shape index: {}]   ;;  %s7205_s11 = inlined_call_operand.hbm [shape: f32[64,128], index: 11, kind: output, shape index: {}]  }
   0x1   :  { %17 = vsyncpa [#allocation12], 0 }
   0x2   :  { %18 = vsyncpa [#allocation15], 0 }
   0x3   :  { %19 = vsyncpa [#allocation18], 0 }
   0x4   :  { %20 = vsyncpa [#allocation10], 0  ;;  %s42_s19 = sshll.u32 %s7197_s3, 4  ;;  %s5843_s20 = smov [#allocation11]   ;;  %s43_s19 = int_to_ptr.hbm [resolvable:$true] %s42_s19 }
   0x5   :  { %s44_s21 = sshll.u32 %s5843_s20, 4  ;;  %s71_s24 = sshll.u32 %s7200_s6, 4  ;;  %s45_s21 = int_to_ptr.vmem [resolvable:$true] %s44_s21  ;;  %s72_s24 = int_to_ptr.hbm [resolvable:$true] %s71_s24 }
   0x6   :  { %s5844_s25 = smov 512   ;;  %s5845_s26 = smov 32  }
   0x7   :  { %50 = dma.hbm_to_vmem [thread:$0]  %s43_s19, 8192, %s45_s21, [#allocation12], %s5844_s25, %s5844_s25, %s5845_s26  }
   0x8   :  { %s5846_s27 = smov [#allocation14]   ;;  %s29_s12 = sshll.u32 %s7196_s2, 4  ;;  %s30_s12 = int_to_ptr.hbm [resolvable:$true] %s29_s12 }
   0x9   :  { %s73_s28 = sshll.u32 %s5846_s27, 4  ;;  %s57_s14 = sshll.u32 %s7199_s5, 4  ;;  %s74_s28 = int_to_ptr.vmem [resolvable:$true] %s73_s28  ;;  %s58_s14 = int_to_ptr.hbm [resolvable:$true] %s57_s14 }
   0xa   :  { %76 = dma.hbm_to_vmem [thread:$0]  %s72_s24, 64, %s74_s28, [#allocation15]  }
   0xb   :  { %s5847_s15 = smov [#allocation8]   ;;  %s5848_s6 = smov [#allocation13]  }
   0xc   :  { %s31_s16 = sshll.u32 %s5847_s15, 4  ;;  %s59_s17 = sshll.u32 %s5848_s6, 4  ;;  %s32_s16 = int_to_ptr.vmem [resolvable:$true] %s31_s16  ;;  %s60_s17 = int_to_ptr.vmem [resolvable:$true] %s59_s17 }
   0xd   :  { %37 = dma.hbm_to_vmem [thread:$0]  %s30_s12, 8192, %s32_s16, [#allocation9], %s5844_s25, %s5844_s25, %s5845_s26  }
   0xe   :  { %s81_s20 = sshll.u32 %s7201_s7, 4  ;;  %s5849_s2 = smov [#allocation16]   ;;  %s82_s20 = int_to_ptr.hbm [resolvable:$true] %s81_s20 }
   0xf   :  { %65 = dma.hbm_to_vmem [thread:$0]  %s58_s14, 16384, %s60_s17, [#allocation12], %s5844_s25, %s5844_s25, %s5845_s26  }
  0x10   :  { %s83_s21 = sshll.u32 %s5849_s2, 4  ;;  %s96_s5 = sshll.u32 %s7203_s9, 4  ;;  %s84_s21 = int_to_ptr.vmem [resolvable:$true] %s83_s21  ;;  %s97_s5 = int_to_ptr.hbm [resolvable:$true] %s96_s5 }
  0x11   :  { %s5850_s24 = smov 128   ;;  %s5851_s27 = smov 8  }
  0x12   :  { %89 = dma.hbm_to_vmem [thread:$0]  %s82_s20, 2048, %s84_s21, [#allocation15], %s5850_s24, %s5850_s24, %s5851_s27  }
  0x13   :  { %s5852_s28 = smov [#allocation17]  }
  0x14   :  { %s98_s29 = sshll.u32 %s5852_s28, 4  ;;  %s99_s29 = int_to_ptr.vmem [resolvable:$true] %s98_s29 }
  0x15   :  { %104 = dma.hbm_to_vmem [thread:$0]  %s97_s5, 2048, %s99_s29, [#allocation18], %s5850_s24, %s5850_s24, %s5851_s27  }
  0x16   :  { %5833 = dma.done.wait [#allocation9], 8192  }
  0x17   :  { %5834 = vsyncadd [#allocation9], 4294959104 }
  0x18   :  { %5835 = dma.done.wait [#allocation12], 24576  }
  0x19   :  { %5836 = vsyncadd [#allocation12], 4294942720 }
  0x1a   :  { %5837 = dma.done.wait [#allocation15], 2112  }
  0x1b   :  { %5838 = vsyncadd [#allocation15], 4294965184 }
  0x1c   :  { %5839 = dma.done.wait [#allocation18], 2048  }
  0x1d   :  { %5840 = vsyncadd [#allocation18], 4294965248  ;;  %v207_v0 = vld [vmem:[#allocation8 + $0x1e0] sm:$0xff]  ;;  %v208_v1 = vld [vmem:[#allocation8 + $0x1e8] sm:$0xff]  ;;  %s5280_s19 = sshll.u32 %s7205_s11, 4  ;;  %s5281_s19 = int_to_ptr.hbm [resolvable:$true] %s5280_s19 }
  0x1e   :  { %v203_v2 = vld [vmem:[#allocation8 + $0x1c0] sm:$0xff]  ;;  %5351 = vmatpush.msra.mxu2 %v207_v0  ;;  %5367 = vmatpush.msra.mxu3 %v208_v1  ;;  %v204_v3 = vld [vmem:[#allocation8 + $0x1c8] sm:$0xff]  ;;  %v210_v33 = vld [vmem:[#allocation8 + $0x1f8] sm:$0xff] }
  0x1f   :  { %v199_v4 = vld [vmem:[#allocation8 + $0x1a0] sm:$0xff]  ;;  %v200_v5 = vld [vmem:[#allocation8 + $0x1a8] sm:$0xff]  ;;  %221 = vmatpush.msra.mxu0 %v207_v0  ;;  %262 = vmatpush.msra.mxu1 %v208_v1  ;;  %v209_v34 = vld [vmem:[#allocation8 + $0x1f0] sm:$0xff] }
  0x20   :  { %5352 = vmatpush.msra.mxu2 %v203_v2  ;;  %5368 = vmatpush.msra.mxu3 %v204_v3  ;;  %v195_v6 = vld [vmem:[#allocation8 + $0x180] sm:$0xff]  ;;  %v196_v7 = vld [vmem:[#allocation8 + $0x188] sm:$0xff]  ;;  %v206_v35 = vld [vmem:[#allocation8 + $0x1d8] sm:$0xff] }
  0x21   :  { %222 = vmatpush.msra.mxu0 %v203_v2  ;;  %263 = vmatpush.msra.mxu1 %v204_v3  ;;  %v191_v8 = vld [vmem:[#allocation8 + $0x160] sm:$0xff]  ;;  %v192_v9 = vld [vmem:[#allocation8 + $0x168] sm:$0xff]  ;;  %v205_v36 = vld [vmem:[#allocation8 + $0x1d0] sm:$0xff] }
  0x22   :  { %5353 = vmatpush.msra.mxu2 %v199_v4  ;;  %5369 = vmatpush.msra.mxu3 %v200_v5  ;;  %v187_v10 = vld [vmem:[#allocation8 + $0x140] sm:$0xff]  ;;  %v188_v11 = vld [vmem:[#allocation8 + $0x148] sm:$0xff]  ;;  %v202_v38 = vld [vmem:[#allocation8 + $0x1b8] sm:$0xff] }
  0x23   :  { %223 = vmatpush.msra.mxu0 %v199_v4  ;;  %264 = vmatpush.msra.mxu1 %v200_v5  ;;  %v183_v12 = vld [vmem:[#allocation8 + $0x120] sm:$0xff]  ;;  %v184_v13 = vld [vmem:[#allocation8 + $0x128] sm:$0xff]  ;;  %v201_v39 = vld [vmem:[#allocation8 + $0x1b0] sm:$0xff] }
  0x24   :  { %5354 = vmatpush.msra.mxu2 %v195_v6  ;;  %5370 = vmatpush.msra.mxu3 %v196_v7  ;;  %v179_v14 = vld [vmem:[#allocation8 + $0x100] sm:$0xff]  ;;  %v180_v15 = vld [vmem:[#allocation8 + $0x108] sm:$0xff]  ;;  %v198_v42 = vld [vmem:[#allocation8 + $0x198] sm:$0xff] }
  0x25   :  { %224 = vmatpush.msra.mxu0 %v195_v6  ;;  %265 = vmatpush.msra.mxu1 %v196_v7  ;;  %v175_v16 = vld [vmem:[#allocation8 + $0xe0] sm:$0xff]  ;;  %v176_v17 = vld [vmem:[#allocation8 + $0xe8] sm:$0xff]  ;;  %v197_v43 = vld [vmem:[#allocation8 + $0x190] sm:$0xff] }
  0x26   :  { %5355 = vmatpush.msra.mxu2 %v191_v8  ;;  %5371 = vmatpush.msra.mxu3 %v192_v9  ;;  %v171_v18 = vld [vmem:[#allocation8 + $0xc0] sm:$0xff]  ;;  %v172_v19 = vld [vmem:[#allocation8 + $0xc8] sm:$0xff]  ;;  %v194_v45 = vld [vmem:[#allocation8 + $0x178] sm:$0xff] }
  0x27   :  { %225 = vmatpush.msra.mxu0 %v191_v8  ;;  %266 = vmatpush.msra.mxu1 %v192_v9  ;;  %v167_v20 = vld [vmem:[#allocation8 + $0xa0] sm:$0xff]  ;;  %v168_v21 = vld [vmem:[#allocation8 + $0xa8] sm:$0xff]  ;;  %v193_v46 = vld [vmem:[#allocation8 + $0x170] sm:$0xff] }
  0x28   :  { %5356 = vmatpush.msra.mxu2 %v187_v10  ;;  %5372 = vmatpush.msra.mxu3 %v188_v11  ;;  %v163_v22 = vld [vmem:[#allocation8 + $0x80] sm:$0xff]  ;;  %v164_v23 = vld [vmem:[#allocation8 + $0x88] sm:$0xff]  ;;  %v190_v49 = vld [vmem:[#allocation8 + $0x158] sm:$0xff] }
  0x29   :  { %226 = vmatpush.msra.mxu0 %v187_v10  ;;  %267 = vmatpush.msra.mxu1 %v188_v11  ;;  %v159_v24 = vld [vmem:[#allocation8 + $0x60] sm:$0xff]  ;;  %v160_v25 = vld [vmem:[#allocation8 + $0x68] sm:$0xff]  ;;  %v189_v50 = vld [vmem:[#allocation8 + $0x150] sm:$0xff] }
  0x2a   :  { %5357 = vmatpush.msra.mxu2 %v183_v12  ;;  %5373 = vmatpush.msra.mxu3 %v184_v13  ;;  %v155_v26 = vld [vmem:[#allocation8 + $0x40] sm:$0xff]  ;;  %v156_v27 = vld [vmem:[#allocation8 + $0x48] sm:$0xff]  ;;  %v186_v53 = vld [vmem:[#allocation8 + $0x138] sm:$0xff] }
  0x2b   :  { %227 = vmatpush.msra.mxu0 %v183_v12  ;;  %268 = vmatpush.msra.mxu1 %v184_v13  ;;  %v151_v28 = vld [vmem:[#allocation8 + $0x20] sm:$0xff]  ;;  %v152_v29 = vld [vmem:[#allocation8 + $0x28] sm:$0xff]  ;;  %v185_v54 = vld [vmem:[#allocation8 + $0x130] sm:$0xff] }
  0x2c   :  { %5358 = vmatpush.msra.mxu2 %v179_v14  ;;  %5374 = vmatpush.msra.mxu3 %v180_v15  ;;  %v147_v30 = vld [vmem:[#allocation8] sm:$0xff]  ;;  %v148_v31 = vld [vmem:[#allocation8 + $0x8] sm:$0xff]  ;;  %v182_v57 = vld [vmem:[#allocation8 + $0x118] sm:$0xff] }
  0x2d   :  { %228 = vmatpush.msra.mxu0 %v179_v14  ;;  %269 = vmatpush.msra.mxu1 %v180_v15  ;;  %v5943_v32 = vld [vmem:[%s7194_s0 + $0x20] sm:$0xff]  ;;  %v489_v41 = vld [vmem:[#allocation11 + $0x1e8] sm:$0xff]  ;;  %v181_v58 = vld [vmem:[#allocation8 + $0x110] sm:$0xff] }
  0x2e   :  { %5359 = vmatpush.msra.mxu2 %v175_v16  ;;  %5375 = vmatpush.msra.mxu3 %v176_v17  ;;  %v5950_v37 = vld [vmem:[%s7194_s0] sm:$0xff]  ;;  %v5957_v44 = vld [vmem:[%s7194_s0 + $0x28] sm:$0xff]  ;;  %v5964_v59 = vld [vmem:[%s7194_s0 + $0x30] sm:$0xff] }
  0x2f   :  { %229 = vmatpush.msra.mxu0 %v175_v16  ;;  %270 = vmatpush.msra.mxu1 %v176_v17  ;;  %v488_v40 = vld [vmem:[#allocation11 + $0x1e0] sm:$0xff]  ;;  %v485_v48 = vld [vmem:[#allocation11 + $0x1c8] sm:$0xff]  ;;  %v178_v60 = vld [vmem:[#allocation8 + $0xf8] sm:$0xff] }
  0x30   :  { %5360 = vmatpush.msra.mxu2 %v171_v18  ;;  %5376 = vmatpush.msra.mxu3 %v172_v19  ;;  %v484_v47 = vld [vmem:[#allocation11 + $0x1c0] sm:$0xff]  ;;  %v481_v52 = vld [vmem:[#allocation11 + $0x1a8] sm:$0xff]  ;;  %v177_v61 = vld [vmem:[#allocation8 + $0xf0] sm:$0xff] }
  0x31   :  { %230 = vmatpush.msra.mxu0 %v171_v18  ;;  %271 = vmatpush.msra.mxu1 %v172_v19  ;;  %v480_v51 = vld [vmem:[#allocation11 + $0x1a0] sm:$0xff]  ;;  %v477_v56 = vld [vmem:[#allocation11 + $0x188] sm:$0xff]  ;;  %v174_v63 = vld [vmem:[#allocation8 + $0xd8] sm:$0xff] }
  0x32   :  { %5361 = vmatpush.msra.mxu2 %v167_v20  ;;  %5377 = vmatpush.msra.mxu3 %v168_v21  ;;  %v476_v55 = vld [vmem:[#allocation11 + $0x180] sm:$0xff]  ;;  %v5969_v62 = vld [vmem:[%s7194_s0 + $0x8] sm:$0xff]  ;;  %v173_v0 = vld [vmem:[#allocation8 + $0xd0] sm:$0xff] }
  0x33   :  { %231 = vmatpush.msra.mxu0 %v167_v20  ;;  %272 = vmatpush.msra.mxu1 %v168_v21  ;;  %v472_v1 = vld [vmem:[#allocation11 + $0x160] sm:$0xff]  ;;  %v473_v2 = vld [vmem:[#allocation11 + $0x168] sm:$0xff]  ;;  %v170_v3 = vld [vmem:[#allocation8 + $0xb8] sm:$0xff] }
  0x34   :  { %5362 = vmatpush.msra.mxu2 %v163_v22  ;;  %5378 = vmatpush.msra.mxu3 %v164_v23  ;;  %v169_v4 = vld [vmem:[#allocation8 + $0xb0] sm:$0xff]  ;;  %v468_v5 = vld [vmem:[#allocation11 + $0x140] sm:$0xff]  ;;  %v469_v6 = vld [vmem:[#allocation11 + $0x148] sm:$0xff] }
  0x35   :  { %232 = vmatpush.msra.mxu0 %v163_v22  ;;  %273 = vmatpush.msra.mxu1 %v164_v23  ;;  %v166_v7 = vld [vmem:[#allocation8 + $0x98] sm:$0xff]  ;;  %v165_v8 = vld [vmem:[#allocation8 + $0x90] sm:$0xff]  ;;  %v464_v12 = vld [vmem:[#allocation11 + $0x120] sm:$0xff] }
  0x36   :  { %5363 = vmatpush.msra.mxu2 %v159_v24  ;;  %5379 = vmatpush.msra.mxu3 %v160_v25  ;;  %v5978_v9 = vld [vmem:[%s7194_s0 + $0x38] sm:$0xff]  ;;  %v161_v11 = vld [vmem:[#allocation8 + $0x70] sm:$0xff]  ;;  %v465_v13 = vld [vmem:[#allocation11 + $0x128] sm:$0xff] }
  0x37   :  { %233 = vmatpush.msra.mxu0 %v159_v24  ;;  %274 = vmatpush.msra.mxu1 %v160_v25  ;;  %v162_v10 = vld [vmem:[#allocation8 + $0x78] sm:$0xff]  ;;  %v157_v15 = vld [vmem:[#allocation8 + $0x50] sm:$0xff]  ;;  %v460_v16 = vld [vmem:[#allocation11 + $0x100] sm:$0xff] }
  0x38   :  { %5364 = vmatpush.msra.mxu2 %v155_v26  ;;  %5380 = vmatpush.msra.mxu3 %v156_v27  ;;  %v158_v14 = vld [vmem:[#allocation8 + $0x58] sm:$0xff]  ;;  %v461_v17 = vld [vmem:[#allocation11 + $0x108] sm:$0xff]  ;;  %v153_v19 = vld [vmem:[#allocation8 + $0x30] sm:$0xff] }
  0x39   :  { %234 = vmatpush.msra.mxu0 %v155_v26  ;;  %275 = vmatpush.msra.mxu1 %v156_v27  ;;  %v154_v18 = vld [vmem:[#allocation8 + $0x38] sm:$0xff]  ;;  %v5985_v20 = vld [vmem:[%s7194_s0 + $0x10] sm:$0xff]  ;;  %v456_v24 = vld [vmem:[#allocation11 + $0xe0] sm:$0xff] }
  0x3a   :  { %5365 = vmatpush.msra.mxu2 %v151_v28  ;;  %5381 = vmatpush.msra.mxu3 %v152_v29  ;;  %v150_v21 = vld [vmem:[#allocation8 + $0x18] sm:$0xff]  ;;  %v149_v22 = vld [vmem:[#allocation8 + $0x10] sm:$0xff]  ;;  %v5991_v25 = vld [vmem:[#allocation11 + $0xe8] sm:$0xff] }
  0x3b   :  { %235 = vmatpush.msra.mxu0 %v151_v28  ;;  %276 = vmatpush.msra.mxu1 %v152_v29  ;;  %v5989_v23 = vld [vmem:[#allocation11 + $0x1f8] sm:$0xff]  ;;  %v490_v26 = vld [vmem:[#allocation11 + $0x1f0] sm:$0xff]  ;;  %v452_v27 = vld [vmem:[#allocation11 + $0xc0] sm:$0xff] }
  0x3c   :  { %5366 = vmatpush.msra.mxu2 %v147_v30  ;;  %5382 = vmatpush.msra.mxu3 %v148_v31  ;;  %v5995_v28 = vld [vmem:[#allocation11 + $0x1d8] sm:$0xff]  ;;  %v453_v29 = vld [vmem:[#allocation11 + $0xc8] sm:$0xff] }
  0x3d   :  { %249 = vmatmul.f32.vlgmr.msra.gmra.mxu2 %v5943_v32  ;;  %290 = vmatmul.f32.vlgmr.msra.gmra.mxu3 %v5943_v32 }
  0x3e   :  { %344 = vmatpush.msrb.mxu3 %v210_v33  ;;  %303 = vmatpush.msrb.mxu2 %v209_v34  ;;  %v5999_v33 = vld [vmem:[#allocation11 + $0x1b8] sm:$0xff]  ;;  %v449_v34 = vld [vmem:[#allocation11 + $0xa8] sm:$0xff] }
  0x3f   :  { %236 = vmatpush.msra.mxu0 %v147_v30  ;;  %277 = vmatpush.msra.mxu1 %v148_v31  ;;  %v486_v30 = vld [vmem:[#allocation11 + $0x1d0] sm:$0xff]  ;;  %v448_v31 = vld [vmem:[#allocation11 + $0xa0] sm:$0xff] }
  0x40   :  { %345 = vmatpush.msrb.mxu3 %v206_v35  ;;  %304 = vmatpush.msrb.mxu2 %v205_v36  ;;  %v6005_v35 = vld [vmem:[%s7194_s0 + $0x18] sm:$0xff]  ;;  %v444_v36 = vld [vmem:[#allocation11 + $0x80] sm:$0xff] }
  0x41   :  { %237 = vmatmul.f32.vlgmr.msra.gmra.mxu0 %v5950_v37  ;;  %278 = vmatmul.f32.vlgmr.msra.gmra.mxu1 %v5950_v37 }
  0x42   :  { %346 = vmatpush.msrb.mxu3 %v202_v38  ;;  %305 = vmatpush.msrb.mxu2 %v201_v39  ;;  %v440_v38 = vld [vmem:[#allocation11 + $0x60] sm:$0xff]  ;;  %v441_v39 = vld [vmem:[#allocation11 + $0x68] sm:$0xff] }
  0x43   :  { %492 = vmatpush.msrb.mxu0 %v488_v40  ;;  %512 = vmatpush.msrb.mxu1 %v489_v41  ;;  %v6010_v40 = vld [vmem:[#allocation11 + $0x198] sm:$0xff]  ;;  %v436_v41 = vld [vmem:[#allocation11 + $0x40] sm:$0xff] }
  0x44   :  { %347 = vmatpush.msrb.mxu3 %v198_v42  ;;  %306 = vmatpush.msrb.mxu2 %v197_v43  ;;  %v482_v42 = vld [vmem:[#allocation11 + $0x1b0] sm:$0xff]  ;;  %v437_v43 = vld [vmem:[#allocation11 + $0x48] sm:$0xff] }
  0x45   :  { %252 = vmatmul.f32.gmra.mxu2 %v5957_v44  ;;  %293 = vmatmul.f32.gmra.mxu3 %v5957_v44 }
  0x46   :  { %348 = vmatpush.msrb.mxu3 %v194_v45  ;;  %307 = vmatpush.msrb.mxu2 %v193_v46  ;;  %v6014_v45 = vld [vmem:[#allocation11 + $0x178] sm:$0xff]  ;;  %v432_v46 = vld [vmem:[#allocation11 + $0x20] sm:$0xff] }
  0x47   :  { %493 = vmatpush.msrb.mxu0 %v484_v47  ;;  %513 = vmatpush.msrb.mxu1 %v485_v48  ;;  %v478_v47 = vld [vmem:[#allocation11 + $0x190] sm:$0xff]  ;;  %v433_v48 = vld [vmem:[#allocation11 + $0x28] sm:$0xff] }
  0x48   :  { %349 = vmatpush.msrb.mxu3 %v190_v49  ;;  %308 = vmatpush.msrb.mxu2 %v189_v50  ;;  %v6017_v49 = vld [vmem:[#allocation11 + $0x158] sm:$0xff]  ;;  %v428_v50 = vld [vmem:[#allocation11] sm:$0xff] }
  0x49   :  { %494 = vmatpush.msrb.mxu0 %v480_v51  ;;  %514 = vmatpush.msrb.mxu1 %v481_v52  ;;  %v474_v51 = vld [vmem:[#allocation11 + $0x170] sm:$0xff]  ;;  %v429_v52 = vld [vmem:[#allocation11 + $0x8] sm:$0xff] }
  0x4a   :  { %350 = vmatpush.msrb.mxu3 %v186_v53  ;;  %309 = vmatpush.msrb.mxu2 %v185_v54  ;;  %v6021_v53 = vld [vmem:[#allocation11 + $0x138] sm:$0xff]  ;;  %v470_v54 = vld [vmem:[#allocation11 + $0x150] sm:$0xff] }
  0x4b   :  { %495 = vmatpush.msrb.mxu0 %v476_v55  ;;  %515 = vmatpush.msrb.mxu1 %v477_v56  ;;  %v7206_v55 = vmov 0.0   ;;  %v6026_v56 = vld [vmem:[#allocation11 + $0x118] sm:$0xff] }
  0x4c   :  { %351 = vmatpush.msrb.mxu3 %v182_v57  ;;  %310 = vmatpush.msrb.mxu2 %v181_v58  ;;  %v466_v57 = vld [vmem:[#allocation11 + $0x130] sm:$0xff]  ;;  %v6030_v58 = vld [vmem:[#allocation11 + $0xf8] sm:$0xff] }
  0x4d   :  { %255 = vmatmul.f32.gmra.mxu2 %v5964_v59  ;;  %296 = vmatmul.f32.gmra.mxu3 %v5964_v59 }
  0x4e   :  { %352 = vmatpush.msrb.mxu3 %v178_v60  ;;  %311 = vmatpush.msrb.mxu2 %v177_v61  ;;  %v462_v60 = vld [vmem:[#allocation11 + $0x110] sm:$0xff]  ;;  %v6033_v61 = vld [vmem:[#allocation11 + $0xd8] sm:$0xff] }
  0x4f   :  { %240 = vmatmul.f32.gmra.mxu0 %v5969_v62  ;;  %281 = vmatmul.f32.gmra.mxu1 %v5969_v62 }
  0x50   :  { %353 = vmatpush.msrb.mxu3 %v174_v63  ;;  %312 = vmatpush.msrb.mxu2 %v173_v0  ;;  %v6036_v63 = vld [vmem:[#allocation11 + $0xb8] sm:$0xff]  ;;  %v454_v0 = vld [vmem:[#allocation11 + $0xd0] sm:$0xff] }
  0x51   :  { %496 = vmatpush.msrb.mxu0 %v472_v1  ;;  %516 = vmatpush.msrb.mxu1 %v473_v2  ;;  %v6041_v1 = vld [vmem:[#allocation11 + $0x98] sm:$0xff]  ;;  %v450_v2 = vld [vmem:[#allocation11 + $0xb0] sm:$0xff] }
  0x52   :  { %354 = vmatpush.msrb.mxu3 %v170_v3  ;;  %313 = vmatpush.msrb.mxu2 %v169_v4  ;;  %v6044_v3 = vld [vmem:[#allocation11 + $0x78] sm:$0xff]  ;;  %v446_v4 = vld [vmem:[#allocation11 + $0x90] sm:$0xff] }
  0x53   :  { %497 = vmatpush.msrb.mxu0 %v468_v5  ;;  %517 = vmatpush.msrb.mxu1 %v469_v6  ;;  %v6047_v5 = vld [vmem:[#allocation11 + $0x58] sm:$0xff]  ;;  %v442_v6 = vld [vmem:[#allocation11 + $0x70] sm:$0xff] }
  0x54   :  { %355 = vmatpush.msrb.mxu3 %v166_v7  ;;  %314 = vmatpush.msrb.mxu2 %v165_v8  ;;  %v6050_v7 = vld [vmem:[#allocation11 + $0x38] sm:$0xff]  ;;  %v438_v8 = vld [vmem:[#allocation11 + $0x50] sm:$0xff] }
  0x55   :  { %258 = vmatmul.f32.gmra.mxu2 %v5978_v9  ;;  %299 = vmatmul.f32.gmra.mxu3 %v5978_v9 }
  0x56   :  { %356 = vmatpush.msrb.mxu3 %v162_v10  ;;  %315 = vmatpush.msrb.mxu2 %v161_v11  ;;  %v6055_v10 = vld [vmem:[#allocation11 + $0x18] sm:$0xff]  ;;  %v434_v11 = vld [vmem:[#allocation11 + $0x30] sm:$0xff] }
  0x57   :  { %498 = vmatpush.msrb.mxu0 %v464_v12  ;;  %518 = vmatpush.msrb.mxu1 %v465_v13  ;;  %v430_v12 = vld [vmem:[#allocation11 + $0x10] sm:$0xff] }
  0x58   :  { %357 = vmatpush.msrb.mxu3 %v158_v14  ;;  %316 = vmatpush.msrb.mxu2 %v157_v15  ;;  %v6071_v14 = vld [vmem:[#allocation13 + $0x3e0] sm:$0xff]  ;;  %v6073_v15 = vld [vmem:[#allocation13 + $0x3e8] sm:$0xff] }
  0x59   :  { %499 = vmatpush.msrb.mxu0 %v460_v16  ;;  %519 = vmatpush.msrb.mxu1 %v461_v17  ;;  %v6087_v17 = vld [vmem:[#allocation13 + $0x3a0] sm:$0xff] }
  0x5a   :  { %358 = vmatpush.msrb.mxu3 %v154_v18  ;;  %317 = vmatpush.msrb.mxu2 %v153_v19  ;;  %v6089_v18 = vld [vmem:[#allocation13 + $0x3a8] sm:$0xff]  ;;  %v6093_v19 = vld [vmem:[#allocation13 + $0x380] sm:$0xff] }
  0x5b   :  { %243 = vmatmul.f32.gmra.mxu0 %v5985_v20  ;;  %284 = vmatmul.f32.gmra.mxu1 %v5985_v20 }
  0x5c   :  { %359 = vmatpush.msrb.mxu3 %v150_v21  ;;  %318 = vmatpush.msrb.mxu2 %v149_v22  ;;  %v6099_v21 = vld [vmem:[#allocation13 + $0x360] sm:$0xff]  ;;  %v6101_v22 = vld [vmem:[#allocation13 + $0x368] sm:$0xff] }
  0x5d   :  { %319 = vmatmul.f32.vlgmr.msrb.gmra.mxu2 %v5950_v37  ;;  %360 = vmatmul.f32.vlgmr.msrb.gmra.mxu3 %v5950_v37  ;;  %v445_v37 = vld [vmem:[#allocation11 + $0x88] sm:$0xff] }
  0x5e   :  { %552 = vmatpush.msra.mxu3 %v5989_v23  ;;  %500 = vmatpush.msrb.mxu0 %v456_v24  ;;  %v6105_v24 = vld [vmem:[#allocation13 + $0x340] sm:$0xff] }
  0x5f   :  { %520 = vmatpush.msrb.mxu1 %v5991_v25  ;;  %532 = vmatpush.msra.mxu2 %v490_v26  ;;  %v6107_v26 = vld [vmem:[#allocation13 + $0x348] sm:$0xff] }
  0x60   :  { %501 = vmatpush.msrb.mxu0 %v452_v27  ;;  %553 = vmatpush.msra.mxu3 %v5995_v28 }
  0x61   :  { %521 = vmatpush.msrb.mxu1 %v453_v29  ;;  %533 = vmatpush.msra.mxu2 %v486_v30  ;;  %v6115_v30 = vld [vmem:[#allocation13 + $0x320] sm:$0xff] }
  0x62   :  { %502 = vmatpush.msrb.mxu0 %v448_v31  ;;  %554 = vmatpush.msra.mxu3 %v5999_v33  ;;  %v6117_v31 = vld [vmem:[#allocation13 + $0x328] sm:$0xff] }
  0x63   :  { %522 = vmatpush.msrb.mxu1 %v449_v34  ;;  %246 = vmatmul.f32.gmra.mxu0 %v6005_v35 }
  0x64   :  { %503 = vmatpush.msrb.mxu0 %v444_v36  ;;  %287 = vmatmul.f32.gmra.mxu1 %v6005_v35  ;;  %v6125_v36 = vld [vmem:[#allocation13 + $0x308] sm:$0xff] }
  0x65   :  { %523 = vmatpush.msrb.mxu1 %v445_v37  ;;  %322 = vmatmul.f32.gmra.mxu2 %v5969_v62 }
  0x66   :  { %363 = vmatmul.f32.gmra.mxu3 %v5969_v62  ;;  %504 = vmatpush.msrb.mxu0 %v440_v38  ;;  %v458_v62 = vld [vmem:[#allocation11 + $0xf0] sm:$0xff]  ;;  %v731_v38 = vld [vmem:[#allocation13 + $0x2e0] sm:$0xff] }
  0x67   :  { %524 = vmatpush.msrb.mxu1 %v441_v39  ;;  %555 = vmatpush.msra.mxu3 %v6010_v40  ;;  %v732_v39 = vld [vmem:[#allocation13 + $0x2e8] sm:$0xff] }
  0x68   :  { %505 = vmatpush.msrb.mxu0 %v436_v41  ;;  %534 = vmatpush.msra.mxu2 %v482_v42  ;;  %v727_v41 = vld [vmem:[#allocation13 + $0x2c0] sm:$0xff]  ;;  %v728_v42 = vld [vmem:[#allocation13 + $0x2c8] sm:$0xff] }
  0x69   :  { %525 = vmatpush.msrb.mxu1 %v437_v43  ;;  %556 = vmatpush.msra.mxu3 %v6014_v45 }
  0x6a   :  { %506 = vmatpush.msrb.mxu0 %v432_v46  ;;  %535 = vmatpush.msra.mxu2 %v478_v47  ;;  %v723_v47 = vld [vmem:[#allocation13 + $0x2a0] sm:$0xff] }
  0x6b   :  { %526 = vmatpush.msrb.mxu1 %v433_v48  ;;  %557 = vmatpush.msra.mxu3 %v6017_v49  ;;  %v724_v48 = vld [vmem:[#allocation13 + $0x2a8] sm:$0xff] }
  0x6c   :  { %507 = vmatpush.msrb.mxu0 %v428_v50  ;;  %536 = vmatpush.msra.mxu2 %v474_v51  ;;  %v719_v50 = vld [vmem:[#allocation13 + $0x280] sm:$0xff]  ;;  %v720_v51 = vld [vmem:[#allocation13 + $0x288] sm:$0xff] }
  0x6d   :  { %527 = vmatpush.msrb.mxu1 %v429_v52  ;;  %325 = vmatmul.f32.gmra.mxu2 %v5985_v20 }
  0x6e   :  { %366 = vmatmul.f32.gmra.mxu3 %v5985_v20  ;;  %508 = vmatmul.f32.vlgmr.msrb.gmra.mxu0 %v7206_v55  ;;  %v6095_v20 = vld [vmem:[#allocation13 + $0x388] sm:$0xff] }
  0x6f   :  { %528 = vmatmul.f32.vlgmr.msrb.gmra.mxu1 %v7206_v55  ;;  %558 = vmatpush.msra.mxu3 %v6021_v53 }
  0x70   :  { %537 = vmatpush.msra.mxu2 %v470_v54  ;;  %797 = vmatpush.msra.mxu1 %v6071_v14  ;;  %v715_v54 = vld [vmem:[#allocation13 + $0x260] sm:$0xff] }
  0x71   :  { %559 = vmatpush.msra.mxu3 %v6026_v56 }
  0x72   :  { %538 = vmatpush.msra.mxu2 %v466_v57  ;;  %v716_v57 = vld [vmem:[#allocation13 + $0x268] sm:$0xff] }
  0x73   :  { %560 = vmatpush.msra.mxu3 %v6030_v58 }
  0x74   :  { %539 = vmatpush.msra.mxu2 %v462_v60 }
  0x75   :  { %328 = vmatmul.f32.gmra.mxu2 %v6005_v35  ;;  %561 = vmatpush.msra.mxu3 %v6033_v61 }
  0x76   :  { %369 = vmatmul.f32.gmra.mxu3 %v6005_v35  ;;  %540 = vmatpush.msra.mxu2 %v458_v62  ;;  %v6123_v35 = vld [vmem:[#allocation13 + $0x300] sm:$0xff] }
  0x77   :  { %562 = vmatpush.msra.mxu3 %v6036_v63  ;;  %v711_v62 = vld [vmem:[#allocation13 + $0x240] sm:$0xff] }
  0x78   :  { %541 = vmatpush.msra.mxu2 %v454_v0  ;;  %v712_v0 = vld [vmem:[#allocation13 + $0x248] sm:$0xff] }
  0x79   :  { %563 = vmatpush.msra.mxu3 %v6041_v1 }
  0x7a   :  { %542 = vmatpush.msra.mxu2 %v450_v2 }
  0x7b   :  { %564 = vmatpush.msra.mxu3 %v6044_v3 }
  0x7c   :  { %543 = vmatpush.msra.mxu2 %v446_v4 }
  0x7d   :  { %331 = vmatmul.f32.gmra.mxu2 %v5943_v32  ;;  %565 = vmatpush.msra.mxu3 %v6047_v5 }
  0x7e   :  { %372 = vmatmul.f32.gmra.mxu3 %v5943_v32  ;;  %544 = vmatpush.msra.mxu2 %v442_v6  ;;  %v707_v6 = vld [vmem:[#allocation13 + $0x220] sm:$0xff] }
  0x7f   :  { %566 = vmatpush.msra.mxu3 %v6050_v7 }
  0x80   :  { %545 = vmatpush.msra.mxu2 %v438_v8  ;;  %v708_v8 = vld [vmem:[#allocation13 + $0x228] sm:$0xff] }
  0x81   :  { %567 = vmatpush.msra.mxu3 %v6055_v10 }
  0x82   :  { %546 = vmatpush.msra.mxu2 %v434_v11  ;;  %v703_v11 = vld [vmem:[#allocation13 + $0x200] sm:$0xff] }
  0x83   :  { %837 = vmatpush.msrb.mxu3 %v6073_v15 }
  0x84   :  { %547 = vmatpush.msra.mxu2 %v430_v12  ;;  %v704_v12 = vld [vmem:[#allocation13 + $0x208] sm:$0xff] }
  0x85   :  { %334 = vmatmul.f32.gmra.mxu2 %v5957_v44 }
  0x86   :  { %375 = vmatmul.f32.gmra.mxu3 %v5957_v44  ;;  %v6075_v44 = vld [vmem:[#allocation13 + $0x3c0] sm:$0xff] }
  0x87   :  { %798 = vmatpush.msra.mxu1 %v6075_v44 }
  0x89   :  { %799 = vmatpush.msra.mxu1 %v6087_v17 }
  0x8b   :  { %800 = vmatpush.msra.mxu1 %v6093_v19 }
  0x8d   :  { %337 = vmatmul.f32.gmra.mxu2 %v5964_v59  ;;  %801 = vmatpush.msra.mxu1 %v6099_v21 }
  0x8e   :  { %378 = vmatmul.f32.gmra.mxu3 %v5964_v59  ;;  %v6079_v59 = vld [vmem:[#allocation13 + $0x3c8] sm:$0xff] }
  0x8f   :  { %838 = vmatpush.msrb.mxu3 %v6079_v59  ;;  %802 = vmatpush.msra.mxu1 %v6105_v24 }
  0x91   :  { %839 = vmatpush.msrb.mxu3 %v6089_v18  ;;  %803 = vmatpush.msra.mxu1 %v6115_v30 }
  0x93   :  { %840 = vmatpush.msrb.mxu3 %v6095_v20  ;;  %804 = vmatpush.msra.mxu1 %v6123_v35 }
  0x95   :  { %340 = vmatmul.f32.gmra.mxu2 %v5978_v9  ;;  %841 = vmatpush.msrb.mxu3 %v6101_v22 }
  0x96   :  { %381 = vmatmul.f32.gmra.mxu3 %v5978_v9  ;;  %805 = vmatpush.msra.mxu1 %v731_v38  ;;  %v699_v38 = vld [vmem:[#allocation13 + $0x1e0] sm:$0xff] }
  0x97   :  { %842 = vmatpush.msrb.mxu3 %v6107_v26  ;;  %777 = vmatpush.msra.mxu0 %v699_v38  ;;  %v687_v38 = vld [vmem:[#allocation13 + $0x180] sm:$0xff] }
  0x98   :  { %806 = vmatpush.msra.mxu1 %v727_v41  ;;  %v765_v41 = vld [vmem:[#allocation13 + $0x3f0] sm:$0xff] }
  0x99   :  { %843 = vmatpush.msrb.mxu3 %v6117_v31 }
  0x9a   :  { %807 = vmatpush.msra.mxu1 %v723_v47  ;;  %v695_v47 = vld [vmem:[#allocation13 + $0x1c0] sm:$0xff] }
  0x9b   :  { %844 = vmatpush.msrb.mxu3 %v6125_v36  ;;  %778 = vmatpush.msra.mxu0 %v695_v47  ;;  %v683_v47 = vld [vmem:[#allocation13 + $0x160] sm:$0xff] }
  0x9c   :  { %808 = vmatpush.msra.mxu1 %v719_v50  ;;  %v761_v50 = vld [vmem:[#allocation13 + $0x3d0] sm:$0xff] }
  0x9d   :  { %548 = vmatmul.f32.vlgmr.msra.gmra.mxu2 %v7206_v55  ;;  %845 = vmatpush.msrb.mxu3 %v732_v39  ;;  %v700_v39 = vld [vmem:[#allocation13 + $0x1e8] sm:$0xff] }
  0x9e   :  { %568 = vmatmul.f32.vlgmr.msra.gmra.mxu3 %v7206_v55  ;;  %809 = vmatpush.msra.mxu1 %v715_v54  ;;  %v691_v54 = vld [vmem:[#allocation13 + $0x1a0] sm:$0xff]  ;;  %v749_v55 = vld [vmem:[#allocation13 + $0x370] sm:$0xff] }
  0x9f   :  { %846 = vmatpush.msrb.mxu3 %v728_v42  ;;  %817 = vmatpush.msrb.mxu2 %v700_v39  ;;  %v766_v42 = vld [vmem:[#allocation13 + $0x3f8] sm:$0xff]  ;;  %v688_v39 = vld [vmem:[#allocation13 + $0x188] sm:$0xff] }
  0xa0   :  { %810 = vmatpush.msra.mxu1 %v711_v62  ;;  %v692_v62 = vld [vmem:[#allocation13 + $0x1a8] sm:$0xff]  ;;  %779 = vmatpush.msra.mxu0 %v691_v54  ;;  %v745_v54 = vld [vmem:[#allocation13 + $0x350] sm:$0xff] }
  0xa1   :  { %847 = vmatpush.msrb.mxu3 %v724_v48  ;;  %v696_v48 = vld [vmem:[#allocation13 + $0x1c8] sm:$0xff] }
  0xa2   :  { %811 = vmatpush.msra.mxu1 %v707_v6  ;;  %818 = vmatpush.msrb.mxu2 %v696_v48  ;;  %v758_v6 = vld [vmem:[#allocation13 + $0x3b8] sm:$0xff]  ;;  %v684_v48 = vld [vmem:[#allocation13 + $0x168] sm:$0xff] }
  0xa3   :  { %848 = vmatpush.msrb.mxu3 %v720_v51  ;;  %v762_v51 = vld [vmem:[#allocation13 + $0x3d8] sm:$0xff]  ;;  %780 = vmatpush.msra.mxu0 %v687_v38  ;;  %v741_v38 = vld [vmem:[#allocation13 + $0x330] sm:$0xff] }
  0xa4   :  { %812 = vmatpush.msra.mxu1 %v703_v11  ;;  %819 = vmatpush.msrb.mxu2 %v692_v62  ;;  %v746_v62 = vld [vmem:[#allocation13 + $0x358] sm:$0xff] }
  0xa5   :  { %849 = vmatpush.msrb.mxu3 %v716_v57  ;;  %781 = vmatpush.msra.mxu0 %v683_v47 }
  0xa6   :  { %877 = vmatpush.msrb.mxu1 %v765_v41  ;;  %v753_v41 = vld [vmem:[#allocation13 + $0x390] sm:$0xff]  ;;  %820 = vmatpush.msrb.mxu2 %v688_v39  ;;  %v742_v39 = vld [vmem:[#allocation13 + $0x338] sm:$0xff] }
  0xa7   :  { %850 = vmatpush.msrb.mxu3 %v712_v0  ;;  %v757_v0 = vld [vmem:[#allocation13 + $0x3b0] sm:$0xff] }
  0xa8   :  { %878 = vmatpush.msrb.mxu1 %v761_v50  ;;  %v679_v50 = vld [vmem:[#allocation13 + $0x140] sm:$0xff]  ;;  %821 = vmatpush.msrb.mxu2 %v684_v48  ;;  %v737_v48 = vld [vmem:[#allocation13 + $0x310] sm:$0xff] }
  0xa9   :  { %851 = vmatpush.msrb.mxu3 %v708_v8  ;;  %782 = vmatpush.msra.mxu0 %v679_v50  ;;  %v738_v50 = vld [vmem:[#allocation13 + $0x318] sm:$0xff] }
  0xaa   :  { %879 = vmatpush.msrb.mxu1 %v757_v0  ;;  %v675_v0 = vld [vmem:[#allocation13 + $0x120] sm:$0xff] }
  0xab   :  { %852 = vmatpush.msrb.mxu3 %v704_v12  ;;  %783 = vmatpush.msra.mxu0 %v675_v0  ;;  %v664_v0 = vld [vmem:[#allocation13 + $0xc8] sm:$0xff] }
  0xac   :  { %880 = vmatpush.msrb.mxu1 %v753_v41 }
  0xad   :  { %917 = vmatpush.msra.mxu3 %v766_v42  ;;  %v754_v42 = vld [vmem:[#allocation13 + $0x398] sm:$0xff] }
  0xae   :  { %881 = vmatpush.msrb.mxu1 %v749_v55  ;;  %v671_v55 = vld [vmem:[#allocation13 + $0x100] sm:$0xff] }
  0xaf   :  { %918 = vmatpush.msra.mxu3 %v762_v51  ;;  %v680_v51 = vld [vmem:[#allocation13 + $0x148] sm:$0xff]  ;;  %784 = vmatpush.msra.mxu0 %v671_v55 }
  0xb0   :  { %822 = vmatpush.msrb.mxu2 %v680_v51  ;;  %882 = vmatpush.msrb.mxu1 %v745_v54  ;;  %v667_v51 = vld [vmem:[#allocation13 + $0xe0] sm:$0xff]  ;;  %v733_v54 = vld [vmem:[#allocation13 + $0x2f0] sm:$0xff]  ;;  %v660_v55 = vld [vmem:[#allocation13 + $0xa8] sm:$0xff] }
  0xb1   :  { %919 = vmatpush.msra.mxu3 %v758_v6  ;;  %v676_v6 = vld [vmem:[#allocation13 + $0x128] sm:$0xff]  ;;  %785 = vmatpush.msra.mxu0 %v667_v51 }
  0xb2   :  { %823 = vmatpush.msrb.mxu2 %v676_v6  ;;  %883 = vmatpush.msrb.mxu1 %v741_v38  ;;  %v729_v6 = vld [vmem:[#allocation13 + $0x2d0] sm:$0xff]  ;;  %v6162_v38 = vld [vmem:[%s7198_s4] sm:$0xf] }
  0xb3   :  { %920 = vmatpush.msra.mxu3 %v754_v42  ;;  %v6170_v51 = vperm.slane %v6162_v38, 1 }
  0xb4   :  { %884 = vmatpush.msrb.mxu1 %v737_v48  ;;  %v726_v48 = vld [vmem:[#allocation13 + $0x2b8] sm:$0xff] }
  0xb6   :  { %885 = vmatpush.msrb.mxu1 %v733_v54  ;;  %v655_v54 = vld [vmem:[#allocation13 + $0x80] sm:$0xff] }
  0xb8   :  { %886 = vmatpush.msrb.mxu1 %v729_v6 }
  0xbe   :  { %v6121_v34 = vpop.f32.mrf.mxu0  ;;  %v6127_v37 = vpop.f32.mrf.mxu1 }
  0xc0   :  { %v6067_v32 = vpop.f32.mrf.mxu2  ;;  %v6069_v13 = vpop.f32.mrf.mxu3 }
  0xc1   :  { %7208 = vst [vmem:[#allocation25_spill] sm:$0xff] %v6067_v32  ;;  %v280_v32 = vadd.f32 %v6127_v37, %v6170_v51  ;;  %v643_v37 = vld [vmem:[#allocation13 + $0x20] sm:$0xff] }
  0xc2   :  { %7209 = vst [vmem:[#allocation26_spill] sm:$0xff] %v6069_v13  ;;  %v651_v13 = vld [vmem:[#allocation13 + $0x60] sm:$0xff] }
  0xc8   :  { %v6083_v9 = vpop.f32.mrf.mxu2  ;;  %v6085_v16 = vpop.f32.mrf.mxu3 }
  0xc9   :  { %7210 = vst [vmem:[#allocation27_spill] sm:$0xff] %v6083_v9  ;;  %v730_v9 = vld [vmem:[#allocation13 + $0x2d8] sm:$0xff] }
  0xca   :  { %7211 = vst [vmem:[#allocation28_spill] sm:$0xff] %v6085_v16 }
  0xcc   :  { %v6135_v52 = vpop.f32.mrf.mxu0  ;;  %v6137_v60 = vpop.f32.mrf.mxu1 }
  0xd0   :  { %v6109_v27 = vpop.f32.mrf.mxu2  ;;  %v6111_v29 = vpop.f32.mrf.mxu3 }
  0xd1   :  { %7212 = vst [vmem:[#allocation29_spill] sm:$0xff] %v6109_v27  ;;  %v668_v27 = vld [vmem:[#allocation13 + $0xe8] sm:$0xff] }
  0xd2   :  { %7213 = vst [vmem:[#allocation30_spill] sm:$0xff] %v6111_v29  ;;  %v663_v29 = vld [vmem:[#allocation13 + $0xc0] sm:$0xff] }
  0xd3   :  { %786 = vmatpush.msra.mxu0 %v663_v29 }
  0xd8   :  { %v6131_v43 = vpop.f32.mrf.mxu2  ;;  %v6133_v46 = vpop.f32.mrf.mxu3 }
  0xd9   :  { %7214 = vst [vmem:[#allocation31_spill] sm:$0xff] %v6131_v43  ;;  %v6143_v57 = vpop.f32.mrf.mxu0  ;;  %v6145_v8 = vpop.f32.mrf.mxu1  ;;  %v750_v43 = vld [vmem:[#allocation13 + $0x378] sm:$0xff] }
  0xda   :  { %7215 = vst [vmem:[#allocation32_spill] sm:$0xff] %v6133_v46  ;;  %921 = vmatpush.msra.mxu3 %v750_v43  ;;  %v672_v43 = vld [vmem:[#allocation13 + $0x108] sm:$0xff] }
  0xdb   :  { %7216 = vst [vmem:[#allocation33_spill] sm:$0xff] %v6143_v57  ;;  %824 = vmatpush.msrb.mxu2 %v672_v43  ;;  %v725_v43 = vld [vmem:[#allocation13 + $0x2b0] sm:$0xff]  ;;  %v710_v57 = vld [vmem:[#allocation13 + $0x238] sm:$0xff] }
  0xdc   :  { %922 = vmatpush.msra.mxu3 %v746_v62  ;;  %v734_v62 = vld [vmem:[#allocation13 + $0x2f8] sm:$0xff]  ;;  %887 = vmatpush.msrb.mxu1 %v725_v43  ;;  %v648_v43 = vld [vmem:[#allocation13 + $0x48] sm:$0xff] }
  0xdd   :  { %825 = vmatpush.msrb.mxu2 %v668_v27 }
  0xde   :  { %923 = vmatpush.msra.mxu3 %v742_v39  ;;  %v659_v39 = vld [vmem:[#allocation13 + $0xa0] sm:$0xff] }
  0xdf   :  { %826 = vmatpush.msrb.mxu2 %v664_v0  ;;  %787 = vmatpush.msra.mxu0 %v659_v39  ;;  %v721_v0 = vld [vmem:[#allocation13 + $0x290] sm:$0xff] }
  0xe0   :  { %v6139_v2 = vpop.f32.mrf.mxu2  ;;  %v6141_v4 = vpop.f32.mrf.mxu3  ;;  %924 = vmatpush.msra.mxu3 %v738_v50  ;;  %v6165_v50 = vperm.slane %v6162_v38, 0  ;;  %888 = vmatpush.msrb.mxu1 %v721_v0  ;;  %v717_v39 = vld [vmem:[#allocation13 + $0x270] sm:$0xff] }
  0xe1   :  { %v6153_v41 = vpop.f32.mrf.mxu0  ;;  %v6157_v47 = vpop.f32.mrf.mxu1  ;;  %827 = vmatpush.msrb.mxu2 %v660_v55  ;;  %788 = vmatpush.msra.mxu0 %v655_v54  ;;  %v718_v55 = vld [vmem:[#allocation13 + $0x278] sm:$0xff]  ;;  %v644_v54 = vld [vmem:[#allocation13 + $0x28] sm:$0xff] }
  0xe2   :  { %7218 = vst [vmem:[#allocation35_spill] sm:$0xff] %v6153_v41  ;;  %925 = vmatpush.msra.mxu3 %v734_v62  ;;  %v239_v29 = vadd.f32 %v6121_v34, %v6165_v50  ;;  %v656_v62 = vld [vmem:[#allocation13 + $0x88] sm:$0xff]  ;;  %v647_v34 = vld [vmem:[#allocation13 + $0x40] sm:$0xff]  ;;  %889 = vmatpush.msrb.mxu1 %v717_v39  ;;  %v701_v39 = vld [vmem:[#allocation13 + $0x1f0] sm:$0xff] }
  0xe3   :  { %7219 = vst [vmem:[#allocation36_spill] sm:$0xff] %v6157_v47  ;;  %828 = vmatpush.msrb.mxu2 %v656_v62  ;;  %789 = vmatpush.msra.mxu0 %v651_v13 }
  0xe4   :  { %926 = vmatpush.msra.mxu3 %v730_v9  ;;  %v722_v9 = vld [vmem:[#allocation13 + $0x298] sm:$0xff] }
  0xe5   :  { %790 = vmatpush.msra.mxu0 %v647_v34  ;;  %v1069_v34 = vld [vmem:[#allocation11 + $0x1e8] sm:$0xff] }
  0xe6   :  { %927 = vmatpush.msra.mxu3 %v726_v48  ;;  %v713_v48 = vld [vmem:[#allocation13 + $0x250] sm:$0xff] }
  0xe7   :  { %890 = vmatpush.msrb.mxu1 %v713_v48  ;;  %791 = vmatpush.msra.mxu0 %v643_v37  ;;  %v694_v48 = vld [vmem:[#allocation13 + $0x1b8] sm:$0xff] }
  0xe8   :  { %v6147_v11 = vpop.f32.mrf.mxu2  ;;  %928 = vmatpush.msra.mxu3 %v722_v9 }
  0xe9   :  { %v6149_v12 = vpop.f32.mrf.mxu3 }
  0xea   :  { %929 = vmatpush.msra.mxu3 %v718_v55  ;;  %v702_v55 = vld [vmem:[#allocation13 + $0x1f8] sm:$0xff] }
  0xeb   :  { %v509_v6 = vpop.f32.mrf.mxu0 }
  0xec   :  { %v529_v41 = vpop.f32.mrf.mxu1  ;;  %v572_v47 = vadd.f32 %v509_v6, %v239_v29  ;;  %v640_v29 = vld [vmem:[#allocation13 + $0x8] sm:$0xff] }
  0xed   :  { %v573_v62 = vadd.f32 %v529_v41, %v280_v32  ;;  %v705_v32 = vld [vmem:[#allocation13 + $0x210] sm:$0xff]  ;;  %v706_v41 = vld [vmem:[#allocation13 + $0x218] sm:$0xff] }
  0xee   :  { %v5303_v13 = vmul.f32 -1.442695, %v572_v47  ;;  %v698_v47 = vld [vmem:[#allocation13 + $0x1d8] sm:$0xff] }
  0xef   :  { %v5304_v6 = vmul.f32 -1.442695, %v573_v62 }
  0xf0   :  { %v6151_v46 = vpop.f32.mrf.mxu2  ;;  %5401 = vpow2.f32 %v5303_v13  ;;  %v689_v13 = vld [vmem:[#allocation13 + $0x190] sm:$0xff] }
  0xf1   :  { %7217 = vst [vmem:[#allocation34_spill] sm:$0xff] %v6151_v46  ;;  %v6155_v42 = vpop.f32.mrf.mxu3  ;;  %v709_v46 = vld [vmem:[#allocation13 + $0x230] sm:$0xff]  ;;  %5403 = vpow2.f32 %v5304_v6  ;;  %v686_v6 = vld [vmem:[#allocation13 + $0x178] sm:$0xff] }
  0xf2   :  { %891 = vmatpush.msrb.mxu1 %v709_v46  ;;  %v1065_v46 = vld [vmem:[#allocation11 + $0x1c8] sm:$0xff] }
  0xf4   :  { %892 = vmatpush.msrb.mxu1 %v705_v32 }
  0xf6   :  { %v5402_v32 = vpop.eup %5401 }
  0xf8   :  { %v6167_v27 = vpop.f32.mrf.mxu2 }
  0xf9   :  { %7220 = vst [vmem:[#allocation37_spill] sm:$0xff] %v6167_v27  ;;  %v6172_v16 = vpop.f32.mrf.mxu3  ;;  %v652_v27 = vld [vmem:[#allocation13 + $0x68] sm:$0xff] }
  0xfa   :  { %7221 = vst [vmem:[#allocation38_spill] sm:$0xff] %v6172_v16  ;;  %829 = vmatpush.msrb.mxu2 %v652_v27  ;;  %v714_v16 = vld [vmem:[#allocation13 + $0x258] sm:$0xff]  ;;  %v639_v27 = vld [vmem:[#allocation13] sm:$0xff] }
  0xfb   :  { %930 = vmatpush.msra.mxu3 %v714_v16  ;;  %792 = vmatpush.msra.mxu0 %v639_v27  ;;  %v7222_v16 = vmov 0.0   ;;  %v690_v27 = vld [vmem:[#allocation13 + $0x198] sm:$0xff] }
  0xfc   :  { %830 = vmatpush.msrb.mxu2 %v648_v43  ;;  %813 = vmatmul.f32.vlgmr.msra.gmra.mxu1 %v7222_v16  ;;  %v697_v43 = vld [vmem:[#allocation13 + $0x1d0] sm:$0xff] }
  0xfd   :  { %931 = vmatpush.msra.mxu3 %v710_v57  ;;  %857 = vmatpush.msrb.mxu0 %v701_v39  ;;  %v693_v57 = vld [vmem:[#allocation13 + $0x1b0] sm:$0xff]  ;;  %v5404_v39 = vpop.eup %5403 }
  0xfe   :  { %831 = vmatpush.msrb.mxu2 %v644_v54  ;;  %853 = vmatmul.f32.vlgmr.msrb.gmra.mxu3 %v7222_v16  ;;  %v1061_v54 = vld [vmem:[#allocation11 + $0x1a8] sm:$0xff] }
  0xff   :  { %932 = vmatpush.msra.mxu3 %v706_v41  ;;  %1092 = vmatpush.msra.mxu1 %v1069_v34  ;;  %v1053_v41 = vld [vmem:[#allocation11 + $0x168] sm:$0xff] }
 0x100   :  { %v6178_v0 = vpop.f32.mrf.mxu2  ;;  %832 = vmatpush.msrb.mxu2 %v640_v29  ;;  %858 = vmatpush.msrb.mxu0 %v697_v43  ;;  %v1057_v29 = vld [vmem:[#allocation11 + $0x188] sm:$0xff]  ;;  %v6192_v43 = vadd.f32 1.0, %v5402_v32  ;;  %v661_v32 = vld [vmem:[#allocation13 + $0xb0] sm:$0xff] }
 0x101   :  { %v6180_v9 = vpop.f32.mrf.mxu3  ;;  %1132 = vmatpush.msrb.mxu3 %v5989_v23  ;;  %1093 = vmatpush.msra.mxu1 %v1065_v46  ;;  %v685_v23 = vld [vmem:[#allocation13 + $0x170] sm:$0xff]  ;;  %v1049_v34 = vld [vmem:[#allocation11 + $0x148] sm:$0xff]  ;;  %v6195_v46 = vadd.f32 1.0, %v5404_v39 }
 0x102   :  { %897 = vmatpush.msra.mxu2 %v702_v55  ;;  %859 = vmatpush.msrb.mxu0 %v693_v57  ;;  %v681_v55 = vld [vmem:[#allocation13 + $0x150] sm:$0xff]  ;;  %5405 = vrcp.f32 %v6192_v43  ;;  %v1029_v39 = vld [vmem:[#allocation11 + $0xa8] sm:$0xff]  ;;  %vm585_vm0 = vweird.f32 %v6192_v43 }
 0x103   :  { %1133 = vmatpush.msrb.mxu3 %v5995_v28  ;;  %1094 = vmatpush.msra.mxu1 %v1061_v54  ;;  %v682_v28 = vld [vmem:[#allocation13 + $0x158] sm:$0xff]  ;;  %v673_v54 = vld [vmem:[#allocation13 + $0x110] sm:$0xff]  ;;  %5407 = vrcp.f32 %v6195_v46  ;;  %vm604_vm2 = vweird.f32 %v6195_v46 }
 0x104   :  { %898 = vmatpush.msra.mxu2 %v698_v47  ;;  %860 = vmatpush.msrb.mxu0 %v689_v13  ;;  %v678_v47 = vld [vmem:[#allocation13 + $0x138] sm:$0xff] }
 0x105   :  { %1134 = vmatpush.msrb.mxu3 %v5999_v33  ;;  %1095 = vmatpush.msra.mxu1 %v1057_v29  ;;  %v677_v33 = vld [vmem:[#allocation13 + $0x130] sm:$0xff]  ;;  %v674_v13 = vld [vmem:[#allocation13 + $0x118] sm:$0xff] }
 0x106   :  { %899 = vmatpush.msra.mxu2 %v694_v48  ;;  %861 = vmatpush.msrb.mxu0 %v685_v23  ;;  %v1045_v48 = vld [vmem:[#allocation11 + $0x128] sm:$0xff]  ;;  %v670_v29 = vld [vmem:[#allocation13 + $0xf8] sm:$0xff] }
 0x107   :  { %1135 = vmatpush.msrb.mxu3 %v6010_v40  ;;  %1096 = vmatpush.msra.mxu1 %v1053_v41  ;;  %v666_v23 = vld [vmem:[#allocation13 + $0xd8] sm:$0xff] }
 0x108   :  { %v6185_v37 = vpop.f32.mrf.mxu2  ;;  %900 = vmatpush.msra.mxu2 %v690_v27  ;;  %862 = vmatpush.msrb.mxu0 %v681_v55  ;;  %v1041_v27 = vld [vmem:[#allocation11 + $0x108] sm:$0xff]  ;;  %v6210_v55 = vpop.eup %5405 }
 0x109   :  { %v6187_v62 = vpop.f32.mrf.mxu3  ;;  %1136 = vmatpush.msrb.mxu3 %v6014_v45  ;;  %1097 = vmatpush.msra.mxu1 %v1049_v34  ;;  %v669_v45 = vld [vmem:[#allocation13 + $0xf0] sm:$0xff]  ;;  %v658_v34 = vld [vmem:[#allocation13 + $0x98] sm:$0xff]  ;;  %vm586_vm1 = vweird.f32 %v6210_v55 }
 0x10a   :  { %901 = vmatpush.msra.mxu2 %v686_v6  ;;  %863 = vmatpush.msrb.mxu0 %v677_v33  ;;  %v1033_v6 = vld [vmem:[#allocation11 + $0xc8] sm:$0xff]  ;;  %v6215_v33 = vpop.eup %5407  ;;  %vm6251_vm4 = vmor %vm585_vm0, %vm586_vm1 }
 0x10b   :  { %1137 = vmatpush.msrb.mxu3 %v6017_v49  ;;  %1098 = vmatpush.msra.mxu1 %v1045_v48  ;;  %v665_v49 = vld [vmem:[#allocation13 + $0xd0] sm:$0xff]  ;;  %v654_v48 = vld [vmem:[#allocation13 + $0x78] sm:$0xff]  ;;  %vm605_vm3 = vweird.f32 %v6215_v33 }
 0x10c   :  { %902 = vmatpush.msra.mxu2 %v682_v28  ;;  %864 = vmatpush.msrb.mxu0 %v673_v54  ;;  %v600_v54 = vmul.f32 %v6215_v33, %v6195_v46  ;;  %vm6259_vm5 = vmor %vm604_vm2, %vm605_vm3 }
 0x10d   :  { %1138 = vmatpush.msrb.mxu3 %v6021_v53  ;;  %1099 = vmatpush.msra.mxu1 %v1041_v27  ;;  %v662_v53 = vld [vmem:[#allocation13 + $0xb8] sm:$0xff]  ;;  %v6227_v27 = vperm.slane %v6162_v38, 2 }
 0x10e   :  { %903 = vmatpush.msra.mxu2 %v678_v47  ;;  %865 = vmatpush.msrb.mxu0 %v669_v45  ;;  %v653_v47 = vld [vmem:[#allocation13 + $0x70] sm:$0xff]  ;;  %v650_v45 = vld [vmem:[#allocation13 + $0x58] sm:$0xff] }
 0x10f   :  { %1139 = vmatpush.msrb.mxu3 %v6026_v56  ;;  %1100 = vmatpush.msra.mxu1 %v5991_v25  ;;  %v657_v56 = vld [vmem:[#allocation13 + $0x90] sm:$0xff]  ;;  %v1025_v25 = vld [vmem:[#allocation11 + $0x88] sm:$0xff] }
 0x110   :  { %v6197_v57 = vpop.f32.mrf.mxu2  ;;  %904 = vmatpush.msra.mxu2 %v674_v13  ;;  %866 = vmatpush.msrb.mxu0 %v665_v49  ;;  %v1021_v13 = vld [vmem:[#allocation11 + $0x68] sm:$0xff] }
 0x111   :  { %v6199_v40 = vpop.f32.mrf.mxu3  ;;  %1140 = vmatpush.msrb.mxu3 %v6030_v58  ;;  %1101 = vmatpush.msra.mxu1 %v1033_v6  ;;  %v6219_v58 = vperm.slane %v6162_v38, 3  ;;  %v601_v38 = vsub.f32 1.0, %v600_v54 }
 0x112   :  { %905 = vmatpush.msra.mxu2 %v670_v29  ;;  %867 = vmatpush.msrb.mxu0 %v661_v32  ;;  %v1017_v29 = vld [vmem:[#allocation11 + $0x48] sm:$0xff] }
 0x113   :  { %1141 = vmatpush.msrb.mxu3 %v6033_v61  ;;  %1102 = vmatpush.msra.mxu1 %v1029_v39  ;;  %v581_v61 = vmul.f32 %v6210_v55, %v6192_v43  ;;  %v362_v49 = vadd.f32 %v6141_v4, %v6219_v58  ;;  %v321_v39 = vadd.f32 %v6139_v2, %v6227_v27  ;;  %v641_v4 = vld [vmem:[#allocation13 + $0x10] sm:$0xff]  ;;  %v591_v2 = vand.u32 2147483648, %v6192_v43 }
 0x114   :  { %906 = vmatpush.msra.mxu2 %v666_v23  ;;  %868 = vmatpush.msrb.mxu0 %v657_v56  ;;  %v646_v23 = vld [vmem:[#allocation13 + $0x38] sm:$0xff] }
 0x115   :  { %1142 = vmatpush.msrb.mxu3 %v6036_v63  ;;  %1103 = vmatpush.msra.mxu1 %v1025_v25  ;;  %v649_v63 = vld [vmem:[#allocation13 + $0x50] sm:$0xff]  ;;  %v582_v6 = vsub.f32 1.0, %v581_v61 }
 0x116   :  { %907 = vmatpush.msra.mxu2 %v662_v53  ;;  %893 = vmatmul.f32.vlgmr.msrb.gmra.mxu1 %v7222_v16 }
 0x117   :  { %1143 = vmatpush.msrb.mxu3 %v6041_v1  ;;  %869 = vmatpush.msrb.mxu0 %v653_v47  ;;  %v645_v1 = vld [vmem:[#allocation13 + $0x30] sm:$0xff]  ;;  %v583_v61 = vmul.f32 %v6210_v55, %v582_v6 }
 0x118   :  { %v6208_v41 = vpop.f32.mrf.mxu2  ;;  %908 = vmatpush.msra.mxu2 %v658_v34  ;;  %933 = vmatmul.f32.vlgmr.msra.gmra.mxu3 %v7222_v16  ;;  %v1013_v16 = vld [vmem:[#allocation11 + $0x28] sm:$0xff]  ;;  %v642_v34 = vld [vmem:[#allocation13 + $0x18] sm:$0xff] }
 0x119   :  { %v6212_v28 = vpop.f32.mrf.mxu3  ;;  %1104 = vmatpush.msra.mxu1 %v1021_v13  ;;  %1144 = vmatpush.msrb.mxu3 %v6044_v3  ;;  %v1009_v3 = vld [vmem:[#allocation11 + $0x8] sm:$0xff]  ;;  %v584_v54 = vadd.f32 %v6210_v55, %v583_v61  ;;  %v1050_v61 = vld [vmem:[#allocation11 + $0x150] sm:$0xff]  ;;  %v1036_v13 = vld [vmem:[#allocation11 + $0xe0] sm:$0xff] }
 0x11a   :  { %909 = vmatpush.msra.mxu2 %v654_v48  ;;  %870 = vmatpush.msrb.mxu0 %v649_v63  ;;  %v602_v48 = vmul.f32 %v6215_v33, %v601_v38  ;;  %v608_v63 = vand.u32 2147483647, %v6195_v46 }
 0x11b   :  { %1105 = vmatpush.msra.mxu1 %v1017_v29  ;;  %1145 = vmatpush.msrb.mxu3 %v6047_v5  ;;  %v610_v5 = vand.u32 2147483648, %v6195_v46  ;;  %v588_v46 = vsel %vm6251_vm4, %v6210_v55, %v584_v54  ;;  %v1042_v54 = vld [vmem:[#allocation11 + $0x110] sm:$0xff] }
 0x11c   :  { %910 = vmatpush.msra.mxu2 %v650_v45  ;;  %871 = vmatpush.msrb.mxu0 %v645_v1  ;;  %vm609_vm7 = vcmp.eq.f32.partialorder %v608_v63, 8.507059e+37  ;;  %v1032_v63 = vld [vmem:[#allocation11 + $0xc0] sm:$0xff] }
 0x11d   :  { %1106 = vmatpush.msra.mxu1 %v1013_v16  ;;  %1146 = vmatpush.msrb.mxu3 %v6050_v7  ;;  %v589_v7 = vand.u32 2147483647, %v6192_v43  ;;  %v592_v43 = vor.u32 1.1754944e-38, %v591_v2  ;;  %v611_v45 = vor.u32 1.1754944e-38, %v610_v5  ;;  %v5080_v16 = vld [vmem:[%s7195_s1] sm:$0xff] }
 0x11e   :  { %911 = vmatpush.msra.mxu2 %v646_v23  ;;  %872 = vmatpush.msrb.mxu0 %v641_v4  ;;  %v5854_v4 = vmov 0   ;;  %v1044_v5 = vld [vmem:[#allocation11 + $0x120] sm:$0xff] }
 0x11f   :  { %1107 = vmatpush.msra.mxu1 %v1009_v3  ;;  %1147 = vmatpush.msrb.mxu3 %v6055_v10  ;;  %v603_v10 = vadd.f32 %v6215_v33, %v602_v48  ;;  %vm590_vm6 = vcmp.eq.f32.partialorder %v589_v7, 8.507059e+37  ;;  %v1058_v3 = vld [vmem:[#allocation11 + $0x190] sm:$0xff]  ;;  %v1048_v48 = vld [vmem:[#allocation11 + $0x140] sm:$0xff] }
 0x120   :  { %v549_v32 = vpop.f32.mrf.mxu2  ;;  %912 = vmatpush.msra.mxu2 %v642_v34  ;;  %5396 = vset.pattern.permute.xlu0 %v5854_v4  ;;  %v1056_v34 = vld [vmem:[#allocation11 + $0x180] sm:$0xff]  ;;  %v1046_v7 = vld [vmem:[#allocation11 + $0x130] sm:$0xff] }
 0x121   :  { %v569_v53 = vpop.f32.mrf.mxu3  ;;  %v574_v25 = vadd.f32 %v549_v32, %v321_v39  ;;  %1377 = vmatpush.msrb.mxu1 %v6071_v14  ;;  %1417 = vmatpush.msra.mxu3 %v6073_v15  ;;  %v1064_v32 = vld [vmem:[#allocation11 + $0x1c0] sm:$0xff]  ;;  %v1034_v14 = vld [vmem:[#allocation11 + $0xd0] sm:$0xff] }
 0x122   :  { %v575_v56 = vadd.f32 %v569_v53, %v362_v49  ;;  %v1066_v53 = vld [vmem:[#allocation11 + $0x1d0] sm:$0xff]  ;;  %v1060_v39 = vld [vmem:[#allocation11 + $0x1a0] sm:$0xff]  ;;  %5090 = vperm.xlu0 %5396, %v5080_v16   ;;  %5397 = vset.pattern.permute.xlu1 %v5854_v4 }
 0x123   :  { %1378 = vmatpush.msrb.mxu1 %v6075_v44  ;;  %1418 = vmatpush.msra.mxu3 %v6079_v59  ;;  %v607_v44 = vsel %vm6259_vm5, %v6215_v33, %v603_v10  ;;  %v1040_v2 = vld [vmem:[#allocation11 + $0x100] sm:$0xff]  ;;  %v1038_v10 = vld [vmem:[#allocation11 + $0xf0] sm:$0xff] }
 0x124   :  { %v5305_v47 = vmul.f32 -1.442695, %v575_v56  ;;  %v612_v29 = vsel %vm609_vm7, %v611_v45, %v607_v44  ;;  %v1062_v56 = vld [vmem:[#allocation11 + $0x1b0] sm:$0xff]  ;;  %5398 = vset.pattern.permute.xlu2 %v5854_v4  ;;  %v1024_v45 = vld [vmem:[#allocation11 + $0x80] sm:$0xff]  ;;  %v1272_v4 = vld [vmem:[#allocation13 + $0x1a8] sm:$0xff] }
 0x125   :  { %1379 = vmatpush.msrb.mxu1 %v6087_v17  ;;  %1419 = vmatpush.msra.mxu3 %v6089_v18  ;;  %v593_v18 = vsel %vm590_vm6, %v592_v43, %v588_v46  ;;  %v634_v55 = vmul.f32 0.0, %v612_v29  ;;  %v1030_v43 = vld [vmem:[#allocation11 + $0xb0] sm:$0xff]  ;;  %v1020_v44 = vld [vmem:[#allocation11 + $0x60] sm:$0xff] }
 0x126   :  { %5409 = vpow2.f32 %v5305_v47  ;;  %v1054_v47 = vld [vmem:[#allocation11 + $0x170] sm:$0xff]  ;;  %v1012_v29 = vld [vmem:[#allocation11 + $0x20] sm:$0xff] }
 0x127   :  { %5411 = vtanh.f32 %v574_v25  ;;  %1380 = vmatpush.msrb.mxu1 %v6093_v19  ;;  %1420 = vmatpush.msra.mxu3 %v6095_v20  ;;  %v1052_v25 = vld [vmem:[#allocation11 + $0x160] sm:$0xff]  ;;  %v1026_v46 = vld [vmem:[#allocation11 + $0x90] sm:$0xff] }
 0x128   :  { %v1291_v16 = vld [vmem:[#allocation13 + $0x240] sm:$0xff] }
 0x129   :  { %1381 = vmatpush.msrb.mxu1 %v6099_v21  ;;  %1421 = vmatpush.msra.mxu3 %v6101_v22 }
 0x12b   :  { %1382 = vmatpush.msrb.mxu1 %v6105_v24  ;;  %1422 = vmatpush.msra.mxu3 %v6107_v26 }
 0x12c   :  { %v5410_v15 = vpop.eup %5409 }
 0x12d   :  { %v618_v59 = vadd.f32 1.0, %v5410_v15  ;;  %v5412_v17 = vpop.eup %5411  ;;  %1383 = vmatpush.msrb.mxu1 %v6115_v30  ;;  %1423 = vmatpush.msra.mxu3 %v6117_v31  ;;  %v1028_v15 = vld [vmem:[#allocation11 + $0xa0] sm:$0xff] }
 0x12e   :  { %v635_v49 = vmul.f32 %v5412_v17, %v593_v18  ;;  %v1016_v17 = vld [vmem:[#allocation11 + $0x40] sm:$0xff]  ;;  %v1018_v18 = vld [vmem:[#allocation11 + $0x50] sm:$0xff] }
 0x12f   :  { %5413 = vrcp.f32 %v618_v59  ;;  %1384 = vmatpush.msrb.mxu1 %v6123_v35  ;;  %1424 = vmatpush.msra.mxu3 %v6125_v36  ;;  %v630_v33 = vand.u32 2147483648, %v618_v59  ;;  %v628_v26 = vand.u32 2147483647, %v618_v59  ;;  %vm624_vm9 = vweird.f32 %v618_v59  ;;  %v1068_v35 = vld [vmem:[#allocation11 + $0x1e0] sm:$0xff]  ;;  %v1070_v36 = vld [vmem:[#allocation11 + $0x1f0] sm:$0xff] }
 0x130   :  { %v6279_v20 = vadd.f32 %v635_v49, %v634_v55  ;;  %v1014_v49 = vld [vmem:[#allocation11 + $0x30] sm:$0xff]  ;;  %v1008_v55 = vld [vmem:[#allocation11] sm:$0xff] }
 0x131   :  { %v631_v30 = vor.u32 1.1754944e-38, %v630_v33  ;;  %vm629_vm11 = vcmp.eq.f32.partialorder %v628_v26, 8.507059e+37  ;;  %v1307_v33 = vld [vmem:[#allocation13 + $0x2c0] sm:$0xff] }
 0x132   :  { %5415 = vtanh.f32 %v6279_v20  ;;  %v1303_v26 = vld [vmem:[#allocation13 + $0x2a0] sm:$0xff] }
 0x135   :  { %v5414_v19 = vpop.eup %5413 }
 0x136   :  { %v620_v21 = vmul.f32 %v5414_v19, %v618_v59  ;;  %vm625_vm8 = vweird.f32 %v5414_v19  ;;  %v1022_v59 = vld [vmem:[#allocation11 + $0x70] sm:$0xff] }
 0x137   :  { %vm626_vm10 = vmor %vm624_vm9, %vm625_vm8 }
 0x138   :  { %v621_v22 = vsub.f32 1.0, %v620_v21  ;;  %v5416_v23 = vpop.eup %5415  ;;  %v1311_v21 = vld [vmem:[#allocation13 + $0x2e0] sm:$0xff] }
 0x139   :  { %1385 = vmatpush.msrb.mxu1 %v1311_v21 }
 0x13a   :  { %v622_v24 = vmul.f32 %v5414_v19, %v621_v22  ;;  %v1312_v22 = vld [vmem:[#allocation13 + $0x2e8] sm:$0xff] }
 0x13b   :  { %1425 = vmatpush.msra.mxu3 %v1312_v22  ;;  %1386 = vmatpush.msrb.mxu1 %v1307_v33  ;;  %v1247_v22 = vld [vmem:[#allocation13 + $0xe0] sm:$0xff]  ;;  %v1248_v33 = vld [vmem:[#allocation13 + $0xe8] sm:$0xff] }
 0x13c   :  { %v623_v1 = vadd.f32 %v5414_v19, %v622_v24  ;;  %v1308_v24 = vld [vmem:[#allocation13 + $0x2c8] sm:$0xff] }
 0x13d   :  { %1426 = vmatpush.msra.mxu3 %v1308_v24  ;;  %1387 = vmatpush.msrb.mxu1 %v1303_v26  ;;  %v1329_v24 = vld [vmem:[#allocation13 + $0x370] sm:$0xff] }
 0x13e   :  { %v627_v31 = vsel %vm626_vm10, %v5414_v19, %v623_v1  ;;  %v1010_v19 = vld [vmem:[#allocation11 + $0x10] sm:$0xff]  ;;  %v1304_v1 = vld [vmem:[#allocation13 + $0x2a8] sm:$0xff] }
 0x13f   :  { %v632_v6 = vsel %vm629_vm11, %v631_v30, %v627_v31  ;;  %1427 = vmatpush.msra.mxu3 %v1304_v1  ;;  %v1299_v30 = vld [vmem:[#allocation13 + $0x280] sm:$0xff]  ;;  %v1300_v31 = vld [vmem:[#allocation13 + $0x288] sm:$0xff]  ;;  %v1330_v1 = vld [vmem:[#allocation13 + $0x378] sm:$0xff] }
 0x140   :  { %v6284_v38 = vmul.f32 %v5416_v23, %v632_v6  ;;  %1388 = vmatpush.msrb.mxu1 %v1299_v30  ;;  %v1279_v23 = vld [vmem:[#allocation13 + $0x1e0] sm:$0xff]  ;;  %v1280_v6 = vld [vmem:[#allocation13 + $0x1e8] sm:$0xff] }
 0x141   :  { %1428 = vmatpush.msra.mxu3 %v1300_v31  ;;  %v1243_v30 = vld [vmem:[#allocation13 + $0xc0] sm:$0xff]  ;;  %v1244_v31 = vld [vmem:[#allocation13 + $0xc8] sm:$0xff] }
 0x142   :  { %793 = vmatmul.f32.vlgmr.msra.gmra.mxu0 %v6284_v38  ;;  %833 = vmatmul.f32.vlgmr.msrb.gmra.mxu2 %v6284_v38 }
 0x143   :  { %1072 = vmatpush.msra.mxu0 %v1068_v35  ;;  %1108 = vmatmul.f32.vlgmr.msra.gmra.mxu1 %v6284_v38  ;;  %v1296_v35 = vld [vmem:[#allocation13 + $0x268] sm:$0xff] }
 0x144   :  { %1112 = vmatpush.msrb.mxu2 %v1070_v36  ;;  %1148 = vmatmul.f32.vlgmr.msrb.gmra.mxu3 %v6284_v38  ;;  %v1275_v36 = vld [vmem:[#allocation13 + $0x1c0] sm:$0xff] }
 0x145   :  { %1073 = vmatpush.msra.mxu0 %v1064_v32  ;;  %1429 = vmatpush.msra.mxu3 %v1296_v35  ;;  %v1276_v32 = vld [vmem:[#allocation13 + $0x1c8] sm:$0xff]  ;;  %v1326_v35 = vld [vmem:[#allocation13 + $0x358] sm:$0xff] }
 0x146   :  { %1113 = vmatpush.msrb.mxu2 %v1066_v53 }
 0x147   :  { %1074 = vmatpush.msra.mxu0 %v1060_v39  ;;  %v1292_v39 = vld [vmem:[#allocation13 + $0x248] sm:$0xff] }
 0x148   :  { %1114 = vmatpush.msrb.mxu2 %v1062_v56  ;;  %1430 = vmatpush.msra.mxu3 %v1292_v39  ;;  %v1271_v56 = vld [vmem:[#allocation13 + $0x1a0] sm:$0xff] }
 0x149   :  { %1075 = vmatpush.msra.mxu0 %v1056_v34  ;;  %v1287_v34 = vld [vmem:[#allocation13 + $0x220] sm:$0xff] }
 0x14a   :  { %1115 = vmatpush.msrb.mxu2 %v1058_v3  ;;  %873 = vmatmul.f32.vlgmr.msrb.gmra.mxu0 %v6284_v38  ;;  %v1288_v3 = vld [vmem:[#allocation13 + $0x228] sm:$0xff] }
 0x14b   :  { %913 = vmatmul.f32.vlgmr.msra.gmra.mxu2 %v6284_v38  ;;  %1076 = vmatpush.msra.mxu0 %v1052_v25  ;;  %v1267_v25 = vld [vmem:[#allocation13 + $0x180] sm:$0xff] }
 0x14c   :  { %1116 = vmatpush.msrb.mxu2 %v1054_v47  ;;  %1431 = vmatpush.msra.mxu3 %v1288_v3  ;;  %v1268_v47 = vld [vmem:[#allocation13 + $0x188] sm:$0xff] }
 0x14d   :  { %1077 = vmatpush.msra.mxu0 %v1048_v48  ;;  %v1283_v48 = vld [vmem:[#allocation13 + $0x200] sm:$0xff]  ;;  %v1236_v3 = vld [vmem:[#allocation13 + $0x88] sm:$0xff] }
 0x14e   :  { %1117 = vmatpush.msrb.mxu2 %v1050_v61  ;;  %v1284_v61 = vld [vmem:[#allocation13 + $0x208] sm:$0xff] }
 0x14f   :  { %1078 = vmatpush.msra.mxu0 %v1044_v5  ;;  %1432 = vmatpush.msra.mxu3 %v1284_v61  ;;  %v1263_v5 = vld [vmem:[#allocation13 + $0x160] sm:$0xff]  ;;  %v283_v61 = vadd.f32 %v6137_v60, %v6170_v51  ;;  %v1310_v60 = vld [vmem:[#allocation13 + $0x2d8] sm:$0xff] }
 0x150   :  { %1118 = vmatpush.msrb.mxu2 %v1046_v7  ;;  %v1264_v7 = vld [vmem:[#allocation13 + $0x168] sm:$0xff] }
 0x151   :  { %1079 = vmatpush.msra.mxu0 %v1040_v2  ;;  %v1345_v2 = vld [vmem:[#allocation13 + $0x3f0] sm:$0xff] }
 0x152   :  { %1119 = vmatpush.msrb.mxu2 %v1042_v54  ;;  %v6299_v54 = vld [vmem:[#allocation14] sm:$0xf] }
 0x153   :  { %1080 = vmatpush.msra.mxu0 %v1036_v13  ;;  %v1346_v13 = vld [vmem:[#allocation13 + $0x3f8] sm:$0xff] }
 0x154   :  { %1120 = vmatpush.msrb.mxu2 %v1038_v10  ;;  %1497 = vmatpush.msrb.mxu3 %v1346_v13  ;;  %v1259_v10 = vld [vmem:[#allocation13 + $0x140] sm:$0xff]  ;;  %v1232_v13 = vld [vmem:[#allocation13 + $0x68] sm:$0xff] }
 0x155   :  { %1081 = vmatpush.msra.mxu0 %v1032_v63  ;;  %v1260_v63 = vld [vmem:[#allocation13 + $0x148] sm:$0xff] }
 0x156   :  { %1121 = vmatpush.msrb.mxu2 %v1034_v14  ;;  %v1341_v14 = vld [vmem:[#allocation13 + $0x3d0] sm:$0xff] }
 0x157   :  { %1082 = vmatpush.msra.mxu0 %v1028_v15  ;;  %v1342_v15 = vld [vmem:[#allocation13 + $0x3d8] sm:$0xff] }
 0x158   :  { %1122 = vmatpush.msrb.mxu2 %v1030_v43  ;;  %1498 = vmatpush.msrb.mxu3 %v1342_v15  ;;  %v1255_v43 = vld [vmem:[#allocation13 + $0x120] sm:$0xff] }
 0x159   :  { %1083 = vmatpush.msra.mxu0 %v1024_v45  ;;  %v1256_v45 = vld [vmem:[#allocation13 + $0x128] sm:$0xff] }
 0x15a   :  { %1123 = vmatpush.msrb.mxu2 %v1026_v46  ;;  %v1337_v46 = vld [vmem:[#allocation13 + $0x3b0] sm:$0xff] }
 0x15b   :  { %1084 = vmatpush.msra.mxu0 %v1020_v44 }
 0x15c   :  { %1124 = vmatpush.msrb.mxu2 %v1022_v59  ;;  %v769_v59 = vperm.slane %v6299_v54, 0 }
 0x15d   :  { %1085 = vmatpush.msra.mxu0 %v1016_v17  ;;  %v1338_v17 = vld [vmem:[#allocation13 + $0x3b8] sm:$0xff] }
 0x15e   :  { %1125 = vmatpush.msrb.mxu2 %v1018_v18  ;;  %1499 = vmatpush.msrb.mxu3 %v1338_v17  ;;  %v1251_v18 = vld [vmem:[#allocation13 + $0x100] sm:$0xff]  ;;  %v772_v17 = vperm.slane %v6299_v54, 3 }
 0x15f   :  { %1086 = vmatpush.msra.mxu0 %v1012_v29  ;;  %v1252_v29 = vld [vmem:[#allocation13 + $0x108] sm:$0xff] }
 0x160   :  { %1126 = vmatpush.msrb.mxu2 %v1014_v49  ;;  %v1333_v49 = vld [vmem:[#allocation13 + $0x390] sm:$0xff] }
 0x161   :  { %1087 = vmatpush.msra.mxu0 %v1008_v55 }
 0x162   :  { %1127 = vmatpush.msrb.mxu2 %v1010_v19  ;;  %1088 = vmatmul.f32.vlgmr.msra.gmra.mxu0 %v6284_v38  ;;  %v1334_v19 = vld [vmem:[#allocation13 + $0x398] sm:$0xff] }
 0x163   :  { %1128 = vmatmul.f32.vlgmr.msrb.gmra.mxu2 %v6284_v38  ;;  %1357 = vmatpush.msrb.mxu0 %v1279_v23  ;;  %v1295_v38 = vld [vmem:[#allocation13 + $0x260] sm:$0xff]  ;;  %v1325_v23 = vld [vmem:[#allocation13 + $0x350] sm:$0xff] }
 0x164   :  { %1397 = vmatpush.msra.mxu2 %v1280_v6  ;;  %1389 = vmatpush.msrb.mxu1 %v1295_v38  ;;  %v770_v38 = vperm.slane %v6299_v54, 1 }
 0x165   :  { %1358 = vmatpush.msrb.mxu0 %v1275_v36  ;;  %1500 = vmatpush.msrb.mxu3 %v1334_v19  ;;  %v1239_v36 = vld [vmem:[#allocation13 + $0xa0] sm:$0xff] }
 0x166   :  { %1398 = vmatpush.msra.mxu2 %v1276_v32  ;;  %1390 = vmatpush.msrb.mxu1 %v1291_v16  ;;  %v1240_v32 = vld [vmem:[#allocation13 + $0xa8] sm:$0xff]  ;;  %v1321_v16 = vld [vmem:[#allocation13 + $0x330] sm:$0xff] }
 0x167   :  { %1359 = vmatpush.msrb.mxu0 %v1271_v56  ;;  %1501 = vmatpush.msrb.mxu3 %v1330_v1  ;;  %v1322_v56 = vld [vmem:[#allocation13 + $0x338] sm:$0xff] }
 0x168   :  { %1399 = vmatpush.msra.mxu2 %v1272_v4  ;;  %1391 = vmatpush.msrb.mxu1 %v1287_v34  ;;  %v1235_v34 = vld [vmem:[#allocation13 + $0x80] sm:$0xff]  ;;  %v1302_v1 = vld [vmem:[#allocation13 + $0x298] sm:$0xff] }
 0x169   :  { %1360 = vmatpush.msrb.mxu0 %v1267_v25  ;;  %1502 = vmatpush.msrb.mxu3 %v1326_v35  ;;  %v1277_v35 = vld [vmem:[#allocation13 + $0x1d0] sm:$0xff] }
 0x16a   :  { %1400 = vmatpush.msra.mxu2 %v1268_v47  ;;  %1392 = vmatpush.msrb.mxu1 %v1283_v48  ;;  %v1318_v48 = vld [vmem:[#allocation13 + $0x318] sm:$0xff] }
 0x16b   :  { %1361 = vmatpush.msrb.mxu0 %v1263_v5  ;;  %1503 = vmatpush.msrb.mxu3 %v1322_v56  ;;  %v1293_v56 = vld [vmem:[#allocation13 + $0x250] sm:$0xff] }
 0x16c   :  { %1401 = vmatpush.msra.mxu2 %v1264_v7  ;;  %1457 = vmatpush.msra.mxu1 %v1345_v2  ;;  %v1231_v2 = vld [vmem:[#allocation13 + $0x60] sm:$0xff] }
 0x16d   :  { %1362 = vmatpush.msrb.mxu0 %v1259_v10  ;;  %1504 = vmatpush.msrb.mxu3 %v1318_v48  ;;  %v1313_v10 = vld [vmem:[#allocation13 + $0x2f0] sm:$0xff] }
 0x16e   :  { %1402 = vmatpush.msra.mxu2 %v1260_v63  ;;  %1458 = vmatpush.msra.mxu1 %v1341_v14  ;;  %v1314_v14 = vld [vmem:[#allocation13 + $0x2f8] sm:$0xff] }
 0x16f   :  { %1363 = vmatpush.msrb.mxu0 %v1255_v43  ;;  %1505 = vmatpush.msrb.mxu3 %v1314_v14  ;;  %v1227_v43 = vld [vmem:[#allocation13 + $0x40] sm:$0xff]  ;;  %v1286_v14 = vld [vmem:[#allocation13 + $0x218] sm:$0xff] }
 0x170   :  { %1403 = vmatpush.msra.mxu2 %v1256_v45  ;;  %1459 = vmatpush.msra.mxu1 %v1337_v46  ;;  %v1228_v45 = vld [vmem:[#allocation13 + $0x48] sm:$0xff]  ;;  %v1309_v46 = vld [vmem:[#allocation13 + $0x2d0] sm:$0xff] }
 0x171   :  { %1364 = vmatpush.msrb.mxu0 %v1251_v18  ;;  %1506 = vmatpush.msrb.mxu3 %v1310_v60  ;;  %v1223_v18 = vld [vmem:[#allocation13 + $0x20] sm:$0xff] }
 0x172   :  { %1404 = vmatpush.msra.mxu2 %v1252_v29  ;;  %1460 = vmatpush.msra.mxu1 %v1333_v49  ;;  %v1224_v29 = vld [vmem:[#allocation13 + $0x28] sm:$0xff]  ;;  %v1305_v49 = vld [vmem:[#allocation13 + $0x2b0] sm:$0xff] }
 0x173   :  { %1365 = vmatpush.msrb.mxu0 %v1247_v22 }
 0x174   :  { %1405 = vmatpush.msra.mxu2 %v1248_v33  ;;  %1461 = vmatpush.msra.mxu1 %v1329_v24  ;;  %v1219_v33 = vld [vmem:[#allocation13] sm:$0xff]  ;;  %v1220_v24 = vld [vmem:[#allocation13 + $0x8] sm:$0xff] }
 0x175   :  { %1366 = vmatpush.msrb.mxu0 %v1243_v30  ;;  %v1281_v30 = vld [vmem:[#allocation13 + $0x1f0] sm:$0xff] }
 0x176   :  { %1406 = vmatpush.msra.mxu2 %v1244_v31  ;;  %1462 = vmatpush.msra.mxu1 %v1325_v23  ;;  %v1282_v31 = vld [vmem:[#allocation13 + $0x1f8] sm:$0xff] }
 0x177   :  { %1367 = vmatpush.msrb.mxu0 %v1239_v36  ;;  %v1278_v36 = vld [vmem:[#allocation13 + $0x1d8] sm:$0xff] }
 0x178   :  { %1407 = vmatpush.msra.mxu2 %v1240_v32  ;;  %1463 = vmatpush.msra.mxu1 %v1321_v16 }
 0x179   :  { %v6297_v53 = vpop.f32.mrf.mxu1  ;;  %1368 = vmatpush.msrb.mxu0 %v1235_v34  ;;  %v365_v34 = vadd.f32 %v6149_v12, %v6219_v58  ;;  %v1269_v12 = vld [vmem:[#allocation13 + $0x190] sm:$0xff] }
 0x17a   :  { %1408 = vmatpush.msra.mxu2 %v1236_v3 }
 0x17b   :  { %1369 = vmatpush.msrb.mxu0 %v1231_v2 }
 0x17c   :  { %1409 = vmatpush.msra.mxu2 %v1232_v13 }
 0x17d   :  { %1370 = vmatpush.msrb.mxu0 %v1227_v43 }
 0x17e   :  { %1410 = vmatpush.msra.mxu2 %v1228_v45  ;;  %v1265_v45 = vld [vmem:[#allocation13 + $0x170] sm:$0xff] }
 0x17f   :  { %1371 = vmatpush.msrb.mxu0 %v1223_v18  ;;  %v1262_v18 = vld [vmem:[#allocation13 + $0x158] sm:$0xff] }
 0x180   :  { %1411 = vmatpush.msra.mxu2 %v1224_v29 }
 0x181   :  { %v854_v55 = vpop.f32.mrf.mxu3  ;;  %1372 = vmatpush.msrb.mxu0 %v1219_v33  ;;  %v1258_v33 = vld [vmem:[#allocation13 + $0x138] sm:$0xff] }
 0x182   :  { %1412 = vmatpush.msra.mxu2 %v1220_v24 }
 0x183   :  { %1437 = vmatpush.msra.mxu0 %v1281_v30 }
 0x184   :  { %1477 = vmatpush.msrb.mxu2 %v1282_v31  ;;  %v1253_v31 = vld [vmem:[#allocation13 + $0x110] sm:$0xff] }
 0x185   :  { %1438 = vmatpush.msra.mxu0 %v1277_v35 }
 0x186   :  { %1478 = vmatpush.msrb.mxu2 %v1278_v36 }
 0x193   :  { %v6301_v44 = vpop.f32.mrf.mxu1 }
 0x19b   :  { %v934_v5 = vpop.f32.mrf.mxu3 }
 0x1bf   :  { %v794_v21 = vpop.f32.mrf.mxu0 }
 0x1c0   :  { %v795_v26 = vadd.f32 %v794_v21, %v769_v59  ;;  %v1109_v25 = vpop.f32.mrf.mxu1  ;;  %v1306_v21 = vld [vmem:[#allocation13 + $0x2b8] sm:$0xff] }
 0x1c1   :  { %v1153_v63 = vadd.f32 %v1109_v25, %v283_v61  ;;  %1507 = vmatpush.msrb.mxu3 %v1306_v21  ;;  %v1273_v25 = vld [vmem:[#allocation13 + $0x1b0] sm:$0xff] }
 0x1c2   :  { %v815_v6 = vadd.f32 %v6297_v53, %v795_v26  ;;  %v1317_v53 = vld [vmem:[#allocation13 + $0x310] sm:$0xff]  ;;  %1439 = vmatpush.msra.mxu0 %v1273_v25 }
 0x1c3   :  { %1464 = vmatpush.msra.mxu1 %v1317_v53  ;;  %v5310_v19 = vmul.f32 -1.442695, %v1153_v63  ;;  %v1301_v26 = vld [vmem:[#allocation13 + $0x290] sm:$0xff]  ;;  %1508 = vmatpush.msrb.mxu3 %v1302_v1  ;;  %v771_v53 = vperm.slane %v6299_v54, 2  ;;  %v242_v1 = vadd.f32 %v6135_v52, %v6165_v50 }
 0x1c4   :  { %v5306_v39 = vmul.f32 -1.442695, %v815_v6  ;;  %v1297_v6 = vld [vmem:[#allocation13 + $0x270] sm:$0xff]  ;;  %1440 = vmatpush.msra.mxu0 %v1269_v12  ;;  %v1242_v12 = vld [vmem:[#allocation13 + $0xb8] sm:$0xff] }
 0x1c5   :  { %v834_v4 = vpop.f32.mrf.mxu2  ;;  %1465 = vmatpush.msra.mxu1 %v1313_v10  ;;  %v1270_v10 = vld [vmem:[#allocation13 + $0x198] sm:$0xff]  ;;  %v1285_v63 = vld [vmem:[#allocation13 + $0x210] sm:$0xff] }
 0x1c6   :  { %5417 = vpow2.f32 %v5306_v39  ;;  %v835_v47 = vadd.f32 %v834_v4, %v770_v38  ;;  %v1298_v38 = vld [vmem:[#allocation13 + $0x278] sm:$0xff]  ;;  %1441 = vmatpush.msra.mxu0 %v1265_v45  ;;  %v1245_v25 = vld [vmem:[#allocation13 + $0xd0] sm:$0xff] }
 0x1c7   :  { %1466 = vmatpush.msra.mxu1 %v1309_v46  ;;  %v1149_v16 = vpop.f32.mrf.mxu3  ;;  %1509 = vmatpush.msrb.mxu3 %v1298_v38  ;;  %v1294_v4 = vld [vmem:[#allocation13 + $0x258] sm:$0xff]  ;;  %v874_v48 = vpop.f32.mrf.mxu0 }
 0x1c8   :  { %v855_v7 = vadd.f32 %v854_v55, %v835_v47  ;;  %v1274_v47 = vld [vmem:[#allocation13 + $0x1b8] sm:$0xff]  ;;  %v1155_v13 = vadd.f32 %v1149_v16, %v365_v34  ;;  %v875_v43 = vadd.f32 %v874_v48, %v771_v53 }
 0x1c9   :  { %1467 = vmatpush.msra.mxu1 %v1305_v49  ;;  %1510 = vmatpush.msrb.mxu3 %v1294_v4  ;;  %v1266_v46 = vld [vmem:[#allocation13 + $0x178] sm:$0xff] }
 0x1ca   :  { %v5307_v15 = vmul.f32 -1.442695, %v855_v7  ;;  %v1290_v7 = vld [vmem:[#allocation13 + $0x238] sm:$0xff]  ;;  %1479 = vmatpush.msrb.mxu2 %v1274_v47  ;;  %v895_v21 = vadd.f32 %v6301_v44, %v875_v43 }
 0x1cb   :  { %1468 = vmatpush.msra.mxu1 %v1301_v26  ;;  %1511 = vmatpush.msrb.mxu3 %v1290_v7  ;;  %v1254_v44 = vld [vmem:[#allocation13 + $0x118] sm:$0xff] }
 0x1cc   :  { %v5418_v59 = vpop.eup %5417  ;;  %5419 = vpow2.f32 %v5307_v15  ;;  %1480 = vmatpush.msrb.mxu2 %v1270_v10  ;;  %v1246_v47 = vld [vmem:[#allocation13 + $0xd8] sm:$0xff] }
 0x1cd   :  { %v6309_v55 = vadd.f32 1.0, %v5418_v59  ;;  %1469 = vmatpush.msra.mxu1 %v1297_v6  ;;  %1512 = vmatpush.msrb.mxu3 %v1286_v14  ;;  %v5311_v59 = vmul.f32 -1.442695, %v1155_v13 }
 0x1ce   :  { %v914_v22 = vpop.f32.mrf.mxu2  ;;  %1481 = vmatpush.msrb.mxu2 %v1266_v46 }
 0x1cf   :  { %5421 = vrcp.f32 %v6309_v55  ;;  %v915_v23 = vadd.f32 %v914_v22, %v772_v17  ;;  %1470 = vmatpush.msra.mxu1 %v1293_v56  ;;  %v1261_v17 = vld [vmem:[#allocation13 + $0x150] sm:$0xff]  ;;  %v952_v30 = vand.u32 2147483648, %v6309_v55  ;;  %vm946_vm13 = vweird.f32 %v6309_v55  ;;  %v1250_v56 = vld [vmem:[#allocation13 + $0xf8] sm:$0xff] }
 0x1d0   :  { %5423 = vpow2.f32 %v5310_v19  ;;  %1442 = vmatpush.msra.mxu0 %v1261_v17  ;;  %1482 = vmatpush.msrb.mxu2 %v1262_v18  ;;  %v1257_v22 = vld [vmem:[#allocation13 + $0x130] sm:$0xff]  ;;  %v950_v38 = vand.u32 2147483647, %v6309_v55  ;;  %v1234_v17 = vld [vmem:[#allocation13 + $0x78] sm:$0xff] }
 0x1d1   :  { %v935_v39 = vadd.f32 %v934_v5, %v915_v23  ;;  %v1289_v5 = vld [vmem:[#allocation13 + $0x230] sm:$0xff]  ;;  %v953_v53 = vor.u32 1.1754944e-38, %v952_v30 }
 0x1d2   :  { %v5420_v32 = vpop.eup %5419  ;;  %1471 = vmatpush.msra.mxu1 %v1289_v5  ;;  %1443 = vmatpush.msra.mxu0 %v1257_v22  ;;  %vm951_vm1 = vcmp.eq.f32.partialorder %v950_v38, 8.507059e+37  ;;  %v1230_v22 = vld [vmem:[#allocation13 + $0x58] sm:$0xff]  ;;  %v1221_v38 = vld [vmem:[#allocation13 + $0x10] sm:$0xff] }
 0x1d3   :  { %v6314_v3 = vadd.f32 1.0, %v5420_v32  ;;  %v5308_v61 = vmul.f32 -1.442695, %v935_v39  ;;  %1483 = vmatpush.msrb.mxu2 %v1258_v33  ;;  %v1249_v39 = vld [vmem:[#allocation13 + $0xf0] sm:$0xff] }
 0x1d4   :  { %1472 = vmatpush.msra.mxu1 %v1285_v63  ;;  %1444 = vmatpush.msra.mxu0 %v1253_v31  ;;  %v1226_v31 = vld [vmem:[#allocation13 + $0x38] sm:$0xff] }
 0x1d5   :  { %v6317_v2 = vpop.eup %5421  ;;  %5425 = vrcp.f32 %v6314_v3  ;;  %v969_v35 = vand.u32 2147483647, %v6314_v3  ;;  %v971_v36 = vand.u32 2147483648, %v6314_v3  ;;  %1484 = vmatpush.msrb.mxu2 %v1254_v44  ;;  %vm965_vm0 = vweird.f32 %v6314_v3 }
 0x1d6   :  { %v942_v54 = vmul.f32 %v6317_v2, %v6309_v55  ;;  %v5424_v15 = vpop.eup %5423  ;;  %5427 = vpow2.f32 %v5308_v61  ;;  %vm947_vm12 = vweird.f32 %v6317_v2  ;;  %1445 = vmatpush.msra.mxu0 %v1249_v39 }
 0x1d7   :  { %v6322_v29 = vadd.f32 1.0, %v5424_v15  ;;  %5429 = vpow2.f32 %v5311_v59  ;;  %vm6339_vm14 = vmor %vm946_vm13, %vm947_vm12  ;;  %1485 = vmatpush.msrb.mxu2 %v1250_v56  ;;  %v972_v7 = vor.u32 1.1754944e-38, %v971_v36  ;;  %vm970_vm3 = vcmp.eq.f32.partialorder %v969_v35, 8.507059e+37  ;;  %v1238_v15 = vld [vmem:[#allocation13 + $0x98] sm:$0xff]  ;;  %v1233_v59 = vld [vmem:[#allocation13 + $0x70] sm:$0xff] }
 0x1d8   :  { %v943_v60 = vsub.f32 1.0, %v942_v54  ;;  %1446 = vmatpush.msra.mxu0 %v1245_v25  ;;  %v1222_v35 = vld [vmem:[#allocation13 + $0x18] sm:$0xff] }
 0x1d9   :  { %5431 = vrcp.f32 %v6322_v29  ;;  %1486 = vmatpush.msrb.mxu2 %v1246_v47  ;;  %v1652_v47 = vld [vmem:[#allocation11 + $0x1f8] sm:$0xff]  ;;  %vm1184_vm9 = vweird.f32 %v6322_v29 }
 0x1da   :  { %v944_v49 = vmul.f32 %v6317_v2, %v943_v60  ;;  %5433 = vtanh.f32 %v895_v21  ;;  %v1229_v21 = vld [vmem:[#allocation13 + $0x50] sm:$0xff] }
 0x1db   :  { %v5426_v19 = vpop.eup %5425  ;;  %1487 = vmatpush.msrb.mxu2 %v1242_v12 }
 0x1dc   :  { %v961_v24 = vmul.f32 %v5426_v19, %v6314_v3  ;;  %v945_v26 = vadd.f32 %v6317_v2, %v944_v49  ;;  %v5428_v23 = vpop.eup %5427  ;;  %vm966_vm15 = vweird.f32 %v5426_v19  ;;  %v1237_v3 = vld [vmem:[#allocation13 + $0x90] sm:$0xff] }
 0x1dd   :  { %v6343_v32 = vadd.f32 1.0, %v5428_v23  ;;  %v5430_v5 = vpop.eup %5429  ;;  %vm967_vm2 = vmor %vm965_vm0, %vm966_vm15  ;;  %1488 = vmatpush.msrb.mxu2 %v1238_v15 }
 0x1de   :  { %v962_v6 = vsub.f32 1.0, %v961_v24  ;;  %v949_v55 = vsel %vm6339_vm14, %v6317_v2, %v945_v26  ;;  %v1241_v2 = vld [vmem:[#allocation13 + $0xb0] sm:$0xff]  ;;  %v6352_v60 = vadd.f32 1.0, %v5430_v5 }
 0x1df   :  { %v1089_v16 = vpop.f32.mrf.mxu0  ;;  %5435 = vrcp.f32 %v6343_v32  ;;  %v954_v13 = vsel %vm951_vm1, %v953_v53, %v949_v55  ;;  %v6350_v10 = vpop.eup %5431  ;;  %1447 = vmatpush.msra.mxu0 %v1241_v2  ;;  %1489 = vmatpush.msrb.mxu2 %v1234_v17  ;;  %v1225_v26 = vld [vmem:[#allocation13 + $0x30] sm:$0xff]  ;;  %vm985_vm5 = vweird.f32 %v6343_v32  ;;  %v1648_v2 = vld [vmem:[#allocation11 + $0x1d8] sm:$0xff] }
 0x1e0   :  { %v963_v4 = vmul.f32 %v5426_v19, %v962_v6  ;;  %v1152_v34 = vadd.f32 %v1089_v16, %v242_v1  ;;  %v5434_v63 = vpop.eup %5433  ;;  %v1180_v18 = vmul.f32 %v6350_v10, %v6322_v29  ;;  %v991_v1 = vand.u32 2147483648, %v6343_v32  ;;  %v1640_v17 = vld [vmem:[#allocation11 + $0x198] sm:$0xff] }
 0x1e1   :  { %v996_v45 = vmul.f32 %v5434_v63, %v954_v13  ;;  %1448 = vmatpush.msra.mxu0 %v1237_v3  ;;  %1490 = vmatpush.msrb.mxu2 %v1230_v22  ;;  %v989_v6 = vand.u32 2147483647, %v6343_v32  ;;  %vm1185_vm8 = vweird.f32 %v6350_v10  ;;  %v1646_v13 = vld [vmem:[#allocation11 + $0x1c8] sm:$0xff]  ;;  %v1188_v63 = vand.u32 2147483647, %v6322_v29  ;;  %v1644_v3 = vld [vmem:[#allocation11 + $0x1b8] sm:$0xff] }
 0x1e2   :  { %v964_v48 = vadd.f32 %v5426_v19, %v963_v4  ;;  %v5309_v61 = vmul.f32 -1.442695, %v1152_v34  ;;  %v1181_v44 = vsub.f32 1.0, %v1180_v18  ;;  %v992_v52 = vor.u32 1.1754944e-38, %v991_v1  ;;  %vm6387_vm10 = vmor %vm1184_vm9, %vm1185_vm8  ;;  %v1634_v22 = vld [vmem:[#allocation11 + $0x168] sm:$0xff] }
 0x1e3   :  { %1449 = vmatpush.msra.mxu0 %v1233_v59  ;;  %1491 = vmatpush.msrb.mxu2 %v1226_v31  ;;  %vm990_vm7 = vcmp.eq.f32.partialorder %v989_v6, 8.507059e+37  ;;  %v324_v34 = vadd.f32 %v6147_v11, %v6227_v27  ;;  %v1190_v11 = vand.u32 2147483648, %v6322_v29  ;;  %v1638_v59 = vld [vmem:[#allocation11 + $0x188] sm:$0xff]  ;;  %vm1189_vm13 = vcmp.eq.f32.partialorder %v1188_v63, 8.507059e+37  ;;  %v1632_v31 = vld [vmem:[#allocation11 + $0x158] sm:$0xff]  ;;  %v1651_v63 = vld [vmem:[#allocation11 + $0x1f0] sm:$0xff] }
 0x1e4   :  { %v968_v54 = vsel %vm967_vm2, %v5426_v19, %v964_v48  ;;  %5437 = vpow2.f32 %v5309_v61  ;;  %v1182_v39 = vmul.f32 %v6350_v10, %v1181_v44  ;;  %vm1204_vm1 = vweird.f32 %v6352_v60 }
 0x1e5   :  { %v973_v14 = vsel %vm970_vm3, %v972_v7, %v968_v54  ;;  %v5436_v46 = vpop.eup %5435  ;;  %1450 = vmatpush.msra.mxu0 %v1229_v21  ;;  %1492 = vmatpush.msrb.mxu2 %v1222_v35  ;;  %v1626_v35 = vld [vmem:[#allocation11 + $0x128] sm:$0xff] }
 0x1e6   :  { %v995_v43 = vmul.f32 0.0, %v973_v14  ;;  %v981_v19 = vmul.f32 %v5436_v46, %v6343_v32  ;;  %vm986_vm4 = vweird.f32 %v5436_v46  ;;  %v1129_v56 = vpop.f32.mrf.mxu2  ;;  %v1650_v32 = vld [vmem:[#allocation11 + $0x1e8] sm:$0xff]  ;;  %v1183_v7 = vadd.f32 %v6350_v10, %v1182_v39  ;;  %v1624_v39 = vld [vmem:[#allocation11 + $0x118] sm:$0xff] }
 0x1e7   :  { %1451 = vmatpush.msra.mxu0 %v1225_v26  ;;  %vm987_vm6 = vmor %vm985_vm5, %vm986_vm4  ;;  %v1154_v61 = vadd.f32 %v1129_v56, %v324_v34  ;;  %v1642_v14 = vld [vmem:[#allocation11 + $0x1a8] sm:$0xff]  ;;  %v1620_v34 = vld [vmem:[#allocation11 + $0xf8] sm:$0xff] }
 0x1e8   :  { %v6356_v49 = vadd.f32 %v996_v45, %v995_v43  ;;  %v982_v24 = vsub.f32 1.0, %v981_v19  ;;  %v1187_v29 = vsel %vm6387_vm10, %v6350_v10, %v1183_v7  ;;  %v1191_v19 = vor.u32 1.1754944e-38, %v1190_v11  ;;  %v1630_v10 = vld [vmem:[#allocation11 + $0x148] sm:$0xff]  ;;  %v1612_v7 = vld [vmem:[#allocation11 + $0xb8] sm:$0xff] }
 0x1e9   :  { %1452 = vmatpush.msra.mxu0 %v1221_v38  ;;  %v1606_v11 = vld [vmem:[#allocation11 + $0x88] sm:$0xff] }
 0x1ea   :  { %v5438_v33 = vpop.eup %5437  ;;  %5439 = vtanh.f32 %v6356_v49  ;;  %v983_v23 = vmul.f32 %v5436_v46, %v982_v24  ;;  %v1192_v26 = vsel %vm1189_vm13, %v1191_v19, %v1187_v29  ;;  %v1598_v43 = vld [vmem:[#allocation11 + $0x48] sm:$0xff]  ;;  %v1643_v29 = vld [vmem:[#allocation11 + $0x1b0] sm:$0xff] }
 0x1eb   :  { %5441 = vrcp.f32 %v6352_v60  ;;  %v6362_v30 = vadd.f32 1.0, %v5438_v33  ;;  %v1636_v33 = vld [vmem:[#allocation11 + $0x178] sm:$0xff]  ;;  %v1214_v6 = vmul.f32 %v1192_v26, %v6279_v20  ;;  %v1618_v20 = vld [vmem:[#allocation11 + $0xe8] sm:$0xff]  ;;  %v1639_v19 = vld [vmem:[#allocation11 + $0x190] sm:$0xff] }
 0x1ec   :  { %v984_v36 = vadd.f32 %v5436_v46, %v983_v23  ;;  %v1629_v26 = vld [vmem:[#allocation11 + $0x140] sm:$0xff] }
 0x1ed   :  { %5443 = vrcp.f32 %v6362_v30  ;;  %v1171_v15 = vand.u32 2147483648, %v6362_v30  ;;  %vm1165_vm12 = vweird.f32 %v6362_v30 }
 0x1ee   :  { %v988_v4 = vsel %vm987_vm6, %v5436_v46, %v984_v36  ;;  %5445 = vtanh.f32 %v1154_v61  ;;  %v1169_v46 = vand.u32 2147483647, %v6362_v30  ;;  %v1628_v36 = vld [vmem:[#allocation11 + $0x138] sm:$0xff] }
 0x1ef   :  { %v993_v53 = vsel %vm990_vm7, %v992_v52, %v988_v4  ;;  %v1172_v24 = vor.u32 1.1754944e-38, %v1171_v15  ;;  %v1210_v4 = vand.u32 2147483648, %v6352_v60  ;;  %v1647_v15 = vld [vmem:[#allocation11 + $0x1d0] sm:$0xff] }
 0x1f0   :  { %v5440_v16 = vpop.eup %5439  ;;  %vm1170_vm15 = vcmp.eq.f32.partialorder %v1169_v46, 8.507059e+37  ;;  %v1641_v46 = vld [vmem:[#allocation11 + $0x1a0] sm:$0xff] }
 0x1f1   :  { %v6368_v55 = vpop.eup %5441  ;;  %v6372_v25 = vmul.f32 %v5440_v16, %v993_v53  ;;  %v1622_v16 = vld [vmem:[#allocation11 + $0x108] sm:$0xff]  ;;  %v1208_v53 = vand.u32 2147483647, %v6352_v60  ;;  %v1211_v61 = vor.u32 1.1754944e-38, %v1210_v4  ;;  %v1607_v4 = vld [vmem:[#allocation11 + $0x90] sm:$0xff] }
 0x1f2   :  { %v1200_v12 = vmul.f32 %v6368_v55, %v6352_v60  ;;  %vm1205_vm0 = vweird.f32 %v6368_v55 }
 0x1f3   :  { %v5444_v48 = vpop.eup %5443  ;;  %1393 = vmatmul.f32.vlgmr.msrb.gmra.mxu1 %v6372_v25  ;;  %1433 = vmatmul.f32.vlgmr.msra.gmra.mxu3 %v6372_v25  ;;  %vm1206_vm2 = vmor %vm1204_vm1, %vm1205_vm0  ;;  %vm1209_vm3 = vcmp.eq.f32.partialorder %v1208_v53, 8.507059e+37  ;;  %v1597_v53 = vld [vmem:[#allocation11 + $0x40] sm:$0xff] }
 0x1f4   :  { %v1161_v5 = vmul.f32 %v5444_v48, %v6362_v30  ;;  %1673 = vmatpush.msrb.mxu1 %v1650_v32  ;;  %1713 = vmatpush.msra.mxu3 %v1652_v47  ;;  %vm1166_vm11 = vweird.f32 %v5444_v48  ;;  %v1201_v18 = vsub.f32 1.0, %v1200_v12  ;;  %v5446_v44 = vpop.eup %5445  ;;  %v1614_v32 = vld [vmem:[#allocation11 + $0xc8] sm:$0xff]  ;;  %v1616_v47 = vld [vmem:[#allocation11 + $0xd8] sm:$0xff] }
 0x1f5   :  { %vm1167_vm14 = vmor %vm1165_vm12, %vm1166_vm11  ;;  %v1608_v12 = vld [vmem:[#allocation11 + $0x98] sm:$0xff] }
 0x1f6   :  { %v1162_v54 = vsub.f32 1.0, %v1161_v5  ;;  %1674 = vmatpush.msrb.mxu1 %v1646_v13  ;;  %1714 = vmatpush.msra.mxu3 %v1648_v2  ;;  %v1202_v23 = vmul.f32 %v6368_v55, %v1201_v18  ;;  %v1610_v5 = vld [vmem:[#allocation11 + $0xa8] sm:$0xff]  ;;  %v1637_v18 = vld [vmem:[#allocation11 + $0x180] sm:$0xff] }
 0x1f8   :  { %v1163_v45 = vmul.f32 %v5444_v48, %v1162_v54  ;;  %1675 = vmatpush.msrb.mxu1 %v1642_v14  ;;  %1715 = vmatpush.msra.mxu3 %v1644_v3  ;;  %v1203_v56 = vadd.f32 %v6368_v55, %v1202_v23  ;;  %v1649_v54 = vld [vmem:[#allocation11 + $0x1e0] sm:$0xff]  ;;  %v1604_v14 = vld [vmem:[#allocation11 + $0x78] sm:$0xff] }
 0x1f9   :  { %v1645_v3 = vld [vmem:[#allocation11 + $0x1c0] sm:$0xff] }
 0x1fa   :  { %v1164_v21 = vadd.f32 %v5444_v48, %v1163_v45  ;;  %1676 = vmatpush.msrb.mxu1 %v1638_v59  ;;  %1716 = vmatpush.msra.mxu3 %v1640_v17  ;;  %v1600_v45 = vld [vmem:[#allocation11 + $0x58] sm:$0xff]  ;;  %v1594_v59 = vld [vmem:[#allocation11 + $0x28] sm:$0xff]  ;;  %v1621_v23 = vld [vmem:[#allocation11 + $0x100] sm:$0xff] }
 0x1fb   :  { %1473 = vmatmul.f32.vlgmr.msra.gmra.mxu1 %v6372_v25  ;;  %1513 = vmatmul.f32.vlgmr.msrb.gmra.mxu3 %v6372_v25  ;;  %v1596_v17 = vld [vmem:[#allocation11 + $0x38] sm:$0xff] }
 0x1fc   :  { %v1168_v1 = vsel %vm1167_vm14, %v5444_v48, %v1164_v21  ;;  %1677 = vmatpush.msrb.mxu1 %v1634_v22  ;;  %1717 = vmatpush.msra.mxu3 %v1636_v33  ;;  %v1207_v48 = vsel %vm1206_vm2, %v6368_v55, %v1203_v56  ;;  %v1602_v55 = vld [vmem:[#allocation11 + $0x68] sm:$0xff]  ;;  %v1592_v22 = vld [vmem:[#allocation11 + $0x18] sm:$0xff]  ;;  %v1633_v33 = vld [vmem:[#allocation11 + $0x160] sm:$0xff] }
 0x1fd   :  { %v1173_v30 = vsel %vm1170_vm15, %v1172_v24, %v1168_v1  ;;  %v1212_v2 = vsel %vm1209_vm3, %v1211_v61, %v1207_v48  ;;  %v1590_v21 = vld [vmem:[#allocation11 + $0x8] sm:$0xff]  ;;  %v1635_v24 = vld [vmem:[#allocation11 + $0x170] sm:$0xff]  ;;  %v1605_v56 = vld [vmem:[#allocation11 + $0x80] sm:$0xff] }
 0x1fe   :  { %v1215_v38 = vmul.f32 %v5446_v44, %v1173_v30  ;;  %1678 = vmatpush.msrb.mxu1 %v1630_v10  ;;  %1718 = vmatpush.msra.mxu3 %v1632_v31  ;;  %v5081_v1 = vld [vmem:[%s7195_s1 + $0x8] sm:$0xff]  ;;  %v1631_v10 = vld [vmem:[#allocation11 + $0x150] sm:$0xff]  ;;  %v1625_v31 = vld [vmem:[#allocation11 + $0x120] sm:$0xff] }
 0x1ff   :  { %v1627_v44 = vld [vmem:[#allocation11 + $0x130] sm:$0xff]  ;;  %5095 = vperm.xlu0 %5396, %v5081_v1   ;;  %v1589_v61 = vld [vmem:[#allocation11] sm:$0xff]  ;;  %v1861_v1 = vld [vmem:[#allocation13 + $0x1e8] sm:$0xff] }
 0x200   :  { %v6400_v52 = vadd.f32 %v1215_v38, %v1214_v6  ;;  %1679 = vmatpush.msrb.mxu1 %v1626_v35  ;;  %1719 = vmatpush.msra.mxu3 %v1628_v36  ;;  %v1623_v30 = vld [vmem:[#allocation11 + $0x110] sm:$0xff]  ;;  %v1617_v6 = vld [vmem:[#allocation11 + $0xe0] sm:$0xff] }
 0x201   :  { %v1619_v38 = vld [vmem:[#allocation11 + $0xf0] sm:$0xff]  ;;  %v1613_v35 = vld [vmem:[#allocation11 + $0xc0] sm:$0xff] }
 0x202   :  { %5447 = vtanh.f32 %v6400_v52  ;;  %1680 = vmatpush.msrb.mxu1 %v1622_v16  ;;  %1720 = vmatpush.msra.mxu3 %v1624_v39  ;;  %v1615_v36 = vld [vmem:[#allocation11 + $0xd0] sm:$0xff]  ;;  %v1609_v16 = vld [vmem:[#allocation11 + $0xa0] sm:$0xff] }
 0x203   :  { %v1611_v39 = vld [vmem:[#allocation11 + $0xb0] sm:$0xff] }
 0x204   :  { %1681 = vmatpush.msrb.mxu1 %v1618_v20  ;;  %1721 = vmatpush.msra.mxu3 %v1620_v34  ;;  %v1601_v20 = vld [vmem:[#allocation11 + $0x60] sm:$0xff]  ;;  %v1603_v34 = vld [vmem:[#allocation11 + $0x70] sm:$0xff] }
 0x205   :  { %v1595_v48 = vld [vmem:[#allocation11 + $0x30] sm:$0xff] }
 0x206   :  { %1682 = vmatpush.msrb.mxu1 %v1614_v32  ;;  %1722 = vmatpush.msra.mxu3 %v1616_v47  ;;  %v1599_v32 = vld [vmem:[#allocation11 + $0x50] sm:$0xff]  ;;  %v1593_v47 = vld [vmem:[#allocation11 + $0x20] sm:$0xff] }
 0x208   :  { %v5448_v13 = vpop.eup %5447  ;;  %1683 = vmatpush.msrb.mxu1 %v1610_v5  ;;  %1723 = vmatpush.msra.mxu3 %v1612_v7  ;;  %v1591_v5 = vld [vmem:[#allocation11 + $0x10] sm:$0xff]  ;;  %v1924_v7 = vld [vmem:[#allocation13 + $0x3e0] sm:$0xff] }
 0x209   :  { %v6409_v60 = vmul.f32 %v5448_v13, %v1212_v2  ;;  %v1925_v13 = vld [vmem:[#allocation13 + $0x3e8] sm:$0xff]  ;;  %v1920_v2 = vld [vmem:[#allocation13 + $0x3c0] sm:$0xff] }
 0x20a   :  { %1684 = vmatpush.msrb.mxu1 %v1606_v11  ;;  %1724 = vmatpush.msra.mxu3 %v1608_v12  ;;  %v1921_v11 = vld [vmem:[#allocation13 + $0x3c8] sm:$0xff]  ;;  %v1916_v12 = vld [vmem:[#allocation13 + $0x3a0] sm:$0xff] }
 0x20b   :  { %1373 = vmatmul.f32.vlgmr.msrb.gmra.mxu0 %v6409_v60  ;;  %1413 = vmatmul.f32.vlgmr.msra.gmra.mxu2 %v6409_v60 }
 0x20c   :  { %1653 = vmatpush.msrb.mxu0 %v1649_v54  ;;  %1693 = vmatpush.msra.mxu2 %v1651_v63  ;;  %v1917_v54 = vld [vmem:[#allocation13 + $0x3a8] sm:$0xff]  ;;  %v1912_v63 = vld [vmem:[#allocation13 + $0x380] sm:$0xff] }
 0x20d   :  { %1685 = vmatpush.msrb.mxu1 %v1602_v55  ;;  %1725 = vmatpush.msra.mxu3 %v1604_v14  ;;  %v1913_v55 = vld [vmem:[#allocation13 + $0x388] sm:$0xff]  ;;  %v1908_v14 = vld [vmem:[#allocation13 + $0x360] sm:$0xff] }
 0x20e   :  { %1654 = vmatpush.msrb.mxu0 %v1645_v3  ;;  %1694 = vmatpush.msra.mxu2 %v1647_v15  ;;  %v1909_v3 = vld [vmem:[#allocation13 + $0x368] sm:$0xff] }
 0x20f   :  { %1686 = vmatpush.msrb.mxu1 %v1598_v43  ;;  %1726 = vmatpush.msra.mxu3 %v1600_v45  ;;  %v1905_v15 = vld [vmem:[#allocation13 + $0x348] sm:$0xff]  ;;  %v1900_v43 = vld [vmem:[#allocation13 + $0x320] sm:$0xff] }
 0x210   :  { %1655 = vmatpush.msrb.mxu0 %v1641_v46  ;;  %1695 = vmatpush.msra.mxu2 %v1643_v29  ;;  %v1901_v45 = vld [vmem:[#allocation13 + $0x328] sm:$0xff]  ;;  %v1896_v46 = vld [vmem:[#allocation13 + $0x300] sm:$0xff] }
 0x211   :  { %1687 = vmatpush.msrb.mxu1 %v1594_v59  ;;  %1727 = vmatpush.msra.mxu3 %v1596_v17  ;;  %v1897_v29 = vld [vmem:[#allocation13 + $0x308] sm:$0xff]  ;;  %v1892_v59 = vld [vmem:[#allocation13 + $0x2e0] sm:$0xff] }
 0x212   :  { %1656 = vmatpush.msrb.mxu0 %v1637_v18  ;;  %1696 = vmatpush.msra.mxu2 %v1639_v19  ;;  %v1893_v17 = vld [vmem:[#allocation13 + $0x2e8] sm:$0xff]  ;;  %v1888_v18 = vld [vmem:[#allocation13 + $0x2c0] sm:$0xff] }
 0x213   :  { %1688 = vmatpush.msrb.mxu1 %v1590_v21  ;;  %1728 = vmatpush.msra.mxu3 %v1592_v22  ;;  %v1889_v19 = vld [vmem:[#allocation13 + $0x2c8] sm:$0xff]  ;;  %v1884_v21 = vld [vmem:[#allocation13 + $0x2a0] sm:$0xff] }
 0x214   :  { %1453 = vmatmul.f32.vlgmr.msra.gmra.mxu0 %v6409_v60  ;;  %1493 = vmatmul.f32.vlgmr.msrb.gmra.mxu2 %v6409_v60  ;;  %v1885_v22 = vld [vmem:[#allocation13 + $0x2a8] sm:$0xff] }
 0x215   :  { %1657 = vmatpush.msrb.mxu0 %v1633_v33  ;;  %1689 = vmatmul.f32.vlgmr.msrb.gmra.mxu1 %v6409_v60  ;;  %v1880_v33 = vld [vmem:[#allocation13 + $0x280] sm:$0xff] }
 0x216   :  { %1697 = vmatpush.msra.mxu2 %v1635_v24  ;;  %1729 = vmatmul.f32.vlgmr.msra.gmra.mxu3 %v6409_v60  ;;  %v1881_v24 = vld [vmem:[#allocation13 + $0x288] sm:$0xff] }
 0x217   :  { %1658 = vmatpush.msrb.mxu0 %v1629_v26  ;;  %1958 = vmatpush.msra.mxu1 %v1924_v7  ;;  %v1860_v26 = vld [vmem:[#allocation13 + $0x1e0] sm:$0xff]  ;;  %v1841_v7 = vld [vmem:[#allocation13 + $0x148] sm:$0xff] }
 0x218   :  { %1698 = vmatpush.msra.mxu2 %v1631_v10  ;;  %1998 = vmatpush.msrb.mxu3 %v1925_v13  ;;  %v1876_v10 = vld [vmem:[#allocation13 + $0x260] sm:$0xff]  ;;  %v1922_v13 = vld [vmem:[#allocation13 + $0x3d0] sm:$0xff] }
 0x219   :  { %1659 = vmatpush.msrb.mxu0 %v1625_v31  ;;  %1959 = vmatpush.msra.mxu1 %v1920_v2  ;;  %v1877_v31 = vld [vmem:[#allocation13 + $0x268] sm:$0xff] }
 0x21a   :  { %1699 = vmatpush.msra.mxu2 %v1627_v44  ;;  %1999 = vmatpush.msrb.mxu3 %v1921_v11  ;;  %v1856_v44 = vld [vmem:[#allocation13 + $0x1c0] sm:$0xff]  ;;  %v1923_v11 = vld [vmem:[#allocation13 + $0x3d8] sm:$0xff] }
 0x21b   :  { %1660 = vmatpush.msrb.mxu0 %v1621_v23  ;;  %1960 = vmatpush.msra.mxu1 %v1916_v12  ;;  %v1857_v23 = vld [vmem:[#allocation13 + $0x1c8] sm:$0xff]  ;;  %v1836_v12 = vld [vmem:[#allocation13 + $0x120] sm:$0xff] }
 0x21c   :  { %1700 = vmatpush.msra.mxu2 %v1623_v30  ;;  %2000 = vmatpush.msrb.mxu3 %v1917_v54  ;;  %v1872_v30 = vld [vmem:[#allocation13 + $0x240] sm:$0xff]  ;;  %v1837_v54 = vld [vmem:[#allocation13 + $0x128] sm:$0xff] }
 0x21d   :  { %1661 = vmatpush.msrb.mxu0 %v1617_v6  ;;  %1961 = vmatpush.msra.mxu1 %v1912_v63  ;;  %v1873_v6 = vld [vmem:[#allocation13 + $0x248] sm:$0xff]  ;;  %v1918_v63 = vld [vmem:[#allocation13 + $0x3b0] sm:$0xff] }
 0x21e   :  { %1701 = vmatpush.msra.mxu2 %v1619_v38  ;;  %2001 = vmatpush.msrb.mxu3 %v1913_v55  ;;  %v1852_v38 = vld [vmem:[#allocation13 + $0x1a0] sm:$0xff]  ;;  %v1919_v55 = vld [vmem:[#allocation13 + $0x3b8] sm:$0xff] }
 0x21f   :  { %1662 = vmatpush.msrb.mxu0 %v1613_v35  ;;  %1962 = vmatpush.msra.mxu1 %v1908_v14  ;;  %v1853_v35 = vld [vmem:[#allocation13 + $0x1a8] sm:$0xff] }
 0x220   :  { %1702 = vmatpush.msra.mxu2 %v1615_v36  ;;  %2002 = vmatpush.msrb.mxu3 %v1909_v3  ;;  %v1868_v36 = vld [vmem:[#allocation13 + $0x220] sm:$0xff] }
 0x221   :  { %1663 = vmatpush.msrb.mxu0 %v1609_v16  ;;  %v1869_v16 = vld [vmem:[#allocation13 + $0x228] sm:$0xff]  ;;  %v1832_v3 = vld [vmem:[#allocation13 + $0x100] sm:$0xff] }
 0x222   :  { %1703 = vmatpush.msra.mxu2 %v1611_v39  ;;  %2003 = vmatpush.msrb.mxu3 %v1905_v15  ;;  %v1914_v15 = vld [vmem:[#allocation13 + $0x390] sm:$0xff] }
 0x223   :  { %1664 = vmatpush.msrb.mxu0 %v1605_v56  ;;  %v1848_v56 = vld [vmem:[#allocation13 + $0x180] sm:$0xff] }
 0x224   :  { %1704 = vmatpush.msra.mxu2 %v1607_v4  ;;  %2004 = vmatpush.msrb.mxu3 %v1901_v45  ;;  %v1849_v4 = vld [vmem:[#allocation13 + $0x188] sm:$0xff]  ;;  %v1915_v45 = vld [vmem:[#allocation13 + $0x398] sm:$0xff] }
 0x225   :  { %1665 = vmatpush.msrb.mxu0 %v1601_v20  ;;  %v6422_v20 = vld [vmem:[#allocation14] sm:$0xf] }
 0x226   :  { %1705 = vmatpush.msra.mxu2 %v1603_v34  ;;  %2005 = vmatpush.msrb.mxu3 %v1897_v29  ;;  %v1864_v34 = vld [vmem:[#allocation13 + $0x200] sm:$0xff]  ;;  %v1349_v2 = vperm.slane %v6422_v20, 0 }
 0x227   :  { %1666 = vmatpush.msrb.mxu0 %v1597_v53  ;;  %v1865_v53 = vld [vmem:[#allocation13 + $0x208] sm:$0xff] }
 0x228   :  { %1706 = vmatpush.msra.mxu2 %v1599_v32  ;;  %2006 = vmatpush.msrb.mxu3 %v1893_v17  ;;  %v1844_v32 = vld [vmem:[#allocation13 + $0x160] sm:$0xff]  ;;  %v1829_v17 = vld [vmem:[#allocation13 + $0xe8] sm:$0xff] }
 0x229   :  { %1667 = vmatpush.msrb.mxu0 %v1593_v47  ;;  %v1845_v47 = vld [vmem:[#allocation13 + $0x168] sm:$0xff] }
 0x22a   :  { %1707 = vmatpush.msra.mxu2 %v1595_v48  ;;  %2007 = vmatpush.msrb.mxu3 %v1889_v19  ;;  %v1926_v48 = vld [vmem:[#allocation13 + $0x3f0] sm:$0xff] }
 0x22b   :  { %1668 = vmatpush.msrb.mxu0 %v1589_v61  ;;  %v1927_v61 = vld [vmem:[#allocation13 + $0x3f8] sm:$0xff] }
 0x22c   :  { %1708 = vmatpush.msra.mxu2 %v1591_v5  ;;  %1669 = vmatmul.f32.vlgmr.msrb.gmra.mxu0 %v6409_v60  ;;  %v1840_v5 = vld [vmem:[#allocation13 + $0x140] sm:$0xff] }
 0x22d   :  { %1709 = vmatmul.f32.vlgmr.msra.gmra.mxu2 %v6409_v60  ;;  %v1904_v60 = vld [vmem:[#allocation13 + $0x340] sm:$0xff]  ;;  %2008 = vmatpush.msrb.mxu3 %v1885_v22  ;;  %v1911_v22 = vld [vmem:[#allocation13 + $0x378] sm:$0xff] }
 0x22e   :  { %1963 = vmatpush.msra.mxu1 %v1904_v60  ;;  %1938 = vmatpush.msra.mxu0 %v1860_v26  ;;  %v1833_v60 = vld [vmem:[#allocation13 + $0x108] sm:$0xff]  ;;  %v1906_v26 = vld [vmem:[#allocation13 + $0x350] sm:$0xff] }
 0x22f   :  { %2009 = vmatpush.msrb.mxu3 %v1881_v24  ;;  %1978 = vmatpush.msrb.mxu2 %v1861_v1  ;;  %v1825_v24 = vld [vmem:[#allocation13 + $0xc8] sm:$0xff] }
 0x230   :  { %1964 = vmatpush.msra.mxu1 %v1900_v43  ;;  %1939 = vmatpush.msra.mxu0 %v1856_v44  ;;  %v1820_v44 = vld [vmem:[#allocation13 + $0xa0] sm:$0xff] }
 0x231   :  { %2010 = vmatpush.msrb.mxu3 %v1877_v31  ;;  %1979 = vmatpush.msrb.mxu2 %v1857_v23  ;;  %v1821_v23 = vld [vmem:[#allocation13 + $0xa8] sm:$0xff] }
 0x232   :  { %1965 = vmatpush.msra.mxu1 %v1896_v46  ;;  %1940 = vmatpush.msra.mxu0 %v1852_v38  ;;  %v1903_v38 = vld [vmem:[#allocation13 + $0x338] sm:$0xff] }
 0x233   :  { %2011 = vmatpush.msrb.mxu3 %v1873_v6  ;;  %1980 = vmatpush.msrb.mxu2 %v1853_v35  ;;  %v1816_v35 = vld [vmem:[#allocation13 + $0x80] sm:$0xff] }
 0x234   :  { %1966 = vmatpush.msra.mxu1 %v1892_v59  ;;  %1941 = vmatpush.msra.mxu0 %v1848_v56  ;;  %v1828_v59 = vld [vmem:[#allocation13 + $0xe0] sm:$0xff]  ;;  %v1899_v56 = vld [vmem:[#allocation13 + $0x318] sm:$0xff] }
 0x235   :  { %2012 = vmatpush.msrb.mxu3 %v1869_v16  ;;  %1981 = vmatpush.msrb.mxu2 %v1849_v4  ;;  %v1898_v16 = vld [vmem:[#allocation13 + $0x310] sm:$0xff]  ;;  %v286_v4 = vadd.f32 %v6145_v8, %v6170_v51  ;;  %v1352_v8 = vperm.slane %v6422_v20, 3 }
 0x236   :  { %1967 = vmatpush.msra.mxu1 %v1888_v18  ;;  %1942 = vmatpush.msra.mxu0 %v1844_v32  ;;  %v1910_v18 = vld [vmem:[#allocation13 + $0x370] sm:$0xff]  ;;  %v1813_v32 = vld [vmem:[#allocation13 + $0x68] sm:$0xff] }
 0x237   :  { %2013 = vmatpush.msrb.mxu3 %v1865_v53  ;;  %1982 = vmatpush.msrb.mxu2 %v1845_v47  ;;  %v1812_v53 = vld [vmem:[#allocation13 + $0x60] sm:$0xff]  ;;  %v1894_v47 = vld [vmem:[#allocation13 + $0x2f0] sm:$0xff] }
 0x238   :  { %1968 = vmatpush.msra.mxu1 %v1884_v21  ;;  %1943 = vmatpush.msra.mxu0 %v1840_v5  ;;  %v1350_v21 = vperm.slane %v6422_v20, 1 }
 0x239   :  { %2078 = vmatpush.msra.mxu3 %v1927_v61  ;;  %1983 = vmatpush.msrb.mxu2 %v1841_v7  ;;  %v1895_v61 = vld [vmem:[#allocation13 + $0x2f8] sm:$0xff] }
 0x23a   :  { %1969 = vmatpush.msra.mxu1 %v1880_v33  ;;  %1944 = vmatpush.msra.mxu0 %v1836_v12  ;;  %v1824_v33 = vld [vmem:[#allocation13 + $0xc0] sm:$0xff] }
 0x23b   :  { %2079 = vmatpush.msra.mxu3 %v1923_v11  ;;  %1984 = vmatpush.msrb.mxu2 %v1837_v54  ;;  %v1890_v11 = vld [vmem:[#allocation13 + $0x2d0] sm:$0xff]  ;;  %v1891_v54 = vld [vmem:[#allocation13 + $0x2d8] sm:$0xff] }
 0x23c   :  { %1970 = vmatpush.msra.mxu1 %v1876_v10  ;;  %1945 = vmatpush.msra.mxu0 %v1832_v3  ;;  %v1907_v10 = vld [vmem:[#allocation13 + $0x358] sm:$0xff]  ;;  %v1886_v3 = vld [vmem:[#allocation13 + $0x2b0] sm:$0xff] }
 0x23d   :  { %2080 = vmatpush.msra.mxu3 %v1919_v55  ;;  %1985 = vmatpush.msrb.mxu2 %v1833_v60  ;;  %v1804_v55 = vld [vmem:[#allocation13 + $0x20] sm:$0xff] }
 0x23e   :  { %1971 = vmatpush.msra.mxu1 %v1872_v30  ;;  %1946 = vmatpush.msra.mxu0 %v1828_v59  ;;  %v1902_v30 = vld [vmem:[#allocation13 + $0x330] sm:$0xff] }
 0x23f   :  { %2081 = vmatpush.msra.mxu3 %v1915_v45  ;;  %1986 = vmatpush.msrb.mxu2 %v1829_v17  ;;  %v1800_v45 = vld [vmem:[#allocation13] sm:$0xff]  ;;  %v1882_v59 = vld [vmem:[#allocation13 + $0x290] sm:$0xff] }
 0x240   :  { %1972 = vmatpush.msra.mxu1 %v1868_v36  ;;  %1947 = vmatpush.msra.mxu0 %v1824_v33  ;;  %v1817_v36 = vld [vmem:[#allocation13 + $0x88] sm:$0xff]  ;;  %v1878_v33 = vld [vmem:[#allocation13 + $0x270] sm:$0xff] }
 0x241   :  { %2082 = vmatpush.msra.mxu3 %v1911_v22  ;;  %1987 = vmatpush.msrb.mxu2 %v1825_v24  ;;  %v1351_v22 = vperm.slane %v6422_v20, 2  ;;  %v1879_v24 = vld [vmem:[#allocation13 + $0x278] sm:$0xff]  ;;  %v368_v20 = vadd.f32 %v6155_v42, %v6219_v58  ;;  %v1850_v42 = vld [vmem:[#allocation13 + $0x190] sm:$0xff] }
 0x242   :  { %1973 = vmatpush.msra.mxu1 %v1864_v34  ;;  %1948 = vmatpush.msra.mxu0 %v1820_v44  ;;  %v1859_v44 = vld [vmem:[#allocation13 + $0x1d8] sm:$0xff] }
 0x243   :  { %2083 = vmatpush.msra.mxu3 %v1907_v10  ;;  %1988 = vmatpush.msrb.mxu2 %v1821_v23 }
 0x244   :  { %2038 = vmatpush.msrb.mxu1 %v1926_v48  ;;  %1949 = vmatpush.msra.mxu0 %v1816_v35 }
 0x245   :  { %2084 = vmatpush.msra.mxu3 %v1903_v38  ;;  %1989 = vmatpush.msrb.mxu2 %v1817_v36  ;;  %v1875_v38 = vld [vmem:[#allocation13 + $0x258] sm:$0xff]  ;;  %v1854_v36 = vld [vmem:[#allocation13 + $0x1b0] sm:$0xff] }
 0x246   :  { %2039 = vmatpush.msrb.mxu1 %v1922_v13  ;;  %1950 = vmatpush.msra.mxu0 %v1812_v53  ;;  %v1808_v13 = vld [vmem:[#allocation13 + $0x40] sm:$0xff] }
 0x247   :  { %2085 = vmatpush.msra.mxu3 %v1899_v56  ;;  %1990 = vmatpush.msrb.mxu2 %v1813_v32 }
 0x248   :  { %2040 = vmatpush.msrb.mxu1 %v1918_v63  ;;  %1951 = vmatpush.msra.mxu0 %v1808_v13  ;;  %v1847_v13 = vld [vmem:[#allocation13 + $0x178] sm:$0xff] }
 0x249   :  { %2086 = vmatpush.msra.mxu3 %v1895_v61  ;;  %v1867_v61 = vld [vmem:[#allocation13 + $0x218] sm:$0xff] }
 0x24a   :  { %2041 = vmatpush.msrb.mxu1 %v1914_v15  ;;  %1952 = vmatpush.msra.mxu0 %v1804_v55  ;;  %v1887_v15 = vld [vmem:[#allocation13 + $0x2b8] sm:$0xff] }
 0x24b   :  { %2087 = vmatpush.msra.mxu3 %v1891_v54  ;;  %v1842_v54 = vld [vmem:[#allocation13 + $0x150] sm:$0xff]  ;;  %v1843_v55 = vld [vmem:[#allocation13 + $0x158] sm:$0xff] }
 0x24c   :  { %2042 = vmatpush.msrb.mxu1 %v1910_v18  ;;  %1953 = vmatpush.msra.mxu0 %v1800_v45  ;;  %v1883_v18 = vld [vmem:[#allocation13 + $0x298] sm:$0xff] }
 0x24d   :  { %2088 = vmatpush.msra.mxu3 %v1887_v15  ;;  %v1839_v45 = vld [vmem:[#allocation13 + $0x138] sm:$0xff] }
 0x24e   :  { %2043 = vmatpush.msrb.mxu1 %v1906_v26 }
 0x24f   :  { %2089 = vmatpush.msra.mxu3 %v1883_v18 }
 0x250   :  { %2044 = vmatpush.msrb.mxu1 %v1902_v30 }
 0x251   :  { %2090 = vmatpush.msra.mxu3 %v1879_v24 }
 0x252   :  { %2045 = vmatpush.msrb.mxu1 %v1898_v16  ;;  %v1855_v16 = vld [vmem:[#allocation13 + $0x1b8] sm:$0xff] }
 0x253   :  { %2091 = vmatpush.msra.mxu3 %v1875_v38 }
 0x254   :  { %2046 = vmatpush.msrb.mxu1 %v1894_v47  ;;  %v1851_v47 = vld [vmem:[#allocation13 + $0x198] sm:$0xff] }
 0x256   :  { %2047 = vmatpush.msrb.mxu1 %v1890_v11 }
 0x258   :  { %2048 = vmatpush.msrb.mxu1 %v1886_v3 }
 0x25a   :  { %2049 = vmatpush.msrb.mxu1 %v1882_v59 }
 0x25c   :  { %2050 = vmatpush.msrb.mxu1 %v1878_v33 }
 0x270   :  { %v1394_v39 = vpop.f32.mrf.mxu1 }
 0x276   :  { %v1434_v46 = vpop.f32.mrf.mxu3 }
 0x278   :  { %v6425_v29 = vpop.f32.mrf.mxu1 }
 0x27e   :  { %v1514_v5 = vpop.f32.mrf.mxu3 }
 0x288   :  { %v1374_v14 = vpop.f32.mrf.mxu0 }
 0x289   :  { %v1375_v43 = vadd.f32 %v1374_v14, %v1349_v2  ;;  %v1809_v2 = vld [vmem:[#allocation13 + $0x48] sm:$0xff] }
 0x28a   :  { %1991 = vmatpush.msrb.mxu2 %v1809_v2  ;;  %v1805_v14 = vld [vmem:[#allocation13 + $0x28] sm:$0xff] }
 0x28b   :  { %v1395_v19 = vadd.f32 %v1394_v39, %v1375_v43 }
 0x28c   :  { %1992 = vmatpush.msrb.mxu2 %v1805_v14 }
 0x28d   :  { %v5312_v1 = vmul.f32 -1.442695, %v1395_v19  ;;  %v1862_v19 = vld [vmem:[#allocation13 + $0x1f0] sm:$0xff] }
 0x28e   :  { %v1414_v31 = vpop.f32.mrf.mxu2  ;;  %2018 = vmatpush.msrb.mxu0 %v1862_v19  ;;  %v1834_v19 = vld [vmem:[#allocation13 + $0x110] sm:$0xff] }
 0x28f   :  { %5449 = vpow2.f32 %v5312_v1  ;;  %v1415_v6 = vadd.f32 %v1414_v31, %v1350_v21  ;;  %v1863_v21 = vld [vmem:[#allocation13 + $0x1f8] sm:$0xff]  ;;  %v1858_v31 = vld [vmem:[#allocation13 + $0x1d0] sm:$0xff] }
 0x290   :  { %2019 = vmatpush.msrb.mxu0 %v1858_v31 }
 0x291   :  { %v1435_v39 = vadd.f32 %v1434_v46, %v1415_v6  ;;  %v1801_v46 = vld [vmem:[#allocation13 + $0x8] sm:$0xff]  ;;  %v1454_v1 = vpop.f32.mrf.mxu0  ;;  %v1874_v6 = vld [vmem:[#allocation13 + $0x250] sm:$0xff] }
 0x292   :  { %v1690_v34 = vpop.f32.mrf.mxu1  ;;  %1993 = vmatpush.msrb.mxu2 %v1801_v46  ;;  %v1455_v56 = vadd.f32 %v1454_v1, %v1351_v22  ;;  %2051 = vmatpush.msrb.mxu1 %v1874_v6  ;;  %v7231_v22 = vld [vmem:[#allocation33_spill] sm:$0xff] }
 0x293   :  { %v5313_v48 = vmul.f32 -1.442695, %v1435_v39  ;;  %v1734_v7 = vadd.f32 %v1690_v34, %v286_v4  ;;  %v1870_v4 = vld [vmem:[#allocation13 + $0x230] sm:$0xff]  ;;  %v1871_v34 = vld [vmem:[#allocation13 + $0x238] sm:$0xff]  ;;  %2020 = vmatpush.msrb.mxu0 %v1854_v36  ;;  %v245_v33 = vadd.f32 %v7231_v22, %v6165_v50 }
 0x294   :  { %2058 = vmatpush.msra.mxu2 %v1863_v21  ;;  %2052 = vmatpush.msrb.mxu1 %v1870_v4  ;;  %v1475_v11 = vadd.f32 %v6425_v29, %v1455_v56  ;;  %v1838_v29 = vld [vmem:[#allocation13 + $0x130] sm:$0xff]  ;;  %v1835_v21 = vld [vmem:[#allocation13 + $0x118] sm:$0xff] }
 0x295   :  { %v5450_v12 = vpop.eup %5449  ;;  %5451 = vpow2.f32 %v5313_v48  ;;  %v5316_v43 = vmul.f32 -1.442695, %v1734_v7  ;;  %2092 = vmatpush.msra.mxu3 %v1871_v34  ;;  %v1866_v48 = vld [vmem:[#allocation13 + $0x210] sm:$0xff]  ;;  %2021 = vmatpush.msrb.mxu0 %v1850_v42  ;;  %v1827_v36 = vld [vmem:[#allocation13 + $0xd8] sm:$0xff] }
 0x296   :  { %v6431_v63 = vadd.f32 1.0, %v5450_v12  ;;  %2059 = vmatpush.msra.mxu2 %v1859_v44  ;;  %v1846_v7 = vld [vmem:[#allocation13 + $0x170] sm:$0xff]  ;;  %2053 = vmatpush.msrb.mxu1 %v1866_v48  ;;  %v1823_v42 = vld [vmem:[#allocation13 + $0xb8] sm:$0xff] }
 0x297   :  { %v1494_v60 = vpop.f32.mrf.mxu2  ;;  %2093 = vmatpush.msra.mxu3 %v1867_v61  ;;  %2022 = vmatpush.msrb.mxu0 %v1846_v7  ;;  %v1830_v44 = vld [vmem:[#allocation13 + $0xf0] sm:$0xff]  ;;  %v1803_v22 = vld [vmem:[#allocation13 + $0x18] sm:$0xff] }
 0x298   :  { %5453 = vrcp.f32 %v6431_v63  ;;  %v1495_v17 = vadd.f32 %v1494_v60, %v1352_v8  ;;  %2060 = vmatpush.msra.mxu2 %v1855_v16  ;;  %v1532_v46 = vand.u32 2147483648, %v6431_v63  ;;  %vm1526_vm5 = vweird.f32 %v6431_v63 }
 0x299   :  { %5455 = vpow2.f32 %v5316_v43  ;;  %v1730_v30 = vpop.f32.mrf.mxu3  ;;  %2023 = vmatpush.msrb.mxu0 %v1842_v54  ;;  %v1530_v18 = vand.u32 2147483647, %v6431_v63  ;;  %v1815_v54 = vld [vmem:[#allocation13 + $0x78] sm:$0xff] }
 0x29a   :  { %v1515_v10 = vadd.f32 %v1514_v5, %v1495_v17  ;;  %v1736_v32 = vadd.f32 %v1730_v30, %v368_v20  ;;  %2061 = vmatpush.msra.mxu2 %v1851_v47  ;;  %v1831_v30 = vld [vmem:[#allocation13 + $0xf8] sm:$0xff]  ;;  %v1533_v6 = vor.u32 1.1754944e-38, %v1532_v46 }
 0x29b   :  { %v5452_v26 = vpop.eup %5451  ;;  %2024 = vmatpush.msrb.mxu0 %v1838_v29  ;;  %vm1531_vm9 = vcmp.eq.f32.partialorder %v1530_v18, 8.507059e+37  ;;  %v1807_v46 = vld [vmem:[#allocation13 + $0x38] sm:$0xff] }
 0x29c   :  { %v6435_v23 = vadd.f32 1.0, %v5452_v26  ;;  %v5314_v35 = vmul.f32 -1.442695, %v1515_v10  ;;  %v5317_v8 = vmul.f32 -1.442695, %v1736_v32  ;;  %2062 = vmatpush.msra.mxu2 %v1847_v13  ;;  %v1822_v32 = vld [vmem:[#allocation13 + $0xb0] sm:$0xff] }
 0x29d   :  { %2025 = vmatpush.msrb.mxu0 %v1834_v19  ;;  %v1818_v13 = vld [vmem:[#allocation13 + $0x90] sm:$0xff] }
 0x29e   :  { %v6439_v39 = vpop.eup %5453  ;;  %5457 = vrcp.f32 %v6435_v23  ;;  %2063 = vmatpush.msra.mxu2 %v1843_v55  ;;  %v1549_v24 = vand.u32 2147483647, %v6435_v23  ;;  %v1551_v26 = vand.u32 2147483648, %v6435_v23  ;;  %vm1545_vm8 = vweird.f32 %v6435_v23 }
 0x29f   :  { %v1522_v53 = vmul.f32 %v6439_v39, %v6431_v63  ;;  %5459 = vpow2.f32 %v5314_v35  ;;  %v5456_v2 = vpop.eup %5455  ;;  %vm1527_vm4 = vweird.f32 %v6439_v39  ;;  %2026 = vmatpush.msrb.mxu0 %v1830_v44  ;;  %v1826_v35 = vld [vmem:[#allocation13 + $0xd0] sm:$0xff] }
 0x2a0   :  { %v6449_v43 = vadd.f32 1.0, %v5456_v2  ;;  %5461 = vtanh.f32 %v1475_v11  ;;  %2064 = vmatpush.msra.mxu2 %v1839_v45  ;;  %vm6462_vm6 = vmor %vm1526_vm5, %vm1527_vm4  ;;  %vm1550_vm11 = vcmp.eq.f32.partialorder %v1549_v24, 8.507059e+37  ;;  %v1819_v2 = vld [vmem:[#allocation13 + $0x98] sm:$0xff]  ;;  %v1806_v45 = vld [vmem:[#allocation13 + $0x30] sm:$0xff] }
 0x2a1   :  { %v1523_v5 = vsub.f32 1.0, %v1522_v53  ;;  %5463 = vpow2.f32 %v5317_v8  ;;  %2027 = vmatpush.msrb.mxu0 %v1826_v35  ;;  %v1814_v8 = vld [vmem:[#allocation13 + $0x70] sm:$0xff]  ;;  %v2229_v35 = vld [vmem:[#allocation11 + $0x1d8] sm:$0xff] }
 0x2a2   :  { %2065 = vmatpush.msra.mxu2 %v1835_v21  ;;  %v1802_v21 = vld [vmem:[#allocation13 + $0x10] sm:$0xff]  ;;  %vm1765_vm1 = vweird.f32 %v6449_v43 }
 0x2a3   :  { %v1524_v12 = vmul.f32 %v6439_v39, %v1523_v5  ;;  %2028 = vmatpush.msrb.mxu0 %v1822_v32  ;;  %v1771_v32 = vand.u32 2147483648, %v6449_v43 }
 0x2a4   :  { %v5458_v14 = vpop.eup %5457  ;;  %2066 = vmatpush.msra.mxu2 %v1831_v30 }
 0x2a5   :  { %v5460_v3 = vpop.eup %5459  ;;  %v1541_v60 = vmul.f32 %v5458_v14, %v6435_v23  ;;  %v1525_v15 = vadd.f32 %v6439_v39, %v1524_v12  ;;  %vm1546_vm7 = vweird.f32 %v5458_v14  ;;  %2029 = vmatpush.msrb.mxu0 %v1818_v13  ;;  %v2177_v13 = vld [vmem:[#allocation11 + $0x38] sm:$0xff] }
 0x2a6   :  { %v6452_v59 = vadd.f32 1.0, %v5460_v3  ;;  %v5462_v16 = vpop.eup %5461  ;;  %vm1547_vm10 = vmor %vm1545_vm8, %vm1546_vm7  ;;  %2067 = vmatpush.msra.mxu2 %v1827_v36 }
 0x2a7   :  { %v1542_v17 = vsub.f32 1.0, %v1541_v60  ;;  %v1529_v10 = vsel %vm6462_vm6, %v6439_v39, %v1525_v15  ;;  %v1552_v39 = vor.u32 1.1754944e-38, %v1551_v26  ;;  %v5464_v4 = vpop.eup %5463  ;;  %2030 = vmatpush.msrb.mxu0 %v1814_v8  ;;  %v1810_v60 = vld [vmem:[#allocation13 + $0x50] sm:$0xff]  ;;  %v1811_v15 = vld [vmem:[#allocation13 + $0x58] sm:$0xff] }
 0x2a8   :  { %5465 = vrcp.f32 %v6452_v59  ;;  %v1534_v56 = vsel %vm1531_vm9, %v1533_v6, %v1529_v10  ;;  %2068 = vmatpush.msra.mxu2 %v1823_v42  ;;  %v1571_v3 = vand.u32 2147483648, %v6452_v59  ;;  %v1569_v29 = vand.u32 2147483647, %v6452_v59  ;;  %v2231_v10 = vld [vmem:[#allocation11 + $0x1e8] sm:$0xff] }
 0x2a9   :  { %v1543_v63 = vmul.f32 %v5458_v14, %v1542_v17  ;;  %5467 = vrcp.f32 %v6449_v43  ;;  %v1670_v31 = vpop.f32.mrf.mxu0  ;;  %v1576_v5 = vmul.f32 %v5462_v16, %v1534_v56  ;;  %vm1565_vm13 = vweird.f32 %v6452_v59  ;;  %2031 = vmatpush.msrb.mxu0 %v1810_v60  ;;  %v7234_v6 = vld [vmem:[#allocation34_spill] sm:$0xff]  ;;  %v2213_v60 = vld [vmem:[#allocation11 + $0x158] sm:$0xff] }
 0x2aa   :  { %v1733_v20 = vadd.f32 %v1670_v31, %v245_v33  ;;  %2069 = vmatpush.msra.mxu2 %v1819_v2  ;;  %v1572_v24 = vor.u32 1.1754944e-38, %v1571_v3  ;;  %vm1570_vm15 = vcmp.eq.f32.partialorder %v1569_v29, 8.507059e+37  ;;  %v2233_v31 = vld [vmem:[#allocation11 + $0x1f8] sm:$0xff]  ;;  %v2223_v56 = vld [vmem:[#allocation11 + $0x1a8] sm:$0xff] }
 0x2ab   :  { %v1544_v38 = vadd.f32 %v5458_v14, %v1543_v63  ;;  %2032 = vmatpush.msrb.mxu0 %v1806_v45  ;;  %v2215_v2 = vld [vmem:[#allocation11 + $0x168] sm:$0xff] }
 0x2ac   :  { %v5315_v53 = vmul.f32 -1.442695, %v1733_v20  ;;  %2070 = vmatpush.msra.mxu2 %v1815_v54  ;;  %v2227_v20 = vld [vmem:[#allocation11 + $0x1c8] sm:$0xff] }
 0x2ad   :  { %v1548_v34 = vsel %vm1547_vm10, %v5458_v14, %v1544_v38  ;;  %v6481_v14 = vadd.f32 1.0, %v5464_v4  ;;  %2033 = vmatpush.msrb.mxu0 %v1802_v21  ;;  %v327_v38 = vadd.f32 %v7234_v6, %v6227_v27  ;;  %v2225_v4 = vld [vmem:[#allocation11 + $0x1b8] sm:$0xff]  ;;  %v2211_v3 = vld [vmem:[#allocation11 + $0x148] sm:$0xff] }
 0x2ae   :  { %v5466_v23 = vpop.eup %5465  ;;  %v1553_v47 = vsel %vm1550_vm11, %v1552_v39, %v1548_v34  ;;  %5469 = vpow2.f32 %v5315_v53  ;;  %2071 = vmatpush.msra.mxu2 %v1811_v15  ;;  %v2207_v45 = vld [vmem:[#allocation11 + $0x128] sm:$0xff] }
 0x2af   :  { %v6473_v48 = vpop.eup %5467  ;;  %v1575_v61 = vmul.f32 %v1553_v47, %v6356_v49  ;;  %v1561_v7 = vmul.f32 %v5466_v23, %v6452_v59  ;;  %vm1566_vm12 = vweird.f32 %v5466_v23  ;;  %v2221_v47 = vld [vmem:[#allocation11 + $0x198] sm:$0xff]  ;;  %v1791_v6 = vand.u32 2147483648, %v6481_v14 }
 0x2b0   :  { %v1761_v55 = vmul.f32 %v6473_v48, %v6449_v43  ;;  %vm1567_vm14 = vmor %vm1565_vm13, %vm1566_vm12  ;;  %2072 = vmatpush.msra.mxu2 %v1807_v46  ;;  %v1710_v30 = vpop.f32.mrf.mxu2  ;;  %vm1766_vm0 = vweird.f32 %v6473_v48  ;;  %v2209_v46 = vld [vmem:[#allocation11 + $0x138] sm:$0xff]  ;;  %vm1785_vm9 = vweird.f32 %v6481_v14 }
 0x2b1   :  { %v6477_v11 = vadd.f32 %v1576_v5, %v1575_v61  ;;  %v1562_v12 = vsub.f32 1.0, %v1561_v7  ;;  %v1735_v39 = vadd.f32 %v1710_v30, %v327_v38  ;;  %v1769_v5 = vand.u32 2147483647, %v6449_v43  ;;  %vm6509_vm2 = vmor %vm1765_vm1, %vm1766_vm0  ;;  %v2197_v30 = vld [vmem:[#allocation11 + $0xd8] sm:$0xff]  ;;  %v2191_v38 = vld [vmem:[#allocation11 + $0xa8] sm:$0xff] }
 0x2b2   :  { %v1762_v33 = vsub.f32 1.0, %v1761_v55  ;;  %2073 = vmatpush.msra.mxu2 %v1803_v22 }
 0x2b3   :  { %5471 = vtanh.f32 %v6477_v11  ;;  %v1563_v49 = vmul.f32 %v5466_v23, %v1562_v12  ;;  %v2217_v12 = vld [vmem:[#allocation11 + $0x178] sm:$0xff]  ;;  %vm1770_vm5 = vcmp.eq.f32.partialorder %v1769_v5, 8.507059e+37  ;;  %v2228_v5 = vld [vmem:[#allocation11 + $0x1d0] sm:$0xff] }
 0x2b4   :  { %v5470_v17 = vpop.eup %5469  ;;  %5473 = vrcp.f32 %v6481_v14  ;;  %v1763_v44 = vmul.f32 %v6473_v48, %v1762_v33  ;;  %v2203_v33 = vld [vmem:[#allocation11 + $0x108] sm:$0xff] }
 0x2b5   :  { %v1564_v18 = vadd.f32 %v5466_v23, %v1563_v49  ;;  %v6487_v19 = vadd.f32 1.0, %v5470_v17  ;;  %v1772_v49 = vor.u32 1.1754944e-38, %v1771_v32 }
 0x2b6   :  { %v1764_v53 = vadd.f32 %v6473_v48, %v1763_v44  ;;  %v2195_v44 = vld [vmem:[#allocation11 + $0xc8] sm:$0xff] }
 0x2b7   :  { %v1568_v26 = vsel %vm1567_vm14, %v5466_v23, %v1564_v18  ;;  %5475 = vrcp.f32 %v6487_v19  ;;  %v2219_v23 = vld [vmem:[#allocation11 + $0x188] sm:$0xff]  ;;  %v1752_v7 = vand.u32 2147483648, %v6487_v19  ;;  %v1750_v54 = vand.u32 2147483647, %v6487_v19 }
 0x2b8   :  { %v1573_v59 = vsel %vm1570_vm15, %v1572_v24, %v1568_v26  ;;  %5477 = vtanh.f32 %v1735_v39  ;;  %v1768_v55 = vsel %vm6509_vm2, %v6473_v48, %v1764_v53  ;;  %vm1746_vm4 = vweird.f32 %v6487_v19  ;;  %v2205_v24 = vld [vmem:[#allocation11 + $0x118] sm:$0xff] }
 0x2b9   :  { %v5472_v1 = vpop.eup %5471  ;;  %v1753_v29 = vor.u32 1.1754944e-38, %v1752_v7  ;;  %v1773_v48 = vsel %vm1770_vm5, %v1772_v49, %v1768_v55  ;;  %vm1751_vm7 = vcmp.eq.f32.partialorder %v1750_v54, 8.507059e+37  ;;  %v2189_v39 = vld [vmem:[#allocation11 + $0x98] sm:$0xff]  ;;  %v2175_v7 = vld [vmem:[#allocation11 + $0x28] sm:$0xff]  ;;  %v2218_v55 = vld [vmem:[#allocation11 + $0x180] sm:$0xff] }
 0x2ba   :  { %v6491_v63 = vmul.f32 %v5472_v1, %v1573_v59  ;;  %v6498_v36 = vpop.eup %5473  ;;  %v2199_v1 = vld [vmem:[#allocation11 + $0xe8] sm:$0xff]  ;;  %v2201_v59 = vld [vmem:[#allocation11 + $0xf8] sm:$0xff]  ;;  %v2214_v49 = vld [vmem:[#allocation11 + $0x160] sm:$0xff] }
 0x2bb   :  { %v1781_v42 = vmul.f32 %v6498_v36, %v6481_v14  ;;  %vm1786_vm8 = vweird.f32 %v6498_v36  ;;  %v2173_v54 = vld [vmem:[#allocation11 + $0x18] sm:$0xff] }
 0x2bc   :  { %1974 = vmatmul.f32.vlgmr.msra.gmra.mxu1 %v6491_v63  ;;  %2014 = vmatmul.f32.vlgmr.msrb.gmra.mxu3 %v6491_v63  ;;  %vm1787_vm10 = vmor %vm1785_vm9, %vm1786_vm8 }
 0x2bd   :  { %2254 = vmatpush.msra.mxu1 %v2231_v10  ;;  %2294 = vmatpush.msrb.mxu3 %v2233_v31  ;;  %v5476_v16 = vpop.eup %5475  ;;  %v1782_v43 = vsub.f32 1.0, %v1781_v42  ;;  %v2230_v42 = vld [vmem:[#allocation11 + $0x1e0] sm:$0xff] }
 0x2be   :  { %v1742_v34 = vmul.f32 %v5476_v16, %v6487_v19  ;;  %vm1747_vm3 = vweird.f32 %v5476_v16  ;;  %v5478_v18 = vpop.eup %5477  ;;  %v1795_v19 = vmul.f32 %v1773_v48, %v6400_v52  ;;  %v1789_v52 = vand.u32 2147483647, %v6481_v14  ;;  %v2206_v48 = vld [vmem:[#allocation11 + $0x120] sm:$0xff] }
 0x2bf   :  { %2255 = vmatpush.msra.mxu1 %v2227_v20  ;;  %2295 = vmatpush.msrb.mxu3 %v2229_v35  ;;  %vm1748_vm6 = vmor %vm1746_vm4, %vm1747_vm3  ;;  %v1783_v21 = vmul.f32 %v6498_v36, %v1782_v43  ;;  %v2193_v20 = vld [vmem:[#allocation11 + $0xb8] sm:$0xff]  ;;  %v2220_v43 = vld [vmem:[#allocation11 + $0x190] sm:$0xff] }
 0x2c0   :  { %v1743_v61 = vsub.f32 1.0, %v1742_v34  ;;  %vm1790_vm11 = vcmp.eq.f32.partialorder %v1789_v52, 8.507059e+37  ;;  %v2185_v34 = vld [vmem:[#allocation11 + $0x78] sm:$0xff]  ;;  %v2176_v52 = vld [vmem:[#allocation11 + $0x30] sm:$0xff] }
 0x2c1   :  { %2256 = vmatpush.msra.mxu1 %v2223_v56  ;;  %2296 = vmatpush.msrb.mxu3 %v2225_v4  ;;  %v1784_v31 = vadd.f32 %v6498_v36, %v1783_v21  ;;  %v1792_v56 = vor.u32 1.1754944e-38, %v1791_v6  ;;  %v2183_v4 = vld [vmem:[#allocation11 + $0x68] sm:$0xff]  ;;  %v2200_v21 = vld [vmem:[#allocation11 + $0xf0] sm:$0xff]  ;;  %v2174_v6 = vld [vmem:[#allocation11 + $0x20] sm:$0xff] }
 0x2c2   :  { %v1744_v8 = vmul.f32 %v5476_v16, %v1743_v61  ;;  %v2226_v61 = vld [vmem:[#allocation11 + $0x1c0] sm:$0xff] }
 0x2c3   :  { %2257 = vmatpush.msra.mxu1 %v2219_v23  ;;  %2297 = vmatpush.msrb.mxu3 %v2221_v47  ;;  %v1788_v35 = vsel %vm1787_vm10, %v6498_v36, %v1784_v31  ;;  %v2232_v23 = vld [vmem:[#allocation11 + $0x1f0] sm:$0xff]  ;;  %v2179_v47 = vld [vmem:[#allocation11 + $0x48] sm:$0xff]  ;;  %v2181_v36 = vld [vmem:[#allocation11 + $0x58] sm:$0xff] }
 0x2c4   :  { %2054 = vmatmul.f32.vlgmr.msrb.gmra.mxu1 %v6491_v63  ;;  %2094 = vmatmul.f32.vlgmr.msra.gmra.mxu3 %v6491_v63  ;;  %v1745_v15 = vadd.f32 %v5476_v16, %v1744_v8  ;;  %v1793_v32 = vsel %vm1790_vm11, %v1792_v56, %v1788_v35  ;;  %v2171_v8 = vld [vmem:[#allocation11 + $0x8] sm:$0xff]  ;;  %v2184_v31 = vld [vmem:[#allocation11 + $0x70] sm:$0xff]  ;;  %v2505_v35 = vld [vmem:[#allocation13 + $0x3e0] sm:$0xff] }
 0x2c5   :  { %2258 = vmatpush.msra.mxu1 %v2215_v2  ;;  %2298 = vmatpush.msrb.mxu3 %v2217_v12  ;;  %v2222_v2 = vld [vmem:[#allocation11 + $0x1a0] sm:$0xff]  ;;  %v2224_v12 = vld [vmem:[#allocation11 + $0x1b0] sm:$0xff]  ;;  %v2502_v56 = vld [vmem:[#allocation13 + $0x3c8] sm:$0xff] }
 0x2c6   :  { %v1749_v17 = vsel %vm1748_vm6, %v5476_v16, %v1745_v15  ;;  %v2187_v16 = vld [vmem:[#allocation11 + $0x88] sm:$0xff]  ;;  %v5082_v15 = vld [vmem:[%s7195_s1 + $0x10] sm:$0xff] }
 0x2c7   :  { %2259 = vmatpush.msra.mxu1 %v2211_v3  ;;  %2299 = vmatpush.msrb.mxu3 %v2213_v60  ;;  %v1754_v22 = vsel %vm1751_vm7, %v1753_v29, %v1749_v17  ;;  %v2216_v3 = vld [vmem:[#allocation11 + $0x170] sm:$0xff]  ;;  %v2210_v60 = vld [vmem:[#allocation11 + $0x140] sm:$0xff] }
 0x2c8   :  { %v1796_v26 = vmul.f32 %v5478_v18, %v1754_v22  ;;  %v2212_v29 = vld [vmem:[#allocation11 + $0x150] sm:$0xff]  ;;  %5100 = vperm.xlu1 %5397, %v5082_v15   ;;  %v2198_v18 = vld [vmem:[#allocation11 + $0xe0] sm:$0xff] }
 0x2c9   :  { %2260 = vmatpush.msra.mxu1 %v2207_v45  ;;  %2300 = vmatpush.msrb.mxu3 %v2209_v46  ;;  %v2208_v45 = vld [vmem:[#allocation11 + $0x130] sm:$0xff]  ;;  %v2202_v46 = vld [vmem:[#allocation11 + $0x100] sm:$0xff] }
 0x2ca   :  { %v6523_v10 = vadd.f32 %v1796_v26, %v1795_v19  ;;  %v2204_v17 = vld [vmem:[#allocation11 + $0x110] sm:$0xff]  ;;  %v2194_v22 = vld [vmem:[#allocation11 + $0xc0] sm:$0xff] }
 0x2cb   :  { %2261 = vmatpush.msra.mxu1 %v2203_v33  ;;  %2301 = vmatpush.msrb.mxu3 %v2205_v24  ;;  %v2196_v33 = vld [vmem:[#allocation11 + $0xd0] sm:$0xff]  ;;  %v2190_v24 = vld [vmem:[#allocation11 + $0xa0] sm:$0xff] }
 0x2cc   :  { %5479 = vtanh.f32 %v6523_v10  ;;  %v2192_v19 = vld [vmem:[#allocation11 + $0xb0] sm:$0xff]  ;;  %v2186_v26 = vld [vmem:[#allocation11 + $0x80] sm:$0xff] }
 0x2cd   :  { %2262 = vmatpush.msra.mxu1 %v2199_v1  ;;  %2302 = vmatpush.msrb.mxu3 %v2201_v59  ;;  %v2188_v1 = vld [vmem:[#allocation11 + $0x90] sm:$0xff]  ;;  %v2182_v59 = vld [vmem:[#allocation11 + $0x60] sm:$0xff] }
 0x2ce   :  { %v2457_v15 = vld [vmem:[#allocation13 + $0x260] sm:$0xff] }
 0x2cf   :  { %2263 = vmatpush.msra.mxu1 %v2195_v44  ;;  %2303 = vmatpush.msrb.mxu3 %v2197_v30  ;;  %v2178_v44 = vld [vmem:[#allocation11 + $0x40] sm:$0xff]  ;;  %v2180_v30 = vld [vmem:[#allocation11 + $0x50] sm:$0xff] }
 0x2d1   :  { %2264 = vmatpush.msra.mxu1 %v2191_v38  ;;  %2304 = vmatpush.msrb.mxu3 %v2193_v20  ;;  %v2170_v38 = vld [vmem:[#allocation11] sm:$0xff]  ;;  %v2172_v20 = vld [vmem:[#allocation11 + $0x10] sm:$0xff] }
 0x2d2   :  { %v5480_v53 = vpop.eup %5479 }
 0x2d3   :  { %2265 = vmatpush.msra.mxu1 %v2187_v16  ;;  %2305 = vmatpush.msrb.mxu3 %v2189_v39  ;;  %v6532_v14 = vmul.f32 %v5480_v53, %v1793_v32  ;;  %v2506_v16 = vld [vmem:[#allocation13 + $0x3e8] sm:$0xff]  ;;  %v2501_v39 = vld [vmem:[#allocation13 + $0x3c0] sm:$0xff] }
 0x2d4   :  { %v2493_v53 = vld [vmem:[#allocation13 + $0x380] sm:$0xff]  ;;  %v2494_v32 = vld [vmem:[#allocation13 + $0x388] sm:$0xff] }
 0x2d5   :  { %2266 = vmatpush.msra.mxu1 %v2183_v4  ;;  %2306 = vmatpush.msrb.mxu3 %v2185_v34  ;;  %v2497_v4 = vld [vmem:[#allocation13 + $0x3a0] sm:$0xff]  ;;  %v2498_v34 = vld [vmem:[#allocation13 + $0x3a8] sm:$0xff] }
 0x2d6   :  { %1954 = vmatmul.f32.vlgmr.msra.gmra.mxu0 %v6532_v14  ;;  %1994 = vmatmul.f32.vlgmr.msrb.gmra.mxu2 %v6532_v14 }
 0x2d7   :  { %2234 = vmatpush.msra.mxu0 %v2230_v42  ;;  %2274 = vmatpush.msrb.mxu2 %v2232_v23  ;;  %v2489_v42 = vld [vmem:[#allocation13 + $0x360] sm:$0xff]  ;;  %v2490_v23 = vld [vmem:[#allocation13 + $0x368] sm:$0xff] }
 0x2d8   :  { %2267 = vmatpush.msra.mxu1 %v2179_v47  ;;  %2307 = vmatpush.msrb.mxu3 %v2181_v36  ;;  %v2486_v47 = vld [vmem:[#allocation13 + $0x348] sm:$0xff]  ;;  %v2481_v36 = vld [vmem:[#allocation13 + $0x320] sm:$0xff] }
 0x2d9   :  { %2235 = vmatpush.msra.mxu0 %v2226_v61  ;;  %2275 = vmatpush.msrb.mxu2 %v2228_v5  ;;  %v2482_v61 = vld [vmem:[#allocation13 + $0x328] sm:$0xff]  ;;  %v2477_v5 = vld [vmem:[#allocation13 + $0x300] sm:$0xff] }
 0x2da   :  { %2268 = vmatpush.msra.mxu1 %v2175_v7  ;;  %2308 = vmatpush.msrb.mxu3 %v2177_v13  ;;  %v2478_v7 = vld [vmem:[#allocation13 + $0x308] sm:$0xff]  ;;  %v2473_v13 = vld [vmem:[#allocation13 + $0x2e0] sm:$0xff] }
 0x2db   :  { %2236 = vmatpush.msra.mxu0 %v2222_v2  ;;  %2276 = vmatpush.msrb.mxu2 %v2224_v12  ;;  %v2474_v2 = vld [vmem:[#allocation13 + $0x2e8] sm:$0xff]  ;;  %v2469_v12 = vld [vmem:[#allocation13 + $0x2c0] sm:$0xff] }
 0x2dc   :  { %2269 = vmatpush.msra.mxu1 %v2171_v8  ;;  %2309 = vmatpush.msrb.mxu3 %v2173_v54  ;;  %v2470_v8 = vld [vmem:[#allocation13 + $0x2c8] sm:$0xff]  ;;  %v2465_v54 = vld [vmem:[#allocation13 + $0x2a0] sm:$0xff] }
 0x2dd   :  { %2237 = vmatpush.msra.mxu0 %v2218_v55  ;;  %2277 = vmatpush.msrb.mxu2 %v2220_v43  ;;  %v2466_v55 = vld [vmem:[#allocation13 + $0x2a8] sm:$0xff]  ;;  %v2461_v43 = vld [vmem:[#allocation13 + $0x280] sm:$0xff] }
 0x2de   :  { %2034 = vmatmul.f32.vlgmr.msrb.gmra.mxu0 %v6532_v14  ;;  %2074 = vmatmul.f32.vlgmr.msra.gmra.mxu2 %v6532_v14 }
 0x2df   :  { %2238 = vmatpush.msra.mxu0 %v2214_v49  ;;  %2270 = vmatmul.f32.vlgmr.msra.gmra.mxu1 %v6532_v14  ;;  %v2462_v49 = vld [vmem:[#allocation13 + $0x288] sm:$0xff] }
 0x2e0   :  { %2278 = vmatpush.msrb.mxu2 %v2216_v3  ;;  %2310 = vmatmul.f32.vlgmr.msrb.gmra.mxu3 %v6532_v14  ;;  %v2441_v3 = vld [vmem:[#allocation13 + $0x1e0] sm:$0xff] }
 0x2e1   :  { %2239 = vmatpush.msra.mxu0 %v2210_v60  ;;  %2539 = vmatpush.msrb.mxu1 %v2505_v35  ;;  %v2442_v60 = vld [vmem:[#allocation13 + $0x1e8] sm:$0xff]  ;;  %v2503_v35 = vld [vmem:[#allocation13 + $0x3d0] sm:$0xff] }
 0x2e2   :  { %2279 = vmatpush.msrb.mxu2 %v2212_v29  ;;  %2579 = vmatpush.msra.mxu3 %v2506_v16  ;;  %v2458_v29 = vld [vmem:[#allocation13 + $0x268] sm:$0xff] }
 0x2e3   :  { %2240 = vmatpush.msra.mxu0 %v2206_v48  ;;  %2540 = vmatpush.msrb.mxu1 %v2501_v39  ;;  %v2437_v48 = vld [vmem:[#allocation13 + $0x1c0] sm:$0xff]  ;;  %v2504_v39 = vld [vmem:[#allocation13 + $0x3d8] sm:$0xff] }
 0x2e4   :  { %2280 = vmatpush.msrb.mxu2 %v2208_v45  ;;  %2580 = vmatpush.msra.mxu3 %v2502_v56  ;;  %v2438_v45 = vld [vmem:[#allocation13 + $0x1c8] sm:$0xff]  ;;  %v2417_v56 = vld [vmem:[#allocation13 + $0x120] sm:$0xff] }
 0x2e5   :  { %2241 = vmatpush.msra.mxu0 %v2202_v46  ;;  %2541 = vmatpush.msrb.mxu1 %v2497_v4  ;;  %v2453_v46 = vld [vmem:[#allocation13 + $0x240] sm:$0xff]  ;;  %v2418_v4 = vld [vmem:[#allocation13 + $0x128] sm:$0xff] }
 0x2e6   :  { %2281 = vmatpush.msrb.mxu2 %v2204_v17  ;;  %2581 = vmatpush.msra.mxu3 %v2498_v34  ;;  %v2454_v17 = vld [vmem:[#allocation13 + $0x248] sm:$0xff]  ;;  %v2499_v34 = vld [vmem:[#allocation13 + $0x3b0] sm:$0xff] }
 0x2e7   :  { %2242 = vmatpush.msra.mxu0 %v2198_v18  ;;  %2542 = vmatpush.msrb.mxu1 %v2493_v53  ;;  %v2433_v18 = vld [vmem:[#allocation13 + $0x1a0] sm:$0xff]  ;;  %v2500_v53 = vld [vmem:[#allocation13 + $0x3b8] sm:$0xff] }
 0x2e8   :  { %2282 = vmatpush.msrb.mxu2 %v2200_v21  ;;  %2582 = vmatpush.msra.mxu3 %v2494_v32  ;;  %v2434_v21 = vld [vmem:[#allocation13 + $0x1a8] sm:$0xff] }
 0x2e9   :  { %2243 = vmatpush.msra.mxu0 %v2194_v22  ;;  %2543 = vmatpush.msrb.mxu1 %v2489_v42  ;;  %v2413_v42 = vld [vmem:[#allocation13 + $0x100] sm:$0xff] }
 0x2ea   :  { %2283 = vmatpush.msrb.mxu2 %v2196_v33  ;;  %2583 = vmatpush.msra.mxu3 %v2490_v23  ;;  %v2449_v33 = vld [vmem:[#allocation13 + $0x220] sm:$0xff]  ;;  %v2414_v23 = vld [vmem:[#allocation13 + $0x108] sm:$0xff] }
 0x2eb   :  { %2244 = vmatpush.msra.mxu0 %v2190_v24  ;;  %v2450_v24 = vld [vmem:[#allocation13 + $0x228] sm:$0xff] }
 0x2ec   :  { %2284 = vmatpush.msrb.mxu2 %v2192_v19  ;;  %2584 = vmatpush.msra.mxu3 %v2486_v47  ;;  %v2429_v19 = vld [vmem:[#allocation13 + $0x180] sm:$0xff] }
 0x2ed   :  { %2245 = vmatpush.msra.mxu0 %v2186_v26  ;;  %v2430_v26 = vld [vmem:[#allocation13 + $0x188] sm:$0xff] }
 0x2ee   :  { %2285 = vmatpush.msrb.mxu2 %v2188_v1  ;;  %2585 = vmatpush.msra.mxu3 %v2482_v61  ;;  %v6545_v1 = vld [vmem:[#allocation14] sm:$0xf]  ;;  %v2496_v61 = vld [vmem:[#allocation13 + $0x398] sm:$0xff] }
 0x2ef   :  { %2246 = vmatpush.msra.mxu0 %v2182_v59  ;;  %v2445_v59 = vld [vmem:[#allocation13 + $0x200] sm:$0xff]  ;;  %v1930_v16 = vperm.slane %v6545_v1, 0 }
 0x2f0   :  { %2286 = vmatpush.msrb.mxu2 %v2184_v31  ;;  %2586 = vmatpush.msra.mxu3 %v2478_v7  ;;  %v2446_v31 = vld [vmem:[#allocation13 + $0x208] sm:$0xff] }
 0x2f1   :  { %2247 = vmatpush.msra.mxu0 %v2178_v44  ;;  %v2425_v44 = vld [vmem:[#allocation13 + $0x160] sm:$0xff]  ;;  %v2410_v7 = vld [vmem:[#allocation13 + $0xe8] sm:$0xff] }
 0x2f2   :  { %2287 = vmatpush.msrb.mxu2 %v2180_v30  ;;  %2587 = vmatpush.msra.mxu3 %v2474_v2  ;;  %v2426_v30 = vld [vmem:[#allocation13 + $0x168] sm:$0xff] }
 0x2f3   :  { %2248 = vmatpush.msra.mxu0 %v2174_v6  ;;  %v2507_v6 = vld [vmem:[#allocation13 + $0x3f0] sm:$0xff] }
 0x2f4   :  { %2288 = vmatpush.msrb.mxu2 %v2176_v52  ;;  %2588 = vmatpush.msra.mxu3 %v2470_v8  ;;  %v2508_v52 = vld [vmem:[#allocation13 + $0x3f8] sm:$0xff]  ;;  %v1931_v8 = vperm.slane %v6545_v1, 1 }
 0x2f5   :  { %2249 = vmatpush.msra.mxu0 %v2170_v38  ;;  %v2421_v38 = vld [vmem:[#allocation13 + $0x140] sm:$0xff] }
 0x2f6   :  { %2289 = vmatpush.msrb.mxu2 %v2172_v20  ;;  %2250 = vmatmul.f32.vlgmr.msra.gmra.mxu0 %v6532_v14  ;;  %v2422_v20 = vld [vmem:[#allocation13 + $0x148] sm:$0xff] }
 0x2f7   :  { %2290 = vmatmul.f32.vlgmr.msrb.gmra.mxu2 %v6532_v14  ;;  %v2485_v14 = vld [vmem:[#allocation13 + $0x340] sm:$0xff]  ;;  %2589 = vmatpush.msra.mxu3 %v2466_v55 }
 0x2f8   :  { %2544 = vmatpush.msrb.mxu1 %v2485_v14  ;;  %2519 = vmatpush.msrb.mxu0 %v2441_v3  ;;  %v2495_v14 = vld [vmem:[#allocation13 + $0x390] sm:$0xff]  ;;  %v2405_v55 = vld [vmem:[#allocation13 + $0xc0] sm:$0xff] }
 0x2f9   :  { %2590 = vmatpush.msra.mxu3 %v2462_v49  ;;  %2559 = vmatpush.msra.mxu2 %v2442_v60  ;;  %v2487_v49 = vld [vmem:[#allocation13 + $0x350] sm:$0xff]  ;;  %v2488_v60 = vld [vmem:[#allocation13 + $0x358] sm:$0xff] }
 0x2fa   :  { %2545 = vmatpush.msrb.mxu1 %v2481_v36  ;;  %2520 = vmatpush.msrb.mxu0 %v2437_v48  ;;  %v2402_v48 = vld [vmem:[#allocation13 + $0xa8] sm:$0xff] }
 0x2fb   :  { %2591 = vmatpush.msra.mxu3 %v2458_v29  ;;  %2560 = vmatpush.msra.mxu2 %v2438_v45  ;;  %v2401_v29 = vld [vmem:[#allocation13 + $0xa0] sm:$0xff]  ;;  %v2483_v45 = vld [vmem:[#allocation13 + $0x330] sm:$0xff] }
 0x2fc   :  { %2546 = vmatpush.msrb.mxu1 %v2477_v5  ;;  %2521 = vmatpush.msrb.mxu0 %v2433_v18  ;;  %v2409_v5 = vld [vmem:[#allocation13 + $0xe0] sm:$0xff] }
 0x2fd   :  { %2592 = vmatpush.msra.mxu3 %v2454_v17  ;;  %2561 = vmatpush.msra.mxu2 %v2434_v21  ;;  %v2484_v17 = vld [vmem:[#allocation13 + $0x338] sm:$0xff]  ;;  %v2397_v18 = vld [vmem:[#allocation13 + $0x80] sm:$0xff]  ;;  %v2398_v21 = vld [vmem:[#allocation13 + $0x88] sm:$0xff] }
 0x2fe   :  { %2547 = vmatpush.msrb.mxu1 %v2473_v13  ;;  %2522 = vmatpush.msrb.mxu0 %v2429_v19  ;;  %v2491_v13 = vld [vmem:[#allocation13 + $0x370] sm:$0xff]  ;;  %v2480_v19 = vld [vmem:[#allocation13 + $0x318] sm:$0xff] }
 0x2ff   :  { %2593 = vmatpush.msra.mxu3 %v2450_v24  ;;  %2562 = vmatpush.msra.mxu2 %v2430_v26  ;;  %v7237_v26 = vld [vmem:[#allocation36_spill] sm:$0xff] }
 0x300   :  { %2548 = vmatpush.msrb.mxu1 %v2469_v12  ;;  %2523 = vmatpush.msrb.mxu0 %v2425_v44  ;;  %v2394_v44 = vld [vmem:[#allocation13 + $0x68] sm:$0xff] }
 0x301   :  { %2594 = vmatpush.msra.mxu3 %v2446_v31  ;;  %2563 = vmatpush.msra.mxu2 %v2426_v30  ;;  %v2393_v31 = vld [vmem:[#allocation13 + $0x60] sm:$0xff]  ;;  %v2475_v30 = vld [vmem:[#allocation13 + $0x2f0] sm:$0xff] }
 0x302   :  { %2549 = vmatpush.msrb.mxu1 %v2465_v54  ;;  %2524 = vmatpush.msrb.mxu0 %v2421_v38  ;;  %v2492_v54 = vld [vmem:[#allocation13 + $0x378] sm:$0xff] }
 0x303   :  { %2659 = vmatpush.msrb.mxu3 %v2508_v52  ;;  %2564 = vmatpush.msra.mxu2 %v2422_v20  ;;  %v1933_v52 = vperm.slane %v6545_v1, 3  ;;  %v2476_v38 = vld [vmem:[#allocation13 + $0x2f8] sm:$0xff] }
 0x304   :  { %2550 = vmatpush.msrb.mxu1 %v2461_v43  ;;  %2525 = vmatpush.msrb.mxu0 %v2417_v56  ;;  %v2406_v43 = vld [vmem:[#allocation13 + $0xc8] sm:$0xff] }
 0x305   :  { %2660 = vmatpush.msrb.mxu3 %v2504_v39  ;;  %2565 = vmatpush.msra.mxu2 %v2418_v4  ;;  %v2471_v39 = vld [vmem:[#allocation13 + $0x2d0] sm:$0xff] }
 0x306   :  { %2551 = vmatpush.msrb.mxu1 %v2457_v15  ;;  %2526 = vmatpush.msrb.mxu0 %v2413_v42  ;;  %v2385_v42 = vld [vmem:[#allocation13 + $0x20] sm:$0xff] }
 0x307   :  { %2661 = vmatpush.msrb.mxu3 %v2500_v53  ;;  %2566 = vmatpush.msra.mxu2 %v2414_v23  ;;  %v2386_v23 = vld [vmem:[#allocation13 + $0x28] sm:$0xff] }
 0x308   :  { %2552 = vmatpush.msrb.mxu1 %v2453_v46  ;;  %2527 = vmatpush.msrb.mxu0 %v2409_v5 }
 0x309   :  { %2662 = vmatpush.msrb.mxu3 %v2496_v61  ;;  %2567 = vmatpush.msra.mxu2 %v2410_v7  ;;  %v2468_v61 = vld [vmem:[#allocation13 + $0x2b8] sm:$0xff]  ;;  %v2381_v7 = vld [vmem:[#allocation13] sm:$0xff] }
 0x30a   :  { %2553 = vmatpush.msrb.mxu1 %v2449_v33  ;;  %2528 = vmatpush.msrb.mxu0 %v2405_v55  ;;  %v2444_v55 = vld [vmem:[#allocation13 + $0x1f8] sm:$0xff] }
 0x30b   :  { %2663 = vmatpush.msrb.mxu3 %v2492_v54  ;;  %2568 = vmatpush.msra.mxu2 %v2406_v43  ;;  %v2443_v54 = vld [vmem:[#allocation13 + $0x1f0] sm:$0xff] }
 0x30c   :  { %2554 = vmatpush.msrb.mxu1 %v2445_v59  ;;  %2529 = vmatpush.msrb.mxu0 %v2401_v29  ;;  %v289_v59 = vadd.f32 %v7237_v26, %v6170_v51  ;;  %v2459_v43 = vld [vmem:[#allocation13 + $0x270] sm:$0xff] }
 0x30d   :  { %2664 = vmatpush.msrb.mxu3 %v2488_v60  ;;  %2569 = vmatpush.msra.mxu2 %v2402_v48  ;;  %v1932_v60 = vperm.slane %v6545_v1, 2  ;;  %v2439_v29 = vld [vmem:[#allocation13 + $0x1d0] sm:$0xff]  ;;  %v2440_v48 = vld [vmem:[#allocation13 + $0x1d8] sm:$0xff] }
 0x30e   :  { %2619 = vmatpush.msra.mxu1 %v2507_v6  ;;  %2530 = vmatpush.msrb.mxu0 %v2397_v18  ;;  %v2456_v18 = vld [vmem:[#allocation13 + $0x258] sm:$0xff]  ;;  %v2451_v26 = vld [vmem:[#allocation13 + $0x230] sm:$0xff] }
 0x30f   :  { %2665 = vmatpush.msrb.mxu3 %v2484_v17  ;;  %2570 = vmatpush.msra.mxu2 %v2398_v21  ;;  %v2455_v17 = vld [vmem:[#allocation13 + $0x250] sm:$0xff] }
 0x310   :  { %2620 = vmatpush.msra.mxu1 %v2503_v35  ;;  %2531 = vmatpush.msrb.mxu0 %v2393_v31  ;;  %v2389_v35 = vld [vmem:[#allocation13 + $0x40] sm:$0xff] }
 0x311   :  { %2666 = vmatpush.msrb.mxu3 %v2480_v19  ;;  %2571 = vmatpush.msra.mxu2 %v2394_v44 }
 0x312   :  { %2621 = vmatpush.msra.mxu1 %v2499_v34  ;;  %2532 = vmatpush.msrb.mxu0 %v2389_v35  ;;  %v2472_v34 = vld [vmem:[#allocation13 + $0x2d8] sm:$0xff] }
 0x313   :  { %2667 = vmatpush.msrb.mxu3 %v2476_v38  ;;  %v2447_v38 = vld [vmem:[#allocation13 + $0x210] sm:$0xff] }
 0x314   :  { %2622 = vmatpush.msra.mxu1 %v2495_v14  ;;  %v2467_v14 = vld [vmem:[#allocation13 + $0x2b0] sm:$0xff]  ;;  %2533 = vmatpush.msrb.mxu0 %v2385_v42 }
 0x315   :  { %2668 = vmatpush.msrb.mxu3 %v2472_v34  ;;  %v2423_v42 = vld [vmem:[#allocation13 + $0x150] sm:$0xff] }
 0x316   :  { %2623 = vmatpush.msra.mxu1 %v2491_v13  ;;  %v2382_v13 = vld [vmem:[#allocation13 + $0x8] sm:$0xff]  ;;  %2534 = vmatpush.msrb.mxu0 %v2381_v7 }
 0x317   :  { %2669 = vmatpush.msrb.mxu3 %v2468_v61 }
 0x318   :  { %2624 = vmatpush.msra.mxu1 %v2487_v49  ;;  %v2460_v49 = vld [vmem:[#allocation13 + $0x278] sm:$0xff]  ;;  %2599 = vmatpush.msra.mxu0 %v2443_v54 }
 0x31a   :  { %2625 = vmatpush.msra.mxu1 %v2483_v45  ;;  %2600 = vmatpush.msra.mxu0 %v2439_v29 }
 0x339   :  { %v1975_v22 = vpop.f32.mrf.mxu1 }
 0x33f   :  { %v2015_v2 = vpop.f32.mrf.mxu3 }
 0x341   :  { %v6548_v47 = vpop.f32.mrf.mxu1 }
 0x347   :  { %v2095_v4 = vpop.f32.mrf.mxu3 }
 0x353   :  { %v1955_v32 = vpop.f32.mrf.mxu0 }
 0x354   :  { %v1956_v36 = vadd.f32 %v1955_v32, %v1930_v16  ;;  %v2390_v16 = vld [vmem:[#allocation13 + $0x48] sm:$0xff] }
 0x355   :  { %2572 = vmatpush.msra.mxu2 %v2390_v16  ;;  %v2427_v16 = vld [vmem:[#allocation13 + $0x170] sm:$0xff] }
 0x356   :  { %v1976_v12 = vadd.f32 %v1975_v22, %v1956_v36  ;;  %v2479_v22 = vld [vmem:[#allocation13 + $0x310] sm:$0xff] }
 0x357   :  { %2626 = vmatpush.msra.mxu1 %v2479_v22  ;;  %2573 = vmatpush.msra.mxu2 %v2386_v23  ;;  %v2435_v22 = vld [vmem:[#allocation13 + $0x1b0] sm:$0xff]  ;;  %v2424_v23 = vld [vmem:[#allocation13 + $0x158] sm:$0xff] }
 0x358   :  { %v5318_v3 = vmul.f32 -1.442695, %v1976_v12  ;;  %2601 = vmatpush.msra.mxu0 %v2435_v22 }
 0x359   :  { %v1995_v15 = vpop.f32.mrf.mxu2  ;;  %2627 = vmatpush.msra.mxu1 %v2475_v30  ;;  %2574 = vmatpush.msra.mxu2 %v2382_v13  ;;  %v2431_v30 = vld [vmem:[#allocation13 + $0x190] sm:$0xff] }
 0x35a   :  { %5481 = vpow2.f32 %v5318_v3  ;;  %v1996_v46 = vadd.f32 %v1995_v15, %v1931_v8  ;;  %v2464_v8 = vld [vmem:[#allocation13 + $0x298] sm:$0xff]  ;;  %2602 = vmatpush.msra.mxu0 %v2431_v30 }
 0x35b   :  { %2628 = vmatpush.msra.mxu1 %v2471_v39  ;;  %2670 = vmatpush.msrb.mxu3 %v2464_v8  ;;  %v2428_v39 = vld [vmem:[#allocation13 + $0x178] sm:$0xff] }
 0x35c   :  { %v2016_v33 = vadd.f32 %v2015_v2, %v1996_v46  ;;  %v2271_v24 = vpop.f32.mrf.mxu1  ;;  %v2463_v2 = vld [vmem:[#allocation13 + $0x290] sm:$0xff]  ;;  %2639 = vmatpush.msrb.mxu2 %v2444_v55  ;;  %v2035_v46 = vpop.f32.mrf.mxu0  ;;  %2603 = vmatpush.msra.mxu0 %v2427_v16 }
 0x35d   :  { %v2315_v20 = vadd.f32 %v2271_v24, %v289_v59  ;;  %2629 = vmatpush.msra.mxu1 %v2467_v14  ;;  %2671 = vmatpush.msrb.mxu3 %v2460_v49  ;;  %v7238_v24 = vld [vmem:[#allocation38_spill] sm:$0xff]  ;;  %v2452_v59 = vld [vmem:[#allocation13 + $0x238] sm:$0xff]  ;;  %v2036_v44 = vadd.f32 %v2035_v46, %v1932_v60 }
 0x35e   :  { %v5319_v6 = vmul.f32 -1.442695, %v2016_v33  ;;  %2640 = vmatpush.msrb.mxu2 %v2440_v48  ;;  %v2436_v33 = vld [vmem:[#allocation13 + $0x1b8] sm:$0xff]  ;;  %v371_v19 = vadd.f32 %v7238_v24, %v6219_v58  ;;  %2604 = vmatpush.msra.mxu0 %v2423_v42  ;;  %v2415_v55 = vld [vmem:[#allocation13 + $0x110] sm:$0xff] }
 0x35f   :  { %v5322_v5 = vmul.f32 -1.442695, %v2315_v20  ;;  %2630 = vmatpush.msra.mxu1 %v2463_v2  ;;  %2672 = vmatpush.msrb.mxu3 %v2456_v18  ;;  %v2448_v20 = vld [vmem:[#allocation13 + $0x218] sm:$0xff]  ;;  %v2056_v34 = vadd.f32 %v6548_v47, %v2036_v44  ;;  %v2419_v47 = vld [vmem:[#allocation13 + $0x130] sm:$0xff] }
 0x360   :  { %v5482_v56 = vpop.eup %5481  ;;  %5483 = vpow2.f32 %v5319_v6  ;;  %2641 = vmatpush.msrb.mxu2 %v2436_v33  ;;  %v2432_v6 = vld [vmem:[#allocation13 + $0x198] sm:$0xff]  ;;  %2605 = vmatpush.msra.mxu0 %v2419_v47  ;;  %v2407_v24 = vld [vmem:[#allocation13 + $0xd0] sm:$0xff] }
 0x361   :  { %v6554_v53 = vadd.f32 1.0, %v5482_v56  ;;  %v2075_v32 = vpop.f32.mrf.mxu2  ;;  %2631 = vmatpush.msra.mxu1 %v2459_v43  ;;  %2673 = vmatpush.msrb.mxu3 %v2452_v59  ;;  %v2420_v2 = vld [vmem:[#allocation13 + $0x138] sm:$0xff]  ;;  %v2391_v47 = vld [vmem:[#allocation13 + $0x50] sm:$0xff] }
 0x362   :  { %v2076_v36 = vadd.f32 %v2075_v32, %v1933_v52  ;;  %2642 = vmatpush.msrb.mxu2 %v2432_v6  ;;  %v2416_v43 = vld [vmem:[#allocation13 + $0x118] sm:$0xff]  ;;  %2606 = vmatpush.msra.mxu0 %v2415_v55 }
 0x363   :  { %5485 = vrcp.f32 %v6554_v53  ;;  %v2311_v21 = vpop.f32.mrf.mxu3  ;;  %2632 = vmatpush.msra.mxu1 %v2455_v17  ;;  %2674 = vmatpush.msrb.mxu3 %v2448_v20  ;;  %vm2107_vm13 = vweird.f32 %v6554_v53  ;;  %v2111_v54 = vand.u32 2147483647, %v6554_v53  ;;  %v7239_v49 = vld [vmem:[#allocation35_spill] sm:$0xff] }
 0x364   :  { %v2096_v12 = vadd.f32 %v2095_v4, %v2076_v36  ;;  %5487 = vpow2.f32 %v5322_v5  ;;  %v2317_v52 = vadd.f32 %v2311_v21, %v371_v19  ;;  %2643 = vmatpush.msrb.mxu2 %v2428_v39  ;;  %v2411_v17 = vld [vmem:[#allocation13 + $0xf0] sm:$0xff]  ;;  %v2412_v18 = vld [vmem:[#allocation13 + $0xf8] sm:$0xff] }
 0x365   :  { %2633 = vmatpush.msra.mxu1 %v2451_v26  ;;  %vm2112_vm1 = vcmp.eq.f32.partialorder %v2111_v54, 8.507059e+37  ;;  %2607 = vmatpush.msra.mxu0 %v2411_v17  ;;  %v2408_v19 = vld [vmem:[#allocation13 + $0xd8] sm:$0xff]  ;;  %v2387_v54 = vld [vmem:[#allocation13 + $0x30] sm:$0xff] }
 0x366   :  { %v5484_v3 = vpop.eup %5483  ;;  %v5320_v15 = vmul.f32 -1.442695, %v2096_v12  ;;  %v5323_v61 = vmul.f32 -1.442695, %v2317_v52  ;;  %2644 = vmatpush.msrb.mxu2 %v2424_v23  ;;  %v2113_v12 = vand.u32 2147483648, %v6554_v53  ;;  %v2404_v52 = vld [vmem:[#allocation13 + $0xb8] sm:$0xff] }
 0x367   :  { %v6558_v45 = vadd.f32 1.0, %v5484_v3  ;;  %2634 = vmatpush.msra.mxu1 %v2447_v38  ;;  %v248_v3 = vadd.f32 %v7239_v49, %v6165_v50  ;;  %2608 = vmatpush.msra.mxu0 %v2407_v24  ;;  %v2395_v23 = vld [vmem:[#allocation13 + $0x70] sm:$0xff]  ;;  %v2388_v55 = vld [vmem:[#allocation13 + $0x38] sm:$0xff] }
 0x368   :  { %5489 = vpow2.f32 %v5320_v15  ;;  %2645 = vmatpush.msrb.mxu2 %v2420_v2  ;;  %v2114_v21 = vor.u32 1.1754944e-38, %v2113_v12  ;;  %v2392_v2 = vld [vmem:[#allocation13 + $0x58] sm:$0xff] }
 0x369   :  { %v6560_v1 = vpop.eup %5485  ;;  %5491 = vrcp.f32 %v6558_v45  ;;  %v2132_v60 = vand.u32 2147483648, %v6558_v45  ;;  %v2130_v29 = vand.u32 2147483647, %v6558_v45  ;;  %vm2126_vm0 = vweird.f32 %v6558_v45  ;;  %v2384_v15 = vld [vmem:[#allocation13 + $0x18] sm:$0xff] }
 0x36a   :  { %v2103_v31 = vmul.f32 %v6560_v1, %v6554_v53  ;;  %v5488_v56 = vpop.eup %5487  ;;  %vm2108_vm12 = vweird.f32 %v6560_v1  ;;  %2646 = vmatpush.msrb.mxu2 %v2416_v43 }
 0x36b   :  { %v6574_v13 = vadd.f32 1.0, %v5488_v56  ;;  %vm6585_vm14 = vmor %vm2107_vm13, %vm2108_vm12  ;;  %vm2131_vm3 = vcmp.eq.f32.partialorder %v2130_v29, 8.507059e+37 }
 0x36c   :  { %v2104_v35 = vsub.f32 1.0, %v2103_v31  ;;  %2647 = vmatpush.msrb.mxu2 %v2412_v18  ;;  %v2812_v18 = vld [vmem:[#allocation11 + $0x1e8] sm:$0xff] }
 0x36d   :  { %vm2346_vm9 = vweird.f32 %v6574_v13 }
 0x36e   :  { %v5490_v4 = vpop.eup %5489  ;;  %v2105_v32 = vmul.f32 %v6560_v1, %v2104_v35  ;;  %2648 = vmatpush.msrb.mxu2 %v2408_v19  ;;  %v2808_v19 = vld [vmem:[#allocation11 + $0x1c8] sm:$0xff] }
 0x36f   :  { %v5492_v14 = vpop.eup %5491  ;;  %v6569_v36 = vadd.f32 1.0, %v5490_v4  ;;  %v2399_v4 = vld [vmem:[#allocation13 + $0x90] sm:$0xff] }
 0x370   :  { %v2122_v5 = vmul.f32 %v5492_v14, %v6558_v45  ;;  %v2106_v7 = vadd.f32 %v6560_v1, %v2105_v32  ;;  %vm2127_vm15 = vweird.f32 %v5492_v14  ;;  %v2403_v45 = vld [vmem:[#allocation13 + $0xb0] sm:$0xff]  ;;  %2649 = vmatpush.msrb.mxu2 %v2404_v52 }
 0x371   :  { %5493 = vrcp.f32 %v6569_v36  ;;  %vm2128_vm2 = vmor %vm2126_vm0, %vm2127_vm15  ;;  %2609 = vmatpush.msra.mxu0 %v2403_v45  ;;  %vm2146_vm5 = vweird.f32 %v6569_v36  ;;  %v2352_v45 = vand.u32 2147483648, %v6574_v13 }
 0x372   :  { %v2123_v8 = vsub.f32 1.0, %v2122_v5  ;;  %5495 = vtanh.f32 %v2056_v34  ;;  %v2110_v46 = vsel %vm6585_vm14, %v6560_v1, %v2106_v7  ;;  %v2133_v1 = vor.u32 1.1754944e-38, %v2132_v60  ;;  %v2400_v34 = vld [vmem:[#allocation13 + $0x98] sm:$0xff]  ;;  %v2383_v60 = vld [vmem:[#allocation13 + $0x10] sm:$0xff] }
 0x373   :  { %5497 = vpow2.f32 %v5323_v61  ;;  %v2251_v53 = vpop.f32.mrf.mxu0  ;;  %v2115_v59 = vsel %vm2112_vm1, %v2114_v21, %v2110_v46  ;;  %2610 = vmatpush.msra.mxu0 %v2399_v4  ;;  %2650 = vmatpush.msrb.mxu2 %v2400_v34  ;;  %v2814_v21 = vld [vmem:[#allocation11 + $0x1f8] sm:$0xff] }
 0x374   :  { %v2124_v48 = vmul.f32 %v5492_v14, %v2123_v8  ;;  %5499 = vrcp.f32 %v6574_v13  ;;  %v2314_v22 = vadd.f32 %v2251_v53, %v248_v3  ;;  %v2150_v8 = vand.u32 2147483647, %v6569_v36 }
 0x375   :  { %2611 = vmatpush.msra.mxu0 %v2395_v23 }
 0x376   :  { %v2125_v33 = vadd.f32 %v5492_v14, %v2124_v48  ;;  %v5321_v31 = vmul.f32 -1.442695, %v2314_v22  ;;  %vm2151_vm7 = vcmp.eq.f32.partialorder %v2150_v8, 8.507059e+37  ;;  %v7242_v22 = vld [vmem:[#allocation37_spill] sm:$0xff] }
 0x377   :  { %v5494_v26 = vpop.eup %5493  ;;  %2612 = vmatpush.msra.mxu0 %v2391_v47  ;;  %v2792_v47 = vld [vmem:[#allocation11 + $0x148] sm:$0xff] }
 0x378   :  { %v5496_v44 = vpop.eup %5495  ;;  %v2129_v30 = vsel %vm2128_vm2, %v5492_v14, %v2125_v33  ;;  %v2142_v6 = vmul.f32 %v5494_v26, %v6569_v36  ;;  %5501 = vpow2.f32 %v5321_v31  ;;  %v2396_v14 = vld [vmem:[#allocation13 + $0x78] sm:$0xff]  ;;  %vm2147_vm4 = vweird.f32 %v5494_v26 }
 0x379   :  { %v5498_v38 = vpop.eup %5497  ;;  %v2134_v20 = vsel %vm2131_vm3, %v2133_v1, %v2129_v30  ;;  %v2157_v39 = vmul.f32 %v5496_v44, %v2115_v59  ;;  %2651 = vmatpush.msrb.mxu2 %v2396_v14  ;;  %vm2148_vm6 = vmor %vm2146_vm5, %vm2147_vm4  ;;  %2613 = vmatpush.msra.mxu0 %v2387_v54  ;;  %v330_v33 = vadd.f32 %v7242_v22, %v6227_v27  ;;  %v2804_v30 = vld [vmem:[#allocation11 + $0x1a8] sm:$0xff]  ;;  %v2798_v14 = vld [vmem:[#allocation11 + $0x178] sm:$0xff] }
 0x37a   :  { %v6597_v35 = vpop.eup %5499  ;;  %v2156_v16 = vmul.f32 %v2134_v20, %v6477_v11  ;;  %v2143_v56 = vsub.f32 1.0, %v2142_v6  ;;  %v6604_v5 = vadd.f32 1.0, %v5498_v38  ;;  %v2152_v11 = vand.u32 2147483648, %v6569_v36  ;;  %v2291_v46 = vpop.f32.mrf.mxu2  ;;  %v2806_v6 = vld [vmem:[#allocation11 + $0x1b8] sm:$0xff]  ;;  %v2788_v54 = vld [vmem:[#allocation11 + $0x128] sm:$0xff] }
 0x37b   :  { %v2342_v61 = vmul.f32 %v6597_v35, %v6574_v13  ;;  %2652 = vmatpush.msrb.mxu2 %v2392_v2  ;;  %2614 = vmatpush.msra.mxu0 %v2383_v60  ;;  %v2316_v59 = vadd.f32 %v2291_v46, %v330_v33  ;;  %vm2347_vm8 = vweird.f32 %v6597_v35  ;;  %v2350_v20 = vand.u32 2147483647, %v6574_v13  ;;  %v2796_v13 = vld [vmem:[#allocation11 + $0x168] sm:$0xff]  ;;  %v2794_v2 = vld [vmem:[#allocation11 + $0x158] sm:$0xff] }
 0x37c   :  { %v6600_v32 = vadd.f32 %v2157_v39, %v2156_v16  ;;  %v2144_v42 = vmul.f32 %v5494_v26, %v2143_v56  ;;  %v2153_v29 = vor.u32 1.1754944e-38, %v2152_v11  ;;  %v2800_v16 = vld [vmem:[#allocation11 + $0x188] sm:$0xff]  ;;  %v2802_v39 = vld [vmem:[#allocation11 + $0x198] sm:$0xff]  ;;  %vm6631_vm10 = vmor %vm2346_vm9, %vm2347_vm8  ;;  %vm2366_vm1 = vweird.f32 %v6604_v5 }
 0x37d   :  { %v2343_v49 = vsub.f32 1.0, %v2342_v61  ;;  %2653 = vmatpush.msrb.mxu2 %v2388_v55  ;;  %v2353_v61 = vor.u32 1.1754944e-38, %v2352_v45  ;;  %vm2351_vm13 = vcmp.eq.f32.partialorder %v2350_v20, 8.507059e+37  ;;  %v2790_v55 = vld [vmem:[#allocation11 + $0x138] sm:$0xff]  ;;  %v2370_v33 = vand.u32 2147483647, %v6604_v5 }
 0x37e   :  { %5503 = vtanh.f32 %v6600_v32  ;;  %v2145_v7 = vadd.f32 %v5494_v26, %v2144_v42  ;;  %v5502_v12 = vpop.eup %5501  ;;  %v2782_v46 = vld [vmem:[#allocation11 + $0xf8] sm:$0xff] }
 0x37f   :  { %v6610_v43 = vadd.f32 1.0, %v5502_v12  ;;  %5505 = vrcp.f32 %v6604_v5  ;;  %2654 = vmatpush.msrb.mxu2 %v2384_v15  ;;  %v2344_v48 = vmul.f32 %v6597_v35, %v2343_v49  ;;  %v2778_v22 = vld [vmem:[#allocation11 + $0xd8] sm:$0xff]  ;;  %vm2371_vm3 = vcmp.eq.f32.partialorder %v2370_v33, 8.507059e+37  ;;  %v2755_v33 = vld [vmem:[#allocation11 + $0x20] sm:$0xff] }
 0x380   :  { %v2149_v3 = vsel %vm2148_vm6, %v5494_v26, %v2145_v7  ;;  %v2810_v26 = vld [vmem:[#allocation11 + $0x1d8] sm:$0xff] }
 0x381   :  { %5507 = vrcp.f32 %v6610_v43  ;;  %v2154_v53 = vsel %vm2151_vm7, %v2153_v29, %v2149_v3  ;;  %v2345_v44 = vadd.f32 %v6597_v35, %v2344_v48  ;;  %v2333_v4 = vand.u32 2147483648, %v6610_v43  ;;  %v2784_v29 = vld [vmem:[#allocation11 + $0x108] sm:$0xff]  ;;  %v2766_v20 = vld [vmem:[#allocation11 + $0x78] sm:$0xff] }
 0x382   :  { %5509 = vtanh.f32 %v2316_v59  ;;  %v2331_v42 = vand.u32 2147483647, %v6610_v43  ;;  %vm2327_vm12 = vweird.f32 %v6610_v43  ;;  %v2780_v48 = vld [vmem:[#allocation11 + $0xe8] sm:$0xff]  ;;  %v2762_v56 = vld [vmem:[#allocation11 + $0x58] sm:$0xff] }
 0x383   :  { %v2349_v23 = vsel %vm6631_vm10, %v6597_v35, %v2345_v44  ;;  %v2334_v12 = vor.u32 1.1754944e-38, %v2333_v4  ;;  %v2770_v44 = vld [vmem:[#allocation11 + $0x98] sm:$0xff]  ;;  %v2803_v4 = vld [vmem:[#allocation11 + $0x1a0] sm:$0xff] }
 0x384   :  { %v5504_v36 = vpop.eup %5503  ;;  %v2354_v35 = vsel %vm2351_vm13, %v2353_v61, %v2349_v23  ;;  %vm2332_vm15 = vcmp.eq.f32.partialorder %v2331_v42, 8.507059e+37  ;;  %v2756_v42 = vld [vmem:[#allocation11 + $0x28] sm:$0xff]  ;;  %v2758_v23 = vld [vmem:[#allocation11 + $0x38] sm:$0xff] }
 0x385   :  { %v6615_v17 = vmul.f32 %v5504_v36, %v2154_v53  ;;  %v6619_v24 = vpop.eup %5505  ;;  %v2376_v60 = vmul.f32 %v2354_v35, %v6523_v10  ;;  %v2786_v36 = vld [vmem:[#allocation11 + $0x118] sm:$0xff]  ;;  %v2776_v10 = vld [vmem:[#allocation11 + $0xc8] sm:$0xff]  ;;  %v2793_v35 = vld [vmem:[#allocation11 + $0x150] sm:$0xff] }
 0x386   :  { %v2362_v52 = vmul.f32 %v6619_v24, %v6604_v5  ;;  %vm2367_vm0 = vweird.f32 %v6619_v24  ;;  %v2752_v61 = vld [vmem:[#allocation11 + $0x8] sm:$0xff] }
 0x387   :  { %2555 = vmatmul.f32.vlgmr.msrb.gmra.mxu1 %v6615_v17  ;;  %2595 = vmatmul.f32.vlgmr.msra.gmra.mxu3 %v6615_v17  ;;  %v5508_v1 = vpop.eup %5507  ;;  %vm2368_vm2 = vmor %vm2366_vm1, %vm2367_vm0 }
 0x388   :  { %2835 = vmatpush.msrb.mxu1 %v2812_v18  ;;  %2875 = vmatpush.msra.mxu3 %v2814_v21  ;;  %v2323_v31 = vmul.f32 %v5508_v1, %v6610_v43  ;;  %vm2328_vm11 = vweird.f32 %v5508_v1  ;;  %v2363_v11 = vsub.f32 1.0, %v2362_v52  ;;  %v5510_v49 = vpop.eup %5509  ;;  %v2372_v21 = vand.u32 2147483648, %v6604_v5  ;;  %v2811_v5 = vld [vmem:[#allocation11 + $0x1e0] sm:$0xff]  ;;  %v2813_v52 = vld [vmem:[#allocation11 + $0x1f0] sm:$0xff] }
 0x389   :  { %vm2329_vm14 = vmor %vm2327_vm12, %vm2328_vm11 }
 0x38a   :  { %2836 = vmatpush.msrb.mxu1 %v2808_v19  ;;  %2876 = vmatpush.msra.mxu3 %v2810_v26  ;;  %v2324_v38 = vsub.f32 1.0, %v2323_v31  ;;  %v2364_v43 = vmul.f32 %v6619_v24, %v2363_v11  ;;  %v2772_v19 = vld [vmem:[#allocation11 + $0xa8] sm:$0xff]  ;;  %v2774_v26 = vld [vmem:[#allocation11 + $0xb8] sm:$0xff]  ;;  %v2373_v59 = vor.u32 1.1754944e-38, %v2372_v21  ;;  %v2765_v21 = vld [vmem:[#allocation11 + $0x70] sm:$0xff] }
 0x38b   :  { %v2768_v31 = vld [vmem:[#allocation11 + $0x88] sm:$0xff]  ;;  %v2754_v11 = vld [vmem:[#allocation11 + $0x18] sm:$0xff] }
 0x38c   :  { %2837 = vmatpush.msrb.mxu1 %v2804_v30  ;;  %2877 = vmatpush.msra.mxu3 %v2806_v6  ;;  %v2325_v34 = vmul.f32 %v5508_v1, %v2324_v38  ;;  %v2365_v18 = vadd.f32 %v6619_v24, %v2364_v43  ;;  %v2764_v38 = vld [vmem:[#allocation11 + $0x68] sm:$0xff]  ;;  %v2779_v43 = vld [vmem:[#allocation11 + $0xe0] sm:$0xff] }
 0x38e   :  { %2838 = vmatpush.msrb.mxu1 %v2800_v16  ;;  %2878 = vmatpush.msra.mxu3 %v2802_v39  ;;  %v2326_v7 = vadd.f32 %v5508_v1, %v2325_v34  ;;  %v2809_v16 = vld [vmem:[#allocation11 + $0x1d0] sm:$0xff]  ;;  %v2760_v39 = vld [vmem:[#allocation11 + $0x48] sm:$0xff] }
 0x38f   :  { %2635 = vmatmul.f32.vlgmr.msra.gmra.mxu1 %v6615_v17  ;;  %2675 = vmatmul.f32.vlgmr.msrb.gmra.mxu3 %v6615_v17  ;;  %v2805_v34 = vld [vmem:[#allocation11 + $0x1b0] sm:$0xff] }
 0x390   :  { %2839 = vmatpush.msrb.mxu1 %v2796_v13  ;;  %2879 = vmatpush.msra.mxu3 %v2798_v14  ;;  %v2330_v8 = vsel %vm2329_vm14, %v5508_v1, %v2326_v7  ;;  %v2369_v1 = vsel %vm2368_vm2, %v6619_v24, %v2365_v18  ;;  %v2807_v24 = vld [vmem:[#allocation11 + $0x1c0] sm:$0xff]  ;;  %v2801_v14 = vld [vmem:[#allocation11 + $0x190] sm:$0xff] }
 0x391   :  { %v2335_v3 = vsel %vm2332_vm15, %v2334_v12, %v2330_v8  ;;  %v2374_v6 = vsel %vm2371_vm3, %v2373_v59, %v2369_v1  ;;  %v2799_v13 = vld [vmem:[#allocation11 + $0x180] sm:$0xff]  ;;  %v5083_v12 = vld [vmem:[%s7195_s1 + $0x18] sm:$0xff]  ;;  %v2753_v1 = vld [vmem:[#allocation11 + $0x10] sm:$0xff] }
 0x392   :  { %2840 = vmatpush.msrb.mxu1 %v2792_v47  ;;  %2880 = vmatpush.msra.mxu3 %v2794_v2  ;;  %v2377_v15 = vmul.f32 %v5510_v49, %v2335_v3  ;;  %v2795_v7 = vld [vmem:[#allocation11 + $0x160] sm:$0xff]  ;;  %v2797_v47 = vld [vmem:[#allocation11 + $0x170] sm:$0xff] }
 0x393   :  { %v2791_v2 = vld [vmem:[#allocation11 + $0x140] sm:$0xff]  ;;  %5105 = vperm.xlu1 %5397, %v5083_v12   ;;  %v2785_v49 = vld [vmem:[#allocation11 + $0x110] sm:$0xff]  ;;  %v3023_v12 = vld [vmem:[#allocation13 + $0x1e8] sm:$0xff] }
 0x394   :  { %2841 = vmatpush.msrb.mxu1 %v2788_v54  ;;  %2881 = vmatpush.msra.mxu3 %v2790_v55  ;;  %v6646_v53 = vadd.f32 %v2377_v15, %v2376_v60  ;;  %v2787_v8 = vld [vmem:[#allocation11 + $0x120] sm:$0xff]  ;;  %v2789_v54 = vld [vmem:[#allocation11 + $0x130] sm:$0xff] }
 0x395   :  { %v2783_v55 = vld [vmem:[#allocation11 + $0x100] sm:$0xff]  ;;  %v2781_v3 = vld [vmem:[#allocation11 + $0xf0] sm:$0xff] }
 0x396   :  { %2842 = vmatpush.msrb.mxu1 %v2784_v29  ;;  %2882 = vmatpush.msra.mxu3 %v2786_v36  ;;  %5511 = vtanh.f32 %v6646_v53  ;;  %v2775_v60 = vld [vmem:[#allocation11 + $0xc0] sm:$0xff]  ;;  %v2777_v15 = vld [vmem:[#allocation11 + $0xd0] sm:$0xff] }
 0x397   :  { %v2771_v29 = vld [vmem:[#allocation11 + $0xa0] sm:$0xff]  ;;  %v2773_v36 = vld [vmem:[#allocation11 + $0xb0] sm:$0xff] }
 0x398   :  { %2843 = vmatpush.msrb.mxu1 %v2780_v48  ;;  %2883 = vmatpush.msra.mxu3 %v2782_v46  ;;  %v2767_v48 = vld [vmem:[#allocation11 + $0x80] sm:$0xff]  ;;  %v2769_v46 = vld [vmem:[#allocation11 + $0x90] sm:$0xff] }
 0x399   :  { %v2763_v18 = vld [vmem:[#allocation11 + $0x60] sm:$0xff] }
 0x39a   :  { %2844 = vmatpush.msrb.mxu1 %v2776_v10  ;;  %2884 = vmatpush.msra.mxu3 %v2778_v22  ;;  %v2759_v10 = vld [vmem:[#allocation11 + $0x40] sm:$0xff]  ;;  %v2761_v22 = vld [vmem:[#allocation11 + $0x50] sm:$0xff] }
 0x39b   :  { %v3086_v59 = vld [vmem:[#allocation13 + $0x3e0] sm:$0xff] }
 0x39c   :  { %2845 = vmatpush.msrb.mxu1 %v2772_v19  ;;  %2885 = vmatpush.msra.mxu3 %v2774_v26  ;;  %v5512_v30 = vpop.eup %5511  ;;  %v2757_v19 = vld [vmem:[#allocation11 + $0x30] sm:$0xff]  ;;  %v2751_v26 = vld [vmem:[#allocation11] sm:$0xff] }
 0x39d   :  { %v6655_v45 = vmul.f32 %v5512_v30, %v2374_v6  ;;  %v3083_v30 = vld [vmem:[#allocation13 + $0x3c8] sm:$0xff]  ;;  %v3078_v6 = vld [vmem:[#allocation13 + $0x3a0] sm:$0xff] }
 0x39e   :  { %2846 = vmatpush.msrb.mxu1 %v2768_v31  ;;  %2886 = vmatpush.msra.mxu3 %v2770_v44  ;;  %v3087_v31 = vld [vmem:[#allocation13 + $0x3e8] sm:$0xff]  ;;  %v3082_v44 = vld [vmem:[#allocation13 + $0x3c0] sm:$0xff] }
 0x39f   :  { %2535 = vmatmul.f32.vlgmr.msrb.gmra.mxu0 %v6655_v45  ;;  %2575 = vmatmul.f32.vlgmr.msra.gmra.mxu2 %v6655_v45 }
 0x3a0   :  { %2815 = vmatpush.msrb.mxu0 %v2811_v5  ;;  %2855 = vmatpush.msra.mxu2 %v2813_v52  ;;  %v3079_v5 = vld [vmem:[#allocation13 + $0x3a8] sm:$0xff]  ;;  %v3074_v52 = vld [vmem:[#allocation13 + $0x380] sm:$0xff] }
 0x3a1   :  { %2847 = vmatpush.msrb.mxu1 %v2764_v38  ;;  %2887 = vmatpush.msra.mxu3 %v2766_v20  ;;  %v3075_v38 = vld [vmem:[#allocation13 + $0x388] sm:$0xff]  ;;  %v3070_v20 = vld [vmem:[#allocation13 + $0x360] sm:$0xff] }
 0x3a2   :  { %2816 = vmatpush.msrb.mxu0 %v2807_v24  ;;  %2856 = vmatpush.msra.mxu2 %v2809_v16  ;;  %v3071_v24 = vld [vmem:[#allocation13 + $0x368] sm:$0xff] }
 0x3a3   :  { %2848 = vmatpush.msrb.mxu1 %v2760_v39  ;;  %2888 = vmatpush.msra.mxu3 %v2762_v56  ;;  %v3067_v16 = vld [vmem:[#allocation13 + $0x348] sm:$0xff]  ;;  %v3062_v39 = vld [vmem:[#allocation13 + $0x320] sm:$0xff] }
 0x3a4   :  { %2817 = vmatpush.msrb.mxu0 %v2803_v4  ;;  %2857 = vmatpush.msra.mxu2 %v2805_v34  ;;  %v3063_v56 = vld [vmem:[#allocation13 + $0x328] sm:$0xff]  ;;  %v3058_v4 = vld [vmem:[#allocation13 + $0x300] sm:$0xff] }
 0x3a5   :  { %2849 = vmatpush.msrb.mxu1 %v2756_v42  ;;  %2889 = vmatpush.msra.mxu3 %v2758_v23  ;;  %v3059_v34 = vld [vmem:[#allocation13 + $0x308] sm:$0xff]  ;;  %v3054_v42 = vld [vmem:[#allocation13 + $0x2e0] sm:$0xff] }
 0x3a6   :  { %2818 = vmatpush.msrb.mxu0 %v2799_v13  ;;  %2858 = vmatpush.msra.mxu2 %v2801_v14  ;;  %v3055_v23 = vld [vmem:[#allocation13 + $0x2e8] sm:$0xff]  ;;  %v3050_v13 = vld [vmem:[#allocation13 + $0x2c0] sm:$0xff] }
 0x3a7   :  { %2850 = vmatpush.msrb.mxu1 %v2752_v61  ;;  %2890 = vmatpush.msra.mxu3 %v2754_v11  ;;  %v3051_v14 = vld [vmem:[#allocation13 + $0x2c8] sm:$0xff]  ;;  %v3046_v61 = vld [vmem:[#allocation13 + $0x2a0] sm:$0xff] }
 0x3a8   :  { %2615 = vmatmul.f32.vlgmr.msra.gmra.mxu0 %v6655_v45  ;;  %2655 = vmatmul.f32.vlgmr.msrb.gmra.mxu2 %v6655_v45  ;;  %v3047_v11 = vld [vmem:[#allocation13 + $0x2a8] sm:$0xff] }
 0x3a9   :  { %2819 = vmatpush.msrb.mxu0 %v2795_v7  ;;  %2851 = vmatmul.f32.vlgmr.msrb.gmra.mxu1 %v6655_v45  ;;  %v3042_v7 = vld [vmem:[#allocation13 + $0x280] sm:$0xff] }
 0x3aa   :  { %2859 = vmatpush.msra.mxu2 %v2797_v47  ;;  %2891 = vmatmul.f32.vlgmr.msra.gmra.mxu3 %v6655_v45  ;;  %v3043_v47 = vld [vmem:[#allocation13 + $0x288] sm:$0xff] }
 0x3ab   :  { %2820 = vmatpush.msrb.mxu0 %v2791_v2  ;;  %3120 = vmatpush.msra.mxu1 %v3086_v59  ;;  %v3022_v2 = vld [vmem:[#allocation13 + $0x1e0] sm:$0xff] }
 0x3ac   :  { %2860 = vmatpush.msra.mxu2 %v2793_v35  ;;  %3160 = vmatpush.msrb.mxu3 %v3087_v31  ;;  %v3038_v35 = vld [vmem:[#allocation13 + $0x260] sm:$0xff]  ;;  %v3003_v31 = vld [vmem:[#allocation13 + $0x148] sm:$0xff] }
 0x3ad   :  { %2821 = vmatpush.msrb.mxu0 %v2787_v8  ;;  %3121 = vmatpush.msra.mxu1 %v3082_v44  ;;  %v3039_v8 = vld [vmem:[#allocation13 + $0x268] sm:$0xff]  ;;  %v3002_v59 = vld [vmem:[#allocation13 + $0x140] sm:$0xff]  ;;  %v3084_v44 = vld [vmem:[#allocation13 + $0x3d0] sm:$0xff] }
 0x3ae   :  { %2861 = vmatpush.msra.mxu2 %v2789_v54  ;;  %3161 = vmatpush.msrb.mxu3 %v3083_v30  ;;  %v3018_v54 = vld [vmem:[#allocation13 + $0x1c0] sm:$0xff]  ;;  %v3085_v30 = vld [vmem:[#allocation13 + $0x3d8] sm:$0xff] }
 0x3af   :  { %2822 = vmatpush.msrb.mxu0 %v2783_v55  ;;  %3122 = vmatpush.msra.mxu1 %v3078_v6  ;;  %v3019_v55 = vld [vmem:[#allocation13 + $0x1c8] sm:$0xff]  ;;  %v2998_v6 = vld [vmem:[#allocation13 + $0x120] sm:$0xff] }
 0x3b0   :  { %2862 = vmatpush.msra.mxu2 %v2785_v49  ;;  %3162 = vmatpush.msrb.mxu3 %v3079_v5  ;;  %v3034_v49 = vld [vmem:[#allocation13 + $0x240] sm:$0xff]  ;;  %v2999_v5 = vld [vmem:[#allocation13 + $0x128] sm:$0xff] }
 0x3b1   :  { %2823 = vmatpush.msrb.mxu0 %v2779_v43  ;;  %3123 = vmatpush.msra.mxu1 %v3074_v52  ;;  %v3035_v43 = vld [vmem:[#allocation13 + $0x248] sm:$0xff]  ;;  %v3080_v52 = vld [vmem:[#allocation13 + $0x3b0] sm:$0xff] }
 0x3b2   :  { %2863 = vmatpush.msra.mxu2 %v2781_v3  ;;  %3163 = vmatpush.msrb.mxu3 %v3075_v38  ;;  %v3014_v3 = vld [vmem:[#allocation13 + $0x1a0] sm:$0xff] }
 0x3b3   :  { %2824 = vmatpush.msrb.mxu0 %v2775_v60  ;;  %3124 = vmatpush.msra.mxu1 %v3070_v20  ;;  %v3015_v60 = vld [vmem:[#allocation13 + $0x1a8] sm:$0xff]  ;;  %v3081_v20 = vld [vmem:[#allocation13 + $0x3b8] sm:$0xff] }
 0x3b4   :  { %2864 = vmatpush.msra.mxu2 %v2777_v15  ;;  %3164 = vmatpush.msrb.mxu3 %v3071_v24 }
 0x3b5   :  { %2825 = vmatpush.msrb.mxu0 %v2771_v29  ;;  %v3030_v29 = vld [vmem:[#allocation13 + $0x220] sm:$0xff] }
 0x3b6   :  { %2865 = vmatpush.msra.mxu2 %v2773_v36  ;;  %3165 = vmatpush.msrb.mxu3 %v3067_v16  ;;  %v3031_v36 = vld [vmem:[#allocation13 + $0x228] sm:$0xff] }
 0x3b7   :  { %2826 = vmatpush.msrb.mxu0 %v2767_v48  ;;  %v3010_v48 = vld [vmem:[#allocation13 + $0x180] sm:$0xff]  ;;  %v2995_v16 = vld [vmem:[#allocation13 + $0x108] sm:$0xff] }
 0x3b8   :  { %2866 = vmatpush.msra.mxu2 %v2769_v46  ;;  %3166 = vmatpush.msrb.mxu3 %v3063_v56  ;;  %v3011_v46 = vld [vmem:[#allocation13 + $0x188] sm:$0xff] }
 0x3b9   :  { %2827 = vmatpush.msrb.mxu0 %v2763_v18  ;;  %v6668_v18 = vld [vmem:[#allocation14] sm:$0xf] }
 0x3ba   :  { %2867 = vmatpush.msra.mxu2 %v2765_v21  ;;  %3167 = vmatpush.msrb.mxu3 %v3059_v34  ;;  %v3026_v21 = vld [vmem:[#allocation13 + $0x200] sm:$0xff]  ;;  %v3077_v34 = vld [vmem:[#allocation13 + $0x398] sm:$0xff] }
 0x3bb   :  { %2828 = vmatpush.msrb.mxu0 %v2759_v10  ;;  %v3027_v10 = vld [vmem:[#allocation13 + $0x208] sm:$0xff] }
 0x3bc   :  { %2868 = vmatpush.msra.mxu2 %v2761_v22  ;;  %3168 = vmatpush.msrb.mxu3 %v3055_v23  ;;  %v3006_v22 = vld [vmem:[#allocation13 + $0x160] sm:$0xff]  ;;  %v2512_v23 = vperm.slane %v6668_v18, 1 }
 0x3bd   :  { %2829 = vmatpush.msrb.mxu0 %v2755_v33  ;;  %v3007_v33 = vld [vmem:[#allocation13 + $0x168] sm:$0xff] }
 0x3be   :  { %2869 = vmatpush.msra.mxu2 %v2757_v19  ;;  %3169 = vmatpush.msrb.mxu3 %v3051_v14  ;;  %v3088_v19 = vld [vmem:[#allocation13 + $0x3f0] sm:$0xff]  ;;  %v2991_v14 = vld [vmem:[#allocation13 + $0xe8] sm:$0xff] }
 0x3bf   :  { %2830 = vmatpush.msrb.mxu0 %v2751_v26  ;;  %v3089_v26 = vld [vmem:[#allocation13 + $0x3f8] sm:$0xff] }
 0x3c0   :  { %2870 = vmatpush.msra.mxu2 %v2753_v1  ;;  %2831 = vmatmul.f32.vlgmr.msrb.gmra.mxu0 %v6655_v45  ;;  %v2511_v1 = vperm.slane %v6668_v18, 0 }
 0x3c1   :  { %2871 = vmatmul.f32.vlgmr.msra.gmra.mxu2 %v6655_v45  ;;  %v3066_v45 = vld [vmem:[#allocation13 + $0x340] sm:$0xff]  ;;  %3170 = vmatpush.msrb.mxu3 %v3047_v11  ;;  %v3073_v11 = vld [vmem:[#allocation13 + $0x378] sm:$0xff] }
 0x3c2   :  { %3125 = vmatpush.msra.mxu1 %v3066_v45  ;;  %3100 = vmatpush.msra.mxu0 %v3022_v2  ;;  %v2994_v45 = vld [vmem:[#allocation13 + $0x100] sm:$0xff]  ;;  %v2987_v2 = vld [vmem:[#allocation13 + $0xc8] sm:$0xff] }
 0x3c3   :  { %3171 = vmatpush.msrb.mxu3 %v3043_v47  ;;  %3140 = vmatpush.msrb.mxu2 %v3023_v12  ;;  %v2986_v47 = vld [vmem:[#allocation13 + $0xc0] sm:$0xff]  ;;  %v3068_v12 = vld [vmem:[#allocation13 + $0x350] sm:$0xff] }
 0x3c4   :  { %3126 = vmatpush.msra.mxu1 %v3062_v39  ;;  %3101 = vmatpush.msra.mxu0 %v3018_v54  ;;  %v3076_v39 = vld [vmem:[#allocation13 + $0x390] sm:$0xff] }
 0x3c5   :  { %3172 = vmatpush.msrb.mxu3 %v3039_v8  ;;  %3141 = vmatpush.msrb.mxu2 %v3019_v55  ;;  %v3069_v8 = vld [vmem:[#allocation13 + $0x358] sm:$0xff]  ;;  %v2982_v55 = vld [vmem:[#allocation13 + $0xa0] sm:$0xff] }
 0x3c6   :  { %3127 = vmatpush.msra.mxu1 %v3058_v4  ;;  %3102 = vmatpush.msra.mxu0 %v3014_v3  ;;  %v3065_v3 = vld [vmem:[#allocation13 + $0x338] sm:$0xff] }
 0x3c7   :  { %3173 = vmatpush.msrb.mxu3 %v3035_v43  ;;  %3142 = vmatpush.msrb.mxu2 %v3015_v60  ;;  %v3064_v43 = vld [vmem:[#allocation13 + $0x330] sm:$0xff] }
 0x3c8   :  { %3128 = vmatpush.msra.mxu1 %v3054_v42  ;;  %3103 = vmatpush.msra.mxu0 %v3010_v48  ;;  %v7245_v48 = vld [vmem:[#allocation26_spill] sm:$0xff] }
 0x3c9   :  { %3174 = vmatpush.msrb.mxu3 %v3031_v36  ;;  %3143 = vmatpush.msrb.mxu2 %v3011_v46  ;;  %v3060_v36 = vld [vmem:[#allocation13 + $0x310] sm:$0xff]  ;;  %v292_v46 = vadd.f32 %v7245_v48, %v6170_v51 }
 0x3ca   :  { %3129 = vmatpush.msra.mxu1 %v3050_v13  ;;  %3104 = vmatpush.msra.mxu0 %v3006_v22  ;;  %v2990_v13 = vld [vmem:[#allocation13 + $0xe0] sm:$0xff] }
 0x3cb   :  { %3175 = vmatpush.msrb.mxu3 %v3027_v10  ;;  %3144 = vmatpush.msrb.mxu2 %v3007_v33  ;;  %v3061_v10 = vld [vmem:[#allocation13 + $0x318] sm:$0xff]  ;;  %v2974_v33 = vld [vmem:[#allocation13 + $0x60] sm:$0xff] }
 0x3cc   :  { %3130 = vmatpush.msra.mxu1 %v3046_v61  ;;  %3105 = vmatpush.msra.mxu0 %v3002_v59  ;;  %v3072_v61 = vld [vmem:[#allocation13 + $0x370] sm:$0xff] }
 0x3cd   :  { %3240 = vmatpush.msra.mxu3 %v3089_v26  ;;  %3145 = vmatpush.msrb.mxu2 %v3003_v31  ;;  %v3056_v26 = vld [vmem:[#allocation13 + $0x2f0] sm:$0xff]  ;;  %v3057_v31 = vld [vmem:[#allocation13 + $0x2f8] sm:$0xff] }
 0x3ce   :  { %3131 = vmatpush.msra.mxu1 %v3042_v7  ;;  %3106 = vmatpush.msra.mxu0 %v2998_v6  ;;  %v2970_v6 = vld [vmem:[#allocation13 + $0x40] sm:$0xff] }
 0x3cf   :  { %3241 = vmatpush.msra.mxu3 %v3085_v30  ;;  %3146 = vmatpush.msrb.mxu2 %v2999_v5  ;;  %v2514_v30 = vperm.slane %v6668_v18, 3  ;;  %v2971_v5 = vld [vmem:[#allocation13 + $0x48] sm:$0xff] }
 0x3d0   :  { %3132 = vmatpush.msra.mxu1 %v3038_v35  ;;  %3107 = vmatpush.msra.mxu0 %v2994_v45  ;;  %v2966_v45 = vld [vmem:[#allocation13 + $0x20] sm:$0xff] }
 0x3d1   :  { %3242 = vmatpush.msra.mxu3 %v3081_v20  ;;  %3147 = vmatpush.msrb.mxu2 %v2995_v16  ;;  %v3053_v20 = vld [vmem:[#allocation13 + $0x2d8] sm:$0xff]  ;;  %v2967_v16 = vld [vmem:[#allocation13 + $0x28] sm:$0xff] }
 0x3d2   :  { %3133 = vmatpush.msra.mxu1 %v3034_v49  ;;  %3108 = vmatpush.msra.mxu0 %v2990_v13  ;;  %v2983_v49 = vld [vmem:[#allocation13 + $0xa8] sm:$0xff] }
 0x3d3   :  { %3243 = vmatpush.msra.mxu3 %v3077_v34  ;;  %3148 = vmatpush.msrb.mxu2 %v2991_v14  ;;  %v3049_v34 = vld [vmem:[#allocation13 + $0x2b8] sm:$0xff]  ;;  %v2963_v13 = vld [vmem:[#allocation13 + $0x8] sm:$0xff]  ;;  %v3044_v14 = vld [vmem:[#allocation13 + $0x290] sm:$0xff] }
 0x3d4   :  { %3134 = vmatpush.msra.mxu1 %v3030_v29  ;;  %3109 = vmatpush.msra.mxu0 %v2986_v47  ;;  %v2979_v29 = vld [vmem:[#allocation13 + $0x88] sm:$0xff]  ;;  %v3025_v47 = vld [vmem:[#allocation13 + $0x1f8] sm:$0xff] }
 0x3d5   :  { %3244 = vmatpush.msra.mxu3 %v3073_v11  ;;  %3149 = vmatpush.msrb.mxu2 %v2987_v2  ;;  %v3045_v11 = vld [vmem:[#allocation13 + $0x298] sm:$0xff] }
 0x3d6   :  { %3135 = vmatpush.msra.mxu1 %v3026_v21  ;;  %3110 = vmatpush.msra.mxu0 %v2982_v55 }
 0x3d7   :  { %3245 = vmatpush.msra.mxu3 %v3069_v8  ;;  %3150 = vmatpush.msrb.mxu2 %v2983_v49  ;;  %v3040_v8 = vld [vmem:[#allocation13 + $0x270] sm:$0xff] }
 0x3d8   :  { %3200 = vmatpush.msrb.mxu1 %v3088_v19  ;;  %v2975_v19 = vld [vmem:[#allocation13 + $0x68] sm:$0xff] }
 0x3d9   :  { %3246 = vmatpush.msra.mxu3 %v3065_v3  ;;  %3151 = vmatpush.msrb.mxu2 %v2979_v29  ;;  %v374_v3 = vadd.f32 %v6180_v9, %v6219_v58  ;;  %v3037_v29 = vld [vmem:[#allocation13 + $0x258] sm:$0xff]  ;;  %v3032_v9 = vld [vmem:[#allocation13 + $0x230] sm:$0xff] }
 0x3da   :  { %3201 = vmatpush.msrb.mxu1 %v3084_v44 }
 0x3db   :  { %3247 = vmatpush.msra.mxu3 %v3061_v10  ;;  %3152 = vmatpush.msrb.mxu2 %v2975_v19  ;;  %v3012_v19 = vld [vmem:[#allocation13 + $0x190] sm:$0xff] }
 0x3dc   :  { %3202 = vmatpush.msrb.mxu1 %v3080_v52  ;;  %v3052_v52 = vld [vmem:[#allocation13 + $0x2d0] sm:$0xff] }
 0x3dd   :  { %3248 = vmatpush.msra.mxu3 %v3057_v31  ;;  %3153 = vmatpush.msrb.mxu2 %v2971_v5  ;;  %v3029_v31 = vld [vmem:[#allocation13 + $0x218] sm:$0xff] }
 0x3de   :  { %3203 = vmatpush.msrb.mxu1 %v3076_v39  ;;  %v3048_v39 = vld [vmem:[#allocation13 + $0x2b0] sm:$0xff]  ;;  %v3009_v5 = vld [vmem:[#allocation13 + $0x178] sm:$0xff] }
 0x3df   :  { %3249 = vmatpush.msra.mxu3 %v3053_v20  ;;  %3154 = vmatpush.msrb.mxu2 %v2967_v16  ;;  %v3005_v16 = vld [vmem:[#allocation13 + $0x158] sm:$0xff] }
 0x3e0   :  { %3204 = vmatpush.msrb.mxu1 %v3072_v61  ;;  %v2513_v61 = vperm.slane %v6668_v18, 2  ;;  %v3021_v18 = vld [vmem:[#allocation13 + $0x1d8] sm:$0xff] }
 0x3e1   :  { %3250 = vmatpush.msra.mxu3 %v3049_v34  ;;  %3155 = vmatpush.msrb.mxu2 %v2963_v13  ;;  %v3000_v13 = vld [vmem:[#allocation13 + $0x130] sm:$0xff] }
 0x3e2   :  { %3205 = vmatpush.msrb.mxu1 %v3068_v12 }
 0x3e3   :  { %3251 = vmatpush.msra.mxu3 %v3045_v11  ;;  %3220 = vmatpush.msra.mxu2 %v3025_v47 }
 0x3e4   :  { %3206 = vmatpush.msrb.mxu1 %v3064_v43  ;;  %v3020_v43 = vld [vmem:[#allocation13 + $0x1d0] sm:$0xff] }
 0x3e5   :  { %3221 = vmatpush.msra.mxu2 %v3021_v18 }
 0x3e6   :  { %3207 = vmatpush.msrb.mxu1 %v3060_v36 }
 0x3e8   :  { %3208 = vmatpush.msrb.mxu1 %v3056_v26  ;;  %v3013_v26 = vld [vmem:[#allocation13 + $0x198] sm:$0xff] }
 0x3ea   :  { %3209 = vmatpush.msrb.mxu1 %v3052_v52 }
 0x3ec   :  { %3210 = vmatpush.msrb.mxu1 %v3048_v39 }
 0x3ee   :  { %3211 = vmatpush.msrb.mxu1 %v3044_v14  ;;  %v3001_v14 = vld [vmem:[#allocation13 + $0x138] sm:$0xff] }
 0x3f0   :  { %3212 = vmatpush.msrb.mxu1 %v3040_v8  ;;  %v2996_v8 = vld [vmem:[#allocation13 + $0x110] sm:$0xff] }
 0x404   :  { %v2556_v15 = vpop.f32.mrf.mxu1 }
 0x40a   :  { %v2596_v56 = vpop.f32.mrf.mxu3 }
 0x40c   :  { %v6671_v4 = vpop.f32.mrf.mxu1 }
 0x41c   :  { %v2536_v38 = vpop.f32.mrf.mxu0 }
 0x41d   :  { %v2537_v24 = vadd.f32 %v2536_v38, %v2511_v1  ;;  %v2676_v1 = vpop.f32.mrf.mxu3 }
 0x41f   :  { %v2557_v42 = vadd.f32 %v2556_v15, %v2537_v24  ;;  %v2978_v15 = vld [vmem:[#allocation13 + $0x80] sm:$0xff] }
 0x420   :  { %3111 = vmatpush.msra.mxu0 %v2978_v15  ;;  %v3036_v15 = vld [vmem:[#allocation13 + $0x250] sm:$0xff] }
 0x421   :  { %v5324_v7 = vmul.f32 -1.442695, %v2557_v42  ;;  %3213 = vmatpush.msrb.mxu1 %v3036_v15 }
 0x422   :  { %v2576_v35 = vpop.f32.mrf.mxu2  ;;  %3112 = vmatpush.msra.mxu0 %v2974_v33  ;;  %v3033_v33 = vld [vmem:[#allocation13 + $0x238] sm:$0xff] }
 0x423   :  { %5513 = vpow2.f32 %v5324_v7  ;;  %v2577_v54 = vadd.f32 %v2576_v35, %v2512_v23  ;;  %v2962_v23 = vld [vmem:[#allocation13] sm:$0xff]  ;;  %v3024_v7 = vld [vmem:[#allocation13 + $0x1f0] sm:$0xff]  ;;  %3214 = vmatpush.msrb.mxu1 %v3032_v9 }
 0x424   :  { %3113 = vmatpush.msra.mxu0 %v2970_v6  ;;  %v3008_v6 = vld [vmem:[#allocation13 + $0x170] sm:$0xff] }
 0x425   :  { %v2597_v60 = vadd.f32 %v2596_v56, %v2577_v54  ;;  %v2616_v12 = vpop.f32.mrf.mxu0  ;;  %v3041_v54 = vld [vmem:[#allocation13 + $0x278] sm:$0xff] }
 0x426   :  { %v2852_v21 = vpop.f32.mrf.mxu1  ;;  %3114 = vmatpush.msra.mxu0 %v2966_v45  ;;  %3252 = vmatpush.msra.mxu3 %v3041_v54  ;;  %v2617_v48 = vadd.f32 %v2616_v12, %v2513_v61  ;;  %v3004_v45 = vld [vmem:[#allocation13 + $0x150] sm:$0xff] }
 0x427   :  { %v5325_v22 = vmul.f32 -1.442695, %v2597_v60  ;;  %v2896_v59 = vadd.f32 %v2852_v21, %v292_v46  ;;  %v3016_v46 = vld [vmem:[#allocation13 + $0x1b0] sm:$0xff]  ;;  %v3017_v21 = vld [vmem:[#allocation13 + $0x1b8] sm:$0xff] }
 0x428   :  { %3115 = vmatpush.msra.mxu0 %v2962_v23  ;;  %3253 = vmatpush.msra.mxu3 %v3037_v29 }
 0x429   :  { %v5514_v44 = vpop.eup %5513  ;;  %5515 = vpow2.f32 %v5325_v22  ;;  %v5328_v56 = vmul.f32 -1.442695, %v2896_v59  ;;  %3222 = vmatpush.msra.mxu2 %v3017_v21  ;;  %v3028_v59 = vld [vmem:[#allocation13 + $0x210] sm:$0xff] }
 0x42a   :  { %v6677_v38 = vadd.f32 1.0, %v5514_v44  ;;  %3180 = vmatpush.msrb.mxu0 %v3024_v7  ;;  %3254 = vmatpush.msra.mxu3 %v3033_v33  ;;  %v7246_v7 = vld [vmem:[#allocation25_spill] sm:$0xff] }
 0x42b   :  { %v2656_v24 = vpop.f32.mrf.mxu2  ;;  %3223 = vmatpush.msra.mxu2 %v3013_v26  ;;  %3215 = vmatpush.msrb.mxu1 %v3028_v59  ;;  %v251_v47 = vadd.f32 %v7246_v7, %v6165_v50  ;;  %v2969_v7 = vld [vmem:[#allocation13 + $0x38] sm:$0xff] }
 0x42c   :  { %5517 = vrcp.f32 %v6677_v38  ;;  %v2657_v42 = vadd.f32 %v2656_v24, %v2514_v30  ;;  %3181 = vmatpush.msrb.mxu0 %v3020_v43  ;;  %v2637_v30 = vadd.f32 %v6671_v4, %v2617_v48  ;;  %3255 = vmatpush.msra.mxu3 %v3029_v31  ;;  %vm2688_vm5 = vweird.f32 %v6677_v38 }
 0x42d   :  { %5519 = vpow2.f32 %v5328_v56  ;;  %v2892_v49 = vpop.f32.mrf.mxu3  ;;  %3224 = vmatpush.msra.mxu2 %v3009_v5  ;;  %v2692_v11 = vand.u32 2147483647, %v6677_v38  ;;  %v2981_v5 = vld [vmem:[#allocation13 + $0x98] sm:$0xff] }
 0x42e   :  { %v2677_v35 = vadd.f32 %v2676_v1, %v2657_v42  ;;  %v2898_v22 = vadd.f32 %v2892_v49, %v374_v3  ;;  %3182 = vmatpush.msrb.mxu0 %v3016_v46  ;;  %v2694_v42 = vand.u32 2147483648, %v6677_v38  ;;  %v2992_v3 = vld [vmem:[#allocation13 + $0xf0] sm:$0xff] }
 0x42f   :  { %v5516_v2 = vpop.eup %5515  ;;  %3225 = vmatpush.msra.mxu2 %v3005_v16  ;;  %vm2693_vm9 = vcmp.eq.f32.partialorder %v2692_v11, 8.507059e+37  ;;  %v2976_v16 = vld [vmem:[#allocation13 + $0x70] sm:$0xff] }
 0x430   :  { %v6681_v55 = vadd.f32 1.0, %v5516_v2  ;;  %v5326_v60 = vmul.f32 -1.442695, %v2677_v35  ;;  %3183 = vmatpush.msrb.mxu0 %v3012_v19  ;;  %v5329_v20 = vmul.f32 -1.442695, %v2898_v22  ;;  %v2695_v18 = vor.u32 1.1754944e-38, %v2694_v42 }
 0x431   :  { %3226 = vmatpush.msra.mxu2 %v3001_v14  ;;  %v2972_v42 = vld [vmem:[#allocation13 + $0x50] sm:$0xff] }
 0x432   :  { %v6685_v36 = vpop.eup %5517  ;;  %5521 = vrcp.f32 %v6681_v55  ;;  %3184 = vmatpush.msrb.mxu0 %v3008_v6  ;;  %v2713_v2 = vand.u32 2147483648, %v6681_v55  ;;  %v2711_v35 = vand.u32 2147483647, %v6681_v55  ;;  %vm2707_vm8 = vweird.f32 %v6681_v55  ;;  %v2980_v6 = vld [vmem:[#allocation13 + $0x90] sm:$0xff] }
 0x433   :  { %v2684_v10 = vmul.f32 %v6685_v36, %v6677_v38  ;;  %5523 = vpow2.f32 %v5326_v60  ;;  %v5520_v44 = vpop.eup %5519  ;;  %vm2689_vm4 = vweird.f32 %v6685_v36  ;;  %v2997_v38 = vld [vmem:[#allocation13 + $0x118] sm:$0xff]  ;;  %v2968_v11 = vld [vmem:[#allocation13 + $0x30] sm:$0xff] }
 0x434   :  { %v6695_v4 = vadd.f32 1.0, %v5520_v44  ;;  %5525 = vtanh.f32 %v2637_v30  ;;  %3185 = vmatpush.msrb.mxu0 %v3004_v45  ;;  %vm6707_vm6 = vmor %vm2688_vm5, %vm2689_vm4  ;;  %3227 = vmatpush.msra.mxu2 %v2997_v38  ;;  %v2993_v60 = vld [vmem:[#allocation13 + $0xf8] sm:$0xff]  ;;  %v2714_v46 = vor.u32 1.1754944e-38, %v2713_v2  ;;  %vm2712_vm11 = vcmp.eq.f32.partialorder %v2711_v35, 8.507059e+37 }
 0x435   :  { %v2685_v1 = vsub.f32 1.0, %v2684_v10  ;;  %5527 = vpow2.f32 %v5329_v20  ;;  %v2989_v10 = vld [vmem:[#allocation13 + $0xd8] sm:$0xff] }
 0x436   :  { %3186 = vmatpush.msrb.mxu0 %v3000_v13  ;;  %3228 = vmatpush.msra.mxu2 %v2993_v60  ;;  %v2973_v13 = vld [vmem:[#allocation13 + $0x58] sm:$0xff]  ;;  %vm2927_vm1 = vweird.f32 %v6695_v4 }
 0x437   :  { %v2686_v52 = vmul.f32 %v6685_v36, %v2685_v1  ;;  %v2985_v1 = vld [vmem:[#allocation13 + $0xb8] sm:$0xff] }
 0x438   :  { %v5522_v24 = vpop.eup %5521  ;;  %3187 = vmatpush.msrb.mxu0 %v2996_v8  ;;  %3229 = vmatpush.msra.mxu2 %v2989_v10  ;;  %v2964_v8 = vld [vmem:[#allocation13 + $0x10] sm:$0xff]  ;;  %v2965_v38 = vld [vmem:[#allocation13 + $0x18] sm:$0xff]  ;;  %v3385_v10 = vld [vmem:[#allocation11 + $0x1a8] sm:$0xff] }
 0x439   :  { %v5524_v39 = vpop.eup %5523  ;;  %v2703_v56 = vmul.f32 %v5522_v24, %v6681_v55  ;;  %v2687_v34 = vadd.f32 %v6685_v36, %v2686_v52  ;;  %vm2708_vm7 = vweird.f32 %v5522_v24  ;;  %v2984_v55 = vld [vmem:[#allocation13 + $0xb0] sm:$0xff] }
 0x43a   :  { %v6698_v23 = vadd.f32 1.0, %v5524_v39  ;;  %v5526_v48 = vpop.eup %5525  ;;  %vm2709_vm10 = vmor %vm2707_vm8, %vm2708_vm7  ;;  %3188 = vmatpush.msrb.mxu0 %v2992_v3  ;;  %3230 = vmatpush.msra.mxu2 %v2985_v1 }
 0x43b   :  { %v2704_v61 = vsub.f32 1.0, %v2703_v56  ;;  %v2691_v49 = vsel %vm6707_vm6, %v6685_v36, %v2687_v34  ;;  %v2988_v36 = vld [vmem:[#allocation13 + $0xd0] sm:$0xff]  ;;  %v5528_v22 = vpop.eup %5527 }
 0x43c   :  { %5529 = vrcp.f32 %v6698_v23  ;;  %v2696_v21 = vsel %vm2693_vm9, %v2695_v18, %v2691_v49  ;;  %3189 = vmatpush.msrb.mxu0 %v2988_v36  ;;  %v6726_v45 = vadd.f32 1.0, %v5528_v22  ;;  %3231 = vmatpush.msra.mxu2 %v2981_v5  ;;  %v2733_v56 = vand.u32 2147483648, %v6698_v23  ;;  %v3395_v18 = vld [vmem:[#allocation11 + $0x1f8] sm:$0xff] }
 0x43d   :  { %v2705_v54 = vmul.f32 %v5522_v24, %v2704_v61  ;;  %5531 = vrcp.f32 %v6695_v4  ;;  %v2832_v43 = vpop.f32.mrf.mxu0  ;;  %v2738_v44 = vmul.f32 %v5526_v48, %v2696_v21  ;;  %v2731_v34 = vand.u32 2147483647, %v6698_v23  ;;  %v3391_v48 = vld [vmem:[#allocation11 + $0x1d8] sm:$0xff] }
 0x43e   :  { %v2895_v29 = vadd.f32 %v2832_v43, %v251_v47  ;;  %3190 = vmatpush.msrb.mxu0 %v2984_v55  ;;  %vm2727_vm13 = vweird.f32 %v6698_v23  ;;  %v2734_v12 = vor.u32 1.1754944e-38, %v2733_v56  ;;  %v3393_v43 = vld [vmem:[#allocation11 + $0x1e8] sm:$0xff]  ;;  %v3387_v22 = vld [vmem:[#allocation11 + $0x1b8] sm:$0xff]  ;;  %vm2947_vm9 = vweird.f32 %v6726_v45 }
 0x43f   :  { %v2706_v15 = vadd.f32 %v5522_v24, %v2705_v54  ;;  %vm2732_vm15 = vcmp.eq.f32.partialorder %v2731_v34, 8.507059e+37  ;;  %v3383_v55 = vld [vmem:[#allocation11 + $0x198] sm:$0xff] }
 0x440   :  { %v5327_v33 = vmul.f32 -1.442695, %v2895_v29  ;;  %3191 = vmatpush.msrb.mxu0 %v2980_v6  ;;  %v3389_v29 = vld [vmem:[#allocation11 + $0x1c8] sm:$0xff]  ;;  %v3379_v5 = vld [vmem:[#allocation11 + $0x178] sm:$0xff] }
 0x441   :  { %v2710_v9 = vsel %vm2709_vm10, %v5522_v24, %v2706_v15  ;;  %v333_v15 = vadd.f32 %v6178_v0, %v6227_v27  ;;  %v3377_v6 = vld [vmem:[#allocation11 + $0x168] sm:$0xff]  ;;  %v3375_v56 = vld [vmem:[#allocation11 + $0x158] sm:$0xff] }
 0x442   :  { %v5530_v19 = vpop.eup %5529  ;;  %v2715_v26 = vsel %vm2712_vm11, %v2714_v46, %v2710_v9  ;;  %5533 = vpow2.f32 %v5327_v33  ;;  %3192 = vmatpush.msrb.mxu0 %v2976_v16  ;;  %v2933_v33 = vand.u32 2147483648, %v6695_v4 }
 0x443   :  { %v6718_v59 = vpop.eup %5531  ;;  %v2737_v31 = vmul.f32 %v2715_v26, %v6600_v32  ;;  %v2723_v30 = vmul.f32 %v5530_v19, %v6698_v23  ;;  %v2977_v32 = vld [vmem:[#allocation13 + $0x78] sm:$0xff]  ;;  %vm2728_vm12 = vweird.f32 %v5530_v19  ;;  %v3381_v26 = vld [vmem:[#allocation11 + $0x188] sm:$0xff] }
 0x444   :  { %v2923_v24 = vmul.f32 %v6718_v59, %v6695_v4  ;;  %3232 = vmatpush.msra.mxu2 %v2977_v32  ;;  %vm2729_vm14 = vmor %vm2727_vm13, %vm2728_vm12  ;;  %3193 = vmatpush.msrb.mxu0 %v2972_v42  ;;  %v2872_v60 = vpop.f32.mrf.mxu2  ;;  %vm2928_vm0 = vweird.f32 %v6718_v59 }
 0x445   :  { %v6722_v52 = vadd.f32 %v2738_v44, %v2737_v31  ;;  %v2724_v20 = vsub.f32 1.0, %v2723_v30  ;;  %v2897_v36 = vadd.f32 %v2872_v60, %v333_v15  ;;  %v2931_v31 = vand.u32 2147483647, %v6695_v4  ;;  %vm6753_vm2 = vmor %vm2927_vm1, %vm2928_vm0  ;;  %v3353_v15 = vld [vmem:[#allocation11 + $0xa8] sm:$0xff] }
 0x446   :  { %3233 = vmatpush.msra.mxu2 %v2973_v13  ;;  %v2924_v2 = vsub.f32 1.0, %v2923_v24  ;;  %3194 = vmatpush.msrb.mxu0 %v2968_v11  ;;  %v2934_v4 = vor.u32 1.1754944e-38, %v2933_v33  ;;  %v3369_v13 = vld [vmem:[#allocation11 + $0x128] sm:$0xff]  ;;  %v2953_v60 = vand.u32 2147483648, %v6726_v45 }
 0x447   :  { %5535 = vtanh.f32 %v6722_v52  ;;  %v2725_v39 = vmul.f32 %v5530_v19, %v2724_v20  ;;  %vm2932_vm5 = vcmp.eq.f32.partialorder %v2931_v31, 8.507059e+37  ;;  %v3390_v31 = vld [vmem:[#allocation11 + $0x1d0] sm:$0xff]  ;;  %v3337_v44 = vld [vmem:[#allocation11 + $0x28] sm:$0xff] }
 0x448   :  { %v5534_v14 = vpop.eup %5533  ;;  %5537 = vrcp.f32 %v6726_v45  ;;  %3234 = vmatpush.msra.mxu2 %v2969_v7  ;;  %3195 = vmatpush.msrb.mxu0 %v2964_v8  ;;  %v2925_v3 = vmul.f32 %v6718_v59, %v2924_v2 }
 0x449   :  { %v2726_v61 = vadd.f32 %v5530_v19, %v2725_v39  ;;  %v6732_v47 = vadd.f32 1.0, %v5534_v14  ;;  %v3373_v39 = vld [vmem:[#allocation11 + $0x148] sm:$0xff]  ;;  %v3371_v14 = vld [vmem:[#allocation11 + $0x138] sm:$0xff] }
 0x44a   :  { %3235 = vmatpush.msra.mxu2 %v2965_v38  ;;  %v2926_v0 = vadd.f32 %v6718_v59, %v2925_v3  ;;  %v3361_v38 = vld [vmem:[#allocation11 + $0xe8] sm:$0xff]  ;;  %v3359_v3 = vld [vmem:[#allocation11 + $0xd8] sm:$0xff] }
 0x44b   :  { %v2730_v35 = vsel %vm2729_vm14, %v5530_v19, %v2726_v61  ;;  %5539 = vrcp.f32 %v6732_v47  ;;  %v2914_v30 = vand.u32 2147483648, %v6732_v47  ;;  %v2912_v24 = vand.u32 2147483647, %v6732_v47 }
 0x44c   :  { %v2735_v54 = vsel %vm2732_vm15, %v2734_v12, %v2730_v35  ;;  %5541 = vtanh.f32 %v2897_v36  ;;  %v2930_v16 = vsel %vm6753_vm2, %v6718_v59, %v2926_v0  ;;  %vm2908_vm4 = vweird.f32 %v6732_v47  ;;  %v3365_v12 = vld [vmem:[#allocation11 + $0x108] sm:$0xff]  ;;  %v3367_v35 = vld [vmem:[#allocation11 + $0x118] sm:$0xff] }
 0x44d   :  { %v5536_v23 = vpop.eup %5535  ;;  %v2915_v42 = vor.u32 1.1754944e-38, %v2914_v30  ;;  %v2935_v59 = vsel %vm2932_vm5, %v2934_v4, %v2930_v16  ;;  %vm2913_vm7 = vcmp.eq.f32.partialorder %v2912_v24, 8.507059e+37  ;;  %v3351_v36 = vld [vmem:[#allocation11 + $0x98] sm:$0xff]  ;;  %v3380_v16 = vld [vmem:[#allocation11 + $0x180] sm:$0xff]  ;;  %v3382_v4 = vld [vmem:[#allocation11 + $0x190] sm:$0xff] }
 0x44e   :  { %v6736_v49 = vmul.f32 %v5536_v23, %v2735_v54  ;;  %v6743_v46 = vpop.eup %5537  ;;  %v3363_v23 = vld [vmem:[#allocation11 + $0xf8] sm:$0xff] }
 0x44f   :  { %v2943_v19 = vmul.f32 %v6743_v46, %v6726_v45  ;;  %vm2948_vm8 = vweird.f32 %v6743_v46  ;;  %v3339_v30 = vld [vmem:[#allocation11 + $0x38] sm:$0xff] }
 0x450   :  { %3136 = vmatmul.f32.vlgmr.msra.gmra.mxu1 %v6736_v49  ;;  %3176 = vmatmul.f32.vlgmr.msrb.gmra.mxu3 %v6736_v49  ;;  %vm2949_vm10 = vmor %vm2947_vm9, %vm2948_vm8  ;;  %v3335_v24 = vld [vmem:[#allocation11 + $0x18] sm:$0xff] }
 0x451   :  { %3416 = vmatpush.msra.mxu1 %v3393_v43  ;;  %3456 = vmatpush.msrb.mxu3 %v3395_v18  ;;  %v5540_v21 = vpop.eup %5539  ;;  %v2944_v32 = vsub.f32 1.0, %v2943_v19  ;;  %v3357_v18 = vld [vmem:[#allocation11 + $0xc8] sm:$0xff]  ;;  %v3392_v19 = vld [vmem:[#allocation11 + $0x1e0] sm:$0xff] }
 0x452   :  { %v2904_v9 = vmul.f32 %v5540_v21, %v6732_v47  ;;  %vm2909_vm3 = vweird.f32 %v5540_v21  ;;  %v5542_v11 = vpop.eup %5541  ;;  %v2957_v47 = vmul.f32 %v2935_v59, %v6646_v53  ;;  %v2951_v53 = vand.u32 2147483647, %v6726_v45  ;;  %v3368_v59 = vld [vmem:[#allocation11 + $0x120] sm:$0xff] }
 0x453   :  { %3417 = vmatpush.msra.mxu1 %v3389_v29  ;;  %3457 = vmatpush.msrb.mxu3 %v3391_v48  ;;  %vm2910_vm6 = vmor %vm2908_vm4, %vm2909_vm3  ;;  %v2945_v7 = vmul.f32 %v6743_v46, %v2944_v32  ;;  %v3355_v29 = vld [vmem:[#allocation11 + $0xb8] sm:$0xff]  ;;  %v3376_v32 = vld [vmem:[#allocation11 + $0x160] sm:$0xff] }
 0x454   :  { %v2905_v1 = vsub.f32 1.0, %v2904_v9  ;;  %vm2952_vm11 = vcmp.eq.f32.partialorder %v2951_v53, 8.507059e+37  ;;  %v3347_v9 = vld [vmem:[#allocation11 + $0x78] sm:$0xff]  ;;  %v3338_v53 = vld [vmem:[#allocation11 + $0x30] sm:$0xff] }
 0x455   :  { %3418 = vmatpush.msra.mxu1 %v3385_v10  ;;  %3458 = vmatpush.msrb.mxu3 %v3387_v22  ;;  %v2946_v43 = vadd.f32 %v6743_v46, %v2945_v7  ;;  %v2954_v10 = vor.u32 1.1754944e-38, %v2953_v60  ;;  %v3345_v22 = vld [vmem:[#allocation11 + $0x68] sm:$0xff]  ;;  %v3362_v7 = vld [vmem:[#allocation11 + $0xf0] sm:$0xff]  ;;  %v3336_v60 = vld [vmem:[#allocation11 + $0x20] sm:$0xff] }
 0x456   :  { %v2906_v20 = vmul.f32 %v5540_v21, %v2905_v1  ;;  %v3388_v1 = vld [vmem:[#allocation11 + $0x1c0] sm:$0xff] }
 0x457   :  { %3419 = vmatpush.msra.mxu1 %v3381_v26  ;;  %3459 = vmatpush.msrb.mxu3 %v3383_v55  ;;  %v2950_v48 = vsel %vm2949_vm10, %v6743_v46, %v2946_v43  ;;  %v3394_v26 = vld [vmem:[#allocation11 + $0x1f0] sm:$0xff]  ;;  %v3341_v55 = vld [vmem:[#allocation11 + $0x48] sm:$0xff]  ;;  %v3343_v46 = vld [vmem:[#allocation11 + $0x58] sm:$0xff] }
 0x458   :  { %3216 = vmatmul.f32.vlgmr.msrb.gmra.mxu1 %v6736_v49  ;;  %3256 = vmatmul.f32.vlgmr.msra.gmra.mxu3 %v6736_v49  ;;  %v2907_v34 = vadd.f32 %v5540_v21, %v2906_v20  ;;  %v2955_v33 = vsel %vm2952_vm11, %v2954_v10, %v2950_v48  ;;  %v3333_v20 = vld [vmem:[#allocation11 + $0x8] sm:$0xff]  ;;  %v3346_v43 = vld [vmem:[#allocation11 + $0x70] sm:$0xff]  ;;  %v3667_v48 = vld [vmem:[#allocation13 + $0x3e0] sm:$0xff] }
 0x459   :  { %3420 = vmatpush.msra.mxu1 %v3377_v6  ;;  %3460 = vmatpush.msrb.mxu3 %v3379_v5  ;;  %v3384_v6 = vld [vmem:[#allocation11 + $0x1a0] sm:$0xff]  ;;  %v3386_v5 = vld [vmem:[#allocation11 + $0x1b0] sm:$0xff]  ;;  %v3664_v10 = vld [vmem:[#allocation13 + $0x3c8] sm:$0xff] }
 0x45a   :  { %v2911_v61 = vsel %vm2910_vm6, %v5540_v21, %v2907_v34  ;;  %v3349_v21 = vld [vmem:[#allocation11 + $0x88] sm:$0xff]  ;;  %v5084_v34 = vld [vmem:[%s7195_s1 + $0x20] sm:$0xff] }
 0x45b   :  { %3421 = vmatpush.msra.mxu1 %v3373_v39  ;;  %3461 = vmatpush.msrb.mxu3 %v3375_v56  ;;  %v2916_v2 = vsel %vm2913_vm7, %v2915_v42, %v2911_v61  ;;  %v3378_v39 = vld [vmem:[#allocation11 + $0x170] sm:$0xff]  ;;  %v3372_v56 = vld [vmem:[#allocation11 + $0x140] sm:$0xff] }
 0x45c   :  { %v2958_v8 = vmul.f32 %v5542_v11, %v2916_v2  ;;  %v3374_v42 = vld [vmem:[#allocation11 + $0x150] sm:$0xff]  ;;  %5110 = vperm.xlu2 %5398, %v5084_v34   ;;  %v3360_v11 = vld [vmem:[#allocation11 + $0xe0] sm:$0xff] }
 0x45d   :  { %3422 = vmatpush.msra.mxu1 %v3369_v13  ;;  %3462 = vmatpush.msrb.mxu3 %v3371_v14  ;;  %v3370_v13 = vld [vmem:[#allocation11 + $0x130] sm:$0xff]  ;;  %v3364_v14 = vld [vmem:[#allocation11 + $0x100] sm:$0xff] }
 0x45e   :  { %v6768_v54 = vadd.f32 %v2958_v8, %v2957_v47  ;;  %v3366_v61 = vld [vmem:[#allocation11 + $0x110] sm:$0xff]  ;;  %v3356_v2 = vld [vmem:[#allocation11 + $0xc0] sm:$0xff] }
 0x45f   :  { %3423 = vmatpush.msra.mxu1 %v3365_v12  ;;  %3463 = vmatpush.msrb.mxu3 %v3367_v35  ;;  %v3358_v12 = vld [vmem:[#allocation11 + $0xd0] sm:$0xff]  ;;  %v3352_v35 = vld [vmem:[#allocation11 + $0xa0] sm:$0xff] }
 0x460   :  { %5543 = vtanh.f32 %v6768_v54  ;;  %v3354_v47 = vld [vmem:[#allocation11 + $0xb0] sm:$0xff]  ;;  %v3348_v8 = vld [vmem:[#allocation11 + $0x80] sm:$0xff] }
 0x461   :  { %3424 = vmatpush.msra.mxu1 %v3361_v38  ;;  %3464 = vmatpush.msrb.mxu3 %v3363_v23  ;;  %v3350_v38 = vld [vmem:[#allocation11 + $0x90] sm:$0xff]  ;;  %v3344_v23 = vld [vmem:[#allocation11 + $0x60] sm:$0xff] }
 0x462   :  { %v3619_v34 = vld [vmem:[#allocation13 + $0x260] sm:$0xff] }
 0x463   :  { %3425 = vmatpush.msra.mxu1 %v3357_v18  ;;  %3465 = vmatpush.msrb.mxu3 %v3359_v3  ;;  %v3340_v18 = vld [vmem:[#allocation11 + $0x40] sm:$0xff]  ;;  %v3342_v3 = vld [vmem:[#allocation11 + $0x50] sm:$0xff] }
 0x465   :  { %3426 = vmatpush.msra.mxu1 %v3353_v15  ;;  %3466 = vmatpush.msrb.mxu3 %v3355_v29  ;;  %v3332_v15 = vld [vmem:[#allocation11] sm:$0xff]  ;;  %v3334_v29 = vld [vmem:[#allocation11 + $0x10] sm:$0xff] }
 0x466   :  { %v5544_v0 = vpop.eup %5543 }
 0x467   :  { %3427 = vmatpush.msra.mxu1 %v3349_v21  ;;  %3467 = vmatpush.msrb.mxu3 %v3351_v36  ;;  %v6777_v45 = vmul.f32 %v5544_v0, %v2955_v33  ;;  %v3668_v21 = vld [vmem:[#allocation13 + $0x3e8] sm:$0xff]  ;;  %v3663_v36 = vld [vmem:[#allocation13 + $0x3c0] sm:$0xff] }
 0x468   :  { %v3655_v0 = vld [vmem:[#allocation13 + $0x380] sm:$0xff]  ;;  %v3656_v33 = vld [vmem:[#allocation13 + $0x388] sm:$0xff] }
 0x469   :  { %3428 = vmatpush.msra.mxu1 %v3345_v22  ;;  %3468 = vmatpush.msrb.mxu3 %v3347_v9  ;;  %v3659_v22 = vld [vmem:[#allocation13 + $0x3a0] sm:$0xff]  ;;  %v3660_v9 = vld [vmem:[#allocation13 + $0x3a8] sm:$0xff] }
 0x46a   :  { %3116 = vmatmul.f32.vlgmr.msra.gmra.mxu0 %v6777_v45  ;;  %3156 = vmatmul.f32.vlgmr.msrb.gmra.mxu2 %v6777_v45 }
 0x46b   :  { %3396 = vmatpush.msra.mxu0 %v3392_v19  ;;  %3436 = vmatpush.msrb.mxu2 %v3394_v26  ;;  %v3651_v19 = vld [vmem:[#allocation13 + $0x360] sm:$0xff]  ;;  %v3652_v26 = vld [vmem:[#allocation13 + $0x368] sm:$0xff] }
 0x46c   :  { %3429 = vmatpush.msra.mxu1 %v3341_v55  ;;  %3469 = vmatpush.msrb.mxu3 %v3343_v46  ;;  %v3648_v55 = vld [vmem:[#allocation13 + $0x348] sm:$0xff]  ;;  %v3643_v46 = vld [vmem:[#allocation13 + $0x320] sm:$0xff] }
 0x46d   :  { %3397 = vmatpush.msra.mxu0 %v3388_v1  ;;  %3437 = vmatpush.msrb.mxu2 %v3390_v31  ;;  %v3644_v1 = vld [vmem:[#allocation13 + $0x328] sm:$0xff]  ;;  %v3639_v31 = vld [vmem:[#allocation13 + $0x300] sm:$0xff] }
 0x46e   :  { %3430 = vmatpush.msra.mxu1 %v3337_v44  ;;  %3470 = vmatpush.msrb.mxu3 %v3339_v30  ;;  %v3640_v44 = vld [vmem:[#allocation13 + $0x308] sm:$0xff]  ;;  %v3635_v30 = vld [vmem:[#allocation13 + $0x2e0] sm:$0xff] }
 0x46f   :  { %3398 = vmatpush.msra.mxu0 %v3384_v6  ;;  %3438 = vmatpush.msrb.mxu2 %v3386_v5  ;;  %v3636_v6 = vld [vmem:[#allocation13 + $0x2e8] sm:$0xff]  ;;  %v3631_v5 = vld [vmem:[#allocation13 + $0x2c0] sm:$0xff] }
 0x470   :  { %3431 = vmatpush.msra.mxu1 %v3333_v20  ;;  %3471 = vmatpush.msrb.mxu3 %v3335_v24  ;;  %v3632_v20 = vld [vmem:[#allocation13 + $0x2c8] sm:$0xff]  ;;  %v3627_v24 = vld [vmem:[#allocation13 + $0x2a0] sm:$0xff] }
 0x471   :  { %3399 = vmatpush.msra.mxu0 %v3380_v16  ;;  %3439 = vmatpush.msrb.mxu2 %v3382_v4  ;;  %v3628_v16 = vld [vmem:[#allocation13 + $0x2a8] sm:$0xff]  ;;  %v3623_v4 = vld [vmem:[#allocation13 + $0x280] sm:$0xff] }
 0x472   :  { %3196 = vmatmul.f32.vlgmr.msrb.gmra.mxu0 %v6777_v45  ;;  %3236 = vmatmul.f32.vlgmr.msra.gmra.mxu2 %v6777_v45 }
 0x473   :  { %3400 = vmatpush.msra.mxu0 %v3376_v32  ;;  %3432 = vmatmul.f32.vlgmr.msra.gmra.mxu1 %v6777_v45  ;;  %v3624_v32 = vld [vmem:[#allocation13 + $0x288] sm:$0xff] }
 0x474   :  { %3440 = vmatpush.msrb.mxu2 %v3378_v39  ;;  %3472 = vmatmul.f32.vlgmr.msrb.gmra.mxu3 %v6777_v45  ;;  %v3603_v39 = vld [vmem:[#allocation13 + $0x1e0] sm:$0xff] }
 0x475   :  { %3401 = vmatpush.msra.mxu0 %v3372_v56  ;;  %3701 = vmatpush.msrb.mxu1 %v3667_v48  ;;  %v3604_v56 = vld [vmem:[#allocation13 + $0x1e8] sm:$0xff]  ;;  %v3665_v48 = vld [vmem:[#allocation13 + $0x3d0] sm:$0xff] }
 0x476   :  { %3441 = vmatpush.msrb.mxu2 %v3374_v42  ;;  %3741 = vmatpush.msra.mxu3 %v3668_v21  ;;  %v3620_v42 = vld [vmem:[#allocation13 + $0x268] sm:$0xff] }
 0x477   :  { %3402 = vmatpush.msra.mxu0 %v3368_v59  ;;  %3702 = vmatpush.msrb.mxu1 %v3663_v36  ;;  %v3599_v59 = vld [vmem:[#allocation13 + $0x1c0] sm:$0xff]  ;;  %v3666_v36 = vld [vmem:[#allocation13 + $0x3d8] sm:$0xff] }
 0x478   :  { %3442 = vmatpush.msrb.mxu2 %v3370_v13  ;;  %3742 = vmatpush.msra.mxu3 %v3664_v10  ;;  %v3600_v13 = vld [vmem:[#allocation13 + $0x1c8] sm:$0xff]  ;;  %v3579_v10 = vld [vmem:[#allocation13 + $0x120] sm:$0xff] }
 0x479   :  { %3403 = vmatpush.msra.mxu0 %v3364_v14  ;;  %3703 = vmatpush.msrb.mxu1 %v3659_v22  ;;  %v3615_v14 = vld [vmem:[#allocation13 + $0x240] sm:$0xff]  ;;  %v3580_v22 = vld [vmem:[#allocation13 + $0x128] sm:$0xff] }
 0x47a   :  { %3443 = vmatpush.msrb.mxu2 %v3366_v61  ;;  %3743 = vmatpush.msra.mxu3 %v3660_v9  ;;  %v3616_v61 = vld [vmem:[#allocation13 + $0x248] sm:$0xff]  ;;  %v3661_v9 = vld [vmem:[#allocation13 + $0x3b0] sm:$0xff] }
 0x47b   :  { %3404 = vmatpush.msra.mxu0 %v3360_v11  ;;  %3704 = vmatpush.msrb.mxu1 %v3655_v0  ;;  %v3595_v11 = vld [vmem:[#allocation13 + $0x1a0] sm:$0xff]  ;;  %v3662_v0 = vld [vmem:[#allocation13 + $0x3b8] sm:$0xff] }
 0x47c   :  { %3444 = vmatpush.msrb.mxu2 %v3362_v7  ;;  %3744 = vmatpush.msra.mxu3 %v3656_v33  ;;  %v3596_v7 = vld [vmem:[#allocation13 + $0x1a8] sm:$0xff] }
 0x47d   :  { %3405 = vmatpush.msra.mxu0 %v3356_v2  ;;  %3705 = vmatpush.msrb.mxu1 %v3651_v19  ;;  %v3575_v19 = vld [vmem:[#allocation13 + $0x100] sm:$0xff] }
 0x47e   :  { %3445 = vmatpush.msrb.mxu2 %v3358_v12  ;;  %3745 = vmatpush.msra.mxu3 %v3652_v26  ;;  %v3611_v12 = vld [vmem:[#allocation13 + $0x220] sm:$0xff]  ;;  %v3576_v26 = vld [vmem:[#allocation13 + $0x108] sm:$0xff] }
 0x47f   :  { %3406 = vmatpush.msra.mxu0 %v3352_v35  ;;  %v3612_v35 = vld [vmem:[#allocation13 + $0x228] sm:$0xff] }
 0x480   :  { %3446 = vmatpush.msrb.mxu2 %v3354_v47  ;;  %3746 = vmatpush.msra.mxu3 %v3648_v55  ;;  %v3591_v47 = vld [vmem:[#allocation13 + $0x180] sm:$0xff] }
 0x481   :  { %3407 = vmatpush.msra.mxu0 %v3348_v8  ;;  %v3592_v8 = vld [vmem:[#allocation13 + $0x188] sm:$0xff] }
 0x482   :  { %3447 = vmatpush.msrb.mxu2 %v3350_v38  ;;  %3747 = vmatpush.msra.mxu3 %v3644_v1  ;;  %v6790_v38 = vld [vmem:[#allocation14] sm:$0xf]  ;;  %v3658_v1 = vld [vmem:[#allocation13 + $0x398] sm:$0xff] }
 0x483   :  { %3408 = vmatpush.msra.mxu0 %v3344_v23  ;;  %v3607_v23 = vld [vmem:[#allocation13 + $0x200] sm:$0xff]  ;;  %v3092_v21 = vperm.slane %v6790_v38, 0 }
 0x484   :  { %3448 = vmatpush.msrb.mxu2 %v3346_v43  ;;  %3748 = vmatpush.msra.mxu3 %v3640_v44  ;;  %v3608_v43 = vld [vmem:[#allocation13 + $0x208] sm:$0xff] }
 0x485   :  { %3409 = vmatpush.msra.mxu0 %v3340_v18  ;;  %v3587_v18 = vld [vmem:[#allocation13 + $0x160] sm:$0xff]  ;;  %v3572_v44 = vld [vmem:[#allocation13 + $0xe8] sm:$0xff] }
 0x486   :  { %3449 = vmatpush.msrb.mxu2 %v3342_v3  ;;  %3749 = vmatpush.msra.mxu3 %v3636_v6  ;;  %v3588_v3 = vld [vmem:[#allocation13 + $0x168] sm:$0xff] }
 0x487   :  { %3410 = vmatpush.msra.mxu0 %v3336_v60  ;;  %v3669_v60 = vld [vmem:[#allocation13 + $0x3f0] sm:$0xff] }
 0x488   :  { %3450 = vmatpush.msrb.mxu2 %v3338_v53  ;;  %3750 = vmatpush.msra.mxu3 %v3632_v20  ;;  %v3670_v53 = vld [vmem:[#allocation13 + $0x3f8] sm:$0xff]  ;;  %v3093_v20 = vperm.slane %v6790_v38, 1 }
 0x489   :  { %3411 = vmatpush.msra.mxu0 %v3332_v15  ;;  %v3583_v15 = vld [vmem:[#allocation13 + $0x140] sm:$0xff] }
 0x48a   :  { %3451 = vmatpush.msrb.mxu2 %v3334_v29  ;;  %3412 = vmatmul.f32.vlgmr.msra.gmra.mxu0 %v6777_v45  ;;  %v3584_v29 = vld [vmem:[#allocation13 + $0x148] sm:$0xff] }
 0x48b   :  { %3452 = vmatmul.f32.vlgmr.msrb.gmra.mxu2 %v6777_v45  ;;  %v3647_v45 = vld [vmem:[#allocation13 + $0x340] sm:$0xff]  ;;  %3751 = vmatpush.msra.mxu3 %v3628_v16 }
 0x48c   :  { %3706 = vmatpush.msrb.mxu1 %v3647_v45  ;;  %3681 = vmatpush.msrb.mxu0 %v3603_v39  ;;  %v3657_v45 = vld [vmem:[#allocation13 + $0x390] sm:$0xff]  ;;  %v3567_v16 = vld [vmem:[#allocation13 + $0xc0] sm:$0xff] }
 0x48d   :  { %3752 = vmatpush.msra.mxu3 %v3624_v32  ;;  %3721 = vmatpush.msra.mxu2 %v3604_v56  ;;  %v3649_v32 = vld [vmem:[#allocation13 + $0x350] sm:$0xff]  ;;  %v3650_v56 = vld [vmem:[#allocation13 + $0x358] sm:$0xff] }
 0x48e   :  { %3707 = vmatpush.msrb.mxu1 %v3643_v46  ;;  %3682 = vmatpush.msrb.mxu0 %v3599_v59  ;;  %v3564_v59 = vld [vmem:[#allocation13 + $0xa8] sm:$0xff] }
 0x48f   :  { %3753 = vmatpush.msra.mxu3 %v3620_v42  ;;  %3722 = vmatpush.msra.mxu2 %v3600_v13  ;;  %v3563_v42 = vld [vmem:[#allocation13 + $0xa0] sm:$0xff]  ;;  %v3645_v13 = vld [vmem:[#allocation13 + $0x330] sm:$0xff] }
 0x490   :  { %3708 = vmatpush.msrb.mxu1 %v3639_v31  ;;  %3683 = vmatpush.msrb.mxu0 %v3595_v11  ;;  %v3571_v31 = vld [vmem:[#allocation13 + $0xe0] sm:$0xff] }
 0x491   :  { %3754 = vmatpush.msra.mxu3 %v3616_v61  ;;  %3723 = vmatpush.msra.mxu2 %v3596_v7  ;;  %v3646_v61 = vld [vmem:[#allocation13 + $0x338] sm:$0xff]  ;;  %v3559_v11 = vld [vmem:[#allocation13 + $0x80] sm:$0xff]  ;;  %v3560_v7 = vld [vmem:[#allocation13 + $0x88] sm:$0xff] }
 0x492   :  { %3709 = vmatpush.msrb.mxu1 %v3635_v30  ;;  %3684 = vmatpush.msrb.mxu0 %v3591_v47  ;;  %v3653_v30 = vld [vmem:[#allocation13 + $0x370] sm:$0xff]  ;;  %v3642_v47 = vld [vmem:[#allocation13 + $0x318] sm:$0xff] }
 0x493   :  { %3755 = vmatpush.msra.mxu3 %v3612_v35  ;;  %3724 = vmatpush.msra.mxu2 %v3592_v8  ;;  %v7251_v8 = vld [vmem:[#allocation28_spill] sm:$0xff] }
 0x494   :  { %3710 = vmatpush.msrb.mxu1 %v3631_v5  ;;  %3685 = vmatpush.msrb.mxu0 %v3587_v18  ;;  %v3556_v18 = vld [vmem:[#allocation13 + $0x68] sm:$0xff] }
 0x495   :  { %3756 = vmatpush.msra.mxu3 %v3608_v43  ;;  %3725 = vmatpush.msra.mxu2 %v3588_v3  ;;  %v3555_v43 = vld [vmem:[#allocation13 + $0x60] sm:$0xff]  ;;  %v3637_v3 = vld [vmem:[#allocation13 + $0x2f0] sm:$0xff] }
 0x496   :  { %3711 = vmatpush.msrb.mxu1 %v3627_v24  ;;  %3686 = vmatpush.msrb.mxu0 %v3583_v15  ;;  %v3654_v24 = vld [vmem:[#allocation13 + $0x378] sm:$0xff] }
 0x497   :  { %3821 = vmatpush.msrb.mxu3 %v3670_v53  ;;  %3726 = vmatpush.msra.mxu2 %v3584_v29  ;;  %v3095_v53 = vperm.slane %v6790_v38, 3  ;;  %v3638_v15 = vld [vmem:[#allocation13 + $0x2f8] sm:$0xff] }
 0x498   :  { %3712 = vmatpush.msrb.mxu1 %v3623_v4  ;;  %3687 = vmatpush.msrb.mxu0 %v3579_v10  ;;  %v3568_v4 = vld [vmem:[#allocation13 + $0xc8] sm:$0xff] }
 0x499   :  { %3822 = vmatpush.msrb.mxu3 %v3666_v36  ;;  %3727 = vmatpush.msra.mxu2 %v3580_v22  ;;  %v3633_v36 = vld [vmem:[#allocation13 + $0x2d0] sm:$0xff] }
 0x49a   :  { %3713 = vmatpush.msrb.mxu1 %v3619_v34  ;;  %3688 = vmatpush.msrb.mxu0 %v3575_v19  ;;  %v3547_v19 = vld [vmem:[#allocation13 + $0x20] sm:$0xff] }
 0x49b   :  { %3823 = vmatpush.msrb.mxu3 %v3662_v0  ;;  %3728 = vmatpush.msra.mxu2 %v3576_v26  ;;  %v3548_v26 = vld [vmem:[#allocation13 + $0x28] sm:$0xff] }
 0x49c   :  { %3714 = vmatpush.msrb.mxu1 %v3615_v14  ;;  %3689 = vmatpush.msrb.mxu0 %v3571_v31 }
 0x49d   :  { %3824 = vmatpush.msrb.mxu3 %v3658_v1  ;;  %3729 = vmatpush.msra.mxu2 %v3572_v44  ;;  %v3630_v1 = vld [vmem:[#allocation13 + $0x2b8] sm:$0xff]  ;;  %v3543_v44 = vld [vmem:[#allocation13] sm:$0xff] }
 0x49e   :  { %3715 = vmatpush.msrb.mxu1 %v3611_v12  ;;  %3690 = vmatpush.msrb.mxu0 %v3567_v16  ;;  %v3606_v16 = vld [vmem:[#allocation13 + $0x1f8] sm:$0xff] }
 0x49f   :  { %3825 = vmatpush.msrb.mxu3 %v3654_v24  ;;  %3730 = vmatpush.msra.mxu2 %v3568_v4  ;;  %v3605_v24 = vld [vmem:[#allocation13 + $0x1f0] sm:$0xff] }
 0x4a0   :  { %3716 = vmatpush.msrb.mxu1 %v3607_v23  ;;  %3691 = vmatpush.msrb.mxu0 %v3563_v42  ;;  %v295_v23 = vadd.f32 %v7251_v8, %v6170_v51  ;;  %v3621_v4 = vld [vmem:[#allocation13 + $0x270] sm:$0xff]  ;;  %v3614_v8 = vld [vmem:[#allocation13 + $0x238] sm:$0xff] }
 0x4a1   :  { %3826 = vmatpush.msrb.mxu3 %v3650_v56  ;;  %3731 = vmatpush.msra.mxu2 %v3564_v59  ;;  %v3094_v56 = vperm.slane %v6790_v38, 2  ;;  %v3601_v42 = vld [vmem:[#allocation13 + $0x1d0] sm:$0xff]  ;;  %v3602_v59 = vld [vmem:[#allocation13 + $0x1d8] sm:$0xff] }
 0x4a2   :  { %3781 = vmatpush.msra.mxu1 %v3669_v60  ;;  %3692 = vmatpush.msrb.mxu0 %v3559_v11  ;;  %v3618_v11 = vld [vmem:[#allocation13 + $0x258] sm:$0xff] }
 0x4a3   :  { %3827 = vmatpush.msrb.mxu3 %v3646_v61  ;;  %3732 = vmatpush.msra.mxu2 %v3560_v7  ;;  %v3617_v61 = vld [vmem:[#allocation13 + $0x250] sm:$0xff] }
 0x4a4   :  { %3782 = vmatpush.msra.mxu1 %v3665_v48  ;;  %3693 = vmatpush.msrb.mxu0 %v3555_v43  ;;  %v3551_v48 = vld [vmem:[#allocation13 + $0x40] sm:$0xff] }
 0x4a5   :  { %3828 = vmatpush.msrb.mxu3 %v3642_v47  ;;  %3733 = vmatpush.msra.mxu2 %v3556_v18  ;;  %v3613_v47 = vld [vmem:[#allocation13 + $0x230] sm:$0xff] }
 0x4a6   :  { %3783 = vmatpush.msra.mxu1 %v3661_v9  ;;  %3694 = vmatpush.msrb.mxu0 %v3551_v48  ;;  %v3634_v9 = vld [vmem:[#allocation13 + $0x2d8] sm:$0xff]  ;;  %v3593_v18 = vld [vmem:[#allocation13 + $0x190] sm:$0xff] }
 0x4a7   :  { %3829 = vmatpush.msrb.mxu3 %v3638_v15  ;;  %v3610_v15 = vld [vmem:[#allocation13 + $0x218] sm:$0xff] }
 0x4a8   :  { %3784 = vmatpush.msra.mxu1 %v3657_v45  ;;  %v3629_v45 = vld [vmem:[#allocation13 + $0x2b0] sm:$0xff]  ;;  %3695 = vmatpush.msrb.mxu0 %v3547_v19  ;;  %v3590_v48 = vld [vmem:[#allocation13 + $0x178] sm:$0xff] }
 0x4a9   :  { %3830 = vmatpush.msrb.mxu3 %v3634_v9  ;;  %v3585_v9 = vld [vmem:[#allocation13 + $0x150] sm:$0xff] }
 0x4aa   :  { %3785 = vmatpush.msra.mxu1 %v3653_v30  ;;  %v3544_v30 = vld [vmem:[#allocation13 + $0x8] sm:$0xff]  ;;  %3696 = vmatpush.msrb.mxu0 %v3543_v44  ;;  %v3582_v44 = vld [vmem:[#allocation13 + $0x138] sm:$0xff] }
 0x4ab   :  { %3831 = vmatpush.msrb.mxu3 %v3630_v1 }
 0x4ac   :  { %3786 = vmatpush.msra.mxu1 %v3649_v32  ;;  %v3622_v32 = vld [vmem:[#allocation13 + $0x278] sm:$0xff]  ;;  %3761 = vmatpush.msra.mxu0 %v3605_v24 }
 0x4ad   :  { %v3578_v24 = vld [vmem:[#allocation13 + $0x118] sm:$0xff] }
 0x4ae   :  { %3787 = vmatpush.msra.mxu1 %v3645_v13  ;;  %3762 = vmatpush.msra.mxu0 %v3601_v42 }
 0x4cd   :  { %v3137_v2 = vpop.f32.mrf.mxu1 }
 0x4d3   :  { %v3177_v6 = vpop.f32.mrf.mxu3 }
 0x4d5   :  { %v6793_v55 = vpop.f32.mrf.mxu1 }
 0x4db   :  { %v3257_v22 = vpop.f32.mrf.mxu3 }
 0x4e7   :  { %v3117_v33 = vpop.f32.mrf.mxu0 }
 0x4e8   :  { %v3118_v46 = vadd.f32 %v3117_v33, %v3092_v21  ;;  %v3552_v21 = vld [vmem:[#allocation13 + $0x48] sm:$0xff] }
 0x4e9   :  { %3734 = vmatpush.msra.mxu2 %v3552_v21 }
 0x4ea   :  { %v3138_v5 = vadd.f32 %v3137_v2, %v3118_v46  ;;  %v3641_v2 = vld [vmem:[#allocation13 + $0x310] sm:$0xff] }
 0x4eb   :  { %3788 = vmatpush.msra.mxu1 %v3641_v2  ;;  %3735 = vmatpush.msra.mxu2 %v3548_v26  ;;  %v3597_v2 = vld [vmem:[#allocation13 + $0x1b0] sm:$0xff] }
 0x4ec   :  { %v5330_v39 = vmul.f32 -1.442695, %v3138_v5  ;;  %3763 = vmatpush.msra.mxu0 %v3597_v2  ;;  %v3569_v2 = vld [vmem:[#allocation13 + $0xd0] sm:$0xff] }
 0x4ed   :  { %v3157_v34 = vpop.f32.mrf.mxu2  ;;  %3789 = vmatpush.msra.mxu1 %v3637_v3  ;;  %3736 = vmatpush.msra.mxu2 %v3544_v30  ;;  %v3594_v3 = vld [vmem:[#allocation13 + $0x198] sm:$0xff] }
 0x4ee   :  { %5545 = vpow2.f32 %v5330_v39  ;;  %v3158_v14 = vadd.f32 %v3157_v34, %v3093_v20  ;;  %v3626_v20 = vld [vmem:[#allocation13 + $0x298] sm:$0xff]  ;;  %3764 = vmatpush.msra.mxu0 %v3593_v18 }
 0x4ef   :  { %3790 = vmatpush.msra.mxu1 %v3633_v36  ;;  %3832 = vmatpush.msrb.mxu3 %v3626_v20  ;;  %v3577_v20 = vld [vmem:[#allocation13 + $0x110] sm:$0xff] }
 0x4f0   :  { %v3178_v12 = vadd.f32 %v3177_v6, %v3158_v14  ;;  %v3433_v35 = vpop.f32.mrf.mxu1  ;;  %v3625_v6 = vld [vmem:[#allocation13 + $0x290] sm:$0xff]  ;;  %3801 = vmatpush.msrb.mxu2 %v3606_v16  ;;  %v3197_v14 = vpop.f32.mrf.mxu0 }
 0x4f1   :  { %v3477_v29 = vadd.f32 %v3433_v35, %v295_v23  ;;  %3791 = vmatpush.msra.mxu1 %v3629_v45  ;;  %3833 = vmatpush.msrb.mxu3 %v3622_v32  ;;  %v377_v35 = vadd.f32 %v6187_v62, %v6219_v58  ;;  %v3198_v43 = vadd.f32 %v3197_v14, %v3094_v56  ;;  %v7252_v16 = vld [vmem:[#allocation27_spill] sm:$0xff] }
 0x4f2   :  { %v5331_v60 = vmul.f32 -1.442695, %v3178_v12  ;;  %3802 = vmatpush.msrb.mxu2 %v3602_v59  ;;  %v3598_v12 = vld [vmem:[#allocation13 + $0x1b8] sm:$0xff]  ;;  %v3573_v59 = vld [vmem:[#allocation13 + $0xf0] sm:$0xff] }
 0x4f3   :  { %v5334_v31 = vmul.f32 -1.442695, %v3477_v29  ;;  %3792 = vmatpush.msra.mxu1 %v3625_v6  ;;  %3834 = vmatpush.msrb.mxu3 %v3618_v11  ;;  %v3589_v29 = vld [vmem:[#allocation13 + $0x170] sm:$0xff]  ;;  %v3574_v14 = vld [vmem:[#allocation13 + $0xf8] sm:$0xff] }
 0x4f4   :  { %v5546_v10 = vpop.eup %5545  ;;  %5547 = vpow2.f32 %v5331_v60  ;;  %3803 = vmatpush.msrb.mxu2 %v3598_v12  ;;  %3765 = vmatpush.msra.mxu0 %v3589_v29  ;;  %v3570_v12 = vld [vmem:[#allocation13 + $0xd8] sm:$0xff] }
 0x4f5   :  { %v6799_v0 = vadd.f32 1.0, %v5546_v10  ;;  %v3237_v33 = vpop.f32.mrf.mxu2  ;;  %3793 = vmatpush.msra.mxu1 %v3621_v4  ;;  %3835 = vmatpush.msrb.mxu3 %v3614_v8  ;;  %v3218_v10 = vadd.f32 %v6793_v55, %v3198_v43  ;;  %v3581_v55 = vld [vmem:[#allocation13 + $0x130] sm:$0xff]  ;;  %v254_v4 = vadd.f32 %v7252_v16, %v6165_v50 }
 0x4f6   :  { %v3238_v46 = vadd.f32 %v3237_v33, %v3095_v53  ;;  %v3609_v53 = vld [vmem:[#allocation13 + $0x210] sm:$0xff]  ;;  %3804 = vmatpush.msrb.mxu2 %v3594_v3  ;;  %v3586_v33 = vld [vmem:[#allocation13 + $0x158] sm:$0xff]  ;;  %3766 = vmatpush.msra.mxu0 %v3585_v9 }
 0x4f7   :  { %5549 = vrcp.f32 %v6799_v0  ;;  %v3473_v7 = vpop.f32.mrf.mxu3  ;;  %3794 = vmatpush.msra.mxu1 %v3617_v61  ;;  %3836 = vmatpush.msrb.mxu3 %v3610_v15  ;;  %v3275_v30 = vand.u32 2147483648, %v6799_v0  ;;  %vm3269_vm13 = vweird.f32 %v6799_v0  ;;  %v3566_v3 = vld [vmem:[#allocation13 + $0xb8] sm:$0xff]  ;;  %v3557_v9 = vld [vmem:[#allocation13 + $0x70] sm:$0xff] }
 0x4f8   :  { %v3258_v5 = vadd.f32 %v3257_v22, %v3238_v46  ;;  %5551 = vpow2.f32 %v5334_v31  ;;  %v3479_v60 = vadd.f32 %v3473_v7, %v377_v35  ;;  %3805 = vmatpush.msrb.mxu2 %v3590_v48  ;;  %3767 = vmatpush.msra.mxu0 %v3581_v55  ;;  %v3554_v55 = vld [vmem:[#allocation13 + $0x58] sm:$0xff] }
 0x4f9   :  { %3795 = vmatpush.msra.mxu1 %v3613_v47  ;;  %v3276_v61 = vor.u32 1.1754944e-38, %v3275_v30 }
 0x4fa   :  { %v5548_v39 = vpop.eup %5547  ;;  %v5332_v34 = vmul.f32 -1.442695, %v3258_v5  ;;  %v5335_v45 = vmul.f32 -1.442695, %v3479_v60  ;;  %3806 = vmatpush.msrb.mxu2 %v3586_v33  ;;  %v3273_v5 = vand.u32 2147483647, %v6799_v0  ;;  %3768 = vmatpush.msra.mxu0 %v3577_v20 }
 0x4fb   :  { %v6803_v13 = vadd.f32 1.0, %v5548_v39  ;;  %3796 = vmatpush.msra.mxu1 %v3609_v53  ;;  %v3558_v33 = vld [vmem:[#allocation13 + $0x78] sm:$0xff] }
 0x4fc   :  { %5553 = vpow2.f32 %v5332_v34  ;;  %3807 = vmatpush.msrb.mxu2 %v3582_v44  ;;  %vm3274_vm1 = vcmp.eq.f32.partialorder %v3273_v5, 8.507059e+37  ;;  %3769 = vmatpush.msra.mxu0 %v3573_v59  ;;  %v3550_v5 = vld [vmem:[#allocation13 + $0x38] sm:$0xff]  ;;  %v3974_v59 = vld [vmem:[#allocation11 + $0x1e8] sm:$0xff] }
 0x4fd   :  { %v6805_v38 = vpop.eup %5549  ;;  %5555 = vrcp.f32 %v6803_v13  ;;  %v3294_v32 = vand.u32 2147483648, %v6803_v13  ;;  %v3292_v56 = vand.u32 2147483647, %v6803_v13  ;;  %vm3288_vm0 = vweird.f32 %v6803_v13 }
 0x4fe   :  { %v3265_v23 = vmul.f32 %v6805_v38, %v6799_v0  ;;  %v5552_v21 = vpop.eup %5551  ;;  %vm3270_vm12 = vweird.f32 %v6805_v38  ;;  %3808 = vmatpush.msrb.mxu2 %v3578_v24  ;;  %3770 = vmatpush.msra.mxu0 %v3569_v2  ;;  %v3972_v2 = vld [vmem:[#allocation11 + $0x1d8] sm:$0xff] }
 0x4ff   :  { %v6819_v31 = vadd.f32 1.0, %v5552_v21  ;;  %vm6830_vm14 = vmor %vm3269_vm13, %vm3270_vm12  ;;  %vm3293_vm3 = vcmp.eq.f32.partialorder %v3292_v56, 8.507059e+37  ;;  %v3561_v21 = vld [vmem:[#allocation13 + $0x90] sm:$0xff] }
 0x500   :  { %v3266_v62 = vsub.f32 1.0, %v3265_v23  ;;  %3809 = vmatpush.msrb.mxu2 %v3574_v14  ;;  %v3976_v14 = vld [vmem:[#allocation11 + $0x1f8] sm:$0xff] }
 0x501   :  { %vm3508_vm9 = vweird.f32 %v6819_v31 }
 0x502   :  { %v5554_v36 = vpop.eup %5553  ;;  %v3267_v22 = vmul.f32 %v6805_v38, %v3266_v62  ;;  %3810 = vmatpush.msrb.mxu2 %v3570_v12 }
 0x503   :  { %v5556_v19 = vpop.eup %5555  ;;  %v6814_v26 = vadd.f32 1.0, %v5554_v36  ;;  %v3562_v36 = vld [vmem:[#allocation13 + $0x98] sm:$0xff] }
 0x504   :  { %v3284_v46 = vmul.f32 %v5556_v19, %v6803_v13  ;;  %v3268_v1 = vadd.f32 %v6805_v38, %v3267_v22  ;;  %vm3289_vm15 = vweird.f32 %v5556_v19  ;;  %v3565_v13 = vld [vmem:[#allocation13 + $0xb0] sm:$0xff]  ;;  %3811 = vmatpush.msrb.mxu2 %v3566_v3  ;;  %v3962_v3 = vld [vmem:[#allocation11 + $0x188] sm:$0xff] }
 0x505   :  { %5557 = vrcp.f32 %v6814_v26  ;;  %vm3290_vm2 = vmor %vm3288_vm0, %vm3289_vm15  ;;  %3771 = vmatpush.msra.mxu0 %v3565_v13  ;;  %vm3308_vm5 = vweird.f32 %v6814_v26  ;;  %v3312_v30 = vand.u32 2147483647, %v6814_v26  ;;  %v3512_v13 = vand.u32 2147483647, %v6819_v31 }
 0x506   :  { %v3285_v6 = vsub.f32 1.0, %v3284_v46  ;;  %5559 = vtanh.f32 %v3218_v10  ;;  %v3272_v42 = vsel %vm6830_vm14, %v6805_v38, %v3268_v1  ;;  %v3295_v38 = vor.u32 1.1754944e-38, %v3294_v32  ;;  %3812 = vmatpush.msrb.mxu2 %v3562_v36  ;;  %v3553_v1 = vld [vmem:[#allocation13 + $0x50] sm:$0xff]  ;;  %v3546_v32 = vld [vmem:[#allocation13 + $0x18] sm:$0xff] }
 0x507   :  { %5561 = vpow2.f32 %v5335_v45  ;;  %v3413_v0 = vpop.f32.mrf.mxu0  ;;  %v3277_v47 = vsel %vm3274_vm1, %v3276_v61, %v3272_v42  ;;  %3772 = vmatpush.msra.mxu0 %v3561_v21  ;;  %vm3313_vm7 = vcmp.eq.f32.partialorder %v3312_v30, 8.507059e+37  ;;  %v336_v61 = vadd.f32 %v6185_v37, %v6227_v27  ;;  %v3968_v37 = vld [vmem:[#allocation11 + $0x1b8] sm:$0xff] }
 0x508   :  { %v3286_v34 = vmul.f32 %v5556_v19, %v3285_v6  ;;  %5563 = vrcp.f32 %v6819_v31  ;;  %v3476_v11 = vadd.f32 %v3413_v0, %v254_v4  ;;  %3813 = vmatpush.msrb.mxu2 %v3558_v33  ;;  %v3549_v6 = vld [vmem:[#allocation13 + $0x30] sm:$0xff]  ;;  %v3960_v36 = vld [vmem:[#allocation11 + $0x178] sm:$0xff]  ;;  %vm3513_vm13 = vcmp.eq.f32.partialorder %v3512_v13, 8.507059e+37  ;;  %v3922_v13 = vld [vmem:[#allocation11 + $0x48] sm:$0xff] }
 0x509   :  { %3773 = vmatpush.msra.mxu0 %v3557_v9  ;;  %v3545_v4 = vld [vmem:[#allocation13 + $0x10] sm:$0xff] }
 0x50a   :  { %v3287_v7 = vadd.f32 %v5556_v19, %v3286_v34  ;;  %v5333_v8 = vmul.f32 -1.442695, %v3476_v11  ;;  %3814 = vmatpush.msrb.mxu2 %v3554_v55  ;;  %v3950_v55 = vld [vmem:[#allocation11 + $0x128] sm:$0xff] }
 0x50b   :  { %v5558_v35 = vpop.eup %5557  ;;  %3774 = vmatpush.msra.mxu0 %v3553_v1 }
 0x50c   :  { %v5560_v23 = vpop.eup %5559  ;;  %v3291_v43 = vsel %vm3290_vm2, %v5556_v19, %v3287_v7  ;;  %v3304_v18 = vmul.f32 %v5558_v35, %v6814_v26  ;;  %5565 = vpow2.f32 %v5333_v8  ;;  %vm3309_vm4 = vweird.f32 %v5558_v35  ;;  %3815 = vmatpush.msrb.mxu2 %v3550_v5  ;;  %v3970_v7 = vld [vmem:[#allocation11 + $0x1c8] sm:$0xff] }
 0x50d   :  { %v5562_v60 = vpop.eup %5561  ;;  %v3296_v53 = vsel %vm3293_vm3, %v3295_v38, %v3291_v43  ;;  %v3319_v29 = vmul.f32 %v5560_v23, %v3277_v47  ;;  %vm3310_vm6 = vmor %vm3308_vm5, %vm3309_vm4  ;;  %3775 = vmatpush.msra.mxu0 %v3549_v6  ;;  %v3966_v8 = vld [vmem:[#allocation11 + $0x1a8] sm:$0xff]  ;;  %v3514_v23 = vand.u32 2147483648, %v6819_v31 }
 0x50e   :  { %v6842_v15 = vpop.eup %5563  ;;  %v3318_v62 = vmul.f32 %v3296_v53, %v6722_v52  ;;  %v3305_v48 = vsub.f32 1.0, %v3304_v18  ;;  %v6849_v45 = vadd.f32 1.0, %v5562_v60  ;;  %v3314_v52 = vand.u32 2147483648, %v6814_v26  ;;  %3816 = vmatpush.msrb.mxu2 %v3546_v32  ;;  %v3453_v34 = vpop.f32.mrf.mxu2  ;;  %v3964_v60 = vld [vmem:[#allocation11 + $0x198] sm:$0xff]  ;;  %v3967_v53 = vld [vmem:[#allocation11 + $0x1b0] sm:$0xff] }
 0x50f   :  { %v3504_v19 = vmul.f32 %v6842_v15, %v6819_v31  ;;  %3776 = vmatpush.msra.mxu0 %v3545_v4  ;;  %vm3509_vm8 = vweird.f32 %v6842_v15  ;;  %v3958_v31 = vld [vmem:[#allocation11 + $0x168] sm:$0xff]  ;;  %v3948_v4 = vld [vmem:[#allocation11 + $0x118] sm:$0xff] }
 0x510   :  { %v6845_v10 = vadd.f32 %v3319_v29, %v3318_v62  ;;  %v3306_v22 = vmul.f32 %v5558_v35, %v3305_v48  ;;  %v3315_v39 = vor.u32 1.1754944e-38, %v3314_v52  ;;  %vm6876_vm10 = vmor %vm3508_vm9, %vm3509_vm8  ;;  %v3956_v52 = vld [vmem:[#allocation11 + $0x158] sm:$0xff]  ;;  %vm3528_vm1 = vweird.f32 %v6849_v45 }
 0x511   :  { %v3505_v24 = vsub.f32 1.0, %v3504_v19  ;;  %v3954_v19 = vld [vmem:[#allocation11 + $0x148] sm:$0xff] }
 0x512   :  { %5567 = vtanh.f32 %v6845_v10  ;;  %v3307_v46 = vadd.f32 %v5558_v35, %v3306_v22  ;;  %v5566_v44 = vpop.eup %5565  ;;  %v3515_v22 = vor.u32 1.1754944e-38, %v3514_v23  ;;  %v3926_v23 = vld [vmem:[#allocation11 + $0x68] sm:$0xff] }
 0x513   :  { %v6855_v20 = vadd.f32 1.0, %v5566_v44  ;;  %5569 = vrcp.f32 %v6849_v45  ;;  %v3506_v0 = vmul.f32 %v6842_v15, %v3505_v24  ;;  %v3952_v44 = vld [vmem:[#allocation11 + $0x138] sm:$0xff] }
 0x514   :  { %v3311_v16 = vsel %vm3310_vm6, %v5558_v35, %v3307_v46  ;;  %v3478_v35 = vadd.f32 %v3453_v34, %v336_v61  ;;  %v3940_v34 = vld [vmem:[#allocation11 + $0xd8] sm:$0xff] }
 0x515   :  { %5571 = vrcp.f32 %v6855_v20  ;;  %v3316_v56 = vsel %vm3313_vm7, %v3315_v39, %v3311_v16  ;;  %v3507_v47 = vadd.f32 %v6842_v15, %v3506_v0  ;;  %v3495_v62 = vand.u32 2147483648, %v6855_v20  ;;  %v3946_v16 = vld [vmem:[#allocation11 + $0x108] sm:$0xff]  ;;  %v3936_v61 = vld [vmem:[#allocation11 + $0xb8] sm:$0xff] }
 0x516   :  { %5573 = vtanh.f32 %v3478_v35  ;;  %v3493_v48 = vand.u32 2147483647, %v6855_v20  ;;  %vm3489_vm12 = vweird.f32 %v6855_v20  ;;  %v3942_v39 = vld [vmem:[#allocation11 + $0xe8] sm:$0xff]  ;;  %v3534_v0 = vand.u32 2147483648, %v6849_v45  ;;  %v3932_v35 = vld [vmem:[#allocation11 + $0x98] sm:$0xff] }
 0x517   :  { %v3511_v21 = vsel %vm6876_vm10, %v6842_v15, %v3507_v47  ;;  %v3496_v46 = vor.u32 1.1754944e-38, %v3495_v62  ;;  %v3918_v62 = vld [vmem:[#allocation11 + $0x28] sm:$0xff] }
 0x518   :  { %v5568_v26 = vpop.eup %5567  ;;  %v3516_v15 = vsel %vm3513_vm13, %v3515_v22, %v3511_v21  ;;  %vm3494_vm15 = vcmp.eq.f32.partialorder %v3493_v48, 8.507059e+37  ;;  %v3961_v48 = vld [vmem:[#allocation11 + $0x180] sm:$0xff]  ;;  %v3963_v21 = vld [vmem:[#allocation11 + $0x190] sm:$0xff] }
 0x519   :  { %v6860_v42 = vmul.f32 %v5568_v26, %v3316_v56  ;;  %v6864_v11 = vpop.eup %5569  ;;  %v3944_v26 = vld [vmem:[#allocation11 + $0xf8] sm:$0xff]  ;;  %v3957_v22 = vld [vmem:[#allocation11 + $0x160] sm:$0xff] }
 0x51a   :  { %v3524_v43 = vmul.f32 %v6864_v11, %v6849_v45  ;;  %vm3529_vm0 = vweird.f32 %v6864_v11 }
 0x51b   :  { %3717 = vmatmul.f32.vlgmr.msrb.gmra.mxu1 %v6860_v42  ;;  %3757 = vmatmul.f32.vlgmr.msra.gmra.mxu3 %v6860_v42  ;;  %v5572_v12 = vpop.eup %5571  ;;  %vm3530_vm2 = vmor %vm3528_vm1, %vm3529_vm0 }
 0x51c   :  { %3997 = vmatpush.msrb.mxu1 %v3974_v59  ;;  %4037 = vmatpush.msra.mxu3 %v3976_v14  ;;  %v3485_v38 = vmul.f32 %v5572_v12, %v6855_v20  ;;  %vm3490_vm11 = vweird.f32 %v5572_v12  ;;  %v3525_v9 = vsub.f32 1.0, %v3524_v43  ;;  %v5574_v30 = vpop.eup %5573  ;;  %v3538_v20 = vmul.f32 %v3516_v15, %v6768_v54  ;;  %v3938_v54 = vld [vmem:[#allocation11 + $0xc8] sm:$0xff]  ;;  %v3928_v43 = vld [vmem:[#allocation11 + $0x78] sm:$0xff]  ;;  %v3951_v15 = vld [vmem:[#allocation11 + $0x130] sm:$0xff] }
 0x51d   :  { %vm3491_vm14 = vmor %vm3489_vm12, %vm3490_vm11  ;;  %v3532_v59 = vand.u32 2147483647, %v6849_v45  ;;  %v3934_v14 = vld [vmem:[#allocation11 + $0xa8] sm:$0xff]  ;;  %v3973_v45 = vld [vmem:[#allocation11 + $0x1e0] sm:$0xff] }
 0x51e   :  { %3998 = vmatpush.msrb.mxu1 %v3970_v7  ;;  %4038 = vmatpush.msra.mxu3 %v3972_v2  ;;  %v3486_v18 = vsub.f32 1.0, %v3485_v38  ;;  %v3526_v6 = vmul.f32 %v6864_v11, %v3525_v9  ;;  %v3535_v2 = vor.u32 1.1754944e-38, %v3534_v0  ;;  %v3959_v9 = vld [vmem:[#allocation11 + $0x170] sm:$0xff] }
 0x51f   :  { %vm3533_vm3 = vcmp.eq.f32.partialorder %v3532_v59, 8.507059e+37  ;;  %v3923_v0 = vld [vmem:[#allocation11 + $0x50] sm:$0xff]  ;;  %v3913_v59 = vld [vmem:[#allocation11] sm:$0xff] }
 0x520   :  { %3999 = vmatpush.msrb.mxu1 %v3966_v8  ;;  %4039 = vmatpush.msra.mxu3 %v3968_v37  ;;  %v3487_v29 = vmul.f32 %v5572_v12, %v3486_v18  ;;  %v3527_v56 = vadd.f32 %v6864_v11, %v3526_v6  ;;  %v3975_v37 = vld [vmem:[#allocation11 + $0x1f0] sm:$0xff]  ;;  %v3937_v6 = vld [vmem:[#allocation11 + $0xc0] sm:$0xff] }
 0x521   :  { %v3971_v18 = vld [vmem:[#allocation11 + $0x1d0] sm:$0xff] }
 0x522   :  { %4000 = vmatpush.msrb.mxu1 %v3962_v3  ;;  %4040 = vmatpush.msra.mxu3 %v3964_v60  ;;  %v3488_v33 = vadd.f32 %v5572_v12, %v3487_v29  ;;  %v3531_v7 = vsel %vm3530_vm2, %v6864_v11, %v3527_v56  ;;  %v3969_v11 = vld [vmem:[#allocation11 + $0x1c0] sm:$0xff]  ;;  %v3924_v3 = vld [vmem:[#allocation11 + $0x58] sm:$0xff] }
 0x523   :  { %3797 = vmatmul.f32.vlgmr.msra.gmra.mxu1 %v6860_v42  ;;  %3837 = vmatmul.f32.vlgmr.msrb.gmra.mxu3 %v6860_v42  ;;  %v3536_v47 = vsel %vm3533_vm3, %v3535_v2, %v3531_v7  ;;  %v3965_v60 = vld [vmem:[#allocation11 + $0x1a0] sm:$0xff]  ;;  %v3920_v29 = vld [vmem:[#allocation11 + $0x38] sm:$0xff]  ;;  %v4249_v7 = vld [vmem:[#allocation13 + $0x3e8] sm:$0xff] }
 0x524   :  { %4001 = vmatpush.msrb.mxu1 %v3958_v31  ;;  %4041 = vmatpush.msra.mxu3 %v3960_v36  ;;  %v3492_v1 = vsel %vm3491_vm14, %v5572_v12, %v3488_v33  ;;  %v3930_v12 = vld [vmem:[#allocation11 + $0x88] sm:$0xff]  ;;  %v3916_v36 = vld [vmem:[#allocation11 + $0x18] sm:$0xff]  ;;  %v3953_v33 = vld [vmem:[#allocation11 + $0x140] sm:$0xff] }
 0x525   :  { %v3497_v5 = vsel %vm3494_vm15, %v3496_v46, %v3492_v1  ;;  %v3914_v31 = vld [vmem:[#allocation11 + $0x8] sm:$0xff]  ;;  %v3949_v46 = vld [vmem:[#allocation11 + $0x120] sm:$0xff] }
 0x526   :  { %4002 = vmatpush.msrb.mxu1 %v3954_v19  ;;  %4042 = vmatpush.msra.mxu3 %v3956_v52  ;;  %v3539_v24 = vmul.f32 %v5574_v30, %v3497_v5  ;;  %v5085_v19 = vld [vmem:[%s7195_s1 + $0x28] sm:$0xff]  ;;  %v3955_v52 = vld [vmem:[#allocation11 + $0x150] sm:$0xff]  ;;  %v3945_v1 = vld [vmem:[#allocation11 + $0x100] sm:$0xff] }
 0x527   :  { %5115 = vperm.xlu2 %5398, %v5085_v19   ;;  %v3943_v30 = vld [vmem:[#allocation11 + $0xf0] sm:$0xff]  ;;  %v3921_v56 = vld [vmem:[#allocation11 + $0x40] sm:$0xff]  ;;  %v4201_v19 = vld [vmem:[#allocation13 + $0x268] sm:$0xff] }
 0x528   :  { %4003 = vmatpush.msrb.mxu1 %v3950_v55  ;;  %4043 = vmatpush.msra.mxu3 %v3952_v44  ;;  %v6891_v32 = vadd.f32 %v3539_v24, %v3538_v20  ;;  %v3947_v55 = vld [vmem:[#allocation11 + $0x110] sm:$0xff]  ;;  %v3941_v44 = vld [vmem:[#allocation11 + $0xe0] sm:$0xff] }
 0x529   :  { %v3939_v5 = vld [vmem:[#allocation11 + $0xd0] sm:$0xff]  ;;  %v3933_v20 = vld [vmem:[#allocation11 + $0xa0] sm:$0xff] }
 0x52a   :  { %4004 = vmatpush.msrb.mxu1 %v3946_v16  ;;  %4044 = vmatpush.msra.mxu3 %v3948_v4  ;;  %5575 = vtanh.f32 %v6891_v32  ;;  %v3935_v24 = vld [vmem:[#allocation11 + $0xb0] sm:$0xff]  ;;  %v3929_v16 = vld [vmem:[#allocation11 + $0x80] sm:$0xff] }
 0x52b   :  { %v3931_v4 = vld [vmem:[#allocation11 + $0x90] sm:$0xff]  ;;  %v4244_v2 = vld [vmem:[#allocation13 + $0x3c0] sm:$0xff] }
 0x52c   :  { %4005 = vmatpush.msrb.mxu1 %v3942_v39  ;;  %4045 = vmatpush.msra.mxu3 %v3944_v26  ;;  %v3925_v39 = vld [vmem:[#allocation11 + $0x60] sm:$0xff]  ;;  %v3927_v26 = vld [vmem:[#allocation11 + $0x70] sm:$0xff] }
 0x52e   :  { %4006 = vmatpush.msrb.mxu1 %v3938_v54  ;;  %4046 = vmatpush.msra.mxu3 %v3940_v34  ;;  %v3917_v54 = vld [vmem:[#allocation11 + $0x20] sm:$0xff]  ;;  %v3919_v34 = vld [vmem:[#allocation11 + $0x30] sm:$0xff] }
 0x530   :  { %4007 = vmatpush.msrb.mxu1 %v3934_v14  ;;  %4047 = vmatpush.msra.mxu3 %v3936_v61  ;;  %v5576_v38 = vpop.eup %5575  ;;  %v3915_v14 = vld [vmem:[#allocation11 + $0x10] sm:$0xff]  ;;  %v4248_v61 = vld [vmem:[#allocation13 + $0x3e0] sm:$0xff] }
 0x531   :  { %v6900_v8 = vmul.f32 %v5576_v38, %v3536_v47  ;;  %v4241_v38 = vld [vmem:[#allocation13 + $0x3a8] sm:$0xff]  ;;  %v4236_v47 = vld [vmem:[#allocation13 + $0x380] sm:$0xff] }
 0x532   :  { %4008 = vmatpush.msrb.mxu1 %v3930_v12  ;;  %4048 = vmatpush.msra.mxu3 %v3932_v35  ;;  %v4245_v12 = vld [vmem:[#allocation13 + $0x3c8] sm:$0xff]  ;;  %v4240_v35 = vld [vmem:[#allocation13 + $0x3a0] sm:$0xff] }
 0x533   :  { %3697 = vmatmul.f32.vlgmr.msrb.gmra.mxu0 %v6900_v8  ;;  %3737 = vmatmul.f32.vlgmr.msra.gmra.mxu2 %v6900_v8 }
 0x534   :  { %3977 = vmatpush.msrb.mxu0 %v3973_v45  ;;  %4017 = vmatpush.msra.mxu2 %v3975_v37  ;;  %v4237_v45 = vld [vmem:[#allocation13 + $0x388] sm:$0xff]  ;;  %v4232_v37 = vld [vmem:[#allocation13 + $0x360] sm:$0xff] }
 0x535   :  { %4009 = vmatpush.msrb.mxu1 %v3926_v23  ;;  %4049 = vmatpush.msra.mxu3 %v3928_v43  ;;  %v4233_v23 = vld [vmem:[#allocation13 + $0x368] sm:$0xff] }
 0x536   :  { %3978 = vmatpush.msrb.mxu0 %v3969_v11  ;;  %4018 = vmatpush.msra.mxu2 %v3971_v18  ;;  %v4229_v43 = vld [vmem:[#allocation13 + $0x348] sm:$0xff]  ;;  %v4224_v11 = vld [vmem:[#allocation13 + $0x320] sm:$0xff] }
 0x537   :  { %4010 = vmatpush.msrb.mxu1 %v3922_v13  ;;  %4050 = vmatpush.msra.mxu3 %v3924_v3  ;;  %v4225_v18 = vld [vmem:[#allocation13 + $0x328] sm:$0xff]  ;;  %v4220_v13 = vld [vmem:[#allocation13 + $0x300] sm:$0xff] }
 0x538   :  { %3979 = vmatpush.msrb.mxu0 %v3965_v60  ;;  %4019 = vmatpush.msra.mxu2 %v3967_v53  ;;  %v4221_v3 = vld [vmem:[#allocation13 + $0x308] sm:$0xff]  ;;  %v4216_v60 = vld [vmem:[#allocation13 + $0x2e0] sm:$0xff] }
 0x539   :  { %4011 = vmatpush.msrb.mxu1 %v3918_v62  ;;  %4051 = vmatpush.msra.mxu3 %v3920_v29  ;;  %v4217_v53 = vld [vmem:[#allocation13 + $0x2e8] sm:$0xff]  ;;  %v4212_v62 = vld [vmem:[#allocation13 + $0x2c0] sm:$0xff] }
 0x53a   :  { %3980 = vmatpush.msrb.mxu0 %v3961_v48  ;;  %4020 = vmatpush.msra.mxu2 %v3963_v21  ;;  %v4213_v29 = vld [vmem:[#allocation13 + $0x2c8] sm:$0xff]  ;;  %v4208_v48 = vld [vmem:[#allocation13 + $0x2a0] sm:$0xff] }
 0x53b   :  { %4012 = vmatpush.msrb.mxu1 %v3914_v31  ;;  %4052 = vmatpush.msra.mxu3 %v3916_v36  ;;  %v4209_v21 = vld [vmem:[#allocation13 + $0x2a8] sm:$0xff]  ;;  %v4204_v31 = vld [vmem:[#allocation13 + $0x280] sm:$0xff] }
 0x53c   :  { %3777 = vmatmul.f32.vlgmr.msra.gmra.mxu0 %v6900_v8  ;;  %3817 = vmatmul.f32.vlgmr.msrb.gmra.mxu2 %v6900_v8  ;;  %v4205_v36 = vld [vmem:[#allocation13 + $0x288] sm:$0xff] }
 0x53d   :  { %3981 = vmatpush.msrb.mxu0 %v3957_v22  ;;  %4013 = vmatmul.f32.vlgmr.msrb.gmra.mxu1 %v6900_v8  ;;  %v4184_v22 = vld [vmem:[#allocation13 + $0x1e0] sm:$0xff] }
 0x53e   :  { %4021 = vmatpush.msra.mxu2 %v3959_v9  ;;  %4053 = vmatmul.f32.vlgmr.msra.gmra.mxu3 %v6900_v8  ;;  %v4185_v9 = vld [vmem:[#allocation13 + $0x1e8] sm:$0xff] }
 0x53f   :  { %3982 = vmatpush.msrb.mxu0 %v3953_v33  ;;  %4282 = vmatpush.msra.mxu1 %v4248_v61  ;;  %v4200_v33 = vld [vmem:[#allocation13 + $0x260] sm:$0xff]  ;;  %v4246_v61 = vld [vmem:[#allocation13 + $0x3d0] sm:$0xff] }
 0x540   :  { %4022 = vmatpush.msra.mxu2 %v3955_v52  ;;  %4322 = vmatpush.msrb.mxu3 %v4249_v7  ;;  %v4180_v52 = vld [vmem:[#allocation13 + $0x1c0] sm:$0xff]  ;;  %v4247_v7 = vld [vmem:[#allocation13 + $0x3d8] sm:$0xff] }
 0x541   :  { %3983 = vmatpush.msrb.mxu0 %v3949_v46  ;;  %4283 = vmatpush.msra.mxu1 %v4244_v2  ;;  %v4181_v46 = vld [vmem:[#allocation13 + $0x1c8] sm:$0xff]  ;;  %v4160_v2 = vld [vmem:[#allocation13 + $0x120] sm:$0xff] }
 0x542   :  { %4023 = vmatpush.msra.mxu2 %v3951_v15  ;;  %4323 = vmatpush.msrb.mxu3 %v4245_v12  ;;  %v4196_v15 = vld [vmem:[#allocation13 + $0x240] sm:$0xff]  ;;  %v4161_v12 = vld [vmem:[#allocation13 + $0x128] sm:$0xff] }
 0x543   :  { %3984 = vmatpush.msrb.mxu0 %v3945_v1  ;;  %4284 = vmatpush.msra.mxu1 %v4240_v35  ;;  %v4197_v1 = vld [vmem:[#allocation13 + $0x248] sm:$0xff]  ;;  %v4242_v35 = vld [vmem:[#allocation13 + $0x3b0] sm:$0xff] }
 0x544   :  { %4024 = vmatpush.msra.mxu2 %v3947_v55  ;;  %4324 = vmatpush.msrb.mxu3 %v4241_v38  ;;  %v4176_v55 = vld [vmem:[#allocation13 + $0x1a0] sm:$0xff] }
 0x545   :  { %3985 = vmatpush.msrb.mxu0 %v3941_v44  ;;  %4285 = vmatpush.msra.mxu1 %v4236_v47  ;;  %v4177_v44 = vld [vmem:[#allocation13 + $0x1a8] sm:$0xff]  ;;  %v4243_v47 = vld [vmem:[#allocation13 + $0x3b8] sm:$0xff] }
 0x546   :  { %4025 = vmatpush.msra.mxu2 %v3943_v30  ;;  %4325 = vmatpush.msrb.mxu3 %v4237_v45 }
 0x547   :  { %3986 = vmatpush.msrb.mxu0 %v3937_v6  ;;  %4286 = vmatpush.msra.mxu1 %v4232_v37  ;;  %v4192_v6 = vld [vmem:[#allocation13 + $0x220] sm:$0xff] }
 0x548   :  { %4026 = vmatpush.msra.mxu2 %v3939_v5  ;;  %4326 = vmatpush.msrb.mxu3 %v4233_v23  ;;  %v4193_v5 = vld [vmem:[#allocation13 + $0x228] sm:$0xff]  ;;  %v4156_v37 = vld [vmem:[#allocation13 + $0x100] sm:$0xff] }
 0x549   :  { %3987 = vmatpush.msrb.mxu0 %v3933_v20  ;;  %v4172_v20 = vld [vmem:[#allocation13 + $0x180] sm:$0xff]  ;;  %v4157_v23 = vld [vmem:[#allocation13 + $0x108] sm:$0xff] }
 0x54a   :  { %4027 = vmatpush.msra.mxu2 %v3935_v24  ;;  %4327 = vmatpush.msrb.mxu3 %v4229_v43  ;;  %v4173_v24 = vld [vmem:[#allocation13 + $0x188] sm:$0xff] }
 0x54b   :  { %3988 = vmatpush.msrb.mxu0 %v3929_v16  ;;  %v6913_v16 = vld [vmem:[#allocation14] sm:$0xf] }
 0x54c   :  { %4028 = vmatpush.msra.mxu2 %v3931_v4  ;;  %4328 = vmatpush.msrb.mxu3 %v4225_v18  ;;  %v4188_v4 = vld [vmem:[#allocation13 + $0x200] sm:$0xff]  ;;  %v4239_v18 = vld [vmem:[#allocation13 + $0x398] sm:$0xff] }
 0x54d   :  { %3989 = vmatpush.msrb.mxu0 %v3925_v39  ;;  %v4189_v39 = vld [vmem:[#allocation13 + $0x208] sm:$0xff] }
 0x54e   :  { %4029 = vmatpush.msra.mxu2 %v3927_v26  ;;  %4329 = vmatpush.msrb.mxu3 %v4221_v3  ;;  %v4168_v26 = vld [vmem:[#allocation13 + $0x160] sm:$0xff]  ;;  %v3674_v3 = vperm.slane %v6913_v16, 1 }
 0x54f   :  { %3990 = vmatpush.msrb.mxu0 %v3921_v56  ;;  %v4169_v56 = vld [vmem:[#allocation13 + $0x168] sm:$0xff] }
 0x550   :  { %4030 = vmatpush.msra.mxu2 %v3923_v0  ;;  %4330 = vmatpush.msrb.mxu3 %v4217_v53  ;;  %v4250_v0 = vld [vmem:[#allocation13 + $0x3f0] sm:$0xff]  ;;  %v4153_v53 = vld [vmem:[#allocation13 + $0xe8] sm:$0xff] }
 0x551   :  { %3991 = vmatpush.msrb.mxu0 %v3917_v54  ;;  %v4251_v54 = vld [vmem:[#allocation13 + $0x3f8] sm:$0xff] }
 0x552   :  { %4031 = vmatpush.msra.mxu2 %v3919_v34  ;;  %4331 = vmatpush.msrb.mxu3 %v4213_v29  ;;  %v3673_v34 = vperm.slane %v6913_v16, 0  ;;  %v4235_v29 = vld [vmem:[#allocation13 + $0x378] sm:$0xff] }
 0x553   :  { %3992 = vmatpush.msrb.mxu0 %v3913_v59  ;;  %v4164_v59 = vld [vmem:[#allocation13 + $0x140] sm:$0xff] }
 0x554   :  { %4032 = vmatpush.msra.mxu2 %v3915_v14  ;;  %3993 = vmatmul.f32.vlgmr.msrb.gmra.mxu0 %v6900_v8  ;;  %v4165_v14 = vld [vmem:[#allocation13 + $0x148] sm:$0xff] }
 0x555   :  { %4033 = vmatmul.f32.vlgmr.msra.gmra.mxu2 %v6900_v8  ;;  %v4228_v8 = vld [vmem:[#allocation13 + $0x340] sm:$0xff]  ;;  %4332 = vmatpush.msrb.mxu3 %v4209_v21 }
 0x556   :  { %4287 = vmatpush.msra.mxu1 %v4228_v8  ;;  %4262 = vmatpush.msra.mxu0 %v4184_v22  ;;  %v4238_v8 = vld [vmem:[#allocation13 + $0x390] sm:$0xff]  ;;  %v4148_v21 = vld [vmem:[#allocation13 + $0xc0] sm:$0xff] }
 0x557   :  { %4333 = vmatpush.msrb.mxu3 %v4205_v36  ;;  %4302 = vmatpush.msrb.mxu2 %v4185_v9  ;;  %v4230_v36 = vld [vmem:[#allocation13 + $0x350] sm:$0xff]  ;;  %v4231_v9 = vld [vmem:[#allocation13 + $0x358] sm:$0xff] }
 0x558   :  { %4288 = vmatpush.msra.mxu1 %v4224_v11  ;;  %4263 = vmatpush.msra.mxu0 %v4180_v52  ;;  %v4145_v52 = vld [vmem:[#allocation13 + $0xa8] sm:$0xff] }
 0x559   :  { %4334 = vmatpush.msrb.mxu3 %v4201_v19  ;;  %4303 = vmatpush.msrb.mxu2 %v4181_v46  ;;  %v4144_v19 = vld [vmem:[#allocation13 + $0xa0] sm:$0xff]  ;;  %v4226_v46 = vld [vmem:[#allocation13 + $0x330] sm:$0xff] }
 0x55a   :  { %4289 = vmatpush.msra.mxu1 %v4220_v13  ;;  %4264 = vmatpush.msra.mxu0 %v4176_v55  ;;  %v4140_v55 = vld [vmem:[#allocation13 + $0x80] sm:$0xff] }
 0x55b   :  { %4335 = vmatpush.msrb.mxu3 %v4197_v1  ;;  %4304 = vmatpush.msrb.mxu2 %v4177_v44  ;;  %v4141_v44 = vld [vmem:[#allocation13 + $0x88] sm:$0xff] }
 0x55c   :  { %4290 = vmatpush.msra.mxu1 %v4216_v60  ;;  %4265 = vmatpush.msra.mxu0 %v4172_v20  ;;  %v4152_v60 = vld [vmem:[#allocation13 + $0xe0] sm:$0xff] }
 0x55d   :  { %4336 = vmatpush.msrb.mxu3 %v4193_v5  ;;  %4305 = vmatpush.msrb.mxu2 %v4173_v24  ;;  %v4223_v24 = vld [vmem:[#allocation13 + $0x318] sm:$0xff] }
 0x55e   :  { %4291 = vmatpush.msra.mxu1 %v4212_v62  ;;  %4266 = vmatpush.msra.mxu0 %v4168_v26  ;;  %v4234_v62 = vld [vmem:[#allocation13 + $0x370] sm:$0xff]  ;;  %v4137_v26 = vld [vmem:[#allocation13 + $0x68] sm:$0xff] }
 0x55f   :  { %4337 = vmatpush.msrb.mxu3 %v4189_v39  ;;  %4306 = vmatpush.msrb.mxu2 %v4169_v56  ;;  %v4136_v39 = vld [vmem:[#allocation13 + $0x60] sm:$0xff]  ;;  %v4218_v56 = vld [vmem:[#allocation13 + $0x2f0] sm:$0xff] }
 0x560   :  { %4292 = vmatpush.msra.mxu1 %v4208_v48  ;;  %4267 = vmatpush.msra.mxu0 %v4164_v59 }
 0x561   :  { %4402 = vmatpush.msra.mxu3 %v4251_v54  ;;  %4307 = vmatpush.msrb.mxu2 %v4165_v14  ;;  %v3676_v14 = vperm.slane %v6913_v16, 3 }
 0x562   :  { %4293 = vmatpush.msra.mxu1 %v4204_v31  ;;  %4268 = vmatpush.msra.mxu0 %v4160_v2  ;;  %v4149_v31 = vld [vmem:[#allocation13 + $0xc8] sm:$0xff]  ;;  %v4214_v2 = vld [vmem:[#allocation13 + $0x2d0] sm:$0xff] }
 0x563   :  { %4403 = vmatpush.msra.mxu3 %v4247_v7  ;;  %4308 = vmatpush.msrb.mxu2 %v4161_v12  ;;  %v4133_v7 = vld [vmem:[#allocation13 + $0x48] sm:$0xff] }
 0x564   :  { %4294 = vmatpush.msra.mxu1 %v4200_v33  ;;  %4269 = vmatpush.msra.mxu0 %v4156_v37  ;;  %v4210_v37 = vld [vmem:[#allocation13 + $0x2b0] sm:$0xff] }
 0x565   :  { %4404 = vmatpush.msra.mxu3 %v4243_v47  ;;  %4309 = vmatpush.msrb.mxu2 %v4157_v23  ;;  %v4128_v47 = vld [vmem:[#allocation13 + $0x20] sm:$0xff] }
 0x566   :  { %4295 = vmatpush.msra.mxu1 %v4196_v15  ;;  %4270 = vmatpush.msra.mxu0 %v4152_v60  ;;  %v4227_v15 = vld [vmem:[#allocation13 + $0x338] sm:$0xff]  ;;  %v3675_v60 = vperm.slane %v6913_v16, 2 }
 0x567   :  { %4405 = vmatpush.msra.mxu3 %v4239_v18  ;;  %4310 = vmatpush.msrb.mxu2 %v4153_v53  ;;  %v4124_v18 = vld [vmem:[#allocation13] sm:$0xff]  ;;  %v4207_v53 = vld [vmem:[#allocation13 + $0x298] sm:$0xff] }
 0x568   :  { %4296 = vmatpush.msra.mxu1 %v4192_v6  ;;  %4271 = vmatpush.msra.mxu0 %v4148_v21  ;;  %v7257_v6 = vld [vmem:[#allocation30_spill] sm:$0xff]  ;;  %v4183_v16 = vld [vmem:[#allocation13 + $0x1d8] sm:$0xff] }
 0x569   :  { %4406 = vmatpush.msra.mxu3 %v4235_v29  ;;  %4311 = vmatpush.msrb.mxu2 %v4149_v31  ;;  %v298_v5 = vadd.f32 %v7257_v6, %v6170_v51  ;;  %v4187_v29 = vld [vmem:[#allocation13 + $0x1f8] sm:$0xff] }
 0x56a   :  { %4297 = vmatpush.msra.mxu1 %v4188_v4  ;;  %4272 = vmatpush.msra.mxu0 %v4144_v19  ;;  %v4182_v19 = vld [vmem:[#allocation13 + $0x1d0] sm:$0xff]  ;;  %v4179_v6 = vld [vmem:[#allocation13 + $0x1b8] sm:$0xff] }
 0x56b   :  { %4407 = vmatpush.msra.mxu3 %v4231_v9  ;;  %4312 = vmatpush.msrb.mxu2 %v4145_v52  ;;  %v380_v52 = vadd.f32 %v6199_v40, %v6219_v58  ;;  %v4194_v40 = vld [vmem:[#allocation13 + $0x230] sm:$0xff] }
 0x56c   :  { %4362 = vmatpush.msrb.mxu1 %v4250_v0  ;;  %4273 = vmatpush.msra.mxu0 %v4140_v55 }
 0x56d   :  { %4408 = vmatpush.msra.mxu3 %v4227_v15  ;;  %4313 = vmatpush.msrb.mxu2 %v4141_v44  ;;  %v4198_v15 = vld [vmem:[#allocation13 + $0x250] sm:$0xff] }
 0x56e   :  { %4363 = vmatpush.msrb.mxu1 %v4246_v61  ;;  %4274 = vmatpush.msra.mxu0 %v4136_v39  ;;  %v4132_v61 = vld [vmem:[#allocation13 + $0x40] sm:$0xff]  ;;  %v4175_v39 = vld [vmem:[#allocation13 + $0x198] sm:$0xff] }
 0x56f   :  { %4409 = vmatpush.msra.mxu3 %v4223_v24  ;;  %4314 = vmatpush.msrb.mxu2 %v4137_v26  ;;  %v4195_v24 = vld [vmem:[#allocation13 + $0x238] sm:$0xff] }
 0x570   :  { %4364 = vmatpush.msrb.mxu1 %v4242_v35  ;;  %4275 = vmatpush.msra.mxu0 %v4132_v61  ;;  %v4215_v35 = vld [vmem:[#allocation13 + $0x2d8] sm:$0xff] }
 0x571   :  { %4315 = vmatpush.msrb.mxu2 %v4133_v7 }
 0x572   :  { %4365 = vmatpush.msrb.mxu1 %v4238_v8  ;;  %4276 = vmatpush.msra.mxu0 %v4128_v47  ;;  %v4211_v8 = vld [vmem:[#allocation13 + $0x2b8] sm:$0xff] }
 0x574   :  { %4366 = vmatpush.msrb.mxu1 %v4234_v62  ;;  %4277 = vmatpush.msra.mxu0 %v4124_v18  ;;  %v4186_v62 = vld [vmem:[#allocation13 + $0x1f0] sm:$0xff]  ;;  %v4163_v18 = vld [vmem:[#allocation13 + $0x138] sm:$0xff] }
 0x576   :  { %4367 = vmatpush.msrb.mxu1 %v4230_v36  ;;  %v4202_v36 = vld [vmem:[#allocation13 + $0x270] sm:$0xff]  ;;  %4342 = vmatpush.msrb.mxu0 %v4186_v62 }
 0x578   :  { %4368 = vmatpush.msrb.mxu1 %v4226_v46  ;;  %4343 = vmatpush.msrb.mxu0 %v4182_v19  ;;  %v4154_v19 = vld [vmem:[#allocation13 + $0xf0] sm:$0xff] }
 0x598   :  { %v3718_v30 = vpop.f32.mrf.mxu1 }
 0x59e   :  { %v3758_v43 = vpop.f32.mrf.mxu3 }
 0x5a0   :  { %v6916_v11 = vpop.f32.mrf.mxu1 }
 0x5a6   :  { %v3838_v0 = vpop.f32.mrf.mxu3 }
 0x5b0   :  { %v3698_v38 = vpop.f32.mrf.mxu0 }
 0x5b1   :  { %v3699_v45 = vadd.f32 %v3698_v38, %v3673_v34  ;;  %v4219_v34 = vld [vmem:[#allocation13 + $0x2f8] sm:$0xff] }
 0x5b2   :  { %4410 = vmatpush.msra.mxu3 %v4219_v34 }
 0x5b3   :  { %v3719_v13 = vadd.f32 %v3718_v30, %v3699_v45  ;;  %v4222_v30 = vld [vmem:[#allocation13 + $0x310] sm:$0xff]  ;;  %v4129_v45 = vld [vmem:[#allocation13 + $0x28] sm:$0xff] }
 0x5b4   :  { %4369 = vmatpush.msrb.mxu1 %v4222_v30  ;;  %4411 = vmatpush.msra.mxu3 %v4215_v35  ;;  %v4178_v30 = vld [vmem:[#allocation13 + $0x1b0] sm:$0xff] }
 0x5b5   :  { %v5336_v48 = vmul.f32 -1.442695, %v3719_v13  ;;  %4316 = vmatpush.msrb.mxu2 %v4129_v45  ;;  %v4125_v13 = vld [vmem:[#allocation13 + $0x8] sm:$0xff]  ;;  %4344 = vmatpush.msrb.mxu0 %v4178_v30  ;;  %v4166_v35 = vld [vmem:[#allocation13 + $0x150] sm:$0xff]  ;;  %v4151_v30 = vld [vmem:[#allocation13 + $0xd8] sm:$0xff] }
 0x5b6   :  { %v3738_v22 = vpop.f32.mrf.mxu2  ;;  %4370 = vmatpush.msrb.mxu1 %v4218_v56  ;;  %4412 = vmatpush.msra.mxu3 %v4211_v8  ;;  %v4190_v56 = vld [vmem:[#allocation13 + $0x210] sm:$0xff] }
 0x5b7   :  { %5577 = vpow2.f32 %v5336_v48  ;;  %v3739_v33 = vadd.f32 %v3738_v22, %v3674_v3  ;;  %v4206_v3 = vld [vmem:[#allocation13 + $0x290] sm:$0xff]  ;;  %4317 = vmatpush.msrb.mxu2 %v4125_v13  ;;  %v4203_v22 = vld [vmem:[#allocation13 + $0x278] sm:$0xff] }
 0x5b8   :  { %4371 = vmatpush.msrb.mxu1 %v4214_v2  ;;  %4413 = vmatpush.msra.mxu3 %v4207_v53 }
 0x5b9   :  { %v3759_v1 = vadd.f32 %v3758_v43, %v3739_v33  ;;  %v3778_v21 = vpop.f32.mrf.mxu0  ;;  %4382 = vmatpush.msra.mxu2 %v4187_v29  ;;  %v4126_v29 = vld [vmem:[#allocation13 + $0x10] sm:$0xff] }
 0x5ba   :  { %v4014_v20 = vpop.f32.mrf.mxu1  ;;  %4372 = vmatpush.msrb.mxu1 %v4210_v37  ;;  %4414 = vmatpush.msra.mxu3 %v4203_v22  ;;  %v3779_v44 = vadd.f32 %v3778_v21, %v3675_v60  ;;  %v7258_v60 = vld [vmem:[#allocation29_spill] sm:$0xff]  ;;  %v4158_v21 = vld [vmem:[#allocation13 + $0x110] sm:$0xff] }
 0x5bb   :  { %v5337_v4 = vmul.f32 -1.442695, %v3759_v1  ;;  %v4058_v54 = vadd.f32 %v4014_v20, %v298_v5  ;;  %v4199_v1 = vld [vmem:[#allocation13 + $0x258] sm:$0xff]  ;;  %4383 = vmatpush.msra.mxu2 %v4183_v16  ;;  %v257_v53 = vadd.f32 %v7258_v60, %v6165_v50 }
 0x5bc   :  { %4373 = vmatpush.msrb.mxu1 %v4206_v3  ;;  %4415 = vmatpush.msra.mxu3 %v4199_v1  ;;  %v3799_v34 = vadd.f32 %v6916_v11, %v3779_v44  ;;  %v4155_v16 = vld [vmem:[#allocation13 + $0xf8] sm:$0xff] }
 0x5bd   :  { %v5578_v59 = vpop.eup %5577  ;;  %5579 = vpow2.f32 %v5337_v4  ;;  %v5340_v23 = vmul.f32 -1.442695, %v4058_v54  ;;  %4384 = vmatpush.msra.mxu2 %v4179_v6  ;;  %v4174_v4 = vld [vmem:[#allocation13 + $0x190] sm:$0xff] }
 0x5be   :  { %v6922_v12 = vadd.f32 1.0, %v5578_v59  ;;  %4374 = vmatpush.msrb.mxu1 %v4202_v36  ;;  %4416 = vmatpush.msra.mxu3 %v4195_v24  ;;  %v4170_v59 = vld [vmem:[#allocation13 + $0x170] sm:$0xff] }
 0x5bf   :  { %v3818_v38 = vpop.f32.mrf.mxu2  ;;  %4345 = vmatpush.msrb.mxu0 %v4174_v4  ;;  %4385 = vmatpush.msra.mxu2 %v4175_v39  ;;  %v4147_v4 = vld [vmem:[#allocation13 + $0xb8] sm:$0xff] }
 0x5c0   :  { %5581 = vrcp.f32 %v6922_v12  ;;  %v3819_v43 = vadd.f32 %v3818_v38, %v3676_v14  ;;  %4375 = vmatpush.msrb.mxu1 %v4198_v15  ;;  %v4171_v14 = vld [vmem:[#allocation13 + $0x178] sm:$0xff]  ;;  %vm3850_vm5 = vweird.f32 %v6922_v12  ;;  %v3854_v3 = vand.u32 2147483647, %v6922_v12 }
 0x5c1   :  { %5583 = vpow2.f32 %v5340_v23  ;;  %v4054_v33 = vpop.f32.mrf.mxu3  ;;  %4346 = vmatpush.msrb.mxu0 %v4170_v59  ;;  %4386 = vmatpush.msra.mxu2 %v4171_v14  ;;  %v4167_v38 = vld [vmem:[#allocation13 + $0x158] sm:$0xff]  ;;  %v3856_v23 = vand.u32 2147483648, %v6922_v12 }
 0x5c2   :  { %v3839_v31 = vadd.f32 %v3838_v0, %v3819_v43  ;;  %v4060_v20 = vadd.f32 %v4054_v33, %v380_v52  ;;  %4376 = vmatpush.msrb.mxu1 %v4194_v40  ;;  %v4191_v0 = vld [vmem:[#allocation13 + $0x218] sm:$0xff]  ;;  %v4162_v43 = vld [vmem:[#allocation13 + $0x130] sm:$0xff]  ;;  %vm3855_vm9 = vcmp.eq.f32.partialorder %v3854_v3, 8.507059e+37 }
 0x5c3   :  { %v5580_v48 = vpop.eup %5579  ;;  %4417 = vmatpush.msra.mxu3 %v4191_v0  ;;  %4347 = vmatpush.msrb.mxu0 %v4166_v35  ;;  %v3857_v33 = vor.u32 1.1754944e-38, %v3856_v23 }
 0x5c4   :  { %v6926_v9 = vadd.f32 1.0, %v5580_v48  ;;  %v5338_v46 = vmul.f32 -1.442695, %v3839_v31  ;;  %v5341_v7 = vmul.f32 -1.442695, %v4060_v20  ;;  %4377 = vmatpush.msrb.mxu1 %v4190_v56  ;;  %4387 = vmatpush.msra.mxu2 %v4167_v38 }
 0x5c5   :  { %4348 = vmatpush.msrb.mxu0 %v4162_v43 }
 0x5c6   :  { %v6930_v55 = vpop.eup %5581  ;;  %5585 = vrcp.f32 %v6926_v9  ;;  %v3875_v62 = vand.u32 2147483648, %v6926_v9  ;;  %v3873_v48 = vand.u32 2147483647, %v6926_v9  ;;  %4388 = vmatpush.msra.mxu2 %v4163_v18  ;;  %vm3869_vm8 = vweird.f32 %v6926_v9  ;;  %v4130_v18 = vld [vmem:[#allocation13 + $0x30] sm:$0xff] }
 0x5c7   :  { %v3846_v5 = vmul.f32 %v6930_v55, %v6922_v12  ;;  %5587 = vpow2.f32 %v5338_v46  ;;  %v5584_v54 = vpop.eup %5583  ;;  %vm3851_vm4 = vweird.f32 %v6930_v55  ;;  %v4159_v12 = vld [vmem:[#allocation13 + $0x118] sm:$0xff]  ;;  %4349 = vmatpush.msrb.mxu0 %v4158_v21 }
 0x5c8   :  { %v6940_v11 = vadd.f32 1.0, %v5584_v54  ;;  %5589 = vtanh.f32 %v3799_v34  ;;  %vm6952_vm6 = vmor %vm3850_vm5, %vm3851_vm4  ;;  %4389 = vmatpush.msra.mxu2 %v4159_v12  ;;  %v3876_v1 = vor.u32 1.1754944e-38, %v3875_v62  ;;  %vm3874_vm11 = vcmp.eq.f32.partialorder %v3873_v48, 8.507059e+37  ;;  %v4142_v54 = vld [vmem:[#allocation13 + $0x90] sm:$0xff]  ;;  %v4143_v34 = vld [vmem:[#allocation13 + $0x98] sm:$0xff] }
 0x5c9   :  { %v3847_v26 = vsub.f32 1.0, %v3846_v5  ;;  %5591 = vpow2.f32 %v5341_v7  ;;  %4350 = vmatpush.msrb.mxu0 %v4154_v19  ;;  %v4127_v48 = vld [vmem:[#allocation13 + $0x18] sm:$0xff]  ;;  %v339_v19 = vadd.f32 %v6197_v57, %v6227_v27 }
 0x5ca   :  { %4390 = vmatpush.msra.mxu2 %v4155_v16  ;;  %v4551_v16 = vld [vmem:[#allocation11 + $0x1c8] sm:$0xff]  ;;  %vm4089_vm1 = vweird.f32 %v6940_v11 }
 0x5cb   :  { %v3848_v61 = vmul.f32 %v6930_v55, %v3847_v26 }
 0x5cc   :  { %v5586_v2 = vpop.eup %5585  ;;  %4391 = vmatpush.msra.mxu2 %v4151_v30 }
 0x5cd   :  { %v5588_v47 = vpop.eup %5587  ;;  %v3865_v45 = vmul.f32 %v5586_v2, %v6926_v9  ;;  %v3849_v37 = vadd.f32 %v6930_v55, %v3848_v61  ;;  %vm3870_vm7 = vweird.f32 %v5586_v2  ;;  %v4146_v9 = vld [vmem:[#allocation13 + $0xb0] sm:$0xff] }
 0x5ce   :  { %v6943_v8 = vadd.f32 1.0, %v5588_v47  ;;  %v5590_v15 = vpop.eup %5589  ;;  %vm3871_vm10 = vmor %vm3869_vm8, %vm3870_vm7  ;;  %4392 = vmatpush.msra.mxu2 %v4147_v4  ;;  %v4546_v4 = vld [vmem:[#allocation11 + $0x1a0] sm:$0xff] }
 0x5cf   :  { %v3866_v13 = vsub.f32 1.0, %v3865_v45  ;;  %v3853_v36 = vsel %vm6952_vm6, %v6930_v55, %v3849_v37  ;;  %v4150_v55 = vld [vmem:[#allocation13 + $0xd0] sm:$0xff]  ;;  %v5592_v6 = vpop.eup %5591  ;;  %v4135_v37 = vld [vmem:[#allocation13 + $0x58] sm:$0xff] }
 0x5d0   :  { %5593 = vrcp.f32 %v6943_v8  ;;  %v3858_v44 = vsel %vm3855_vm9, %v3857_v33, %v3853_v36  ;;  %4351 = vmatpush.msrb.mxu0 %v4150_v55  ;;  %v6971_v7 = vadd.f32 1.0, %v5592_v6  ;;  %4393 = vmatpush.msra.mxu2 %v4143_v34  ;;  %v3895_v38 = vand.u32 2147483648, %v6943_v8  ;;  %v4134_v45 = vld [vmem:[#allocation13 + $0x50] sm:$0xff]  ;;  %v4557_v36 = vld [vmem:[#allocation11 + $0x1f8] sm:$0xff] }
 0x5d1   :  { %v3867_v31 = vmul.f32 %v5586_v2, %v3866_v13  ;;  %5595 = vrcp.f32 %v6940_v11  ;;  %v3994_v22 = vpop.f32.mrf.mxu0  ;;  %v3900_v56 = vmul.f32 %v5590_v15, %v3858_v44  ;;  %v3893_v47 = vand.u32 2147483647, %v6943_v8  ;;  %v4131_v13 = vld [vmem:[#allocation13 + $0x38] sm:$0xff]  ;;  %v4547_v44 = vld [vmem:[#allocation11 + $0x1a8] sm:$0xff] }
 0x5d2   :  { %v4057_v46 = vadd.f32 %v3994_v22, %v257_v53  ;;  %4352 = vmatpush.msrb.mxu0 %v4146_v9  ;;  %vm3889_vm13 = vweird.f32 %v6943_v8  ;;  %v3896_v53 = vor.u32 1.1754944e-38, %v3895_v38  ;;  %v4549_v55 = vld [vmem:[#allocation11 + $0x1b8] sm:$0xff]  ;;  %v4095_v6 = vand.u32 2147483648, %v6940_v11 }
 0x5d3   :  { %v3868_v52 = vadd.f32 %v5586_v2, %v3867_v31  ;;  %vm3894_vm15 = vcmp.eq.f32.partialorder %v3893_v47, 8.507059e+37  ;;  %v4555_v31 = vld [vmem:[#allocation11 + $0x1e8] sm:$0xff]  ;;  %v4093_v9 = vand.u32 2147483647, %v6940_v11  ;;  %vm4109_vm9 = vweird.f32 %v6971_v7 }
 0x5d4   :  { %v5339_v20 = vmul.f32 -1.442695, %v4057_v46  ;;  %4353 = vmatpush.msrb.mxu0 %v4142_v54  ;;  %v4531_v47 = vld [vmem:[#allocation11 + $0x128] sm:$0xff] }
 0x5d5   :  { %v3872_v5 = vsel %vm3871_vm10, %v5586_v2, %v3868_v52  ;;  %v4138_v2 = vld [vmem:[#allocation13 + $0x70] sm:$0xff]  ;;  %v4553_v52 = vld [vmem:[#allocation11 + $0x1d8] sm:$0xff]  ;;  %vm4094_vm5 = vcmp.eq.f32.partialorder %v4093_v9, 8.507059e+37 }
 0x5d6   :  { %v5594_v40 = vpop.eup %5593  ;;  %v3877_v24 = vsel %vm3874_vm11, %v3876_v1, %v3872_v5  ;;  %5597 = vpow2.f32 %v5339_v20  ;;  %4354 = vmatpush.msrb.mxu0 %v4138_v2  ;;  %v4543_v20 = vld [vmem:[#allocation11 + $0x188] sm:$0xff]  ;;  %v4501_v9 = vld [vmem:[#allocation11 + $0x38] sm:$0xff] }
 0x5d7   :  { %v6963_v39 = vpop.eup %5595  ;;  %v3899_v26 = vmul.f32 %v3877_v24, %v6845_v10  ;;  %v3885_v0 = vmul.f32 %v5594_v40, %v6943_v8  ;;  %v4139_v10 = vld [vmem:[#allocation13 + $0x78] sm:$0xff]  ;;  %vm3890_vm12 = vweird.f32 %v5594_v40  ;;  %v4535_v2 = vld [vmem:[#allocation11 + $0x148] sm:$0xff] }
 0x5d8   :  { %v4085_v61 = vmul.f32 %v6963_v39, %v6940_v11  ;;  %4394 = vmatpush.msra.mxu2 %v4139_v10  ;;  %vm3891_vm14 = vmor %vm3889_vm13, %vm3890_vm12  ;;  %4355 = vmatpush.msrb.mxu0 %v4134_v45  ;;  %v4034_v33 = vpop.f32.mrf.mxu2  ;;  %vm4090_vm0 = vweird.f32 %v6963_v39  ;;  %v4096_v11 = vor.u32 1.1754944e-38, %v4095_v6  ;;  %v4537_v10 = vld [vmem:[#allocation11 + $0x158] sm:$0xff]  ;;  %v4556_v6 = vld [vmem:[#allocation11 + $0x1f0] sm:$0xff] }
 0x5d9   :  { %v6967_v59 = vadd.f32 %v3900_v56, %v3899_v26  ;;  %v3886_v14 = vsub.f32 1.0, %v3885_v0  ;;  %v4059_v1 = vadd.f32 %v4034_v33, %v339_v19  ;;  %vm6998_vm2 = vmor %vm4089_vm1, %vm4090_vm0  ;;  %v4539_v56 = vld [vmem:[#allocation11 + $0x168] sm:$0xff]  ;;  %v4541_v0 = vld [vmem:[#allocation11 + $0x178] sm:$0xff] }
 0x5da   :  { %4395 = vmatpush.msra.mxu2 %v4135_v37  ;;  %v4086_v60 = vsub.f32 1.0, %v4085_v61  ;;  %4356 = vmatpush.msrb.mxu0 %v4130_v18  ;;  %v4533_v45 = vld [vmem:[#allocation11 + $0x138] sm:$0xff] }
 0x5db   :  { %5599 = vtanh.f32 %v6967_v59  ;;  %v3887_v35 = vmul.f32 %v5594_v40, %v3886_v14  ;;  %v4517_v33 = vld [vmem:[#allocation11 + $0xb8] sm:$0xff] }
 0x5dc   :  { %v5598_v23 = vpop.eup %5597  ;;  %5601 = vrcp.f32 %v6971_v7  ;;  %4396 = vmatpush.msra.mxu2 %v4131_v13  ;;  %4357 = vmatpush.msrb.mxu0 %v4126_v29  ;;  %v4087_v22 = vmul.f32 %v6963_v39, %v4086_v60  ;;  %v4527_v13 = vld [vmem:[#allocation11 + $0x108] sm:$0xff]  ;;  %v4529_v60 = vld [vmem:[#allocation11 + $0x118] sm:$0xff] }
 0x5dd   :  { %v3888_v43 = vadd.f32 %v5594_v40, %v3887_v35  ;;  %v6977_v3 = vadd.f32 1.0, %v5598_v23  ;;  %v4525_v29 = vld [vmem:[#allocation11 + $0xf8] sm:$0xff] }
 0x5de   :  { %4397 = vmatpush.msra.mxu2 %v4127_v48  ;;  %v4088_v57 = vadd.f32 %v6963_v39, %v4087_v22  ;;  %v4515_v22 = vld [vmem:[#allocation11 + $0xa8] sm:$0xff] }
 0x5df   :  { %v3892_v62 = vsel %vm3891_vm14, %v5594_v40, %v3888_v43  ;;  %5603 = vrcp.f32 %v6977_v3  ;;  %v4545_v40 = vld [vmem:[#allocation11 + $0x198] sm:$0xff]  ;;  %v4076_v26 = vand.u32 2147483648, %v6977_v3  ;;  %v4074_v34 = vand.u32 2147483647, %v6977_v3 }
 0x5e0   :  { %v3897_v21 = vsel %vm3894_vm15, %v3896_v53, %v3892_v62  ;;  %5605 = vtanh.f32 %v4059_v1  ;;  %v4092_v14 = vsel %vm6998_vm2, %v6963_v39, %v4088_v57  ;;  %vm4070_vm4 = vweird.f32 %v6977_v3  ;;  %v4523_v62 = vld [vmem:[#allocation11 + $0xe8] sm:$0xff]  ;;  %v4554_v57 = vld [vmem:[#allocation11 + $0x1e0] sm:$0xff] }
 0x5e1   :  { %v5600_v8 = vpop.eup %5599  ;;  %v4077_v38 = vor.u32 1.1754944e-38, %v4076_v26  ;;  %v4097_v39 = vsel %vm4094_vm5, %v4096_v11, %v4092_v14  ;;  %vm4075_vm7 = vcmp.eq.f32.partialorder %v4074_v34, 8.507059e+37  ;;  %v4507_v1 = vld [vmem:[#allocation11 + $0x68] sm:$0xff]  ;;  %v4548_v26 = vld [vmem:[#allocation11 + $0x1b0] sm:$0xff]  ;;  %v4538_v14 = vld [vmem:[#allocation11 + $0x160] sm:$0xff] }
 0x5e2   :  { %v6981_v12 = vmul.f32 %v5600_v8, %v3897_v21  ;;  %v6988_v46 = vpop.eup %5601  ;;  %v4519_v21 = vld [vmem:[#allocation11 + $0xc8] sm:$0xff]  ;;  %v4544_v34 = vld [vmem:[#allocation11 + $0x190] sm:$0xff] }
 0x5e3   :  { %v4105_v5 = vmul.f32 %v6988_v46, %v6971_v7  ;;  %vm4110_vm8 = vweird.f32 %v6988_v46  ;;  %v4540_v11 = vld [vmem:[#allocation11 + $0x170] sm:$0xff] }
 0x5e4   :  { %4298 = vmatmul.f32.vlgmr.msra.gmra.mxu1 %v6981_v12  ;;  %4338 = vmatmul.f32.vlgmr.msrb.gmra.mxu3 %v6981_v12  ;;  %vm4111_vm10 = vmor %vm4109_vm9, %vm4110_vm8 }
 0x5e5   :  { %4578 = vmatpush.msra.mxu1 %v4555_v31  ;;  %4618 = vmatpush.msrb.mxu3 %v4557_v36  ;;  %v5604_v15 = vpop.eup %5603  ;;  %v4106_v61 = vsub.f32 1.0, %v4105_v5  ;;  %v4521_v31 = vld [vmem:[#allocation11 + $0xd8] sm:$0xff]  ;;  %v4115_v36 = vand.u32 2147483648, %v6971_v7  ;;  %v4503_v5 = vld [vmem:[#allocation11 + $0x48] sm:$0xff] }
 0x5e6   :  { %v4066_v30 = vmul.f32 %v5604_v15, %v6977_v3  ;;  %vm4071_vm3 = vweird.f32 %v5604_v15  ;;  %v5606_v23 = vpop.eup %5605  ;;  %v4119_v3 = vmul.f32 %v4097_v39, %v6891_v32  ;;  %v4113_v32 = vand.u32 2147483647, %v6971_v7  ;;  %v4526_v39 = vld [vmem:[#allocation11 + $0x100] sm:$0xff] }
 0x5e7   :  { %4579 = vmatpush.msra.mxu1 %v4551_v16  ;;  %4619 = vmatpush.msrb.mxu3 %v4553_v52  ;;  %vm4072_vm6 = vmor %vm4070_vm4, %vm4071_vm3  ;;  %v4107_v43 = vmul.f32 %v6988_v46, %v4106_v61  ;;  %v4511_v16 = vld [vmem:[#allocation11 + $0x88] sm:$0xff]  ;;  %v4513_v52 = vld [vmem:[#allocation11 + $0x98] sm:$0xff] }
 0x5e8   :  { %v4067_v24 = vsub.f32 1.0, %v4066_v30  ;;  %vm4114_vm11 = vcmp.eq.f32.partialorder %v4113_v32, 8.507059e+37  ;;  %v4534_v61 = vld [vmem:[#allocation11 + $0x140] sm:$0xff]  ;;  %v4496_v32 = vld [vmem:[#allocation11 + $0x10] sm:$0xff] }
 0x5e9   :  { %4580 = vmatpush.msra.mxu1 %v4547_v44  ;;  %4620 = vmatpush.msrb.mxu3 %v4549_v55  ;;  %v4108_v8 = vadd.f32 %v6988_v46, %v4107_v43  ;;  %v4509_v44 = vld [vmem:[#allocation11 + $0x78] sm:$0xff]  ;;  %v4520_v43 = vld [vmem:[#allocation11 + $0xd0] sm:$0xff] }
 0x5ea   :  { %v4068_v54 = vmul.f32 %v5604_v15, %v4067_v24  ;;  %v4499_v24 = vld [vmem:[#allocation11 + $0x28] sm:$0xff] }
 0x5eb   :  { %4581 = vmatpush.msra.mxu1 %v4543_v20  ;;  %4621 = vmatpush.msrb.mxu3 %v4545_v40  ;;  %v4112_v19 = vsel %vm4111_vm10, %v6988_v46, %v4108_v8  ;;  %v4505_v46 = vld [vmem:[#allocation11 + $0x58] sm:$0xff]  ;;  %v4550_v20 = vld [vmem:[#allocation11 + $0x1c0] sm:$0xff]  ;;  %v4552_v40 = vld [vmem:[#allocation11 + $0x1d0] sm:$0xff] }
 0x5ec   :  { %4378 = vmatmul.f32.vlgmr.msrb.gmra.mxu1 %v6981_v12  ;;  %4418 = vmatmul.f32.vlgmr.msra.gmra.mxu3 %v6981_v12  ;;  %v4069_v35 = vadd.f32 %v5604_v15, %v4068_v54  ;;  %v4542_v54 = vld [vmem:[#allocation11 + $0x180] sm:$0xff]  ;;  %v4504_v8 = vld [vmem:[#allocation11 + $0x50] sm:$0xff] }
 0x5ed   :  { %4582 = vmatpush.msra.mxu1 %v4539_v56  ;;  %4622 = vmatpush.msrb.mxu3 %v4541_v0  ;;  %v4495_v56 = vld [vmem:[#allocation11 + $0x8] sm:$0xff]  ;;  %v4497_v0 = vld [vmem:[#allocation11 + $0x18] sm:$0xff] }
 0x5ee   :  { %v4073_v37 = vsel %vm4072_vm6, %v5604_v15, %v4069_v35  ;;  %v4116_v15 = vor.u32 1.1754944e-38, %v4115_v36  ;;  %v4530_v35 = vld [vmem:[#allocation11 + $0x120] sm:$0xff] }
 0x5ef   :  { %4583 = vmatpush.msra.mxu1 %v4535_v2  ;;  %4623 = vmatpush.msrb.mxu3 %v4537_v10  ;;  %v4078_v18 = vsel %vm4075_vm7, %v4077_v38, %v4073_v37  ;;  %v5086_v2 = vld [vmem:[%s7195_s1 + $0x30] sm:$0xff]  ;;  %v4494_v36 = vld [vmem:[#allocation11] sm:$0xff] }
 0x5f0   :  { %v4120_v53 = vmul.f32 %v5606_v23, %v4078_v18  ;;  %v4117_v30 = vsel %vm4114_vm11, %v4116_v15, %v4112_v19  ;;  %v4536_v10 = vld [vmem:[#allocation11 + $0x150] sm:$0xff]  ;;  %5120 = vperm.xlu0 %5396, %v5086_v2   ;;  %v4518_v23 = vld [vmem:[#allocation11 + $0xc0] sm:$0xff]  ;;  %v4822_v15 = vld [vmem:[#allocation13 + $0x3a8] sm:$0xff] }
 0x5f1   :  { %4584 = vmatpush.msra.mxu1 %v4531_v47  ;;  %4624 = vmatpush.msrb.mxu3 %v4533_v45  ;;  %v4532_v38 = vld [vmem:[#allocation11 + $0x130] sm:$0xff]  ;;  %v4522_v45 = vld [vmem:[#allocation11 + $0xe0] sm:$0xff]  ;;  %v4786_v2 = vld [vmem:[#allocation13 + $0x288] sm:$0xff] }
 0x5f2   :  { %v7013_v48 = vadd.f32 %v4120_v53, %v4119_v3  ;;  %v4528_v47 = vld [vmem:[#allocation11 + $0x110] sm:$0xff]  ;;  %v4514_v18 = vld [vmem:[#allocation11 + $0xa0] sm:$0xff] }
 0x5f3   :  { %4585 = vmatpush.msra.mxu1 %v4527_v13  ;;  %4625 = vmatpush.msrb.mxu3 %v4529_v60  ;;  %v4524_v37 = vld [vmem:[#allocation11 + $0xf0] sm:$0xff]  ;;  %v4510_v60 = vld [vmem:[#allocation11 + $0x80] sm:$0xff] }
 0x5f4   :  { %5607 = vtanh.f32 %v7013_v48  ;;  %v4516_v13 = vld [vmem:[#allocation11 + $0xb0] sm:$0xff]  ;;  %v4506_v53 = vld [vmem:[#allocation11 + $0x60] sm:$0xff] }
 0x5f5   :  { %4586 = vmatpush.msra.mxu1 %v4523_v62  ;;  %4626 = vmatpush.msrb.mxu3 %v4525_v29  ;;  %v4512_v3 = vld [vmem:[#allocation11 + $0x90] sm:$0xff]  ;;  %v4502_v29 = vld [vmem:[#allocation11 + $0x40] sm:$0xff] }
 0x5f6   :  { %v4508_v62 = vld [vmem:[#allocation11 + $0x70] sm:$0xff]  ;;  %v4825_v19 = vld [vmem:[#allocation13 + $0x3c0] sm:$0xff] }
 0x5f7   :  { %4587 = vmatpush.msra.mxu1 %v4519_v21  ;;  %4627 = vmatpush.msrb.mxu3 %v4521_v31  ;;  %v4498_v21 = vld [vmem:[#allocation11 + $0x20] sm:$0xff]  ;;  %v4500_v31 = vld [vmem:[#allocation11 + $0x30] sm:$0xff] }
 0x5f9   :  { %4588 = vmatpush.msra.mxu1 %v4515_v22  ;;  %4628 = vmatpush.msrb.mxu3 %v4517_v33  ;;  %v4829_v22 = vld [vmem:[#allocation13 + $0x3e0] sm:$0xff]  ;;  %v4830_v33 = vld [vmem:[#allocation13 + $0x3e8] sm:$0xff] }
 0x5fa   :  { %v5608_v55 = vpop.eup %5607 }
 0x5fb   :  { %4589 = vmatpush.msra.mxu1 %v4511_v16  ;;  %4629 = vmatpush.msrb.mxu3 %v4513_v52  ;;  %v7022_v7 = vmul.f32 %v5608_v55, %v4117_v30  ;;  %v4826_v16 = vld [vmem:[#allocation13 + $0x3c8] sm:$0xff]  ;;  %v4821_v52 = vld [vmem:[#allocation13 + $0x3a0] sm:$0xff] }
 0x5fc   :  { %v4813_v55 = vld [vmem:[#allocation13 + $0x360] sm:$0xff]  ;;  %v4814_v30 = vld [vmem:[#allocation13 + $0x368] sm:$0xff] }
 0x5fd   :  { %4590 = vmatpush.msra.mxu1 %v4507_v1  ;;  %4630 = vmatpush.msrb.mxu3 %v4509_v44  ;;  %v4817_v1 = vld [vmem:[#allocation13 + $0x380] sm:$0xff]  ;;  %v4818_v44 = vld [vmem:[#allocation13 + $0x388] sm:$0xff] }
 0x5fe   :  { %4278 = vmatmul.f32.vlgmr.msra.gmra.mxu0 %v7022_v7  ;;  %4318 = vmatmul.f32.vlgmr.msrb.gmra.mxu2 %v7022_v7 }
 0x5ff   :  { %4558 = vmatpush.msra.mxu0 %v4554_v57  ;;  %4598 = vmatpush.msrb.mxu2 %v4556_v6  ;;  %v4810_v57 = vld [vmem:[#allocation13 + $0x348] sm:$0xff]  ;;  %v4805_v6 = vld [vmem:[#allocation13 + $0x320] sm:$0xff] }
 0x600   :  { %4591 = vmatpush.msra.mxu1 %v4503_v5  ;;  %4631 = vmatpush.msrb.mxu3 %v4505_v46  ;;  %v4806_v5 = vld [vmem:[#allocation13 + $0x328] sm:$0xff]  ;;  %v4801_v46 = vld [vmem:[#allocation13 + $0x300] sm:$0xff] }
 0x601   :  { %4559 = vmatpush.msra.mxu0 %v4550_v20  ;;  %4599 = vmatpush.msrb.mxu2 %v4552_v40  ;;  %v4802_v20 = vld [vmem:[#allocation13 + $0x308] sm:$0xff]  ;;  %v4765_v40 = vld [vmem:[#allocation13 + $0x1e0] sm:$0xff] }
 0x602   :  { %4592 = vmatpush.msra.mxu1 %v4499_v24  ;;  %4632 = vmatpush.msrb.mxu3 %v4501_v9  ;;  %v4797_v24 = vld [vmem:[#allocation13 + $0x2e0] sm:$0xff]  ;;  %v4798_v9 = vld [vmem:[#allocation13 + $0x2e8] sm:$0xff] }
 0x603   :  { %4560 = vmatpush.msra.mxu0 %v4546_v4  ;;  %4600 = vmatpush.msrb.mxu2 %v4548_v26  ;;  %v4761_v4 = vld [vmem:[#allocation13 + $0x1c0] sm:$0xff] }
 0x604   :  { %4593 = vmatpush.msra.mxu1 %v4495_v56  ;;  %4633 = vmatpush.msrb.mxu3 %v4497_v0  ;;  %v4793_v26 = vld [vmem:[#allocation13 + $0x2c0] sm:$0xff]  ;;  %v4794_v56 = vld [vmem:[#allocation13 + $0x2c8] sm:$0xff] }
 0x605   :  { %4561 = vmatpush.msra.mxu0 %v4542_v54  ;;  %4601 = vmatpush.msrb.mxu2 %v4544_v34  ;;  %v4757_v0 = vld [vmem:[#allocation13 + $0x1a0] sm:$0xff] }
 0x606   :  { %4358 = vmatmul.f32.vlgmr.msrb.gmra.mxu0 %v7022_v7  ;;  %4398 = vmatmul.f32.vlgmr.msra.gmra.mxu2 %v7022_v7  ;;  %v4789_v34 = vld [vmem:[#allocation13 + $0x2a0] sm:$0xff] }
 0x607   :  { %4562 = vmatpush.msra.mxu0 %v4538_v14  ;;  %4594 = vmatmul.f32.vlgmr.msra.gmra.mxu1 %v7022_v7  ;;  %v4790_v14 = vld [vmem:[#allocation13 + $0x2a8] sm:$0xff] }
 0x608   :  { %4602 = vmatpush.msrb.mxu2 %v4540_v11  ;;  %4634 = vmatmul.f32.vlgmr.msrb.gmra.mxu3 %v7022_v7  ;;  %v4753_v11 = vld [vmem:[#allocation13 + $0x180] sm:$0xff] }
 0x609   :  { %4563 = vmatpush.msra.mxu0 %v4534_v61  ;;  %4863 = vmatpush.msrb.mxu1 %v4829_v22  ;;  %v4785_v61 = vld [vmem:[#allocation13 + $0x280] sm:$0xff] }
 0x60a   :  { %4603 = vmatpush.msrb.mxu2 %v4536_v10  ;;  %4903 = vmatpush.msra.mxu3 %v4830_v33  ;;  %v7035_v10 = vld [vmem:[#allocation14] sm:$0xf]  ;;  %v4750_v33 = vld [vmem:[#allocation13 + $0x168] sm:$0xff] }
 0x60b   :  { %4564 = vmatpush.msra.mxu0 %v4530_v35  ;;  %4864 = vmatpush.msrb.mxu1 %v4825_v19  ;;  %v4749_v35 = vld [vmem:[#allocation13 + $0x160] sm:$0xff]  ;;  %v4831_v19 = vld [vmem:[#allocation13 + $0x3f0] sm:$0xff] }
 0x60c   :  { %4604 = vmatpush.msrb.mxu2 %v4532_v38  ;;  %4904 = vmatpush.msra.mxu3 %v4826_v16  ;;  %v4766_v38 = vld [vmem:[#allocation13 + $0x1e8] sm:$0xff]  ;;  %v4733_v22 = vld [vmem:[#allocation13 + $0xe0] sm:$0xff] }
 0x60d   :  { %4565 = vmatpush.msra.mxu0 %v4526_v39  ;;  %4865 = vmatpush.msrb.mxu1 %v4821_v52  ;;  %v4781_v39 = vld [vmem:[#allocation13 + $0x260] sm:$0xff] }
 0x60e   :  { %4605 = vmatpush.msrb.mxu2 %v4528_v47  ;;  %4905 = vmatpush.msra.mxu3 %v4822_v15  ;;  %v4782_v47 = vld [vmem:[#allocation13 + $0x268] sm:$0xff]  ;;  %v4255_v15 = vperm.slane %v7035_v10, 1 }
 0x60f   :  { %4566 = vmatpush.msra.mxu0 %v4522_v45  ;;  %4866 = vmatpush.msrb.mxu1 %v4817_v1  ;;  %v4745_v45 = vld [vmem:[#allocation13 + $0x140] sm:$0xff]  ;;  %v4832_v1 = vld [vmem:[#allocation13 + $0x3f8] sm:$0xff] }
 0x610   :  { %4606 = vmatpush.msrb.mxu2 %v4524_v37  ;;  %4906 = vmatpush.msra.mxu3 %v4818_v44  ;;  %v4762_v37 = vld [vmem:[#allocation13 + $0x1c8] sm:$0xff]  ;;  %v4729_v44 = vld [vmem:[#allocation13 + $0xc0] sm:$0xff] }
 0x611   :  { %4567 = vmatpush.msra.mxu0 %v4518_v23  ;;  %4867 = vmatpush.msrb.mxu1 %v4813_v55  ;;  %v4254_v23 = vperm.slane %v7035_v10, 0  ;;  %v4746_v55 = vld [vmem:[#allocation13 + $0x148] sm:$0xff] }
 0x612   :  { %4607 = vmatpush.msrb.mxu2 %v4520_v43  ;;  %4907 = vmatpush.msra.mxu3 %v4814_v30  ;;  %v4777_v43 = vld [vmem:[#allocation13 + $0x240] sm:$0xff]  ;;  %v4827_v30 = vld [vmem:[#allocation13 + $0x3d0] sm:$0xff] }
 0x613   :  { %4568 = vmatpush.msra.mxu0 %v4514_v18  ;;  %v4778_v18 = vld [vmem:[#allocation13 + $0x248] sm:$0xff] }
 0x614   :  { %4608 = vmatpush.msrb.mxu2 %v4516_v13  ;;  %4908 = vmatpush.msra.mxu3 %v4810_v57  ;;  %v4741_v13 = vld [vmem:[#allocation13 + $0x120] sm:$0xff]  ;;  %v4828_v57 = vld [vmem:[#allocation13 + $0x3d8] sm:$0xff] }
 0x615   :  { %4569 = vmatpush.msra.mxu0 %v4510_v60  ;;  %v4758_v60 = vld [vmem:[#allocation13 + $0x1a8] sm:$0xff] }
 0x616   :  { %4609 = vmatpush.msrb.mxu2 %v4512_v3  ;;  %4909 = vmatpush.msra.mxu3 %v4806_v5  ;;  %v4773_v3 = vld [vmem:[#allocation13 + $0x220] sm:$0xff] }
 0x617   :  { %4570 = vmatpush.msra.mxu0 %v4506_v53  ;;  %v4774_v53 = vld [vmem:[#allocation13 + $0x228] sm:$0xff]  ;;  %v4725_v5 = vld [vmem:[#allocation13 + $0xa0] sm:$0xff] }
 0x618   :  { %4610 = vmatpush.msrb.mxu2 %v4508_v62  ;;  %4910 = vmatpush.msra.mxu3 %v4802_v20  ;;  %v4823_v20 = vld [vmem:[#allocation13 + $0x3b0] sm:$0xff] }
 0x619   :  { %4571 = vmatpush.msra.mxu0 %v4502_v29  ;;  %v4737_v29 = vld [vmem:[#allocation13 + $0x100] sm:$0xff] }
 0x61a   :  { %4611 = vmatpush.msrb.mxu2 %v4504_v8  ;;  %4911 = vmatpush.msra.mxu3 %v4798_v9  ;;  %v4754_v8 = vld [vmem:[#allocation13 + $0x188] sm:$0xff]  ;;  %v4721_v9 = vld [vmem:[#allocation13 + $0x80] sm:$0xff] }
 0x61b   :  { %4572 = vmatpush.msra.mxu0 %v4498_v21 }
 0x61c   :  { %4612 = vmatpush.msrb.mxu2 %v4500_v31  ;;  %4912 = vmatpush.msra.mxu3 %v4794_v56 }
 0x61d   :  { %4573 = vmatpush.msra.mxu0 %v4494_v36  ;;  %v4769_v36 = vld [vmem:[#allocation13 + $0x200] sm:$0xff] }
 0x61e   :  { %4613 = vmatpush.msrb.mxu2 %v4496_v32  ;;  %4574 = vmatmul.f32.vlgmr.msra.gmra.mxu0 %v7022_v7  ;;  %v4770_v32 = vld [vmem:[#allocation13 + $0x208] sm:$0xff] }
 0x61f   :  { %4614 = vmatmul.f32.vlgmr.msrb.gmra.mxu2 %v7022_v7  ;;  %v4809_v7 = vld [vmem:[#allocation13 + $0x340] sm:$0xff]  ;;  %4843 = vmatpush.msrb.mxu0 %v4765_v40 }
 0x620   :  { %4868 = vmatpush.msrb.mxu1 %v4809_v7  ;;  %4913 = vmatpush.msra.mxu3 %v4790_v14 }
 0x621   :  { %4844 = vmatpush.msrb.mxu0 %v4761_v4  ;;  %4883 = vmatpush.msra.mxu2 %v4766_v38  ;;  %v4738_v4 = vld [vmem:[#allocation13 + $0x108] sm:$0xff]  ;;  %v4257_v38 = vperm.slane %v7035_v10, 3 }
 0x622   :  { %4869 = vmatpush.msrb.mxu1 %v4805_v6  ;;  %4914 = vmatpush.msra.mxu3 %v4786_v2  ;;  %v4815_v2 = vld [vmem:[#allocation13 + $0x370] sm:$0xff] }
 0x623   :  { %4845 = vmatpush.msrb.mxu0 %v4757_v0  ;;  %4884 = vmatpush.msra.mxu2 %v4762_v37  ;;  %v4730_v37 = vld [vmem:[#allocation13 + $0xc8] sm:$0xff] }
 0x624   :  { %4870 = vmatpush.msrb.mxu1 %v4801_v46  ;;  %4915 = vmatpush.msra.mxu3 %v4782_v47  ;;  %v4742_v46 = vld [vmem:[#allocation13 + $0x128] sm:$0xff] }
 0x625   :  { %4846 = vmatpush.msrb.mxu0 %v4753_v11  ;;  %4885 = vmatpush.msra.mxu2 %v4758_v60  ;;  %v4717_v11 = vld [vmem:[#allocation13 + $0x60] sm:$0xff] }
 0x626   :  { %4871 = vmatpush.msrb.mxu1 %v4797_v24  ;;  %4916 = vmatpush.msra.mxu3 %v4778_v18  ;;  %v4824_v24 = vld [vmem:[#allocation13 + $0x3b8] sm:$0xff] }
 0x627   :  { %4847 = vmatpush.msrb.mxu0 %v4749_v35  ;;  %4886 = vmatpush.msra.mxu2 %v4754_v8  ;;  %v4808_v8 = vld [vmem:[#allocation13 + $0x338] sm:$0xff] }
 0x628   :  { %4872 = vmatpush.msrb.mxu1 %v4793_v26  ;;  %4917 = vmatpush.msra.mxu3 %v4774_v53  ;;  %v4819_v26 = vld [vmem:[#allocation13 + $0x390] sm:$0xff]  ;;  %v4726_v53 = vld [vmem:[#allocation13 + $0xa8] sm:$0xff] }
 0x629   :  { %4848 = vmatpush.msrb.mxu0 %v4745_v45  ;;  %4887 = vmatpush.msra.mxu2 %v4750_v33  ;;  %v4713_v45 = vld [vmem:[#allocation13 + $0x40] sm:$0xff] }
 0x62a   :  { %4873 = vmatpush.msrb.mxu1 %v4789_v34  ;;  %4918 = vmatpush.msra.mxu3 %v4770_v32  ;;  %v7263_v34 = vld [vmem:[#allocation32_spill] sm:$0xff]  ;;  %v4722_v32 = vld [vmem:[#allocation13 + $0x88] sm:$0xff] }
 0x62b   :  { %4849 = vmatpush.msrb.mxu0 %v4741_v13  ;;  %4888 = vmatpush.msra.mxu2 %v4746_v55  ;;  %v301_v14 = vadd.f32 %v7263_v34, %v6170_v51  ;;  %v4812_v51 = vld [vmem:[#allocation13 + $0x358] sm:$0xff]  ;;  %v4256_v55 = vperm.slane %v7035_v10, 2  ;;  %v383_v10 = vadd.f32 %v6212_v28, %v6219_v58  ;;  %v4755_v34 = vld [vmem:[#allocation13 + $0x190] sm:$0xff] }
 0x62c   :  { %4874 = vmatpush.msrb.mxu1 %v4785_v61  ;;  %4983 = vmatpush.msrb.mxu3 %v4832_v1  ;;  %v4734_v61 = vld [vmem:[#allocation13 + $0xe8] sm:$0xff]  ;;  %v4800_v1 = vld [vmem:[#allocation13 + $0x2f8] sm:$0xff] }
 0x62d   :  { %4850 = vmatpush.msrb.mxu0 %v4737_v29  ;;  %4889 = vmatpush.msra.mxu2 %v4742_v46  ;;  %v4795_v46 = vld [vmem:[#allocation13 + $0x2d0] sm:$0xff]  ;;  %v4788_v58 = vld [vmem:[#allocation13 + $0x298] sm:$0xff] }
 0x62e   :  { %4875 = vmatpush.msrb.mxu1 %v4781_v39  ;;  %4984 = vmatpush.msrb.mxu3 %v4828_v57  ;;  %v4816_v39 = vld [vmem:[#allocation13 + $0x378] sm:$0xff] }
 0x62f   :  { %4851 = vmatpush.msrb.mxu0 %v4733_v22  ;;  %4890 = vmatpush.msra.mxu2 %v4738_v4  ;;  %v4803_v22 = vld [vmem:[#allocation13 + $0x310] sm:$0xff]  ;;  %v4710_v4 = vld [vmem:[#allocation13 + $0x28] sm:$0xff] }
 0x630   :  { %4876 = vmatpush.msrb.mxu1 %v4777_v43  ;;  %4985 = vmatpush.msrb.mxu3 %v4824_v24  ;;  %v4759_v24 = vld [vmem:[#allocation13 + $0x1b0] sm:$0xff] }
 0x631   :  { %4852 = vmatpush.msrb.mxu0 %v4729_v44  ;;  %4891 = vmatpush.msra.mxu2 %v4734_v61  ;;  %v4787_v61 = vld [vmem:[#allocation13 + $0x290] sm:$0xff] }
 0x632   :  { %4877 = vmatpush.msrb.mxu1 %v4773_v3  ;;  %v4709_v3 = vld [vmem:[#allocation13 + $0x20] sm:$0xff] }
 0x633   :  { %4853 = vmatpush.msrb.mxu0 %v4725_v5  ;;  %4892 = vmatpush.msra.mxu2 %v4730_v37  ;;  %v4714_v5 = vld [vmem:[#allocation13 + $0x48] sm:$0xff] }
 0x634   :  { %4878 = vmatpush.msrb.mxu1 %v4769_v36  ;;  %v4705_v36 = vld [vmem:[#allocation13] sm:$0xff] }
 0x635   :  { %4854 = vmatpush.msrb.mxu0 %v4721_v9  ;;  %4893 = vmatpush.msra.mxu2 %v4726_v53  ;;  %v4779_v53 = vld [vmem:[#allocation13 + $0x250] sm:$0xff] }
 0x636   :  { %4943 = vmatpush.msra.mxu1 %v4831_v19  ;;  %v4804_v19 = vld [vmem:[#allocation13 + $0x318] sm:$0xff] }
 0x637   :  { %4855 = vmatpush.msrb.mxu0 %v4717_v11  ;;  %4894 = vmatpush.msra.mxu2 %v4722_v32  ;;  %v4706_v11 = vld [vmem:[#allocation13 + $0x8] sm:$0xff] }
 0x638   :  { %4944 = vmatpush.msra.mxu1 %v4827_v30 }
 0x639   :  { %4856 = vmatpush.msrb.mxu0 %v4713_v45 }
 0x63a   :  { %4945 = vmatpush.msra.mxu1 %v4823_v20  ;;  %v4796_v20 = vld [vmem:[#allocation13 + $0x2d8] sm:$0xff] }
 0x63b   :  { %4857 = vmatpush.msrb.mxu0 %v4709_v3 }
 0x63c   :  { %4946 = vmatpush.msra.mxu1 %v4819_v26  ;;  %v4791_v26 = vld [vmem:[#allocation13 + $0x2b0] sm:$0xff] }
 0x63d   :  { %4858 = vmatpush.msrb.mxu0 %v4705_v36  ;;  %v4760_v36 = vld [vmem:[#allocation13 + $0x1b8] sm:$0xff] }
 0x63e   :  { %4947 = vmatpush.msra.mxu1 %v4815_v2  ;;  %v4751_v2 = vld [vmem:[#allocation13 + $0x170] sm:$0xff] }
 0x661   :  { %v4299_v54 = vpop.f32.mrf.mxu1 }
 0x667   :  { %v4339_v16 = vpop.f32.mrf.mxu3 }
 0x669   :  { %v7038_v21 = vpop.f32.mrf.mxu1 }
 0x66f   :  { %v4419_v18 = vpop.f32.mrf.mxu3 }
 0x67b   :  { %v4279_v62 = vpop.f32.mrf.mxu0 }
 0x67c   :  { %v4280_v31 = vadd.f32 %v4279_v62, %v4254_v23  ;;  %v4811_v23 = vld [vmem:[#allocation13 + $0x350] sm:$0xff] }
 0x67d   :  { %4948 = vmatpush.msra.mxu1 %v4811_v23  ;;  %v4807_v62 = vld [vmem:[#allocation13 + $0x330] sm:$0xff] }
 0x67e   :  { %v4300_v52 = vadd.f32 %v4299_v54, %v4280_v31  ;;  %v4820_v54 = vld [vmem:[#allocation13 + $0x398] sm:$0xff] }
 0x67f   :  { %4986 = vmatpush.msrb.mxu3 %v4820_v54  ;;  %4949 = vmatpush.msra.mxu1 %v4807_v62  ;;  %v4780_v62 = vld [vmem:[#allocation13 + $0x258] sm:$0xff] }
 0x680   :  { %v5342_v7 = vmul.f32 -1.442695, %v4300_v52  ;;  %v4718_v52 = vld [vmem:[#allocation13 + $0x68] sm:$0xff] }
 0x681   :  { %v4319_v6 = vpop.f32.mrf.mxu2  ;;  %4987 = vmatpush.msrb.mxu3 %v4816_v39  ;;  %4950 = vmatpush.msra.mxu1 %v4803_v22  ;;  %v4783_v39 = vld [vmem:[#allocation13 + $0x270] sm:$0xff] }
 0x682   :  { %5609 = vpow2.f32 %v5342_v7  ;;  %v4320_v40 = vadd.f32 %v4319_v6, %v4255_v15  ;;  %v4799_v15 = vld [vmem:[#allocation13 + $0x2f0] sm:$0xff]  ;;  %4895 = vmatpush.msra.mxu2 %v4718_v52 }
 0x683   :  { %4988 = vmatpush.msrb.mxu3 %v4812_v51  ;;  %v4763_v7 = vld [vmem:[#allocation13 + $0x1d0] sm:$0xff]  ;;  %v4359_v6 = vpop.f32.mrf.mxu0  ;;  %4951 = vmatpush.msra.mxu1 %v4799_v15  ;;  %v4756_v15 = vld [vmem:[#allocation13 + $0x198] sm:$0xff] }
 0x684   :  { %v4340_v56 = vadd.f32 %v4339_v16, %v4320_v40  ;;  %v4595_v0 = vpop.f32.mrf.mxu1  ;;  %v4767_v16 = vld [vmem:[#allocation13 + $0x1f0] sm:$0xff]  ;;  %4896 = vmatpush.msra.mxu2 %v4714_v5  ;;  %v4360_v54 = vadd.f32 %v4359_v6, %v4256_v55  ;;  %v4772_v5 = vld [vmem:[#allocation13 + $0x218] sm:$0xff] }
 0x685   :  { %v4639_v47 = vadd.f32 %v4595_v0, %v301_v14  ;;  %4989 = vmatpush.msrb.mxu3 %v4808_v8  ;;  %4923 = vmatpush.msra.mxu0 %v4767_v16  ;;  %v4775_v22 = vld [vmem:[#allocation13 + $0x230] sm:$0xff] }
 0x686   :  { %v5343_v35 = vmul.f32 -1.442695, %v4340_v56  ;;  %4952 = vmatpush.msra.mxu1 %v4795_v46  ;;  %v4792_v56 = vld [vmem:[#allocation13 + $0x2b8] sm:$0xff]  ;;  %4897 = vmatpush.msra.mxu2 %v4710_v4  ;;  %v4380_v37 = vadd.f32 %v7038_v21, %v4360_v54  ;;  %v4739_v52 = vld [vmem:[#allocation13 + $0x110] sm:$0xff] }
 0x687   :  { %v5346_v31 = vmul.f32 -1.442695, %v4639_v47  ;;  %4990 = vmatpush.msrb.mxu3 %v4804_v19  ;;  %4924 = vmatpush.msra.mxu0 %v4763_v7  ;;  %v4784_v47 = vld [vmem:[#allocation13 + $0x278] sm:$0xff]  ;;  %v4771_v6 = vld [vmem:[#allocation13 + $0x210] sm:$0xff] }
 0x688   :  { %v5610_v43 = vpop.eup %5609  ;;  %5611 = vpow2.f32 %v5343_v35  ;;  %4953 = vmatpush.msra.mxu1 %v4791_v26  ;;  %4898 = vmatpush.msra.mxu2 %v4706_v11  ;;  %v4768_v35 = vld [vmem:[#allocation13 + $0x1f8] sm:$0xff] }
 0x689   :  { %v7044_v13 = vadd.f32 1.0, %v5610_v43  ;;  %v4399_v60 = vpop.f32.mrf.mxu2  ;;  %4991 = vmatpush.msrb.mxu3 %v4800_v1  ;;  %4925 = vmatpush.msra.mxu0 %v4759_v24  ;;  %v4747_v43 = vld [vmem:[#allocation13 + $0x150] sm:$0xff]  ;;  %v4748_v26 = vld [vmem:[#allocation13 + $0x158] sm:$0xff] }
 0x68a   :  { %v4400_v29 = vadd.f32 %v4399_v60, %v4257_v38  ;;  %4954 = vmatpush.msra.mxu1 %v4787_v61  ;;  %4963 = vmatpush.msrb.mxu2 %v4768_v35  ;;  %v7264_v1 = vld [vmem:[#allocation31_spill] sm:$0xff] }
 0x68b   :  { %5613 = vrcp.f32 %v7044_v13  ;;  %v4635_v40 = vpop.f32.mrf.mxu3  ;;  %4992 = vmatpush.msrb.mxu3 %v4796_v20  ;;  %4926 = vmatpush.msra.mxu0 %v4755_v34  ;;  %v4437_v32 = vand.u32 2147483648, %v7044_v13  ;;  %vm4431_vm13 = vweird.f32 %v7044_v13  ;;  %v4435_v16 = vand.u32 2147483647, %v7044_v13  ;;  %v4735_v20 = vld [vmem:[#allocation13 + $0xf0] sm:$0xff]  ;;  %v4744_v34 = vld [vmem:[#allocation13 + $0x138] sm:$0xff] }
 0x68c   :  { %v4420_v33 = vadd.f32 %v4419_v18, %v4400_v29  ;;  %5615 = vpow2.f32 %v5346_v31  ;;  %v4641_v14 = vadd.f32 %v4635_v40, %v383_v10  ;;  %v4764_v18 = vld [vmem:[#allocation13 + $0x1d8] sm:$0xff]  ;;  %4955 = vmatpush.msra.mxu1 %v4783_v39  ;;  %v4743_v31 = vld [vmem:[#allocation13 + $0x130] sm:$0xff] }
 0x68d   :  { %4993 = vmatpush.msrb.mxu3 %v4792_v56  ;;  %4927 = vmatpush.msra.mxu0 %v4751_v2  ;;  %v4752_v40 = vld [vmem:[#allocation13 + $0x178] sm:$0xff]  ;;  %v4438_v24 = vor.u32 1.1754944e-38, %v4437_v32  ;;  %vm4436_vm1 = vcmp.eq.f32.partialorder %v4435_v16, 8.507059e+37  ;;  %v5657_v61 = vld [vmem:[#allocation13 + $0xd0] sm:$0xff] }
 0x68e   :  { %v5612_v44 = vpop.eup %5611  ;;  %v5344_v30 = vmul.f32 -1.442695, %v4420_v33  ;;  %v5347_v3 = vmul.f32 -1.442695, %v4641_v14  ;;  %4964 = vmatpush.msrb.mxu2 %v4764_v18  ;;  %4956 = vmatpush.msra.mxu1 %v4779_v53  ;;  %v4776_v33 = vld [vmem:[#allocation13 + $0x238] sm:$0xff]  ;;  %v5659_v18 = vld [vmem:[#allocation13 + $0x90] sm:$0xff] }
 0x68f   :  { %v7048_v57 = vadd.f32 1.0, %v5612_v44  ;;  %4994 = vmatpush.msrb.mxu3 %v4788_v58  ;;  %4928 = vmatpush.msra.mxu0 %v4747_v43  ;;  %v260_v44 = vadd.f32 %v7264_v1, %v6165_v50  ;;  %v4740_v2 = vld [vmem:[#allocation13 + $0x118] sm:$0xff] }
 0x690   :  { %5617 = vpow2.f32 %v5344_v30  ;;  %4965 = vmatpush.msrb.mxu2 %v4760_v36  ;;  %4957 = vmatpush.msra.mxu1 %v4775_v22  ;;  %v4728_v36 = vld [vmem:[#allocation13 + $0xb8] sm:$0xff]  ;;  %v5663_v30 = vld [vmem:[#allocation13 + $0x10] sm:$0xff]  ;;  %v5148_v22 = vld [vmem:[#allocation16 + $0x60] sm:$0xff] }
 0x691   :  { %v7050_v9 = vpop.eup %5613  ;;  %5619 = vrcp.f32 %v7048_v57  ;;  %4995 = vmatpush.msrb.mxu3 %v4784_v47  ;;  %4929 = vmatpush.msra.mxu0 %v4743_v31  ;;  %v4456_v55 = vand.u32 2147483648, %v7048_v57  ;;  %v4454_v7 = vand.u32 2147483647, %v7048_v57  ;;  %vm4450_vm0 = vweird.f32 %v7048_v57  ;;  %v4720_v1 = vld [vmem:[#allocation13 + $0x78] sm:$0xff] }
 0x692   :  { %v4427_v0 = vmul.f32 %v7050_v9, %v7044_v13  ;;  %v5616_v38 = vpop.eup %5615  ;;  %vm4432_vm12 = vweird.f32 %v7050_v9  ;;  %4966 = vmatpush.msrb.mxu2 %v4756_v15  ;;  %4958 = vmatpush.msra.mxu1 %v4771_v6 }
 0x693   :  { %v7067_v8 = vadd.f32 1.0, %v5616_v38  ;;  %4996 = vmatpush.msrb.mxu3 %v4780_v62  ;;  %vm7078_vm14 = vmor %vm4431_vm13, %vm4432_vm12  ;;  %4930 = vmatpush.msra.mxu0 %v4739_v52  ;;  %vm4455_vm3 = vcmp.eq.f32.partialorder %v4454_v7, 8.507059e+37  ;;  %v4724_v52 = vld [vmem:[#allocation13 + $0x98] sm:$0xff] }
 0x694   :  { %v4428_v28 = vsub.f32 1.0, %v4427_v0  ;;  %4967 = vmatpush.msrb.mxu2 %v4752_v40 }
 0x695   :  { %4997 = vmatpush.msrb.mxu3 %v4776_v33  ;;  %4931 = vmatpush.msra.mxu0 %v4735_v20  ;;  %v5661_v33 = vld [vmem:[#allocation13 + $0x50] sm:$0xff]  ;;  %v4712_v20 = vld [vmem:[#allocation13 + $0x38] sm:$0xff]  ;;  %vm4670_vm9 = vweird.f32 %v7067_v8 }
 0x696   :  { %v5618_v45 = vpop.eup %5617  ;;  %v4429_v23 = vmul.f32 %v7050_v9, %v4428_v28  ;;  %4968 = vmatpush.msrb.mxu2 %v4748_v26  ;;  %v4676_v26 = vand.u32 2147483648, %v7067_v8 }
 0x697   :  { %v7059_v51 = vpop.eup %5619  ;;  %v7061_v60 = vadd.f32 1.0, %v5618_v45  ;;  %4998 = vmatpush.msrb.mxu3 %v4772_v5  ;;  %4932 = vmatpush.msra.mxu0 %v5657_v61  ;;  %v5658_v45 = vld [vmem:[#allocation13 + $0xb0] sm:$0xff]  ;;  %v4716_v5 = vld [vmem:[#allocation13 + $0x58] sm:$0xff] }
 0x698   :  { %v4446_v29 = vmul.f32 %v7059_v51, %v7048_v57  ;;  %v4430_v21 = vadd.f32 %v7050_v9, %v4429_v23  ;;  %vm4451_vm15 = vweird.f32 %v7059_v51  ;;  %4969 = vmatpush.msrb.mxu2 %v4744_v34 }
 0x699   :  { %5621 = vrcp.f32 %v7061_v60  ;;  %vm4452_vm2 = vmor %vm4450_vm0, %vm4451_vm15  ;;  %4933 = vmatpush.msra.mxu0 %v5658_v45  ;;  %v4476_v53 = vand.u32 2147483648, %v7061_v60  ;;  %vm4470_vm5 = vweird.f32 %v7061_v60  ;;  %v4474_v31 = vand.u32 2147483647, %v7061_v60 }
 0x69a   :  { %v4447_v19 = vsub.f32 1.0, %v4446_v29  ;;  %5623 = vtanh.f32 %v4380_v37  ;;  %v4434_v50 = vsel %vm7078_vm14, %v7050_v9, %v4430_v21  ;;  %v4457_v9 = vor.u32 1.1754944e-38, %v4456_v55  ;;  %v4736_v37 = vld [vmem:[#allocation13 + $0xf8] sm:$0xff]  ;;  %4970 = vmatpush.msrb.mxu2 %v4740_v2  ;;  %v5660_v29 = vld [vmem:[#allocation13 + $0x70] sm:$0xff] }
 0x69b   :  { %5625 = vpow2.f32 %v5347_v3  ;;  %v4575_v13 = vpop.f32.mrf.mxu0  ;;  %v4439_v0 = vsel %vm4436_vm1, %v4438_v24, %v4434_v50  ;;  %4934 = vmatpush.msra.mxu0 %v5659_v18  ;;  %v4477_v15 = vor.u32 1.1754944e-38, %v4476_v53  ;;  %vm4475_vm7 = vcmp.eq.f32.partialorder %v4474_v31, 8.507059e+37  ;;  %v5151_v31 = vld [vmem:[#allocation16 + $0x78] sm:$0xff] }
 0x69c   :  { %v4448_v46 = vmul.f32 %v7059_v51, %v4447_v19  ;;  %5627 = vrcp.f32 %v7067_v8  ;;  %v4638_v10 = vadd.f32 %v4575_v13, %v260_v44  ;;  %4971 = vmatpush.msrb.mxu2 %v4736_v37 }
 0x69d   :  { %4935 = vmatpush.msra.mxu0 %v5660_v29 }
 0x69e   :  { %v4449_v4 = vadd.f32 %v7059_v51, %v4448_v46  ;;  %v5345_v54 = vmul.f32 -1.442695, %v4638_v10  ;;  %v342_v46 = vadd.f32 %v6208_v41, %v6227_v27 }
 0x69f   :  { %v7091_v56 = vpop.eup %5621  ;;  %4936 = vmatpush.msra.mxu0 %v5661_v33  ;;  %v5147_v33 = vld [vmem:[#allocation16 + $0x58] sm:$0xff] }
 0x6a0   :  { %v5624_v14 = vpop.eup %5623  ;;  %v4453_v11 = vsel %vm4452_vm2, %v7059_v51, %v4449_v4  ;;  %v4466_v57 = vmul.f32 %v7091_v56, %v7061_v60  ;;  %5629 = vpow2.f32 %v5345_v54  ;;  %vm4471_vm4 = vweird.f32 %v7091_v56  ;;  %v5662_v60 = vld [vmem:[#allocation13 + $0x30] sm:$0xff]  ;;  %v5664_v54 = vld [vmem:[#allocation13 + $0x18] sm:$0xff] }
 0x6a1   :  { %v5626_v28 = vpop.eup %5625  ;;  %v4458_v58 = vsel %vm4455_vm3, %v4457_v9, %v4453_v11  ;;  %v4481_v39 = vmul.f32 %v5624_v14, %v4439_v0  ;;  %vm7116_vm6 = vmor %vm4470_vm5, %vm4471_vm4  ;;  %4937 = vmatpush.msra.mxu0 %v5662_v60  ;;  %v5141_v60 = vld [vmem:[#allocation16 + $0x28] sm:$0xff] }
 0x6a2   :  { %v7098_v35 = vpop.eup %5627  ;;  %v4480_v38 = vmul.f32 %v4458_v58, %v6967_v59  ;;  %v4467_v47 = vsub.f32 1.0, %v4466_v57  ;;  %v7106_v3 = vadd.f32 1.0, %v5626_v28  ;;  %v4732_v59 = vld [vmem:[#allocation13 + $0xd8] sm:$0xff]  ;;  %v4615_v13 = vpop.f32.mrf.mxu2  ;;  %v4677_v57 = vor.u32 1.1754944e-38, %v4676_v26  ;;  %v5218_v9 = vld [vmem:[#allocation17 + $0x68] sm:$0xff] }
 0x6a3   :  { %v4666_v51 = vmul.f32 %v7098_v35, %v7067_v8  ;;  %4972 = vmatpush.msrb.mxu2 %v4732_v59  ;;  %4938 = vmatpush.msra.mxu0 %v5663_v30  ;;  %v4640_v24 = vadd.f32 %v4615_v13, %v342_v46  ;;  %vm4671_vm8 = vweird.f32 %v7098_v35  ;;  %v5137_v30 = vld [vmem:[#allocation16 + $0x8] sm:$0xff]  ;;  %v5136_v13 = vld [vmem:[#allocation16] sm:$0xff] }
 0x6a4   :  { %v7101_v23 = vadd.f32 %v4481_v39, %v4480_v38  ;;  %v4468_v43 = vmul.f32 %v7091_v56, %v4467_v47  ;;  %vm7139_vm10 = vmor %vm4670_vm9, %vm4671_vm8  ;;  %vm4690_vm1 = vweird.f32 %v7106_v3  ;;  %v4694_v59 = vand.u32 2147483647, %v7106_v3 }
 0x6a5   :  { %v4667_v19 = vsub.f32 1.0, %v4666_v51  ;;  %4973 = vmatpush.msrb.mxu2 %v4728_v36  ;;  %v4696_v51 = vand.u32 2147483648, %v7106_v3  ;;  %v5150_v36 = vld [vmem:[#allocation16 + $0x70] sm:$0xff] }
 0x6a6   :  { %5631 = vtanh.f32 %v7101_v23  ;;  %v4469_v62 = vadd.f32 %v7091_v56, %v4468_v43  ;;  %v5630_v21 = vpop.eup %5629  ;;  %v5087_v43 = vld [vmem:[%s7195_s1 + $0x38] sm:$0xff]  ;;  %vm4695_vm3 = vcmp.eq.f32.partialorder %v4694_v59, 8.507059e+37 }
 0x6a7   :  { %v7114_v32 = vadd.f32 1.0, %v5630_v21  ;;  %5633 = vrcp.f32 %v7106_v3  ;;  %4974 = vmatpush.msrb.mxu2 %v4724_v52  ;;  %v4668_v7 = vmul.f32 %v7098_v35, %v4667_v19  ;;  %5125 = vperm.xlu1 %5397, %v5087_v43   ;;  %v5145_v19 = vld [vmem:[#allocation16 + $0x48] sm:$0xff]  ;;  %v5143_v52 = vld [vmem:[#allocation16 + $0x38] sm:$0xff] }
 0x6a8   :  { %v4473_v16 = vsel %vm7116_vm6, %v7091_v56, %v4469_v62  ;;  %v4674_v56 = vand.u32 2147483647, %v7067_v8  ;;  %v4697_v62 = vor.u32 1.1754944e-38, %v4696_v51  ;;  %v5205_v51 = vld [vmem:[#allocation17] sm:$0xff] }
 0x6a9   :  { %5635 = vrcp.f32 %v7114_v32  ;;  %v4478_v55 = vsel %vm4475_vm7, %v4477_v15, %v4473_v16  ;;  %4975 = vmatpush.msrb.mxu2 %v4720_v1  ;;  %v4669_v4 = vadd.f32 %v7098_v35, %v4668_v7  ;;  %v4657_v0 = vand.u32 2147483648, %v7114_v32  ;;  %v5144_v16 = vld [vmem:[#allocation16 + $0x40] sm:$0xff]  ;;  %v5142_v15 = vld [vmem:[#allocation16 + $0x30] sm:$0xff]  ;;  %v5091_v7 = vpop.permute.xlu0 %5090 }
 0x6aa   :  { %5637 = vtanh.f32 %v4640_v24  ;;  %v4655_v14 = vand.u32 2147483647, %v7114_v32  ;;  %vm4651_vm12 = vweird.f32 %v7114_v32  ;;  %vm4675_vm13 = vcmp.eq.f32.partialorder %v4674_v56, 8.507059e+37  ;;  %v5140_v1 = vld [vmem:[#allocation16 + $0x20] sm:$0xff]  ;;  %v5220_v56 = vld [vmem:[#allocation17 + $0x78] sm:$0xff] }
 0x6ab   :  { %4976 = vmatpush.msrb.mxu2 %v4716_v5  ;;  %v4673_v11 = vsel %vm7139_vm10, %v7098_v35, %v4669_v4  ;;  %v4658_v28 = vor.u32 1.1754944e-38, %v4657_v0  ;;  %v5128_v5 = vmul.f32 %v5091_v7, %v6372_v25  ;;  %v5111_v4 = vpop.permute.xlu2 %5110  ;;  %v5216_v0 = vld [vmem:[#allocation17 + $0x58] sm:$0xff] }
 0x6ac   :  { %v5632_v44 = vpop.eup %5631  ;;  %v4678_v58 = vsel %vm4675_vm13, %v4677_v57, %v4673_v11  ;;  %vm4656_vm15 = vcmp.eq.f32.partialorder %v4655_v14, 8.507059e+37  ;;  %v5132_v26 = vmul.f32 %v5111_v4, %v6860_v42  ;;  %v5215_v42 = vld [vmem:[#allocation17 + $0x50] sm:$0xff]  ;;  %v4833_v14 = vld [vmem:[#allocation14] sm:$0xf]  ;;  %v5210_v57 = vld [vmem:[#allocation17 + $0x28] sm:$0xff] }
 0x6ad   :  { %v7126_v6 = vmul.f32 %v5632_v44, %v4478_v55  ;;  %v5634_v50 = vpop.eup %5633  ;;  %4977 = vmatpush.msrb.mxu2 %v4712_v20  ;;  %v4700_v35 = vmul.f32 %v4678_v58, %v7013_v48  ;;  %v5139_v44 = vld [vmem:[#allocation16 + $0x18] sm:$0xff]  ;;  %v5138_v55 = vld [vmem:[#allocation16 + $0x10] sm:$0xff]  ;;  %v5101_v20 = vpop.permute.xlu1 %5100  ;;  %v4835_v11 = vperm.slane %v4833_v14, 0 }
 0x6ae   :  { %v4686_v41 = vmul.f32 %v5634_v50, %v7106_v3  ;;  %vm4691_vm0 = vweird.f32 %v5634_v50  ;;  %v5146_v3 = vld [vmem:[#allocation16 + $0x50] sm:$0xff]  ;;  %v5208_v58 = vld [vmem:[#allocation17 + $0x18] sm:$0xff] }
 0x6af   :  { %4879 = vmatmul.f32.vlgmr.msrb.gmra.mxu1 %v7126_v6  ;;  %4919 = vmatmul.f32.vlgmr.msra.gmra.mxu3 %v7126_v6  ;;  %v5636_v40 = vpop.eup %5635  ;;  %vm4692_vm2 = vmor %vm4690_vm1, %vm4691_vm0 }
 0x6b0   :  { %v4647_v10 = vmul.f32 %v5636_v40, %v7114_v32  ;;  %4978 = vmatpush.msrb.mxu2 %v5664_v54  ;;  %vm4652_vm11 = vweird.f32 %v5636_v40  ;;  %v4687_v61 = vsub.f32 1.0, %v4686_v41  ;;  %v5638_v38 = vpop.eup %5637  ;;  %v5149_v32 = vld [vmem:[#allocation16 + $0x68] sm:$0xff]  ;;  %5225 = vmatpush.msrb.mxu1 %v5220_v56 }
 0x6b1   :  { %vm4653_vm14 = vmor %vm4651_vm12, %vm4652_vm11  ;;  %v5096_v46 = vpop.permute.xlu0 %5095  ;;  %v5214_v54 = vld [vmem:[#allocation17 + $0x48] sm:$0xff] }
 0x6b2   :  { %v4648_v27 = vsub.f32 1.0, %v4647_v10  ;;  %v4688_v39 = vmul.f32 %v5634_v50, %v4687_v61  ;;  %v5209_v61 = vld [vmem:[#allocation17 + $0x20] sm:$0xff] }
 0x6b3   :  { %v5116_v41 = vpop.permute.xlu2 %5115 }
 0x6b4   :  { %v4649_v34 = vmul.f32 %v5636_v40, %v4648_v27  ;;  %v4689_v18 = vadd.f32 %v5634_v50, %v4688_v39  ;;  %v5133_v25 = vmul.f32 %v5116_v41, %v6981_v12  ;;  %v5213_v12 = vld [vmem:[#allocation17 + $0x40] sm:$0xff]  ;;  %v4836_v39 = vperm.slane %v4833_v14, 1 }
 0x6b5   :  { %v5106_v24 = vpop.permute.xlu1 %5105 }
 0x6b6   :  { %v4650_v8 = vadd.f32 %v5636_v40, %v4649_v34  ;;  %v4693_v53 = vsel %vm4692_vm2, %v5634_v50, %v4689_v18  ;;  %v5129_v50 = vmul.f32 %v5096_v46, %v6491_v63  ;;  %v5131_v10 = vmul.f32 %v5106_v24, %v6736_v49  ;;  %v5217_v49 = vld [vmem:[#allocation17 + $0x60] sm:$0xff]  ;;  %v5212_v34 = vld [vmem:[#allocation17 + $0x38] sm:$0xff] }
 0x6b7   :  { %4959 = vmatmul.f32.vlgmr.msra.gmra.mxu1 %v7126_v6  ;;  %4999 = vmatmul.f32.vlgmr.msrb.gmra.mxu3 %v7126_v6  ;;  %v4698_v29 = vsel %vm4695_vm3, %v4697_v62, %v4693_v53  ;;  %v4838_v62 = vperm.slane %v4833_v14, 3 }
 0x6b8   :  { %v4654_v2 = vsel %vm4653_vm14, %v5636_v40, %v4650_v8  ;;  %v5130_v40 = vmul.f32 %v5101_v20, %v6615_v17  ;;  %v5219_v17 = vld [vmem:[#allocation17 + $0x70] sm:$0xff]  ;;  %v7168_v20 = vld [vmem:[%s7202_s8] ss:$0 sm:$0xff] }
 0x6b9   :  { %v4659_v47 = vsel %vm4656_vm15, %v4658_v28, %v4654_v2  ;;  %v5121_v27 = vpop.permute.xlu0 %5120  ;;  %5226 = vmatpush.msrb.mxu1 %v5219_v17 }
 0x6ba   :  { %v4701_v45 = vmul.f32 %v5638_v38, %v4659_v47  ;;  %v5134_v63 = vmul.f32 %v5121_v27, %v7126_v6  ;;  %v5211_v6 = vld [vmem:[#allocation17 + $0x30] sm:$0xff] }
 0x6bb   :  { %5227 = vmatpush.msrb.mxu1 %v5218_v9  ;;  %v5207_v47 = vld [vmem:[#allocation17 + $0x10] sm:$0xff] }
 0x6bc   :  { %v4702_v37 = vadd.f32 %v4701_v45, %v4700_v35  ;;  %v5206_v45 = vld [vmem:[#allocation17 + $0x8] sm:$0xff] }
 0x6bd   :  { %5228 = vmatpush.msrb.mxu1 %v5217_v49 }
 0x6be   :  { %5639 = vtanh.f32 %v4702_v37 }
 0x6bf   :  { %5229 = vmatpush.msrb.mxu1 %v5216_v0 }
 0x6c1   :  { %5230 = vmatpush.msrb.mxu1 %v5215_v42 }
 0x6c3   :  { %5231 = vmatpush.msrb.mxu1 %v5214_v54 }
 0x6c4   :  { %v5640_v48 = vpop.eup %5639 }
 0x6c5   :  { %v4704_v21 = vmul.f32 %v5640_v48, %v4698_v29  ;;  %5232 = vmatpush.msrb.mxu1 %v5213_v12 }
 0x6c7   :  { %4859 = vmatmul.f32.vlgmr.msrb.gmra.mxu0 %v4704_v21  ;;  %4899 = vmatmul.f32.vlgmr.msra.gmra.mxu2 %v4704_v21 }
 0x6c8   :  { %5156 = vmatpush.msrb.mxu0 %v5151_v31  ;;  %5233 = vmatpush.msrb.mxu1 %v5212_v34 }
 0x6ca   :  { %5157 = vmatpush.msrb.mxu0 %v5150_v36  ;;  %5234 = vmatpush.msrb.mxu1 %v5211_v6 }
 0x6cc   :  { %5158 = vmatpush.msrb.mxu0 %v5149_v32  ;;  %5235 = vmatpush.msrb.mxu1 %v5210_v57 }
 0x6ce   :  { %5159 = vmatpush.msrb.mxu0 %v5148_v22  ;;  %5236 = vmatpush.msrb.mxu1 %v5209_v61 }
 0x6cf   :  { %4939 = vmatmul.f32.vlgmr.msra.gmra.mxu0 %v4704_v21  ;;  %4979 = vmatmul.f32.vlgmr.msrb.gmra.mxu2 %v4704_v21 }
 0x6d0   :  { %5160 = vmatpush.msrb.mxu0 %v5147_v33  ;;  %5237 = vmatpush.msrb.mxu1 %v5208_v58 }
 0x6d2   :  { %5161 = vmatpush.msrb.mxu0 %v5146_v3  ;;  %5238 = vmatpush.msrb.mxu1 %v5207_v47 }
 0x6d4   :  { %5162 = vmatpush.msrb.mxu0 %v5145_v19  ;;  %5239 = vmatpush.msrb.mxu1 %v5206_v45  ;;  %v4837_v19 = vperm.slane %v4833_v14, 2 }
 0x6d6   :  { %5163 = vmatpush.msrb.mxu0 %v5144_v16  ;;  %5240 = vmatpush.msrb.mxu1 %v5205_v51 }
 0x6d8   :  { %5164 = vmatpush.msrb.mxu0 %v5143_v52 }
 0x6da   :  { %5165 = vmatpush.msrb.mxu0 %v5142_v15 }
 0x6dc   :  { %5166 = vmatpush.msrb.mxu0 %v5141_v60 }
 0x6de   :  { %5167 = vmatpush.msrb.mxu0 %v5140_v1 }
 0x6e0   :  { %5168 = vmatpush.msrb.mxu0 %v5139_v44 }
 0x6e2   :  { %5169 = vmatpush.msrb.mxu0 %v5138_v55 }
 0x6e4   :  { %5170 = vmatpush.msrb.mxu0 %v5137_v30 }
 0x6e6   :  { %5171 = vmatpush.msrb.mxu0 %v5136_v13 }
 0x6e7   :  { %5172 = vmatmul.f32.vlgmr.msrb.gmra.mxu0 %v5128_v5 }
 0x6ef   :  { %5175 = vmatmul.f32.gmra.mxu0 %v5129_v50 }
 0x6f7   :  { %5178 = vmatmul.f32.gmra.mxu0 %v5130_v40 }
 0x6ff   :  { %5181 = vmatmul.f32.gmra.mxu0 %v5131_v10 }
 0x707   :  { %5184 = vmatmul.f32.gmra.mxu0 %v5132_v26 }
 0x70f   :  { %5187 = vmatmul.f32.gmra.mxu0 %v5133_v25 }
 0x717   :  { %5190 = vmatmul.f32.gmra.mxu0 %v5134_v63 }
 0x72c   :  { %v4880_v2 = vpop.f32.mrf.mxu1 }
 0x732   :  { %v4920_v37 = vpop.f32.mrf.mxu3 }
 0x734   :  { %v4960_v55 = vpop.f32.mrf.mxu1 }
 0x73a   :  { %v5000_v36 = vpop.f32.mrf.mxu3 }
 0x744   :  { %v4860_v8 = vpop.f32.mrf.mxu0 }
 0x745   :  { %v4861_v28 = vadd.f32 %v4860_v8, %v4835_v11 }
 0x747   :  { %v4881_v38 = vadd.f32 %v4880_v2, %v4861_v28 }
 0x749   :  { %v5348_v35 = vmul.f32 -1.442695, %v4881_v38 }
 0x74a   :  { %v4900_v43 = vpop.f32.mrf.mxu2 }
 0x74b   :  { %5641 = vpow2.f32 %v5348_v35  ;;  %v4901_v18 = vadd.f32 %v4900_v43, %v4836_v39 }
 0x74c   :  { %v4940_v16 = vpop.f32.mrf.mxu0 }
 0x74d   :  { %v4921_v59 = vadd.f32 %v4920_v37, %v4901_v18  ;;  %v4941_v60 = vadd.f32 %v4940_v16, %v4837_v19 }
 0x74f   :  { %v5349_v53 = vmul.f32 -1.442695, %v4921_v59  ;;  %v4961_v13 = vadd.f32 %v4960_v55, %v4941_v60  ;;  %v5400_v60 = vld [vmem:[%s7204_s10] ss:$0 sm:$0xff]  ;;  %s5855_s10 = smov [#allocation19]  }
 0x750   :  { %s5278_s6 = sshll.u32 %s5855_s10, 4  ;;  %s5279_s6 = int_to_ptr.vmem [resolvable:$true] %s5278_s6 }
 0x751   :  { %v5642_v48 = vpop.eup %5641  ;;  %5643 = vpow2.f32 %v5349_v53  ;;  %v5126_v53 = vpop.permute.xlu1 %5125 }
 0x752   :  { %v5006_v29 = vadd.f32 1.0, %v5642_v48  ;;  %v4980_v21 = vpop.f32.mrf.mxu2 }
 0x753   :  { %v4981_v31 = vadd.f32 %v4980_v21, %v4838_v62 }
 0x754   :  { %5645 = vrcp.f32 %v5006_v29  ;;  %v5018_v40 = vand.u32 2147483648, %v5006_v29  ;;  %vm5012_vm5 = vweird.f32 %v5006_v29  ;;  %v5016_v10 = vand.u32 2147483647, %v5006_v29 }
 0x755   :  { %v5001_v32 = vadd.f32 %v5000_v36, %v4981_v31 }
 0x756   :  { %v5019_v17 = vor.u32 1.1754944e-38, %v5018_v40  ;;  %vm5017_vm9 = vcmp.eq.f32.partialorder %v5016_v10, 8.507059e+37 }
 0x757   :  { %v5644_v22 = vpop.eup %5643  ;;  %v5350_v33 = vmul.f32 -1.442695, %v5001_v32 }
 0x758   :  { %v5025_v3 = vadd.f32 1.0, %v5644_v22 }
 0x759   :  { %5647 = vpow2.f32 %v5350_v33 }
 0x75a   :  { %v5646_v52 = vpop.eup %5645  ;;  %5649 = vrcp.f32 %v5025_v3  ;;  %v5037_v4 = vand.u32 2147483648, %v5025_v3  ;;  %v5035_v41 = vand.u32 2147483647, %v5025_v3  ;;  %vm5031_vm8 = vweird.f32 %v5025_v3 }
 0x75b   :  { %v5008_v15 = vmul.f32 %v5646_v52, %v5006_v29  ;;  %vm5013_vm4 = vweird.f32 %v5646_v52 }
 0x75c   :  { %vm7170_vm6 = vmor %vm5012_vm5, %vm5013_vm4  ;;  %v5038_v42 = vor.u32 1.1754944e-38, %v5037_v4  ;;  %vm5036_vm11 = vcmp.eq.f32.partialorder %v5035_v41, 8.507059e+37 }
 0x75d   :  { %v5009_v1 = vsub.f32 1.0, %v5008_v15 }
 0x75f   :  { %v5648_v44 = vpop.eup %5647  ;;  %v5010_v30 = vmul.f32 %v5646_v52, %v5009_v1 }
 0x760   :  { %v5650_v7 = vpop.eup %5649  ;;  %v5045_v5 = vadd.f32 1.0, %v5648_v44 }
 0x761   :  { %v5027_v46 = vmul.f32 %v5650_v7, %v5025_v3  ;;  %v5011_v50 = vadd.f32 %v5646_v52, %v5010_v30  ;;  %vm5032_vm7 = vweird.f32 %v5650_v7 }
 0x762   :  { %5651 = vrcp.f32 %v5045_v5  ;;  %vm5033_vm10 = vmor %vm5031_vm8, %vm5032_vm7  ;;  %v5057_v47 = vand.u32 2147483648, %v5045_v5  ;;  %vm5051_vm13 = vweird.f32 %v5045_v5  ;;  %v5055_v35 = vand.u32 2147483647, %v5045_v5 }
 0x763   :  { %v5028_v24 = vsub.f32 1.0, %v5027_v46  ;;  %5653 = vtanh.f32 %v4961_v13  ;;  %v5015_v63 = vsel %vm7170_vm6, %v5646_v52, %v5011_v50 }
 0x764   :  { %v5173_v25 = vpop.f32.mrf.mxu0  ;;  %v5020_v54 = vsel %vm5017_vm9, %v5019_v17, %v5015_v63  ;;  %v5058_v37 = vor.u32 1.1754944e-38, %v5057_v47  ;;  %vm5056_vm15 = vcmp.eq.f32.partialorder %v5055_v35, 8.507059e+37 }
 0x765   :  { %v5029_v27 = vmul.f32 %v5650_v7, %v5028_v24  ;;  %v5174_v56 = vadd.f32 %v7168_v20, %v5173_v25 }
 0x767   :  { %v5030_v9 = vadd.f32 %v5650_v7, %v5029_v27  ;;  %v5197_v49 = vmax.f32 %v5174_v56, 0.0 }
 0x768   :  { %v5652_v0 = vpop.eup %5651 }
 0x769   :  { %v5034_v12 = vsel %vm5033_vm10, %v5650_v7, %v5030_v9  ;;  %v5047_v34 = vmul.f32 %v5652_v0, %v5045_v5  ;;  %5241 = vmatmul.f32.vlgmr.msrb.gmra.mxu1 %v5197_v49  ;;  %v5654_v14 = vpop.eup %5653  ;;  %vm5052_vm12 = vweird.f32 %v5652_v0 }
 0x76a   :  { %v5039_v6 = vsel %vm5036_vm11, %v5038_v42, %v5034_v12  ;;  %v5062_v57 = vmul.f32 %v5654_v14, %v5020_v54  ;;  %vm5053_vm14 = vmor %vm5051_vm13, %vm5052_vm12 }
 0x76b   :  { %v5061_v11 = vmul.f32 %v5039_v6, %v7101_v23  ;;  %v5048_v61 = vsub.f32 1.0, %v5047_v34 }
 0x76c   :  { %v5176_v8 = vpop.f32.mrf.mxu0 }
 0x76d   :  { %v5063_v28 = vadd.f32 %v5062_v57, %v5061_v11  ;;  %v5177_v58 = vadd.f32 %v7168_v20, %v5176_v8  ;;  %v5049_v2 = vmul.f32 %v5652_v0, %v5048_v61 }
 0x76f   :  { %5655 = vtanh.f32 %v5063_v28  ;;  %v5198_v38 = vmax.f32 %v5177_v58, 0.0  ;;  %v5050_v39 = vadd.f32 %v5652_v0, %v5049_v2 }
 0x771   :  { %5244 = vmatmul.f32.gmra.mxu1 %v5198_v38  ;;  %v5054_v45 = vsel %vm5053_vm14, %v5652_v0, %v5050_v39 }
 0x772   :  { %v5059_v51 = vsel %vm5056_vm15, %v5058_v37, %v5054_v45 }
 0x774   :  { %v5179_v43 = vpop.f32.mrf.mxu0 }
 0x775   :  { %v5656_v23 = vpop.eup %5655  ;;  %v5180_v18 = vadd.f32 %v7168_v20, %v5179_v43 }
 0x776   :  { %v5065_v59 = vmul.f32 %v5656_v23, %v5059_v51 }
 0x777   :  { %v5199_v62 = vmax.f32 %v5180_v18, 0.0 }
 0x778   :  { %v5135_v48 = vmul.f32 %v5126_v53, %v5065_v59 }
 0x779   :  { %5247 = vmatmul.f32.gmra.mxu1 %v5199_v62 }
 0x77a   :  { %5193 = vmatmul.f32.gmra.mxu0 %v5135_v48 }
 0x77c   :  { %v5182_v29 = vpop.f32.mrf.mxu0 }
 0x77d   :  { %v5183_v21 = vadd.f32 %v7168_v20, %v5182_v29 }
 0x77f   :  { %v5200_v31 = vmax.f32 %v5183_v21, 0.0 }
 0x781   :  { %5250 = vmatmul.f32.gmra.mxu1 %v5200_v31 }
 0x784   :  { %v5185_v36 = vpop.f32.mrf.mxu0 }
 0x785   :  { %v5186_v32 = vadd.f32 %v7168_v20, %v5185_v36 }
 0x787   :  { %v5201_v22 = vmax.f32 %v5186_v32, 0.0 }
 0x789   :  { %5253 = vmatmul.f32.gmra.mxu1 %v5201_v22 }
 0x78c   :  { %v5188_v33 = vpop.f32.mrf.mxu0 }
 0x78d   :  { %v5189_v3 = vadd.f32 %v7168_v20, %v5188_v33 }
 0x78f   :  { %v5202_v19 = vmax.f32 %v5189_v3, 0.0 }
 0x791   :  { %5256 = vmatmul.f32.gmra.mxu1 %v5202_v19 }
 0x794   :  { %v5191_v16 = vpop.f32.mrf.mxu0 }
 0x795   :  { %v5192_v52 = vadd.f32 %v7168_v20, %v5191_v16 }
 0x797   :  { %v5203_v15 = vmax.f32 %v5192_v52, 0.0 }
 0x799   :  { %5259 = vmatmul.f32.gmra.mxu1 %v5203_v15 }
 0x7e6   :  { %v5242_v1 = vpop.f32.mrf.mxu1 }
 0x7e7   :  { %v5243_v44 = vadd.f32 %v5400_v60, %v5242_v1 }
 0x7e9   :  { %5266 = vst [vmem:[#allocation19] sm:$0xff] %v5243_v44 }
 0x7ee   :  { %v5245_v55 = vpop.f32.mrf.mxu1 }
 0x7ef   :  { %v5246_v30 = vadd.f32 %v5400_v60, %v5245_v55 }
 0x7f1   :  { %5267 = vst [vmem:[#allocation19 + $0x8] sm:$0xff] %v5246_v30 }
 0x7f6   :  { %v5248_v7 = vpop.f32.mrf.mxu1 }
 0x7f7   :  { %v5249_v13 = vadd.f32 %v5400_v60, %v5248_v7  ;;  %v5194_v5 = vpop.f32.mrf.mxu0 }
 0x7f8   :  { %v5195_v46 = vadd.f32 %v7168_v20, %v5194_v5 }
 0x7f9   :  { %5268 = vst [vmem:[#allocation19 + $0x10] sm:$0xff] %v5249_v13 }
 0x7fa   :  { %v5204_v50 = vmax.f32 %v5195_v46, 0.0 }
 0x7fc   :  { %5262 = vmatmul.f32.gmra.mxu1 %v5204_v50 }
 0x7fe   :  { %v5251_v40 = vpop.f32.mrf.mxu1 }
 0x7ff   :  { %v5252_v24 = vadd.f32 %v5400_v60, %v5251_v40 }
 0x801   :  { %5269 = vst [vmem:[#allocation19 + $0x18] sm:$0xff] %v5252_v24 }
 0x806   :  { %v5254_v10 = vpop.f32.mrf.mxu1 }
 0x807   :  { %v5255_v4 = vadd.f32 %v5400_v60, %v5254_v10 }
 0x809   :  { %5270 = vst [vmem:[#allocation19 + $0x20] sm:$0xff] %v5255_v4 }
 0x80e   :  { %v5257_v26 = vpop.f32.mrf.mxu1 }
 0x80f   :  { %v5258_v41 = vadd.f32 %v5400_v60, %v5257_v26 }
 0x811   :  { %5271 = vst [vmem:[#allocation19 + $0x28] sm:$0xff] %v5258_v41 }
 0x816   :  { %v5260_v25 = vpop.f32.mrf.mxu1 }
 0x817   :  { %v5261_v27 = vadd.f32 %v5400_v60, %v5260_v25 }
 0x819   :  { %5272 = vst [vmem:[#allocation19 + $0x30] sm:$0xff] %v5261_v27 }
 0x879   :  { %v5263_v20 = vpop.f32.mrf.mxu1 }
 0x87a   :  { %v5264_v63 = vadd.f32 %v5400_v60, %v5263_v20 }
 0x87c   :  { %5273 = vst [vmem:[#allocation19 + $0x38] sm:$0xff] %v5264_v63 }
 0x87d   :  { %5286 = dma.vmem_to_hbm [thread:$0]  %s5279_s6, 1024, %s5281_s19, [#allocation10], %s5850_s24, %s5850_s24, %s5851_s27  }
 0x87e   :  { %5841 = dma.done.wait [#allocation10], 1024  }
 0x87f   :  { %5842 = vsyncadd [#allocation10], 4294966272 }
 0x880   :  { %5291 = vsyncpa [#allocation9], 1 }
 0x881   :  { %5292 = vsyncpa [#allocation12], 1 }
 0x882   :  { %5293 = vsyncpa [#allocation15], 1 }
 0x883   :  { %5294 = vsyncpa [#allocation18], 1 }
 0x884   :  { %5295 = vsyncpa [#allocation10], 1 }

</bundles_post_ra>
